<compile_context>
chip_gen: v7x
topology: tpu7x:2x2x1
jax: 0.10.0
libtpu: 0.0.40
codegen_flags: <defaults>
</compile_context>

<pallas_src>
import functools

import numpy as np
import jax
import jax.numpy as jnp
from jax.experimental import pallas as pl
from jax.experimental.pallas import tpu as pltpu

_EPS = float(jnp.finfo(jnp.float32).eps)   # F.rms_norm default eps for float32
_MASK_VALUE = -1e30
# Proven-safe scoped VMEM limit.  On v5e/v6e (128 MiB physical) this can be
# raised (64-96 MiB) to allow 256-512-row tiles and resident weights at large
# D; on v7x (64 MiB physical) keep it <= ~48 MiB and single-buffer the
# constant-index weight slabs (or tile the 4D MLP hidden dim) at large D.
_VMEM_LIMIT = 32 * 1024 * 1024


def _rms_norm(x):
    ms = jnp.mean(jnp.square(x), axis=-1, keepdims=True)
    return x * jax.lax.rsqrt(ms + _EPS)


# ---------------------------------------------------------------------------
# Kernel 1: lambda mixing + norm + fused QKV projection + per-head norm/rotary
# ---------------------------------------------------------------------------
def _qkv_kernel(lam_ref, x_ref, x0_ref, vi_ref, wqkv_ref, cos_ref, sin_ref,
                xmix_ref, q_ref, k_ref, v_ref, *, num_heads, head_dim):
    hd = head_dim
    half = hd // 2
    D = x_ref.shape[-1]
    sm_scale = 1.0 / (hd ** 0.5)   # folded into q so attention's loop is clean

    lam0, lam1 = lam_ref[0, 0], lam_ref[0, 1]      # Block.lambdas
    la0, la1 = lam_ref[0, 2], lam_ref[0, 3]        # CausalSelfAttention.lambdas

    # x = lambdas[0] * x + lambdas[1] * x0   (f32; also the attention residual)
    x = lam0 * x_ref[...] + lam1 * x0_ref[...]
    xmix_ref[...] = x

    # Fused q/k/v projection: bf16 operands, f32 accumulation on the MXU.
    xn = _rms_norm(x).astype(jnp.bfloat16)
    qkv = jnp.dot(xn, wqkv_ref[...], preferred_element_type=jnp.float32)

    # v = lambdas[0] * v + lambdas[1] * vi   (elementwise in f32)
    v = la0 * qkv[:, 2 * D:] + la1 * vi_ref[...]
    v_ref[...] = v.astype(v_ref.dtype)

    cos = cos_ref[...]          # (tr, hd): [cos | cos]
    sin = sin_ref[...]          # (tr, hd): [sin | -sin]

    # Per-head rms-norm + rotary.  rotate_half(t) == roll(t, hd/2), so rope is
    # two full-lane-width FMAs + one XLU roll.  The softmax scale multiplies
    # q's (tr, 1) normalization column — effectively free here, and it removes
    # a (tq, tk) multiply per head per KV tile from the attention hot loop.
    for h in range(num_heads):                      # static unroll over heads
        out_sl = slice(h * hd, (h + 1) * hd)
        qh = qkv[:, h * hd:(h + 1) * hd]
        kh = qkv[:, D + h * hd:D + (h + 1) * hd]
        q_norm = jax.lax.rsqrt(
            jnp.mean(jnp.square(qh), axis=-1, keepdims=True) + _EPS) * sm_scale
        qh = qh * q_norm
        kh = _rms_norm(kh)
        q_ref[:, out_sl] = (qh * cos + pltpu.roll(qh, half, 1) * sin).astype(
            q_ref.dtype)
        k_ref[:, out_sl] = (kh * cos + pltpu.roll(kh, half, 1) * sin).astype(
            k_ref.dtype)


# ---------------------------------------------------------------------------
# Kernel 2: flash-style causal attention over a lower-triangular tile schedule
# ---------------------------------------------------------------------------
def _flash_attn_kernel(qi_ref, ki_ref, q_ref, k_ref, v_ref, o_ref,
                       acc_ref, m_ref, l_ref, *, num_heads, head_dim):
    step = pl.program_id(0)
    qi = qi_ref[step]
    ki = ki_ref[step]
    hd = head_dim
    tq = q_ref.shape[0]
    tk = k_ref.shape[0]
    diag = ki == qi          # last (and only masked) KV tile of this query row

    @pl.when(ki == 0)
    def _init():
        acc_ref[...] = jnp.zeros(acc_ref.shape, acc_ref.dtype)
        m_ref[...] = jnp.full(m_ref.shape, _MASK_VALUE, m_ref.dtype)
        l_ref[...] = jnp.zeros(l_ref.shape, l_ref.dtype)

    def attend(bias):
        for h in range(num_heads):                  # static unroll over heads
            sl = slice(h * hd, (h + 1) * hd)
            # q @ k^T without an explicit transpose; softmax scale already in q.
            s = jax.lax.dot_general(
                q_ref[:, sl], k_ref[:, sl], (((1,), (1,)), ((), ())),
                preferred_element_type=jnp.float32)
            if bias is not None:
                s = s + bias
            # m/l are lane-dense: each head's (tq, hd) slab holds the per-row
            # statistic broadcast across all lanes -> unmasked full-lane vst.
            m_prev = m_ref[:, sl]                           # (tq, hd)
            s_max = jnp.max(s, axis=-1, keepdims=True)      # (tq, 1)
            m_new = jnp.maximum(m_prev, s_max)              # (tq, hd)
            alpha = jnp.exp(m_prev - m_new)                 # (tq, hd)
            p = jnp.exp(s - m_new[:, :1])                   # (tq, tk)
            l_ref[:, sl] = alpha * l_ref[:, sl] + jnp.sum(p, axis=-1,
                                                          keepdims=True)
            pv = jnp.dot(p.astype(jnp.bfloat16), v_ref[:, sl],
                         preferred_element_type=jnp.float32)
            acc_ref[:, sl] = alpha * acc_ref[:, sl] + pv
            m_ref[:, sl] = m_new

    # Interior tiles are strictly below the diagonal: unmasked fast path (no
    # iotas / compares / selects in the steady-state inner loop).
    @pl.when(jnp.logical_not(diag))
    def _interior():
        attend(None)

    # Diagonal tile: build the (local) causal mask, then finalize this row.
    @pl.when(diag)
    def _diag_and_finalize():
        # ki == qi and tq == tk, so the block offsets cancel -> local iotas.
        r = jax.lax.broadcasted_iota(jnp.int32, (tq, tk), 0)
        c = jax.lax.broadcasted_iota(jnp.int32, (tq, tk), 1)
        attend(jnp.where(r >= c, 0.0, _MASK_VALUE))
        # Single deferred, full-lane normalization (approx recip -> EUP slot).
        inv_l = pl.reciprocal(l_ref[...], approx=True)
        o_ref[...] = (acc_ref[...] * inv_l).astype(o_ref.dtype)


# ---------------------------------------------------------------------------
# Kernel 3: attention output projection + residual + squared-ReLU MLP
# ---------------------------------------------------------------------------
def _proj_mlp_kernel(xmix_ref, y_ref, wo_ref, wfc_ref, wproj_ref, out_ref):
    # x = x + attn_out
    x = xmix_ref[...] + jnp.dot(y_ref[...], wo_ref[...],
                                preferred_element_type=jnp.float32)
    # x = x + c_proj(relu(c_fc(norm(x)))^2)
    xn = _rms_norm(x).astype(jnp.bfloat16)
    h = jnp.dot(xn, wfc_ref[...], preferred_element_type=jnp.float32)
    h = jnp.square(jnp.maximum(h, 0.0)).astype(jnp.bfloat16)
    mlp = jnp.dot(h, wproj_ref[...], preferred_element_type=jnp.float32)
    out_ref[...] = (x + mlp).astype(out_ref.dtype)


# ---------------------------------------------------------------------------
# Host-side wrappers
# ---------------------------------------------------------------------------
def _rotary_tables(seq_len, head_dim, base=10000.0):
    inv_freq = (1.0 / base) ** (
        jnp.arange(0, head_dim, 2, dtype=jnp.float32) / head_dim)
    t = jnp.arange(seq_len, dtype=jnp.float32)
    freqs = jnp.outer(t, inv_freq)                  # (T, head_dim // 2)
    return jnp.cos(freqs), jnp.sin(freqs)


def _triangular_schedule(nq):
    """Flat lower-triangular (qi, ki) schedule, row-major over query tiles."""
    qi, ki = [], []
    for q in range(nq):
        for k in range(q + 1):
            qi.append(q)
            ki.append(k)
    return (jnp.asarray(np.array(qi, dtype=np.int32)),
            jnp.asarray(np.array(ki, dtype=np.int32)))


def prepare_params(torch_params, seq_len, num_heads):
    """One-time conversion outside the hot path: torch (out,in) weights ->
    fused bf16 (in,out) matmul slabs, packed lambda scalars, and full-width
    rotary tables with the rotate-half sign folded in."""
    wq, wk, wv = torch_params["wq"], torch_params["wk"], torch_params["wv"]
    D = wq.shape[0]
    hd = D // num_heads
    cos, sin = _rotary_tables(seq_len, hd)
    return {
        "wqkv": jnp.concatenate([wq.T, wk.T, wv.T], axis=1).astype(jnp.bfloat16),
        "wo": torch_params["wo"].T.astype(jnp.bfloat16),
        "wfc": torch_params["w_fc"].T.astype(jnp.bfloat16),
        "wproj": torch_params["w_mlp_proj"].T.astype(jnp.bfloat16),
        "lambdas": jnp.concatenate(
            [torch_params["block_lambdas"], torch_params["attn_lambdas"]]
        ).astype(jnp.float32).reshape(1, 4),
        "rope_cos": jnp.concatenate([cos, cos], axis=-1),      # (T, hd)
        "rope_sin": jnp.concatenate([sin, -sin], axis=-1),     # (T, hd)
    }


def block_forward(x, vi, x0, params, *, num_heads, tq=128, tk=128, tr=128):
    """x, vi, x0: (1, T, D) float32.  params: output of prepare_params.

    tq/tk: attention tile sizes (use 256 on v6e/v7x to fill the 256-wide MXU).
    tr:    row tile for the QKV and proj/MLP kernels (raise to 256-512 on
           v5e/v6e together with _VMEM_LIMIT).
    """
    B, T, D = x.shape
    assert B == 1, "Must use batch size = 1 (FlexAttention convention)"
    assert tq == tk, "diagonal-tile masking assumes square attention tiles"
    assert T % tq == 0 and T % tr == 0
    hd = D // num_heads
    nq = T // tq
    nr = T // tr
    f32, bf16 = jnp.float32, jnp.bfloat16

    lam_spec = pl.BlockSpec((1, 4), lambda i: (0, 0),
                            memory_space=pltpu.MemorySpace.SMEM)
    row_f32 = pl.BlockSpec((tr, D), lambda i: (i, 0))
    row_bf16 = pl.BlockSpec((tr, D), lambda i: (i, 0))
    rope_spec = pl.BlockSpec((tr, hd), lambda i: (i, 0))

    # --- 1) lambda mix + fused QKV + per-head norm/rotary (scale folded in) --
    xmix, q, k, v = pl.pallas_call(
        functools.partial(_qkv_kernel, num_heads=num_heads, head_dim=hd),
        grid=(nr,),
        in_specs=[lam_spec, row_f32, row_f32, row_f32,
                  pl.BlockSpec((D, 3 * D), lambda i: (0, 0)),   # resident weight
                  rope_spec, rope_spec],
        out_specs=[row_f32, row_bf16, row_bf16, row_bf16],
        out_shape=[jax.ShapeDtypeStruct((T, D), f32)] +
                  [jax.ShapeDtypeStruct((T, D), bf16)] * 3,
        compiler_params=pltpu.CompilerParams(
            dimension_semantics=("parallel",),
            vmem_limit_bytes=_VMEM_LIMIT),
    )(params["lambdas"], x[0], x0[0], vi[0], params["wqkv"],
      params["rope_cos"], params["rope_sin"])

    # --- 2) flash attention over the lower-triangular (q_tile, kv_tile) set --
    # Flat 1-D grid of nq*(nq+1)/2 steps; (qi, ki) come from scalar-prefetched
    # schedule arrays, so no grid step is spent above the diagonal and every
    # output row is finalized / written back right after its diagonal tile.
    qi_sched, ki_sched = _triangular_schedule(nq)
    n_steps = int(qi_sched.shape[0])

    grid_spec = pltpu.PrefetchScalarGridSpec(
        num_scalar_prefetch=2,
        grid=(n_steps,),
        in_specs=[pl.BlockSpec((tq, D), lambda s, qs, ks: (qs[s], 0)),
                  pl.BlockSpec((tk, D), lambda s, qs, ks: (ks[s], 0)),
                  pl.BlockSpec((tk, D), lambda s, qs, ks: (ks[s], 0))],
        out_specs=pl.BlockSpec((tq, D), lambda s, qs, ks: (qs[s], 0)),
        scratch_shapes=[pltpu.VMEM((tq, D), f32),     # acc
                        pltpu.VMEM((tq, D), f32),     # m (lane-dense per head)
                        pltpu.VMEM((tq, D), f32)])    # l (lane-dense per head)

    y = pl.pallas_call(
        functools.partial(_flash_attn_kernel, num_heads=num_heads, head_dim=hd),
        grid_spec=grid_spec,
        out_shape=jax.ShapeDtypeStruct((T, D), bf16),
        compiler_params=pltpu.CompilerParams(
            # The flat triangular axis carries the online-softmax accumulator,
            # so it must stay "arbitrary".  NOTE: on v7x megacore, a leading
            # parallel axis splitting the schedule (pairing row i with nq-1-i)
            # would balance the triangular work across the 2 TensorCores.
            dimension_semantics=("arbitrary",),
            vmem_limit_bytes=_VMEM_LIMIT),
    )(qi_sched, ki_sched, q, k, v)

    # --- 3) output projection + residual + MLP -------------------------------
    out = pl.pallas_call(
        _proj_mlp_kernel,
        grid=(nr,),
        in_specs=[row_f32, row_bf16,
                  pl.BlockSpec((D, D), lambda i: (0, 0)),
                  pl.BlockSpec((D, 4 * D), lambda i: (0, 0)),
                  pl.BlockSpec((4 * D, D), lambda i: (0, 0))],
        out_specs=row_f32,
        out_shape=jax.ShapeDtypeStruct((T, D), f32),
        input_output_aliases={0: 0},          # reuse x_mix's HBM buffer
        compiler_params=pltpu.CompilerParams(
            dimension_semantics=("parallel",),
            vmem_limit_bytes=_VMEM_LIMIT),
    )(xmix, y, params["wo"], params["wfc"], params["wproj"])

    return out[None]


def block_forward_ref(x, vi, x0, torch_params, *, num_heads):
    """Pure-JAX f32 reference mirroring the PyTorch forward (for validation)."""
    B, T, D = x.shape
    H = num_heads
    hd = D // H
    cos, sin = _rotary_tables(T, hd)

    def rn(t):
        return t * jax.lax.rsqrt(jnp.mean(t * t, axis=-1, keepdims=True) + _EPS)

    lb = torch_params["block_lambdas"]
    la = torch_params["attn_lambdas"]
    xx = lb[0] * x + lb[1] * x0

    xn = rn(xx)
    q = xn @ torch_params["wq"].T
    k = xn @ torch_params["wk"].T
    v = xn @ torch_params["wv"].T
    v = la[0] * v + la[1] * vi
    q = rn(q.reshape(B, T, H, hd))
    k = rn(k.reshape(B, T, H, hd))
    v = v.reshape(B, T, H, hd)

    def rope(t):
        t1, t2 = t[..., :hd // 2], t[..., hd // 2:]
        c = cos[None, :, None, :]
        s = sin[None, :, None, :]
        return jnp.concatenate([t1 * c + t2 * s, -t1 * s + t2 * c], axis=-1)

    q, k = rope(q), rope(k)
    s = jnp.einsum("bthd,bshd->bhts", q, k) / (hd ** 0.5)
    mask = jnp.tril(jnp.ones((T, T), bool))
    s = jnp.where(mask[None, None], s, -jnp.inf)
    p = jax.nn.softmax(s, axis=-1)
    y = jnp.einsum("bhts,bshd->bthd", p, v).reshape(B, T, D)
    xx = xx + y @ torch_params["wo"].T

    xn2 = rn(xx)
    h = jnp.square(jax.nn.relu(xn2 @ torch_params["w_fc"].T))
    return xx + h @ torch_params["w_mlp_proj"].T


if __name__ == "__main__":
    # Small but TPU-tile-friendly shapes: head_dim = 128 keeps head slices
    # 128-lane aligned; two 128-row tiles exercise the triangular flash grid
    # (3 steps) and the row-tiled QKV / MLP pipelines (2 steps each).
    B, T, D, H = 1, 256, 256, 2

    key = jax.random.PRNGKey(0)
    ks = jax.random.split(key, 9)
    x = jax.random.normal(ks[0], (B, T, D), jnp.float32)
    vi = jax.random.normal(ks[1], (B, T, D), jnp.float32)
    x0 = jax.random.normal(ks[2], (B, T, D), jnp.float32)

    # Deterministic synthetic weights (torch layout: (out_features, in_features)).
    # Note: the PyTorch __init__ zero-inits the c_proj weights; we use small
    # random values instead so the projection matmuls exercise real compute.
    w_scale = 0.05
    torch_params = {
        "wq": w_scale * jax.random.normal(ks[3], (D, D), jnp.float32),
        "wk": w_scale * jax.random.normal(ks[4], (D, D), jnp.float32),
        "wv": w_scale * jax.random.normal(ks[5], (D, D), jnp.float32),
        "wo": w_scale * jax.random.normal(ks[6], (D, D), jnp.float32),
        "w_fc": w_scale * jax.random.normal(ks[7], (4 * D, D), jnp.float32),
        "w_mlp_proj": w_scale * jax.random.normal(ks[8], (D, 4 * D), jnp.float32),
        "attn_lambdas": jnp.array([0.5, 0.5], jnp.float32),   # as in __init__
        "block_lambdas": jnp.array([1.0, 0.0], jnp.float32),  # as in __init__
    }

    params = prepare_params(torch_params, T, H)   # once, outside the hot path
    fwd = jax.jit(functools.partial(block_forward, num_heads=H))

    out = jax.block_until_ready(fwd(x, vi, x0, params))
    ref = block_forward_ref(x, vi, x0, torch_params, num_heads=H)

    assert out.shape == (B, T, D)
    err = float(jnp.max(jnp.abs(out - ref)))
    # bf16 matmul operands (f32 accumulation) vs. an all-f32 reference.
    assert jnp.allclose(out, ref, rtol=5e-2, atol=5e-2), err
    print("KERNEL_OK")
</pallas_src>

<mosaic_0001>
module attributes {stable_mosaic.version = 11 : i64} {
  func.func @_flash_attn_kernel(%arg0: i32, %arg1: memref<3xi32, #tpu.memory_space<smem>>, %arg2: memref<3xi32, #tpu.memory_space<smem>>, %arg3: memref<128x256xbf16, #tpu.memory_space<vmem>>, %arg4: memref<128x256xbf16, #tpu.memory_space<vmem>>, %arg5: memref<128x256xbf16, #tpu.memory_space<vmem>>, %arg6: memref<128x256xbf16, #tpu.memory_space<vmem>>, %arg7: memref<128x256xf32, #tpu.memory_space<vmem>>, %arg8: memref<128x256xf32, #tpu.memory_space<vmem>>, %arg9: memref<128x256xf32, #tpu.memory_space<vmem>>) attributes {dimension_semantics = [#tpu.dimension_semantics<arbitrary>], iteration_bounds = array<i64: 3>, scalar_prefetch = 2 : i64, scratch_operands = 3 : i64, tpu.core_type = #tpu.core_type<tc>, window_params = [{transform_indices = @transform_0, window_bounds = array<i64: 128, 256>}, {transform_indices = @transform_1, window_bounds = array<i64: 128, 256>}, {transform_indices = @transform_2, window_bounds = array<i64: 128, 256>}, {transform_indices = @transform_3, window_bounds = array<i64: 128, 256>}]} {
    %0 = arith.index_cast %arg0 : i32 to index
    %1 = memref.load %arg1[%0] : memref<3xi32, #tpu.memory_space<smem>>
    %2 = arith.index_cast %arg0 : i32 to index
    %3 = memref.load %arg2[%2] : memref<3xi32, #tpu.memory_space<smem>>
    %4 = arith.cmpi eq, %3, %1 : i32
    %c0_i32 = arith.constant 0 : i32
    %5 = arith.cmpi eq, %3, %c0_i32 : i32
    %6 = arith.extui %5 : i1 to i32
    %c0_i32_0 = arith.constant 0 : i32
    %7 = arith.cmpi ne, %6, %c0_i32_0 : i32
    scf.if %7 {
      %cst = arith.constant 0.000000e+00 : f32
      %13 = vector.broadcast %cst : f32 to vector<128x256xf32>
      %c0 = arith.constant 0 : index
      %c0_3 = arith.constant 0 : index
      %14 = vector.load %arg7[%c0, %c0_3] : memref<128x256xf32, #tpu.memory_space<vmem>>, vector<128x256xf32>
      tpu.vector_store %arg7[%c0, %c0_3], %13 {strides = array<i32>} : memref<128x256xf32, #tpu.memory_space<vmem>>, vector<128x256xf32>,
      %cst_4 = arith.constant -1.000000e+30 : f32
      %15 = vector.broadcast %cst_4 : f32 to vector<128x256xf32>
      %c0_5 = arith.constant 0 : index
      %c0_6 = arith.constant 0 : index
      %16 = vector.load %arg8[%c0_5, %c0_6] : memref<128x256xf32, #tpu.memory_space<vmem>>, vector<128x256xf32>
      tpu.vector_store %arg8[%c0_5, %c0_6], %15 {strides = array<i32>} : memref<128x256xf32, #tpu.memory_space<vmem>>, vector<128x256xf32>,
      %cst_7 = arith.constant 0.000000e+00 : f32
      %17 = vector.broadcast %cst_7 : f32 to vector<128x256xf32>
      %c0_8 = arith.constant 0 : index
      %c0_9 = arith.constant 0 : index
      %18 = vector.load %arg9[%c0_8, %c0_9] : memref<128x256xf32, #tpu.memory_space<vmem>>, vector<128x256xf32>
      tpu.vector_store %arg9[%c0_8, %c0_9], %17 {strides = array<i32>} : memref<128x256xf32, #tpu.memory_space<vmem>>, vector<128x256xf32>,
    } else {
    }
    %true = arith.constant true
    %8 = arith.xori %4, %true : i1
    %9 = arith.extui %8 : i1 to i32
    %c0_i32_1 = arith.constant 0 : i32
    %10 = arith.cmpi ne, %9, %c0_i32_1 : i32
    scf.if %10 {
      %c0 = arith.constant 0 : index
      %c0_3 = arith.constant 0 : index
      %13 = vector.load %arg3[%c0, %c0_3] : memref<128x256xbf16, #tpu.memory_space<vmem>>, vector<128x128xbf16>
      %c0_4 = arith.constant 0 : index
      %c0_5 = arith.constant 0 : index
      %14 = vector.load %arg4[%c0_4, %c0_5] : memref<128x256xbf16, #tpu.memory_space<vmem>>, vector<128x128xbf16>
      %cst = arith.constant dense<0.000000e+00> : vector<128x128xf32>
      %15 = tpu.matmul %13, %14, %cst {dimension_numbers = #tpu.dot_dimension_numbers<[1], [1], [0], [0], [0, 0, 1, 0], [], []>} : vector<128x128xbf16>, vector<128x128xbf16>, vector<128x128xf32> -> vector<128x128xf32>
      %c0_6 = arith.constant 0 : index
      %c0_7 = arith.constant 0 : index
      %16 = vector.load %arg8[%c0_6, %c0_7] : memref<128x256xf32, #tpu.memory_space<vmem>>, vector<128x128xf32>
      %cst_8 = arith.constant dense<0xFF800000> : vector<128xf32>
      %17 = vector.multi_reduction <maximumf>, %15, %cst_8 [1] : vector<128x128xf32> to vector<128xf32>
      %18 = vector.shape_cast %17 : vector<128xf32> to vector<128x1xf32>
      %19 = vector.broadcast %18 : vector<128x1xf32> to vector<128x128xf32>
      %20 = arith.maximumf %16, %19 : vector<128x128xf32>
      %21 = arith.subf %16, %20 : vector<128x128xf32>
      %22 = math.exp %21 : vector<128x128xf32>
      %23 = vector.extract_strided_slice %20 {offsets = [0, 0], sizes = [128, 1], strides = [1, 1]} : vector<128x128xf32> to vector<128x1xf32>
      %24 = vector.broadcast %23 : vector<128x1xf32> to vector<128x128xf32>
      %25 = arith.subf %15, %24 : vector<128x128xf32>
      %26 = math.exp %25 : vector<128x128xf32>
      %c0_9 = arith.constant 0 : index
      %c0_10 = arith.constant 0 : index
      %27 = vector.load %arg9[%c0_9, %c0_10] : memref<128x256xf32, #tpu.memory_space<vmem>>, vector<128x128xf32>
      %28 = arith.mulf %22, %27 : vector<128x128xf32>
      %cst_11 = arith.constant dense<0.000000e+00> : vector<128xf32>
      %29 = vector.multi_reduction <add>, %26, %cst_11 [1] : vector<128x128xf32> to vector<128xf32>
      %30 = vector.shape_cast %29 : vector<128xf32> to vector<128x1xf32>
      %31 = vector.broadcast %30 : vector<128x1xf32> to vector<128x128xf32>
      %32 = arith.addf %28, %31 : vector<128x128xf32>
      %c0_12 = arith.constant 0 : index
      %c0_13 = arith.constant 0 : index
      %33 = vector.load %arg9[%c0_12, %c0_13] : memref<128x256xf32, #tpu.memory_space<vmem>>, vector<128x128xf32>
      tpu.vector_store %arg9[%c0_12, %c0_13], %32 {strides = array<i32>} : memref<128x256xf32, #tpu.memory_space<vmem>>, vector<128x128xf32>,
      %34 = arith.truncf %26 : vector<128x128xf32> to vector<128x128xbf16>
      %c0_14 = arith.constant 0 : index
      %c0_15 = arith.constant 0 : index
      %35 = vector.load %arg5[%c0_14, %c0_15] : memref<128x256xbf16, #tpu.memory_space<vmem>>, vector<128x128xbf16>
      %cst_16 = arith.constant dense<0.000000e+00> : vector<128x128xf32>
      %36 = tpu.matmul %34, %35, %cst_16 {dimension_numbers = #tpu.dot_dimension_numbers<[1], [0], [0], [1], [0, 0, 1, 1], [], []>} : vector<128x128xbf16>, vector<128x128xbf16>, vector<128x128xf32> -> vector<128x128xf32>
      %c0_17 = arith.constant 0 : index
      %c0_18 = arith.constant 0 : index
      %37 = vector.load %arg7[%c0_17, %c0_18] : memref<128x256xf32, #tpu.memory_space<vmem>>, vector<128x128xf32>
      %38 = arith.mulf %22, %37 : vector<128x128xf32>
      %39 = arith.addf %38, %36 : vector<128x128xf32>
      %c0_19 = arith.constant 0 : index
      %c0_20 = arith.constant 0 : index
      %40 = vector.load %arg7[%c0_19, %c0_20] : memref<128x256xf32, #tpu.memory_space<vmem>>, vector<128x128xf32>
      tpu.vector_store %arg7[%c0_19, %c0_20], %39 {strides = array<i32>} : memref<128x256xf32, #tpu.memory_space<vmem>>, vector<128x128xf32>,
      %c0_21 = arith.constant 0 : index
      %c0_22 = arith.constant 0 : index
      %41 = vector.load %arg8[%c0_21, %c0_22] : memref<128x256xf32, #tpu.memory_space<vmem>>, vector<128x128xf32>
      tpu.vector_store %arg8[%c0_21, %c0_22], %20 {strides = array<i32>} : memref<128x256xf32, #tpu.memory_space<vmem>>, vector<128x128xf32>,
      %c0_23 = arith.constant 0 : index
      %c128 = arith.constant 128 : index
      %42 = vector.load %arg3[%c0_23, %c128] : memref<128x256xbf16, #tpu.memory_space<vmem>>, vector<128x128xbf16>
      %c0_24 = arith.constant 0 : index
      %c128_25 = arith.constant 128 : index
      %43 = vector.load %arg4[%c0_24, %c128_25] : memref<128x256xbf16, #tpu.memory_space<vmem>>, vector<128x128xbf16>
      %cst_26 = arith.constant dense<0.000000e+00> : vector<128x128xf32>
      %44 = tpu.matmul %42, %43, %cst_26 {dimension_numbers = #tpu.dot_dimension_numbers<[1], [1], [0], [0], [0, 0, 1, 0], [], []>} : vector<128x128xbf16>, vector<128x128xbf16>, vector<128x128xf32> -> vector<128x128xf32>
      %c0_27 = arith.constant 0 : index
      %c128_28 = arith.constant 128 : index
      %45 = vector.load %arg8[%c0_27, %c128_28] : memref<128x256xf32, #tpu.memory_space<vmem>>, vector<128x128xf32>
      %cst_29 = arith.constant dense<0xFF800000> : vector<128xf32>
      %46 = vector.multi_reduction <maximumf>, %44, %cst_29 [1] : vector<128x128xf32> to vector<128xf32>
      %47 = vector.shape_cast %46 : vector<128xf32> to vector<128x1xf32>
      %48 = vector.broadcast %47 : vector<128x1xf32> to vector<128x128xf32>
      %49 = arith.maximumf %45, %48 : vector<128x128xf32>
      %50 = arith.subf %45, %49 : vector<128x128xf32>
      %51 = math.exp %50 : vector<128x128xf32>
      %52 = vector.extract_strided_slice %49 {offsets = [0, 0], sizes = [128, 1], strides = [1, 1]} : vector<128x128xf32> to vector<128x1xf32>
      %53 = vector.broadcast %52 : vector<128x1xf32> to vector<128x128xf32>
      %54 = arith.subf %44, %53 : vector<128x128xf32>
      %55 = math.exp %54 : vector<128x128xf32>
      %c0_30 = arith.constant 0 : index
      %c128_31 = arith.constant 128 : index
      %56 = vector.load %arg9[%c0_30, %c128_31] : memref<128x256xf32, #tpu.memory_space<vmem>>, vector<128x128xf32>
      %57 = arith.mulf %51, %56 : vector<128x128xf32>
      %cst_32 = arith.constant dense<0.000000e+00> : vector<128xf32>
      %58 = vector.multi_reduction <add>, %55, %cst_32 [1] : vector<128x128xf32> to vector<128xf32>
      %59 = vector.shape_cast %58 : vector<128xf32> to vector<128x1xf32>
      %60 = vector.broadcast %59 : vector<128x1xf32> to vector<128x128xf32>
      %61 = arith.addf %57, %60 : vector<128x128xf32>
      %c0_33 = arith.constant 0 : index
      %c128_34 = arith.constant 128 : index
      %62 = vector.load %arg9[%c0_33, %c128_34] : memref<128x256xf32, #tpu.memory_space<vmem>>, vector<128x128xf32>
      tpu.vector_store %arg9[%c0_33, %c128_34], %61 {strides = array<i32>} : memref<128x256xf32, #tpu.memory_space<vmem>>, vector<128x128xf32>,
      %63 = arith.truncf %55 : vector<128x128xf32> to vector<128x128xbf16>
      %c0_35 = arith.constant 0 : index
      %c128_36 = arith.constant 128 : index
      %64 = vector.load %arg5[%c0_35, %c128_36] : memref<128x256xbf16, #tpu.memory_space<vmem>>, vector<128x128xbf16>
      %cst_37 = arith.constant dense<0.000000e+00> : vector<128x128xf32>
      %65 = tpu.matmul %63, %64, %cst_37 {dimension_numbers = #tpu.dot_dimension_numbers<[1], [0], [0], [1], [0, 0, 1, 1], [], []>} : vector<128x128xbf16>, vector<128x128xbf16>, vector<128x128xf32> -> vector<128x128xf32>
      %c0_38 = arith.constant 0 : index
      %c128_39 = arith.constant 128 : index
      %66 = vector.load %arg7[%c0_38, %c128_39] : memref<128x256xf32, #tpu.memory_space<vmem>>, vector<128x128xf32>
      %67 = arith.mulf %51, %66 : vector<128x128xf32>
      %68 = arith.addf %67, %65 : vector<128x128xf32>
      %c0_40 = arith.constant 0 : index
      %c128_41 = arith.constant 128 : index
      %69 = vector.load %arg7[%c0_40, %c128_41] : memref<128x256xf32, #tpu.memory_space<vmem>>, vector<128x128xf32>
      tpu.vector_store %arg7[%c0_40, %c128_41], %68 {strides = array<i32>} : memref<128x256xf32, #tpu.memory_space<vmem>>, vector<128x128xf32>,
      %c0_42 = arith.constant 0 : index
      %c128_43 = arith.constant 128 : index
      %70 = vector.load %arg8[%c0_42, %c128_43] : memref<128x256xf32, #tpu.memory_space<vmem>>, vector<128x128xf32>
      tpu.vector_store %arg8[%c0_42, %c128_43], %49 {strides = array<i32>} : memref<128x256xf32, #tpu.memory_space<vmem>>, vector<128x128xf32>,
    } else {
    }
    %11 = arith.extui %4 : i1 to i32
    %c0_i32_2 = arith.constant 0 : i32
    %12 = arith.cmpi ne, %11, %c0_i32_2 : i32
    scf.if %12 {
      %13 = tpu.iota {dimensions = array<i32: 0>} : vector<128x128xi32>
      %14 = tpu.iota {dimensions = array<i32: 1>} : vector<128x128xi32>
      %15 = arith.cmpi sge, %13, %14 : vector<128x128xi32>
      %cst = arith.constant 0.000000e+00 : f32
      %cst_3 = arith.constant -1.000000e+30 : f32
      %16 = vector.broadcast %cst : f32 to vector<128x128xf32>
      %17 = vector.broadcast %cst_3 : f32 to vector<128x128xf32>
      %18 = arith.select %15, %16, %17 : vector<128x128xi1>, vector<128x128xf32>
      %c0 = arith.constant 0 : index
      %c0_4 = arith.constant 0 : index
      %19 = vector.load %arg3[%c0, %c0_4] : memref<128x256xbf16, #tpu.memory_space<vmem>>, vector<128x128xbf16>
      %c0_5 = arith.constant 0 : index
      %c0_6 = arith.constant 0 : index
      %20 = vector.load %arg4[%c0_5, %c0_6] : memref<128x256xbf16, #tpu.memory_space<vmem>>, vector<128x128xbf16>
      %cst_7 = arith.constant dense<0.000000e+00> : vector<128x128xf32>
      %21 = tpu.matmul %19, %20, %cst_7 {dimension_numbers = #tpu.dot_dimension_numbers<[1], [1], [0], [0], [0, 0, 1, 0], [], []>} : vector<128x128xbf16>, vector<128x128xbf16>, vector<128x128xf32> -> vector<128x128xf32>
      %22 = arith.addf %21, %18 : vector<128x128xf32>
      %c0_8 = arith.constant 0 : index
      %c0_9 = arith.constant 0 : index
      %23 = vector.load %arg8[%c0_8, %c0_9] : memref<128x256xf32, #tpu.memory_space<vmem>>, vector<128x128xf32>
      %cst_10 = arith.constant dense<0xFF800000> : vector<128xf32>
      %24 = vector.multi_reduction <maximumf>, %22, %cst_10 [1] : vector<128x128xf32> to vector<128xf32>
      %25 = vector.shape_cast %24 : vector<128xf32> to vector<128x1xf32>
      %26 = vector.broadcast %25 : vector<128x1xf32> to vector<128x128xf32>
      %27 = arith.maximumf %23, %26 : vector<128x128xf32>
      %28 = arith.subf %23, %27 : vector<128x128xf32>
      %29 = math.exp %28 : vector<128x128xf32>
      %30 = vector.extract_strided_slice %27 {offsets = [0, 0], sizes = [128, 1], strides = [1, 1]} : vector<128x128xf32> to vector<128x1xf32>
      %31 = vector.broadcast %30 : vector<128x1xf32> to vector<128x128xf32>
      %32 = arith.subf %22, %31 : vector<128x128xf32>
      %33 = math.exp %32 : vector<128x128xf32>
      %c0_11 = arith.constant 0 : index
      %c0_12 = arith.constant 0 : index
      %34 = vector.load %arg9[%c0_11, %c0_12] : memref<128x256xf32, #tpu.memory_space<vmem>>, vector<128x128xf32>
      %35 = arith.mulf %29, %34 : vector<128x128xf32>
      %cst_13 = arith.constant dense<0.000000e+00> : vector<128xf32>
      %36 = vector.multi_reduction <add>, %33, %cst_13 [1] : vector<128x128xf32> to vector<128xf32>
      %37 = vector.shape_cast %36 : vector<128xf32> to vector<128x1xf32>
      %38 = vector.broadcast %37 : vector<128x1xf32> to vector<128x128xf32>
      %39 = arith.addf %35, %38 : vector<128x128xf32>
      %c0_14 = arith.constant 0 : index
      %c0_15 = arith.constant 0 : index
      %40 = vector.load %arg9[%c0_14, %c0_15] : memref<128x256xf32, #tpu.memory_space<vmem>>, vector<128x128xf32>
      tpu.vector_store %arg9[%c0_14, %c0_15], %39 {strides = array<i32>} : memref<128x256xf32, #tpu.memory_space<vmem>>, vector<128x128xf32>,
      %41 = arith.truncf %33 : vector<128x128xf32> to vector<128x128xbf16>
      %c0_16 = arith.constant 0 : index
      %c0_17 = arith.constant 0 : index
      %42 = vector.load %arg5[%c0_16, %c0_17] : memref<128x256xbf16, #tpu.memory_space<vmem>>, vector<128x128xbf16>
      %cst_18 = arith.constant dense<0.000000e+00> : vector<128x128xf32>
      %43 = tpu.matmul %41, %42, %cst_18 {dimension_numbers = #tpu.dot_dimension_numbers<[1], [0], [0], [1], [0, 0, 1, 1], [], []>} : vector<128x128xbf16>, vector<128x128xbf16>, vector<128x128xf32> -> vector<128x128xf32>
      %c0_19 = arith.constant 0 : index
      %c0_20 = arith.constant 0 : index
      %44 = vector.load %arg7[%c0_19, %c0_20] : memref<128x256xf32, #tpu.memory_space<vmem>>, vector<128x128xf32>
      %45 = arith.mulf %29, %44 : vector<128x128xf32>
      %46 = arith.addf %45, %43 : vector<128x128xf32>
      %c0_21 = arith.constant 0 : index
      %c0_22 = arith.constant 0 : index
      %47 = vector.load %arg7[%c0_21, %c0_22] : memref<128x256xf32, #tpu.memory_space<vmem>>, vector<128x128xf32>
      tpu.vector_store %arg7[%c0_21, %c0_22], %46 {strides = array<i32>} : memref<128x256xf32, #tpu.memory_space<vmem>>, vector<128x128xf32>,
      %c0_23 = arith.constant 0 : index
      %c0_24 = arith.constant 0 : index
      %48 = vector.load %arg8[%c0_23, %c0_24] : memref<128x256xf32, #tpu.memory_space<vmem>>, vector<128x128xf32>
      tpu.vector_store %arg8[%c0_23, %c0_24], %27 {strides = array<i32>} : memref<128x256xf32, #tpu.memory_space<vmem>>, vector<128x128xf32>,
      %c0_25 = arith.constant 0 : index
      %c128 = arith.constant 128 : index
      %49 = vector.load %arg3[%c0_25, %c128] : memref<128x256xbf16, #tpu.memory_space<vmem>>, vector<128x128xbf16>
      %c0_26 = arith.constant 0 : index
      %c128_27 = arith.constant 128 : index
      %50 = vector.load %arg4[%c0_26, %c128_27] : memref<128x256xbf16, #tpu.memory_space<vmem>>, vector<128x128xbf16>
      %cst_28 = arith.constant dense<0.000000e+00> : vector<128x128xf32>
      %51 = tpu.matmul %49, %50, %cst_28 {dimension_numbers = #tpu.dot_dimension_numbers<[1], [1], [0], [0], [0, 0, 1, 0], [], []>} : vector<128x128xbf16>, vector<128x128xbf16>, vector<128x128xf32> -> vector<128x128xf32>
      %52 = arith.addf %51, %18 : vector<128x128xf32>
      %c0_29 = arith.constant 0 : index
      %c128_30 = arith.constant 128 : index
      %53 = vector.load %arg8[%c0_29, %c128_30] : memref<128x256xf32, #tpu.memory_space<vmem>>, vector<128x128xf32>
      %cst_31 = arith.constant dense<0xFF800000> : vector<128xf32>
      %54 = vector.multi_reduction <maximumf>, %52, %cst_31 [1] : vector<128x128xf32> to vector<128xf32>
      %55 = vector.shape_cast %54 : vector<128xf32> to vector<128x1xf32>
      %56 = vector.broadcast %55 : vector<128x1xf32> to vector<128x128xf32>
      %57 = arith.maximumf %53, %56 : vector<128x128xf32>
      %58 = arith.subf %53, %57 : vector<128x128xf32>
      %59 = math.exp %58 : vector<128x128xf32>
      %60 = vector.extract_strided_slice %57 {offsets = [0, 0], sizes = [128, 1], strides = [1, 1]} : vector<128x128xf32> to vector<128x1xf32>
      %61 = vector.broadcast %60 : vector<128x1xf32> to vector<128x128xf32>
      %62 = arith.subf %52, %61 : vector<128x128xf32>
      %63 = math.exp %62 : vector<128x128xf32>
      %c0_32 = arith.constant 0 : index
      %c128_33 = arith.constant 128 : index
      %64 = vector.load %arg9[%c0_32, %c128_33] : memref<128x256xf32, #tpu.memory_space<vmem>>, vector<128x128xf32>
      %65 = arith.mulf %59, %64 : vector<128x128xf32>
      %cst_34 = arith.constant dense<0.000000e+00> : vector<128xf32>
      %66 = vector.multi_reduction <add>, %63, %cst_34 [1] : vector<128x128xf32> to vector<128xf32>
      %67 = vector.shape_cast %66 : vector<128xf32> to vector<128x1xf32>
      %68 = vector.broadcast %67 : vector<128x1xf32> to vector<128x128xf32>
      %69 = arith.addf %65, %68 : vector<128x128xf32>
      %c0_35 = arith.constant 0 : index
      %c128_36 = arith.constant 128 : index
      %70 = vector.load %arg9[%c0_35, %c128_36] : memref<128x256xf32, #tpu.memory_space<vmem>>, vector<128x128xf32>
      tpu.vector_store %arg9[%c0_35, %c128_36], %69 {strides = array<i32>} : memref<128x256xf32, #tpu.memory_space<vmem>>, vector<128x128xf32>,
      %71 = arith.truncf %63 : vector<128x128xf32> to vector<128x128xbf16>
      %c0_37 = arith.constant 0 : index
      %c128_38 = arith.constant 128 : index
      %72 = vector.load %arg5[%c0_37, %c128_38] : memref<128x256xbf16, #tpu.memory_space<vmem>>, vector<128x128xbf16>
      %cst_39 = arith.constant dense<0.000000e+00> : vector<128x128xf32>
      %73 = tpu.matmul %71, %72, %cst_39 {dimension_numbers = #tpu.dot_dimension_numbers<[1], [0], [0], [1], [0, 0, 1, 1], [], []>} : vector<128x128xbf16>, vector<128x128xbf16>, vector<128x128xf32> -> vector<128x128xf32>
      %c0_40 = arith.constant 0 : index
      %c128_41 = arith.constant 128 : index
      %74 = vector.load %arg7[%c0_40, %c128_41] : memref<128x256xf32, #tpu.memory_space<vmem>>, vector<128x128xf32>
      %75 = arith.mulf %59, %74 : vector<128x128xf32>
      %76 = arith.addf %75, %73 : vector<128x128xf32>
      %c0_42 = arith.constant 0 : index
      %c128_43 = arith.constant 128 : index
      %77 = vector.load %arg7[%c0_42, %c128_43] : memref<128x256xf32, #tpu.memory_space<vmem>>, vector<128x128xf32>
      tpu.vector_store %arg7[%c0_42, %c128_43], %76 {strides = array<i32>} : memref<128x256xf32, #tpu.memory_space<vmem>>, vector<128x128xf32>,
      %c0_44 = arith.constant 0 : index
      %c128_45 = arith.constant 128 : index
      %78 = vector.load %arg8[%c0_44, %c128_45] : memref<128x256xf32, #tpu.memory_space<vmem>>, vector<128x128xf32>
      tpu.vector_store %arg8[%c0_44, %c128_45], %57 {strides = array<i32>} : memref<128x256xf32, #tpu.memory_space<vmem>>, vector<128x128xf32>,
      %c0_46 = arith.constant 0 : index
      %c0_47 = arith.constant 0 : index
      %79 = vector.load %arg9[%c0_46, %c0_47] : memref<128x256xf32, #tpu.memory_space<vmem>>, vector<128x256xf32>
      %80 = tpu.reciprocal %79 {approx = true} : vector<128x256xf32> -> vector<128x256xf32>
      %c0_48 = arith.constant 0 : index
      %c0_49 = arith.constant 0 : index
      %81 = vector.load %arg7[%c0_48, %c0_49] : memref<128x256xf32, #tpu.memory_space<vmem>>, vector<128x256xf32>
      %82 = arith.mulf %81, %80 : vector<128x256xf32>
      %83 = arith.truncf %82 : vector<128x256xf32> to vector<128x256xbf16>
      %c0_50 = arith.constant 0 : index
      %c0_51 = arith.constant 0 : index
      %84 = vector.load %arg6[%c0_50, %c0_51] : memref<128x256xbf16, #tpu.memory_space<vmem>>, vector<128x256xbf16>
      tpu.vector_store %arg6[%c0_50, %c0_51], %83 {strides = array<i32>} : memref<128x256xbf16, #tpu.memory_space<vmem>>, vector<128x256xbf16>,
    } else {
    }
    return
  }
  func.func @transform_0(%arg0: i32, %arg1: memref<3xi32, #tpu.memory_space<smem>>, %arg2: memref<3xi32, #tpu.memory_space<smem>>) -> (i32, i32) {
    %0 = arith.index_cast %arg0 : i32 to index
    %1 = memref.load %arg1[%0] : memref<3xi32, #tpu.memory_space<smem>>
    %c0_i32 = arith.constant 0 : i32
    %c0_i32_0 = arith.constant 0 : i32
    return %1, %c0_i32 : i32, i32
  }
  func.func @transform_1(%arg0: i32, %arg1: memref<3xi32, #tpu.memory_space<smem>>, %arg2: memref<3xi32, #tpu.memory_space<smem>>) -> (i32, i32) {
    %0 = arith.index_cast %arg0 : i32 to index
    %1 = memref.load %arg2[%0] : memref<3xi32, #tpu.memory_space<smem>>
    %c0_i32 = arith.constant 0 : i32
    %c0_i32_0 = arith.constant 0 : i32
    return %1, %c0_i32 : i32, i32
  }
  func.func @transform_2(%arg0: i32, %arg1: memref<3xi32, #tpu.memory_space<smem>>, %arg2: memref<3xi32, #tpu.memory_space<smem>>) -> (i32, i32) {
    %0 = arith.index_cast %arg0 : i32 to index
    %1 = memref.load %arg2[%0] : memref<3xi32, #tpu.memory_space<smem>>
    %c0_i32 = arith.constant 0 : i32
    %c0_i32_0 = arith.constant 0 : i32
    return %1, %c0_i32 : i32, i32
  }
  func.func @transform_3(%arg0: i32, %arg1: memref<3xi32, #tpu.memory_space<smem>>, %arg2: memref<3xi32, #tpu.memory_space<smem>>) -> (i32, i32) {
    %0 = arith.index_cast %arg0 : i32 to index
    %1 = memref.load %arg1[%0] : memref<3xi32, #tpu.memory_space<smem>>
    %c0_i32 = arith.constant 0 : i32
    %c0_i32_0 = arith.constant 0 : i32
    return %1, %c0_i32 : i32, i32
  }
}

module attributes {stable_mosaic.version = 11 : i64} {
  func.func @_proj_mlp_kernel(%arg0: i32, %arg1: memref<128x256xf32, #tpu.memory_space<vmem>>, %arg2: memref<128x256xbf16, #tpu.memory_space<vmem>>, %arg3: memref<256x256xbf16, #tpu.memory_space<vmem>>, %arg4: memref<256x1024xbf16, #tpu.memory_space<vmem>>, %arg5: memref<1024x256xbf16, #tpu.memory_space<vmem>>, %arg6: memref<128x256xf32, #tpu.memory_space<vmem>>) attributes {dimension_semantics = [#tpu.dimension_semantics<parallel>], iteration_bounds = array<i64: 2>, scalar_prefetch = 0 : i64, scratch_operands = 0 : i64, tpu.core_type = #tpu.core_type<tc>, window_params = [{transform_indices = @transform_0, window_bounds = array<i64: 128, 256>}, {transform_indices = @transform_1, window_bounds = array<i64: 128, 256>}, {pipeline_mode = #tpu.pipeline_mode<synchronous>, transform_indices = @transform_2, window_bounds = array<i64: 256, 256>}, {pipeline_mode = #tpu.pipeline_mode<synchronous>, transform_indices = @transform_3, window_bounds = array<i64: 256, 1024>}, {pipeline_mode = #tpu.pipeline_mode<synchronous>, transform_indices = @transform_4, window_bounds = array<i64: 1024, 256>}, {transform_indices = @transform_5, window_bounds = array<i64: 128, 256>}]} {
    %c0 = arith.constant 0 : index
    %c0_0 = arith.constant 0 : index
    %0 = vector.load %arg1[%c0, %c0_0] : memref<128x256xf32, #tpu.memory_space<vmem>>, vector<128x256xf32>
    %c0_1 = arith.constant 0 : index
    %c0_2 = arith.constant 0 : index
    %1 = vector.load %arg2[%c0_1, %c0_2] : memref<128x256xbf16, #tpu.memory_space<vmem>>, vector<128x256xbf16>
    %c0_3 = arith.constant 0 : index
    %c0_4 = arith.constant 0 : index
    %2 = vector.load %arg3[%c0_3, %c0_4] : memref<256x256xbf16, #tpu.memory_space<vmem>>, vector<256x256xbf16>
    %cst = arith.constant dense<0.000000e+00> : vector<128x256xf32>
    %3 = tpu.matmul %1, %2, %cst {dimension_numbers = #tpu.dot_dimension_numbers<[1], [0], [0], [1], [0, 0, 1, 1], [], []>} : vector<128x256xbf16>, vector<256x256xbf16>, vector<128x256xf32> -> vector<128x256xf32>
    %4 = arith.addf %0, %3 : vector<128x256xf32>
    %5 = arith.mulf %4, %4 : vector<128x256xf32>
    %cst_5 = arith.constant dense<0.000000e+00> : vector<128xf32>
    %6 = vector.multi_reduction <add>, %5, %cst_5 [1] : vector<128x256xf32> to vector<128xf32>
    %7 = vector.shape_cast %6 : vector<128xf32> to vector<128x1xf32>
    %cst_6 = arith.constant 2.560000e+02 : f32
    %8 = vector.broadcast %cst_6 : f32 to vector<128x1xf32>
    %9 = arith.divf %7, %8 : vector<128x1xf32>
    %cst_7 = arith.constant 1.1920929E-7 : f32
    %10 = vector.broadcast %cst_7 : f32 to vector<128x1xf32>
    %11 = arith.addf %9, %10 : vector<128x1xf32>
    %12 = math.rsqrt %11 : vector<128x1xf32>
    %13 = vector.broadcast %12 : vector<128x1xf32> to vector<128x256xf32>
    %14 = arith.mulf %4, %13 : vector<128x256xf32>
    %15 = arith.truncf %14 : vector<128x256xf32> to vector<128x256xbf16>
    %c0_8 = arith.constant 0 : index
    %c0_9 = arith.constant 0 : index
    %16 = vector.load %arg4[%c0_8, %c0_9] : memref<256x1024xbf16, #tpu.memory_space<vmem>>, vector<256x1024xbf16>
    %cst_10 = arith.constant dense<0.000000e+00> : vector<128x1024xf32>
    %17 = tpu.matmul %15, %16, %cst_10 {dimension_numbers = #tpu.dot_dimension_numbers<[1], [0], [0], [1], [0, 0, 1, 1], [], []>} : vector<128x256xbf16>, vector<256x1024xbf16>, vector<128x1024xf32> -> vector<128x1024xf32>
    %cst_11 = arith.constant 0.000000e+00 : f32
    %18 = vector.broadcast %cst_11 : f32 to vector<128x1024xf32>
    %19 = arith.maximumf %17, %18 : vector<128x1024xf32>
    %20 = arith.mulf %19, %19 : vector<128x1024xf32>
    %21 = arith.truncf %20 : vector<128x1024xf32> to vector<128x1024xbf16>
    %c0_12 = arith.constant 0 : index
    %c0_13 = arith.constant 0 : index
    %22 = vector.load %arg5[%c0_12, %c0_13] : memref<1024x256xbf16, #tpu.memory_space<vmem>>, vector<1024x256xbf16>
    %cst_14 = arith.constant dense<0.000000e+00> : vector<128x256xf32>
    %23 = tpu.matmul %21, %22, %cst_14 {dimension_numbers = #tpu.dot_dimension_numbers<[1], [0], [0], [1], [0, 0, 1, 1], [], []>} : vector<128x1024xbf16>, vector<1024x256xbf16>, vector<128x256xf32> -> vector<128x256xf32>
    %24 = arith.addf %4, %23 : vector<128x256xf32>
    %c0_15 = arith.constant 0 : index
    %c0_16 = arith.constant 0 : index
    %25 = vector.load %arg6[%c0_15, %c0_16] : memref<128x256xf32, #tpu.memory_space<vmem>>, vector<128x256xf32>
    tpu.vector_store %arg6[%c0_15, %c0_16], %24 {strides = array<i32>} : memref<128x256xf32, #tpu.memory_space<vmem>>, vector<128x256xf32>,
    return
  }
  func.func @transform_0(%arg0: i32) -> (i32, i32) {
    %c0_i32 = arith.constant 0 : i32
    %c0_i32_0 = arith.constant 0 : i32
    return %arg0, %c0_i32 : i32, i32
  }
  func.func @transform_1(%arg0: i32) -> (i32, i32) {
    %c0_i32 = arith.constant 0 : i32
    %c0_i32_0 = arith.constant 0 : i32
    return %arg0, %c0_i32 : i32, i32
  }
  func.func @transform_2(%arg0: i32) -> (i32, i32) {
    %c0_i32 = arith.constant 0 : i32
    %c0_i32_0 = arith.constant 0 : i32
    %c0_i32_1 = arith.constant 0 : i32
    return %c0_i32, %c0_i32_0 : i32, i32
  }
  func.func @transform_3(%arg0: i32) -> (i32, i32) {
    %c0_i32 = arith.constant 0 : i32
    %c0_i32_0 = arith.constant 0 : i32
    %c0_i32_1 = arith.constant 0 : i32
    return %c0_i32, %c0_i32_0 : i32, i32
  }
  func.func @transform_4(%arg0: i32) -> (i32, i32) {
    %c0_i32 = arith.constant 0 : i32
    %c0_i32_0 = arith.constant 0 : i32
    %c0_i32_1 = arith.constant 0 : i32
    return %c0_i32, %c0_i32_0 : i32, i32
  }
  func.func @transform_5(%arg0: i32) -> (i32, i32) {
    %c0_i32 = arith.constant 0 : i32
    %c0_i32_0 = arith.constant 0 : i32
    return %arg0, %c0_i32 : i32, i32
  }
}

module attributes {stable_mosaic.version = 11 : i64} {
  func.func @_qkv_kernel(%arg0: i32, %arg1: memref<1x4xf32, #tpu.memory_space<smem>>, %arg2: memref<128x256xf32, #tpu.memory_space<vmem>>, %arg3: memref<128x256xf32, #tpu.memory_space<vmem>>, %arg4: memref<128x256xf32, #tpu.memory_space<vmem>>, %arg5: memref<256x768xbf16, #tpu.memory_space<vmem>>, %arg6: memref<128x128xf32, #tpu.memory_space<vmem>>, %arg7: memref<128x128xf32, #tpu.memory_space<vmem>>, %arg8: memref<128x256xf32, #tpu.memory_space<vmem>>, %arg9: memref<128x256xbf16, #tpu.memory_space<vmem>>, %arg10: memref<128x256xbf16, #tpu.memory_space<vmem>>, %arg11: memref<128x256xbf16, #tpu.memory_space<vmem>>) attributes {dimension_semantics = [#tpu.dimension_semantics<parallel>], iteration_bounds = array<i64: 2>, scalar_prefetch = 0 : i64, scratch_operands = 0 : i64, tpu.core_type = #tpu.core_type<tc>, window_params = [{transform_indices = @transform_0, window_bounds = array<i64: 1, 4>}, {transform_indices = @transform_1, window_bounds = array<i64: 128, 256>}, {transform_indices = @transform_2, window_bounds = array<i64: 128, 256>}, {transform_indices = @transform_3, window_bounds = array<i64: 128, 256>}, {pipeline_mode = #tpu.pipeline_mode<synchronous>, transform_indices = @transform_4, window_bounds = array<i64: 256, 768>}, {transform_indices = @transform_5, window_bounds = array<i64: 128, 128>}, {transform_indices = @transform_6, window_bounds = array<i64: 128, 128>}, {transform_indices = @transform_7, window_bounds = array<i64: 128, 256>}, {transform_indices = @transform_8, window_bounds = array<i64: 128, 256>}, {transform_indices = @transform_9, window_bounds = array<i64: 128, 256>}, {transform_indices = @transform_10, window_bounds = array<i64: 128, 256>}]} {
    %c0 = arith.constant 0 : index
    %c0_0 = arith.constant 0 : index
    %0 = memref.load %arg1[%c0, %c0_0] : memref<1x4xf32, #tpu.memory_space<smem>>
    %c0_1 = arith.constant 0 : index
    %c1 = arith.constant 1 : index
    %1 = memref.load %arg1[%c0_1, %c1] : memref<1x4xf32, #tpu.memory_space<smem>>
    %c0_2 = arith.constant 0 : index
    %c2 = arith.constant 2 : index
    %2 = memref.load %arg1[%c0_2, %c2] : memref<1x4xf32, #tpu.memory_space<smem>>
    %c0_3 = arith.constant 0 : index
    %c3 = arith.constant 3 : index
    %3 = memref.load %arg1[%c0_3, %c3] : memref<1x4xf32, #tpu.memory_space<smem>>
    %c0_4 = arith.constant 0 : index
    %c0_5 = arith.constant 0 : index
    %4 = vector.load %arg2[%c0_4, %c0_5] : memref<128x256xf32, #tpu.memory_space<vmem>>, vector<128x256xf32>
    %5 = vector.broadcast %0 : f32 to vector<128x256xf32>
    %6 = arith.mulf %5, %4 : vector<128x256xf32>
    %c0_6 = arith.constant 0 : index
    %c0_7 = arith.constant 0 : index
    %7 = vector.load %arg3[%c0_6, %c0_7] : memref<128x256xf32, #tpu.memory_space<vmem>>, vector<128x256xf32>
    %8 = vector.broadcast %1 : f32 to vector<128x256xf32>
    %9 = arith.mulf %8, %7 : vector<128x256xf32>
    %10 = arith.addf %6, %9 : vector<128x256xf32>
    %c0_8 = arith.constant 0 : index
    %c0_9 = arith.constant 0 : index
    %11 = vector.load %arg8[%c0_8, %c0_9] : memref<128x256xf32, #tpu.memory_space<vmem>>, vector<128x256xf32>
    tpu.vector_store %arg8[%c0_8, %c0_9], %10 {strides = array<i32>} : memref<128x256xf32, #tpu.memory_space<vmem>>, vector<128x256xf32>,
    %12 = arith.mulf %10, %10 : vector<128x256xf32>
    %cst = arith.constant dense<0.000000e+00> : vector<128xf32>
    %13 = vector.multi_reduction <add>, %12, %cst [1] : vector<128x256xf32> to vector<128xf32>
    %14 = vector.shape_cast %13 : vector<128xf32> to vector<128x1xf32>
    %cst_10 = arith.constant 2.560000e+02 : f32
    %15 = vector.broadcast %cst_10 : f32 to vector<128x1xf32>
    %16 = arith.divf %14, %15 : vector<128x1xf32>
    %cst_11 = arith.constant 1.1920929E-7 : f32
    %17 = vector.broadcast %cst_11 : f32 to vector<128x1xf32>
    %18 = arith.addf %16, %17 : vector<128x1xf32>
    %19 = math.rsqrt %18 : vector<128x1xf32>
    %20 = vector.broadcast %19 : vector<128x1xf32> to vector<128x256xf32>
    %21 = arith.mulf %10, %20 : vector<128x256xf32>
    %22 = arith.truncf %21 : vector<128x256xf32> to vector<128x256xbf16>
    %c0_12 = arith.constant 0 : index
    %c0_13 = arith.constant 0 : index
    %23 = vector.load %arg5[%c0_12, %c0_13] : memref<256x768xbf16, #tpu.memory_space<vmem>>, vector<256x768xbf16>
    %cst_14 = arith.constant dense<0.000000e+00> : vector<128x768xf32>
    %24 = tpu.matmul %22, %23, %cst_14 {dimension_numbers = #tpu.dot_dimension_numbers<[1], [0], [0], [1], [0, 0, 1, 1], [], []>} : vector<128x256xbf16>, vector<256x768xbf16>, vector<128x768xf32> -> vector<128x768xf32>
    %25 = vector.extract_strided_slice %24 {offsets = [0, 512], sizes = [128, 256], strides = [1, 1]} : vector<128x768xf32> to vector<128x256xf32>
    %26 = vector.broadcast %2 : f32 to vector<128x256xf32>
    %27 = arith.mulf %26, %25 : vector<128x256xf32>
    %c0_15 = arith.constant 0 : index
    %c0_16 = arith.constant 0 : index
    %28 = vector.load %arg4[%c0_15, %c0_16] : memref<128x256xf32, #tpu.memory_space<vmem>>, vector<128x256xf32>
    %29 = vector.broadcast %3 : f32 to vector<128x256xf32>
    %30 = arith.mulf %29, %28 : vector<128x256xf32>
    %31 = arith.addf %27, %30 : vector<128x256xf32>
    %32 = arith.truncf %31 : vector<128x256xf32> to vector<128x256xbf16>
    %c0_17 = arith.constant 0 : index
    %c0_18 = arith.constant 0 : index
    %33 = vector.load %arg11[%c0_17, %c0_18] : memref<128x256xbf16, #tpu.memory_space<vmem>>, vector<128x256xbf16>
    tpu.vector_store %arg11[%c0_17, %c0_18], %32 {strides = array<i32>} : memref<128x256xbf16, #tpu.memory_space<vmem>>, vector<128x256xbf16>,
    %c0_19 = arith.constant 0 : index
    %c0_20 = arith.constant 0 : index
    %34 = vector.load %arg6[%c0_19, %c0_20] : memref<128x128xf32, #tpu.memory_space<vmem>>, vector<128x128xf32>
    %c0_21 = arith.constant 0 : index
    %c0_22 = arith.constant 0 : index
    %35 = vector.load %arg7[%c0_21, %c0_22] : memref<128x128xf32, #tpu.memory_space<vmem>>, vector<128x128xf32>
    %36 = vector.extract_strided_slice %24 {offsets = [0, 0], sizes = [128, 128], strides = [1, 1]} : vector<128x768xf32> to vector<128x128xf32>
    %37 = vector.extract_strided_slice %24 {offsets = [0, 256], sizes = [128, 128], strides = [1, 1]} : vector<128x768xf32> to vector<128x128xf32>
    %38 = arith.mulf %36, %36 : vector<128x128xf32>
    %cst_23 = arith.constant dense<0.000000e+00> : vector<128xf32>
    %39 = vector.multi_reduction <add>, %38, %cst_23 [1] : vector<128x128xf32> to vector<128xf32>
    %40 = vector.shape_cast %39 : vector<128xf32> to vector<128x1xf32>
    %cst_24 = arith.constant 1.280000e+02 : f32
    %41 = vector.broadcast %cst_24 : f32 to vector<128x1xf32>
    %42 = arith.divf %40, %41 : vector<128x1xf32>
    %cst_25 = arith.constant 1.1920929E-7 : f32
    %43 = vector.broadcast %cst_25 : f32 to vector<128x1xf32>
    %44 = arith.addf %42, %43 : vector<128x1xf32>
    %45 = math.rsqrt %44 : vector<128x1xf32>
    %cst_26 = arith.constant 0.0883883461 : f32
    %46 = vector.broadcast %cst_26 : f32 to vector<128x1xf32>
    %47 = arith.mulf %45, %46 : vector<128x1xf32>
    %48 = vector.broadcast %47 : vector<128x1xf32> to vector<128x128xf32>
    %49 = arith.mulf %36, %48 : vector<128x128xf32>
    %50 = arith.mulf %37, %37 : vector<128x128xf32>
    %cst_27 = arith.constant dense<0.000000e+00> : vector<128xf32>
    %51 = vector.multi_reduction <add>, %50, %cst_27 [1] : vector<128x128xf32> to vector<128xf32>
    %52 = vector.shape_cast %51 : vector<128xf32> to vector<128x1xf32>
    %cst_28 = arith.constant 1.280000e+02 : f32
    %53 = vector.broadcast %cst_28 : f32 to vector<128x1xf32>
    %54 = arith.divf %52, %53 : vector<128x1xf32>
    %cst_29 = arith.constant 1.1920929E-7 : f32
    %55 = vector.broadcast %cst_29 : f32 to vector<128x1xf32>
    %56 = arith.addf %54, %55 : vector<128x1xf32>
    %57 = math.rsqrt %56 : vector<128x1xf32>
    %58 = vector.broadcast %57 : vector<128x1xf32> to vector<128x128xf32>
    %59 = arith.mulf %37, %58 : vector<128x128xf32>
    %60 = arith.mulf %49, %34 : vector<128x128xf32>
    %c64_i32 = arith.constant 64 : i32
    %61 = tpu.dynamic_rotate %49 by %c64_i32 dim 1 : vector<128x128xf32>, i32 -> vector<128x128xf32>
    %62 = arith.mulf %61, %35 : vector<128x128xf32>
    %63 = arith.addf %60, %62 : vector<128x128xf32>
    %64 = arith.truncf %63 : vector<128x128xf32> to vector<128x128xbf16>
    %c0_30 = arith.constant 0 : index
    %c0_31 = arith.constant 0 : index
    %65 = vector.load %arg9[%c0_30, %c0_31] : memref<128x256xbf16, #tpu.memory_space<vmem>>, vector<128x128xbf16>
    tpu.vector_store %arg9[%c0_30, %c0_31], %64 {strides = array<i32>} : memref<128x256xbf16, #tpu.memory_space<vmem>>, vector<128x128xbf16>,
    %66 = arith.mulf %59, %34 : vector<128x128xf32>
    %c64_i32_32 = arith.constant 64 : i32
    %67 = tpu.dynamic_rotate %59 by %c64_i32_32 dim 1 : vector<128x128xf32>, i32 -> vector<128x128xf32>
    %68 = arith.mulf %67, %35 : vector<128x128xf32>
    %69 = arith.addf %66, %68 : vector<128x128xf32>
    %70 = arith.truncf %69 : vector<128x128xf32> to vector<128x128xbf16>
    %c0_33 = arith.constant 0 : index
    %c0_34 = arith.constant 0 : index
    %71 = vector.load %arg10[%c0_33, %c0_34] : memref<128x256xbf16, #tpu.memory_space<vmem>>, vector<128x128xbf16>
    tpu.vector_store %arg10[%c0_33, %c0_34], %70 {strides = array<i32>} : memref<128x256xbf16, #tpu.memory_space<vmem>>, vector<128x128xbf16>,
    %72 = vector.extract_strided_slice %24 {offsets = [0, 128], sizes = [128, 128], strides = [1, 1]} : vector<128x768xf32> to vector<128x128xf32>
    %73 = vector.extract_strided_slice %24 {offsets = [0, 384], sizes = [128, 128], strides = [1, 1]} : vector<128x768xf32> to vector<128x128xf32>
    %74 = arith.mulf %72, %72 : vector<128x128xf32>
    %cst_35 = arith.constant dense<0.000000e+00> : vector<128xf32>
    %75 = vector.multi_reduction <add>, %74, %cst_35 [1] : vector<128x128xf32> to vector<128xf32>
    %76 = vector.shape_cast %75 : vector<128xf32> to vector<128x1xf32>
    %cst_36 = arith.constant 1.280000e+02 : f32
    %77 = vector.broadcast %cst_36 : f32 to vector<128x1xf32>
    %78 = arith.divf %76, %77 : vector<128x1xf32>
    %cst_37 = arith.constant 1.1920929E-7 : f32
    %79 = vector.broadcast %cst_37 : f32 to vector<128x1xf32>
    %80 = arith.addf %78, %79 : vector<128x1xf32>
    %81 = math.rsqrt %80 : vector<128x1xf32>
    %cst_38 = arith.constant 0.0883883461 : f32
    %82 = vector.broadcast %cst_38 : f32 to vector<128x1xf32>
    %83 = arith.mulf %81, %82 : vector<128x1xf32>
    %84 = vector.broadcast %83 : vector<128x1xf32> to vector<128x128xf32>
    %85 = arith.mulf %72, %84 : vector<128x128xf32>
    %86 = arith.mulf %73, %73 : vector<128x128xf32>
    %cst_39 = arith.constant dense<0.000000e+00> : vector<128xf32>
    %87 = vector.multi_reduction <add>, %86, %cst_39 [1] : vector<128x128xf32> to vector<128xf32>
    %88 = vector.shape_cast %87 : vector<128xf32> to vector<128x1xf32>
    %cst_40 = arith.constant 1.280000e+02 : f32
    %89 = vector.broadcast %cst_40 : f32 to vector<128x1xf32>
    %90 = arith.divf %88, %89 : vector<128x1xf32>
    %cst_41 = arith.constant 1.1920929E-7 : f32
    %91 = vector.broadcast %cst_41 : f32 to vector<128x1xf32>
    %92 = arith.addf %90, %91 : vector<128x1xf32>
    %93 = math.rsqrt %92 : vector<128x1xf32>
    %94 = vector.broadcast %93 : vector<128x1xf32> to vector<128x128xf32>
    %95 = arith.mulf %73, %94 : vector<128x128xf32>
    %96 = arith.mulf %85, %34 : vector<128x128xf32>
    %c64_i32_42 = arith.constant 64 : i32
    %97 = tpu.dynamic_rotate %85 by %c64_i32_42 dim 1 : vector<128x128xf32>, i32 -> vector<128x128xf32>
    %98 = arith.mulf %97, %35 : vector<128x128xf32>
    %99 = arith.addf %96, %98 : vector<128x128xf32>
    %100 = arith.truncf %99 : vector<128x128xf32> to vector<128x128xbf16>
    %c0_43 = arith.constant 0 : index
    %c128 = arith.constant 128 : index
    %101 = vector.load %arg9[%c0_43, %c128] : memref<128x256xbf16, #tpu.memory_space<vmem>>, vector<128x128xbf16>
    tpu.vector_store %arg9[%c0_43, %c128], %100 {strides = array<i32>} : memref<128x256xbf16, #tpu.memory_space<vmem>>, vector<128x128xbf16>,
    %102 = arith.mulf %95, %34 : vector<128x128xf32>
    %c64_i32_44 = arith.constant 64 : i32
    %103 = tpu.dynamic_rotate %95 by %c64_i32_44 dim 1 : vector<128x128xf32>, i32 -> vector<128x128xf32>
    %104 = arith.mulf %103, %35 : vector<128x128xf32>
    %105 = arith.addf %102, %104 : vector<128x128xf32>
    %106 = arith.truncf %105 : vector<128x128xf32> to vector<128x128xbf16>
    %c0_45 = arith.constant 0 : index
    %c128_46 = arith.constant 128 : index
    %107 = vector.load %arg10[%c0_45, %c128_46] : memref<128x256xbf16, #tpu.memory_space<vmem>>, vector<128x128xbf16>
    tpu.vector_store %arg10[%c0_45, %c128_46], %106 {strides = array<i32>} : memref<128x256xbf16, #tpu.memory_space<vmem>>, vector<128x128xbf16>,
    return
  }
  func.func @transform_0(%arg0: i32) -> (i32, i32) {
    %c0_i32 = arith.constant 0 : i32
    %c0_i32_0 = arith.constant 0 : i32
    %c0_i32_1 = arith.constant 0 : i32
    return %c0_i32, %c0_i32_0 : i32, i32
  }
  func.func @transform_1(%arg0: i32) -> (i32, i32) {
    %c0_i32 = arith.constant 0 : i32
    %c0_i32_0 = arith.constant 0 : i32
    return %arg0, %c0_i32 : i32, i32
  }
  func.func @transform_2(%arg0: i32) -> (i32, i32) {
    %c0_i32 = arith.constant 0 : i32
    %c0_i32_0 = arith.constant 0 : i32
    return %arg0, %c0_i32 : i32, i32
  }
  func.func @transform_3(%arg0: i32) -> (i32, i32) {
    %c0_i32 = arith.constant 0 : i32
    %c0_i32_0 = arith.constant 0 : i32
    return %arg0, %c0_i32 : i32, i32
  }
  func.func @transform_4(%arg0: i32) -> (i32, i32) {
    %c0_i32 = arith.constant 0 : i32
    %c0_i32_0 = arith.constant 0 : i32
    %c0_i32_1 = arith.constant 0 : i32
    return %c0_i32, %c0_i32_0 : i32, i32
  }
  func.func @transform_5(%arg0: i32) -> (i32, i32) {
    %c0_i32 = arith.constant 0 : i32
    %c0_i32_0 = arith.constant 0 : i32
    return %arg0, %c0_i32 : i32, i32
  }
  func.func @transform_6(%arg0: i32) -> (i32, i32) {
    %c0_i32 = arith.constant 0 : i32
    %c0_i32_0 = arith.constant 0 : i32
    return %arg0, %c0_i32 : i32, i32
  }
  func.func @transform_7(%arg0: i32) -> (i32, i32) {
    %c0_i32 = arith.constant 0 : i32
    %c0_i32_0 = arith.constant 0 : i32
    return %arg0, %c0_i32 : i32, i32
  }
  func.func @transform_8(%arg0: i32) -> (i32, i32) {
    %c0_i32 = arith.constant 0 : i32
    %c0_i32_0 = arith.constant 0 : i32
    return %arg0, %c0_i32 : i32, i32
  }
  func.func @transform_9(%arg0: i32) -> (i32, i32) {
    %c0_i32 = arith.constant 0 : i32
    %c0_i32_0 = arith.constant 0 : i32
    return %arg0, %c0_i32 : i32, i32
  }
  func.func @transform_10(%arg0: i32) -> (i32, i32) {
    %c0_i32 = arith.constant 0 : i32
    %c0_i32_0 = arith.constant 0 : i32
    return %arg0, %c0_i32 : i32, i32
  }
}

</mosaic_0001>

<bundles_post_ra>
// kernel: block_forward.3
= control target key start
LH: loop header
LB: loop body
LE: loop exit
PB: predicated region body
PF: predicated region fallthrough
CT: control target
= control target key end

     0   :  { %s6312_s0 = inlined_call_operand.vmem [shape: f32[1,4], index: 0, kind: input, shape index: {}]   ;;  %s6313_s1 = inlined_call_operand.hbm [shape: f32[256,256], index: 1, kind: input, shape index: {}]   ;;  %s6314_s2 = inlined_call_operand.hbm [shape: f32[256,256], index: 2, kind: input, shape index: {}]   ;;  %s6315_s3 = inlined_call_operand.hbm [shape: f32[256,256], index: 3, kind: input, shape index: {}]   ;;  %s6316_s4 = inlined_call_operand.hbm [shape: bf16[256,768], index: 4, kind: input, shape index: {}]   ;;  %s6317_s5 = inlined_call_operand.hbm [shape: f32[256,128], index: 5, kind: input, shape index: {}]   ;;  %s6318_s6 = inlined_call_operand.hbm [shape: f32[256,128], index: 6, kind: input, shape index: {}]   ;;  %s6319_s7 = inlined_call_operand.vmem [shape: f32[256,256], index: 7, kind: output, shape index: {0}]   ;;  %s6320_s8 = inlined_call_operand.vmem [shape: bf16[256,256], index: 8, kind: output, shape index: {1}]   ;;  %s6321_s9 = inlined_call_operand.vmem [shape: bf16[256,256], index: 9, kind: output, shape index: {2}]   ;;  %s6322_s10 = inlined_call_operand.vmem [shape: bf16[256,256], index: 10, kind: output, shape index: {3}]  }
   0x1   :  { %6389 = sst [smem:[#allocation54_spill]] %s6312_s0 }
   0x2   :  { %6390 = sst [smem:[#allocation55_spill]] %s6313_s1 }
   0x3   :  { %6391 = sst [smem:[#allocation56_spill]] %s6314_s2 }
   0x4   :  { %16 = vsyncpa [#allocation4], 0 }
   0x5   :  { %17 = vsyncpa [#allocation3], 0 }
   0x6   :  { %19 = vsyncpa [#allocation3 + $0x1], 0 }
   0x7   :  { %20 = vsyncpa [#allocation7], 0 }
   0x8   :  { %22 = vsyncpa [#allocation7 + $0x1], 0 }
   0x9   :  { %23 = vsyncpa [#allocation10], 0  ;;  %s4642_s13 = smov 0   ;;  %s4644_s14 = smov 0  }
   0xa   :  { %s4646_s15 = smov 0   ;;  %s4648_s16 = smov 0  }
   0xb LB: > { %s4663_s17 = sadd.s32 1, %s4571_s16   ;;  %s57_s18 = sadd.s32 1, %s4567_s15  ;;  %s4571_s16 = sphi %s4648_s16, %s6525_s16   ;;  %s4567_s15 = sphi %s4646_s15, %s6529_s15   ;;  %s4563_s14 = sphi %s4644_s14, %s6528_s14   ;;  %s4559_s13 = sphi %s4642_s13, %s6527_s13  }
   0xc   : > { %6392 = sst [smem:[#allocation19_spill]] %s4663_s17  ;;  %s54_s19 = ssub.s32 %s4571_s16, %s4663_s17 }
   0xd   : > { %p64_p0 = scmp.ne.s32.totalorder %s4567_s15, %s4563_s14  ;;  %p55_p1 = scmp.eq.s32.totalorder %s54_s19, 0 }
   0xe   : > { %p65_p2 = scmp.eq.s32.totalorder %s4571_s16, 0  ;;  %p3976_p3 = scmp.lt.s32.totalorder %s4571_s16, 2 }
   0xf   : > { %s4673_s20 = scalar_select %p55_p1, %s4567_s15, %s57_s18  }
  0x10   : > { %p66_p4 = por %p65_p2, %p64_p0  ;;  %s6324_s21 = sand.u32 1, %s4571_s16  }
  0x11   : > { %6393 = sst [smem:[#allocation20_spill]] %s4673_s20  ;;  %s6323_s22 = sand.u32 1, %s4567_s15  }
  0x12   : > { %s4678_s23 = sshll.u32 %s4571_s16, 12  ;;  %s4682_s24 = sshll.u32 %s6323_s22, 8 }
  0x13   : > { %p4684_p5 = pnand %p3976_p3, %p66_p4  ;;  %s6395_s2 = sld [smem:[#allocation56_spill]] }
  0x14   : > { %s373_s29 = scalar_lea.vmem [#allocation6], %s4682_s24  ;;  %s4699_s11 = scalar_lea.sflag [#allocation7], %s6324_s21 }
  0x15   : > { %s381_s30 = sshll.u32 %s373_s29, 4  ;;  %p4705_p7 = pneg %p4684_p5  ;;  %s4695_s30 = int_to_ptr.vmem [resolvable:$true] %s381_s30 }
  0x19   : > { %s4692_s28 = scalar_lea.hbm %s6395_s2, %s4678_s23  ;;  %s4329_s27 = scalar_lea.hbm %s6395_s2, 8192 }
  0x1a   : > { %s4324_s12 = scalar_lea.hbm %s4692_s28, 4096  ;;  %p4330_p10 = scmp.lt.u32.totalorder %s4692_s28, %s6395_s2 }
  0x1b   : > { %p4325_p6 = scmp.ne.s32.totalorder %s4692_s28, %s4324_s12  ;;  %p4331_p11 = scmp.lt.u32.totalorder %s4329_s27, %s4324_s12 }
  0x1c   : > { %p4333_p13 = scmp.lt.u32.totalorder %s4324_s12, %s4692_s28 }
  0x1d   : > { %p4327_p8 = pnand %p4705_p7, %p4325_p6  ;;  %p4332_p12 = por %p4331_p11, %p4330_p10 }
  0x1f   : > { %p4328_p9 = pneg %p4327_p8  ;;  %p4334_p0 = por %p4333_p13, %p4332_p12 }
  0x21   : > { %p4335_p1 = pnand %p4334_p0, %p4328_p9 }
  0x23   : > { %4338 = shalt.err (!%p4335_p1)
}
  0x24   : > { %s4339_s21 = scalar_lea.vmem %s4695_s30, 4096  ;;  %s4573_s19 = smov [#allocation6]  }
  0x25   : > { %p4340_p2 = scmp.ne.s32.totalorder %s4695_s30, %s4339_s21  ;;  %s4344_s26 = sshll.u32 %s4573_s19, 4  ;;  %s4345_s26 = int_to_ptr.vmem [resolvable:$false] %s4344_s26 }
  0x26   : > { %s4346_s22 = scalar_lea.vmem %s4345_s26, 8192  ;;  %p4347_p6 = scmp.lt.s32.totalorder %s4695_s30, %s4345_s26 }
  0x27   : > { %p4342_p3 = pnand %p4340_p2, %p4705_p7  ;;  %p4348_p8 = scmp.lt.s32.totalorder %s4346_s22, %s4339_s21 }
  0x29   : > { %p4343_p4 = pneg %p4342_p3  ;;  %p4349_p10 = por %p4348_p8, %p4347_p6 }
  0x2b   : > { %p4350_p11 = pnand %p4349_p10, %p4343_p4 }
  0x2d   : > { %4353 = shalt.err (!%p4350_p11)
}
  0x2e   : > { %s6327_s12 = smov 256   ;;  %s4575_s27 = smov 16  }
  0x2f   : > { %3964 = dma.hbm_to_vmem [thread:$0]  (!%p4684_p5), %s4692_s28, 4096, %s4695_s30, %s4699_s11, %s6327_s12, %s6327_s12, %s4575_s27  }
  0x30   : > { %s6397_s1 = sld [smem:[#allocation55_spill]]  ;;  %s351_s26 = scalar_lea.vmem [#allocation5], %s4682_s24 }
  0x31   : > { %s359_s22 = sshll.u32 %s351_s26, 4  ;;  %s6398_s2 = sand.u32 1, %s4571_s16   ;;  %s4739_s22 = int_to_ptr.vmem [resolvable:$true] %s359_s22 }
  0x32   : > { %s4743_s20 = scalar_lea.sflag [#allocation3], %s6398_s2 }
  0x36   : > { %s4736_s19 = scalar_lea.hbm %s6397_s1, %s4678_s23  ;;  %s4359_s29 = scalar_lea.hbm %s6397_s1, 8192 }
  0x37   : > { %s4354_s17 = scalar_lea.hbm %s4736_s19, 4096  ;;  %p4360_p0 = scmp.lt.u32.totalorder %s4736_s19, %s6397_s1 }
  0x38   : > { %p4355_p9 = scmp.ne.s32.totalorder %s4736_s19, %s4354_s17  ;;  %p4361_p1 = scmp.lt.u32.totalorder %s4359_s29, %s4354_s17 }
  0x39   : > { %p4363_p3 = scmp.lt.u32.totalorder %s4354_s17, %s4736_s19 }
  0x3a   : > { %p4357_p12 = pnand %p4355_p9, %p4705_p7  ;;  %p4362_p2 = por %p4361_p1, %p4360_p0 }
  0x3c   : > { %p4358_p13 = pneg %p4357_p12  ;;  %p4364_p4 = por %p4363_p3, %p4362_p2 }
  0x3e   : > { %p4365_p6 = pnand %p4364_p4, %p4358_p13 }
  0x40   : > { %4368 = shalt.err (!%p4365_p6)
}
  0x41   : > { %s4369_s2 = scalar_lea.vmem %s4739_s22, 4096  ;;  %s4576_s26 = smov [#allocation5]  }
  0x42   : > { %p4370_p8 = scmp.ne.s32.totalorder %s4739_s22, %s4369_s2  ;;  %s4374_s28 = sshll.u32 %s4576_s26, 4  ;;  %s4375_s28 = int_to_ptr.vmem [resolvable:$false] %s4374_s28 }
  0x43   : > { %s4376_s12 = scalar_lea.vmem %s4375_s28, 8192  ;;  %p4377_p9 = scmp.lt.s32.totalorder %s4739_s22, %s4375_s28 }
  0x44   : > { %p4372_p10 = pnand %p4370_p8, %p4705_p7  ;;  %p4378_p12 = scmp.lt.s32.totalorder %s4376_s12, %s4369_s2 }
  0x46   : > { %p4373_p11 = pneg %p4372_p10  ;;  %p4379_p0 = por %p4378_p12, %p4377_p9 }
  0x48   : > { %p4380_p1 = pnand %p4379_p0, %p4373_p11 }
  0x4a   : > { %4383 = shalt.err (!%p4380_p1)
}
  0x4b   : > { %s6399_s17 = smov 256   ;;  %s4774_s21 = scalar_lea.hbm %s6315_s3, %s4678_s23 }
  0x4c   : > { %3961 = dma.hbm_to_vmem [thread:$0]  (!%p4684_p5), %s4736_s19, 4096, %s4739_s22, %s4743_s20, %s6399_s17, %s6399_s17, %s4575_s27  }
  0x4d   : > { %s395_s2 = scalar_lea.vmem [#allocation8], %s4682_s24  ;;  %s4384_s28 = scalar_lea.hbm %s4774_s21, 4096 }
  0x4e   : > { %s403_s26 = sshll.u32 %s395_s2, 4  ;;  %p4385_p13 = scmp.ne.s32.totalorder %s4774_s21, %s4384_s28  ;;  %s4777_s26 = int_to_ptr.vmem [resolvable:$true] %s403_s26 }
  0x4f   : > { %s4389_s22 = scalar_lea.hbm %s6315_s3, 8192  ;;  %p4390_p4 = scmp.lt.u32.totalorder %s4774_s21, %s6315_s3 }
  0x50   : > { %p4387_p2 = pnand %p4385_p13, %p4705_p7  ;;  %p4391_p6 = scmp.lt.u32.totalorder %s4389_s22, %s4384_s28 }
  0x51   : > { %p4393_p10 = scmp.lt.u32.totalorder %s4384_s28, %s4774_s21 }
  0x52   : > { %p4388_p3 = pneg %p4387_p2  ;;  %p4392_p8 = por %p4391_p6, %p4390_p4 }
  0x54   : > { %p4394_p11 = por %p4393_p10, %p4392_p8 }
  0x56   : > { %p4395_p9 = pnand %p4394_p11, %p4388_p3 }
  0x58   : > { %4398 = shalt.err (!%p4395_p9)
}
  0x59   : > { %s4399_s24 = scalar_lea.vmem %s4777_s26, 4096  ;;  %s4577_s29 = smov [#allocation8]  }
  0x5a   : > { %p4400_p12 = scmp.ne.s32.totalorder %s4777_s26, %s4399_s24  ;;  %s4404_s2 = sshll.u32 %s4577_s29, 4  ;;  %s4405_s2 = int_to_ptr.vmem [resolvable:$false] %s4404_s2 }
  0x5b   : > { %s4406_s12 = scalar_lea.vmem %s4405_s2, 8192  ;;  %p4407_p13 = scmp.lt.s32.totalorder %s4777_s26, %s4405_s2 }
  0x5c   : > { %p4402_p0 = pnand %p4400_p12, %p4705_p7  ;;  %p4408_p2 = scmp.lt.s32.totalorder %s4406_s12, %s4399_s24 }
  0x5e   : > { %p4403_p1 = pneg %p4402_p0  ;;  %p4409_p4 = por %p4408_p2, %p4407_p13 }
  0x60   : > { %p4410_p6 = pnand %p4409_p4, %p4403_p1 }
  0x62   : > { %4413 = shalt.err (!%p4410_p6)
}
  0x63   : > { %3967 = dma.hbm_to_vmem [thread:$0]  (!%p4684_p5), %s4774_s21, 4096, %s4777_s26, %s4699_s11, %s6399_s17, %s6399_s17, %s4575_s27  }
  0x64   : > { %s4805_s28 = sadd.s32 4294967295, %s4571_s16   ;;  %p70_p3 = scmp.ne.s32.totalorder %s4563_s14, %s4559_s13 }
  0x65   : > { %p6329_p8 = scmp.eq.s32.totalorder %s4805_s28, 0  ;;  %p3586_p10 = scmp.ge.s32.totalorder %s4571_s16, 1 }
  0x66   : > { %p310_p11 = scmp.lt.s32.totalorder %s4571_s16, 3  ;;  %s6402_s0 = sld [smem:[#allocation54_spill]] }
  0x67   : > { %p4814_p9 = por %p6329_p8, %p70_p3  ;;  %s4578_s13 = smov [#allocation9]  }
  0x68   : > { %p4818_p12 = pnand %p3586_p10, %p310_p11  ;;  %s333_s21 = sshll.u32 %s4578_s13, 4  ;;  %s4833_s21 = int_to_ptr.vmem [resolvable:$true] %s333_s21 }
  0x69   : > { %s6400_s19 = scalar_select %p4814_p9, 1, 0 }
  0x6a   : > { %s6401_s22 = scalar_select %p4818_p12, 1, 0 }
  0x6b   : > { %p3951_p0 = pneg %p4818_p12  ;;  %s6404_s23 = sand.u32 1, %s4567_s15  }
  0x6c   : > { %s323_s17 = sshll.u32 %s6402_s0, 4  ;;  %s4837_s24 = sshll.u32 %s6404_s23, 7  ;;  %s324_s17 = int_to_ptr.vmem [resolvable:$true] %s323_s17 }
  0x6d   : > { %p4829_p1 = pnand %p3951_p0, %p6329_p8  ;;  %s4414_s29 = scalar_lea.vmem %s324_s17, 16 }
  0x6e   : > { %p4415_p13 = scmp.ne.s32.totalorder %s324_s17, %s4414_s29  ;;  %p4422_p3 = scmp.lt.s32.totalorder %s324_s17, %s324_s17 }
  0x6f   : > { %p4416_p2 = pneg %p4829_p1  ;;  %p4423_p10 = scmp.lt.s32.totalorder %s4414_s29, %s4414_s29 }
  0x71   : > { %p4417_p4 = pnand %p4416_p2, %p4415_p13  ;;  %p4424_p11 = por %p4423_p10, %p4422_p3 }
  0x73   : > { %p4418_p6 = pneg %p4417_p4 }
  0x75   : > { %p4425_p0 = pnand %p4424_p11, %p4418_p6 }
  0x77   : > { %4428 = shalt.err (!%p4425_p0)
}
  0x78   : > { %s4579_s2 = smov [#allocation2]   ;;  %s4429_s27 = scalar_lea.hbm %s6316_s4, 12288 }
  0x79   : > { %3954 = dma.vmem_to_smem (!%p4829_p1), %s324_s17, 16, %s4579_s2, [#allocation4]  }
  0x7a   : > { %p4430_p8 = scmp.ne.s32.totalorder %s6316_s4, %s4429_s27  ;;  %p4436_p6 = scmp.lt.u32.totalorder %s4429_s27, %s6316_s4 }
  0x7c   : > { %p4432_p13 = pnand %p4430_p8, %p4416_p2 }
  0x7e   : > { %p4433_p4 = pneg %p4432_p13 }
  0x80   : > { %p4438_p3 = pnand %p4436_p6, %p4433_p4 }
  0x82   : > { %4441 = shalt.err (!%p4438_p3)
}
  0x83   : > { %s4442_s17 = scalar_lea.vmem %s4833_s21, 12288  ;;  %p4450_p9 = scmp.lt.s32.totalorder %s4833_s21, %s4833_s21 }
  0x84   : > { %p4443_p10 = scmp.ne.s32.totalorder %s4833_s21, %s4442_s17  ;;  %p4451_p8 = scmp.lt.s32.totalorder %s4442_s17, %s4442_s17 }
  0x86   : > { %p4445_p11 = pnand %p4443_p10, %p4416_p2  ;;  %p4452_p13 = por %p4451_p8, %p4450_p9 }
  0x88   : > { %p4446_p0 = pneg %p4445_p11 }
  0x8a   : > { %p4453_p12 = pnand %p4452_p13, %p4446_p0 }
  0x8c   : > { %4456 = shalt.err (!%p4453_p12)
}
  0x8d   : > { %s4580_s0 = smov 384   ;;  %s4581_s2 = smov 24  }
  0x8e   : > { %3957 = dma.hbm_to_vmem [thread:$0]  (!%p4829_p1), %s6316_s4, 12288, %s4833_s21, [#allocation10], %s4580_s0, %s4580_s0, %s4581_s2  }
  0x8f   : > { %s3815_s27 = sshll.u32 %s4571_s16, 11  ;;  %s417_s13 = scalar_lea.vmem [#allocation11], %s4837_s24 }
  0x90   : > { %s424_s23 = sshll.u32 %s417_s13, 4  ;;  %s4878_s1 = scalar_lea.hbm %s6317_s5, %s3815_s27  ;;  %s4880_s23 = int_to_ptr.vmem [resolvable:$true] %s424_s23 }
  0x91   : > { %s4457_s26 = scalar_lea.hbm %s4878_s1, 2048  ;;  %s4462_s2 = scalar_lea.hbm %s6317_s5, 4096 }
  0x92   : > { %p4458_p9 = scmp.ne.s32.totalorder %s4878_s1, %s4457_s26  ;;  %p4463_p2 = scmp.lt.u32.totalorder %s4878_s1, %s6317_s5 }
  0x93   : > { %p4464_p4 = scmp.lt.u32.totalorder %s4462_s2, %s4457_s26  ;;  %p4466_p3 = scmp.lt.u32.totalorder %s4457_s26, %s4878_s1 }
  0x94   : > { %p4460_p12 = pnand %p4458_p9, %p4705_p7 }
  0x95   : > { %p4465_p6 = por %p4464_p4, %p4463_p2 }
  0x96   : > { %p4461_p1 = pneg %p4460_p12 }
  0x97   : > { %p4467_p10 = por %p4466_p3, %p4465_p6 }
  0x99   : > { %p4468_p11 = pnand %p4467_p10, %p4461_p1 }
  0x9b   : > { %4471 = shalt.err (!%p4468_p11)
}
  0x9c   : > { %s4472_s13 = scalar_lea.vmem %s4880_s23, 2048  ;;  %s4582_s29 = smov [#allocation11]  }
  0x9d   : > { %p4473_p0 = scmp.ne.s32.totalorder %s4880_s23, %s4472_s13  ;;  %s4477_s17 = sshll.u32 %s4582_s29, 4  ;;  %s4478_s17 = int_to_ptr.vmem [resolvable:$false] %s4477_s17 }
  0x9e   : > { %s4479_s21 = scalar_lea.vmem %s4478_s17, 4096  ;;  %p4480_p9 = scmp.lt.s32.totalorder %s4880_s23, %s4478_s17 }
  0x9f   : > { %p4475_p8 = pnand %p4473_p0, %p4705_p7  ;;  %p4481_p12 = scmp.lt.s32.totalorder %s4479_s21, %s4472_s13 }
  0xa1   : > { %p4476_p13 = pneg %p4475_p8  ;;  %p4482_p2 = por %p4481_p12, %p4480_p9 }
  0xa3   : > { %p4483_p4 = pnand %p4482_p2, %p4476_p13 }
  0xa5   : > { %4486 = shalt.err (!%p4483_p4)
}
  0xa6   : > { %s4583_s26 = smov 128   ;;  %s4584_s0 = smov 8  }
  0xa7   : > { %3970 = dma.hbm_to_vmem [thread:$0]  (!%p4684_p5), %s4878_s1, 2048, %s4880_s23, %s4743_s20, %s4583_s26, %s4583_s26, %s4584_s0  }
  0xa8   : > { %s4912_s30 = scalar_lea.hbm %s6318_s6, %s3815_s27  ;;  %s438_s13 = scalar_lea.vmem [#allocation12], %s4837_s24 }
  0xa9   : > { %s445_s29 = sshll.u32 %s438_s13, 4  ;;  %s4487_s17 = scalar_lea.hbm %s4912_s30, 2048  ;;  %s4915_s29 = int_to_ptr.vmem [resolvable:$true] %s445_s29 }
  0xaa   : > { %p4488_p1 = scmp.ne.s32.totalorder %s4912_s30, %s4487_s17  ;;  %s4492_s20 = scalar_lea.hbm %s6318_s6, 4096 }
  0xab   : > { %p4493_p10 = scmp.lt.u32.totalorder %s4912_s30, %s6318_s6  ;;  %p4494_p11 = scmp.lt.u32.totalorder %s4492_s20, %s4487_s17 }
  0xac   : > { %p4490_p6 = pnand %p4488_p1, %p4705_p7  ;;  %p4496_p8 = scmp.lt.u32.totalorder %s4487_s17, %s4912_s30 }
  0xad   : > { %p4495_p0 = por %p4494_p11, %p4493_p10 }
  0xae   : > { %p4491_p3 = pneg %p4490_p6 }
  0xaf   : > { %p4497_p13 = por %p4496_p8, %p4495_p0 }
  0xb1   : > { %p4498_p9 = pnand %p4497_p13, %p4491_p3 }
  0xb3   : > { %4501 = shalt.err (!%p4498_p9)
}
  0xb4   : > { %s4502_s24 = scalar_lea.vmem %s4915_s29, 2048  ;;  %s4585_s21 = smov [#allocation12]  }
  0xb5   : > { %p4503_p12 = scmp.ne.s32.totalorder %s4915_s29, %s4502_s24  ;;  %s4507_s2 = sshll.u32 %s4585_s21, 4  ;;  %s4508_s2 = int_to_ptr.vmem [resolvable:$false] %s4507_s2 }
  0xb6   : > { %s4509_s12 = scalar_lea.vmem %s4508_s2, 4096  ;;  %p4510_p1 = scmp.lt.s32.totalorder %s4915_s29, %s4508_s2 }
  0xb7   : > { %p4505_p2 = pnand %p4503_p12, %p4705_p7  ;;  %p4511_p6 = scmp.lt.s32.totalorder %s4509_s12, %s4502_s24 }
  0xb9   : > { %p4506_p4 = pneg %p4505_p2  ;;  %p4512_p10 = por %p4511_p6, %p4510_p1 }
  0xbb   : > { %p4513_p11 = pnand %p4512_p10, %p4506_p4 }
  0xbd   : > { %4516 = shalt.err (!%p4513_p11)
}
  0xbe   : > { %3973 = dma.hbm_to_vmem [thread:$0]  (!%p4684_p5), %s4912_s30, 2048, %s4915_s29, %s4699_s11, %s4583_s26, %s4583_s26, %s4584_s0  }
  0xbf   : > { %p6405_p7 = scmp.ne.s32.totalorder %s6401_s22, 0 }
  0xc1   : > { %457 = sbr.rel (%p6405_p7) target bundleno = 1035 (0x40b), region = 48 }
  0xc8   : > { %p6406_p3 = scmp.eq.s32.totalorder %s4805_s28, 0 }
  0xca   : > { %4534 = dma.done.wait (%p6406_p3), [#allocation4], 16   ;;  %p6407_p0 = pmov %p6406_p3 }
  0xcb   : > { %s463_s25 = sand.u32 1, %s4805_s28   ;;  %s465_s18 = sand.u32 1, %s4563_s14  }
  0xcc   : > { %4536 = vsyncadd (%p6407_p0), [#allocation4], 4294967280  ;;  %s3610_s13 = sshll.u32 %s465_s18, 8  ;;  %s464_s17 = scalar_lea.sflag [#allocation3], %s463_s25 }
  0xcd   : > { %s4950_s1 = scalar_lea.vmem [#allocation5], %s3610_s13  ;;  %p6408_p8 = scmp.ne.s32.totalorder %s6400_s19, 0 }
  0xcf   : > { %4538 = dma.done.wait (%p6408_p8), %s464_s17, 4096  }
  0xd0   : > { %4540 = vsyncadd (%p6408_p8), %s464_s17, 4294963200  ;;  %s473_s11 = scalar_lea.sflag [#allocation7], %s463_s25  ;;  %s4956_s22 = scalar_lea.vmem [#allocation6], %s3610_s13 }
  0xd1   : > { %4542 = dma.done.wait (%p6408_p8), %s473_s11, 8192  }
  0xd2   : > { %4544 = vsyncadd (%p6408_p8), %s473_s11, 4294959104  ;;  %s4962_s26 = scalar_lea.vmem [#allocation8], %s3610_s13  ;;  %p6409_p5 = pmov %p6407_p0 }
  0xd3   : > { %p6410_p13 = pmov %p6407_p0 }
  0xd4   : > { %4546 = dma.done.wait (%p6409_p5), [#allocation10], 12288  }
  0xd5   : > { %4548 = vsyncadd (%p6410_p13), [#allocation10], 4294955008  ;;  %s3614_s0 = sshll.u32 %s465_s18, 7 }
  0xd6   : > { %s4968_s30 = scalar_lea.vmem [#allocation11], %s3614_s0 }
  0xd7   : > { %4550 = dma.done.wait (%p6408_p8), %s464_s17, 2048  }
  0xd8   : > { %4552 = vsyncadd (%p6408_p8), %s464_s17, 4294965248  ;;  %s4974_s29 = scalar_lea.vmem [#allocation12], %s3614_s0 }
  0xd9   : > { %4554 = dma.done.wait (%p6408_p8), %s473_s11, 2048  }
  0xda   : > { %4556 = vsyncadd (%p6408_p8), %s473_s11, 4294965248 }
  0xdb   : > { %512 = sfence }
  0xdc   : > { %s617_s16 = sld [smem:[#allocation2]]  ;;  %s3628_s20 = sld [smem:[#allocation2 + $0x1]]  ;;  %v621_v0 = vld [vmem:[%s4950_s1] sm:$0xff]  ;;  %v622_v1 = vld [vmem:[%s4950_s1 + $0x8] sm:$0xff]  ;;  %v623_v4 = vld [vmem:[%s4950_s1 + $0x10] sm:$0xff] }
  0xdd   : > { %s3616_s23 = sshll.u32 %s4805_s28, 4  ;;  %v686_v2 = vld [vmem:[%s4956_s22] sm:$0xff]  ;;  %v687_v3 = vld [vmem:[%s4956_s22 + $0x8] sm:$0xff]  ;;  %v624_v5 = vld [vmem:[%s4950_s1 + $0x18] sm:$0xff]  ;;  %s3630_s21 = sld [smem:[#allocation2 + $0x3]] }
  0xde   : > { %p590_p9 = scmp.lt.s32.totalorder %s3616_s23, 31  ;;  %v688_v6 = vld [vmem:[%s4956_s22 + $0x10] sm:$0xff]  ;;  %v689_v7 = vld [vmem:[%s4956_s22 + $0x18] sm:$0xff]  ;;  %v625_v10 = vld [vmem:[%s4950_s1 + $0x20] sm:$0xff]  ;;  %s3629_s2 = sld [smem:[#allocation2 + $0x2]] }
  0xdf   : > { %v626_v11 = vld [vmem:[%s4950_s1 + $0x28] sm:$0xff]  ;;  %v690_v16 = vld [vmem:[%s4956_s22 + $0x20] sm:$0xff]  ;;  %v627_v22 = vld [vmem:[%s4950_s1 + $0x30] sm:$0xff]  ;;  %s4586_s17 = smov 64  }
  0xe0   : > { %s6531_s23 = smov (!%p590_p9, %s3616_s23), 31  ;;  %v691_v17 = vld [vmem:[%s4956_s22 + $0x28] sm:$0xff]  ;;  %v628_v23 = vld [vmem:[%s4950_s1 + $0x38] sm:$0xff]  ;;  %v692_v32 = vld [vmem:[%s4956_s22 + $0x30] sm:$0xff] }
  0xe1   : > { %s3817_s28 = sshll.u32 %s6531_s23, 4  ;;  %v693_v33 = vld [vmem:[%s4956_s22 + $0x38] sm:$0xff]  ;;  %v631_v34 = vld [vmem:[%s4950_s1 + $0x50] sm:$0xff]  ;;  %v629_v50 = vld [vmem:[%s4950_s1 + $0x40] sm:$0xff]  ;;  %s5623_s12 = sshll.u32 %s6531_s23, 3 }
  0xe2   : > { %v4991_v8 = vstv %s617_s16  ;;  %v4993_v9 = vstv %s3628_s20  ;;  %s5007_s24 = scalar_lea.vmem %s6319_s7, %s3817_s28  ;;  %v632_v39 = vld [vmem:[%s4950_s1 + $0x58] sm:$0xff]  ;;  %v696_v44 = vld [vmem:[%s4956_s22 + $0x50] sm:$0xff]  ;;  %s5643_s13 = scalar_lea.vmem %s6322_s10, %s5623_s12 }
  0xe3   : > { %v654_v12 = vmul.f32 %v4991_v8, %v621_v0  ;;  %v655_v13 = vmul.f32 %v4991_v8, %v622_v1  ;;  %v719_v14 = vmul.f32 %v4993_v9, %v686_v2  ;;  %v720_v15 = vmul.f32 %v4993_v9, %v687_v3  ;;  %v697_v45 = vld [vmem:[%s4956_s22 + $0x58] sm:$0xff]  ;;  %v630_v51 = vld [vmem:[%s4950_s1 + $0x48] sm:$0xff]  ;;  %v694_v52 = vld [vmem:[%s4956_s22 + $0x40] sm:$0xff]  ;;  %s6116_s16 = scalar_lea.vmem %s6320_s8, %s5623_s12 }
  0xe4   : > { %v656_v18 = vmul.f32 %v4991_v8, %v623_v4  ;;  %v657_v19 = vmul.f32 %v4991_v8, %v624_v5  ;;  %v721_v20 = vmul.f32 %v4993_v9, %v688_v6  ;;  %v722_v21 = vmul.f32 %v4993_v9, %v689_v7  ;;  %v695_v61 = vld [vmem:[%s4956_s22 + $0x48] sm:$0xff]  ;;  %v635_v62 = vld [vmem:[%s4950_s1 + $0x70] sm:$0xff]  ;;  %v636_v63 = vld [vmem:[%s4950_s1 + $0x78] sm:$0xff] }
  0xe5   : > { %v5015_v24 = vadd.f32 %v719_v14, %v654_v12  ;;  %v5017_v25 = vadd.f32 %v720_v15, %v655_v13  ;;  %v658_v26 = vmul.f32 %v4991_v8, %v625_v10  ;;  %v659_v27 = vmul.f32 %v4991_v8, %v626_v11  ;;  %v700_v4 = vld [vmem:[%s4956_s22 + $0x70] sm:$0xff]  ;;  %v701_v11 = vld [vmem:[%s4956_s22 + $0x78] sm:$0xff]  ;;  %v633_v12 = vld [vmem:[%s4950_s1 + $0x60] sm:$0xff] }
  0xe6   : > { %v5021_v28 = vadd.f32 %v721_v20, %v656_v18  ;;  %v5023_v29 = vadd.f32 %v722_v21, %v657_v19  ;;  %v723_v30 = vmul.f32 %v4993_v9, %v690_v16  ;;  %v724_v31 = vmul.f32 %v4993_v9, %v691_v17  ;;  %v634_v17 = vld [vmem:[%s4950_s1 + $0x68] sm:$0xff]  ;;  %v698_v18 = vld [vmem:[%s4956_s22 + $0x60] sm:$0xff] }
  0xe7   : > { %v815_v35 = vmul.f32 %v5015_v24, %v5015_v24  ;;  %v816_v36 = vmul.f32 %v5017_v25, %v5017_v25  ;;  %783 = vst [vmem:[%s5007_s24] sm:$0xff] %v5015_v24  ;;  %784 = vst [vmem:[%s5007_s24 + $0x8] sm:$0xff] %v5017_v25  ;;  %v660_v37 = vmul.f32 %v4991_v8, %v627_v22 }
  0xe8   : > { %v661_v38 = vmul.f32 %v4991_v8, %v628_v23  ;;  %v817_v40 = vmul.f32 %v5021_v28, %v5021_v28  ;;  %v818_v41 = vmul.f32 %v5023_v29, %v5023_v29  ;;  %785 = vst [vmem:[%s5007_s24 + $0x10] sm:$0xff] %v5021_v28  ;;  %786 = vst [vmem:[%s5007_s24 + $0x18] sm:$0xff] %v5023_v29  ;;  %v699_v23 = vld [vmem:[%s4956_s22 + $0x68] sm:$0xff] }
  0xe9   : > { %v5049_v42 = vadd.f32 %v723_v30, %v658_v26  ;;  %v5051_v43 = vadd.f32 %v724_v31, %v659_v27  ;;  %v847_v46 = vadd.f32 %v816_v36, %v815_v35  ;;  %v725_v47 = vmul.f32 %v4993_v9, %v692_v32  ;;  %v639_v26 = vld [vmem:[%s4950_s1 + $0x90] sm:$0xff] }
  0xea   : > { %v726_v48 = vmul.f32 %v4993_v9, %v693_v33  ;;  %v664_v49 = vmul.f32 %v4991_v8, %v631_v34  ;;  %v850_v53 = vadd.f32 %v818_v41, %v817_v40  ;;  %v665_v56 = vmul.f32 %v4991_v8, %v632_v39  ;;  %v640_v33 = vld [vmem:[%s4950_s1 + $0x98] sm:$0xff]  ;;  %v704_v34 = vld [vmem:[%s4956_s22 + $0x90] sm:$0xff]  ;;  %v637_v40 = vld [vmem:[%s4950_s1 + $0x80] sm:$0xff] }
  0xeb   : > { %v819_v54 = vmul.f32 %v5049_v42, %v5049_v42  ;;  %v820_v55 = vmul.f32 %v5051_v43, %v5051_v43  ;;  %787 = vst [vmem:[%s5007_s24 + $0x20] sm:$0xff] %v5049_v42  ;;  %788 = vst [vmem:[%s5007_s24 + $0x28] sm:$0xff] %v5051_v43  ;;  %848 = vadd.xlane.f32.xlu0 %v847_v46  ;;  %v5070_v57 = vadd.f32 %v725_v47, %v660_v37  ;;  %v705_v39 = vld [vmem:[%s4956_s22 + $0x98] sm:$0xff]  ;;  %v638_v41 = vld [vmem:[%s4950_s1 + $0x88] sm:$0xff] }
  0xec   : > { %v5072_v58 = vadd.f32 %v726_v48, %v661_v38  ;;  %v729_v59 = vmul.f32 %v4993_v9, %v696_v44  ;;  %v730_v60 = vmul.f32 %v4993_v9, %v697_v45  ;;  %v662_v1 = vmul.f32 %v4991_v8, %v629_v50  ;;  %v702_v48 = vld [vmem:[%s4956_s22 + $0x80] sm:$0xff]  ;;  %v643_v50 = vld [vmem:[%s4950_s1 + $0xb0] sm:$0xff] }
  0xed   : > { %v853_v0 = vadd.f32 %v820_v55, %v819_v54  ;;  %v663_v2 = vmul.f32 %v4991_v8, %v630_v51  ;;  %v727_v3 = vmul.f32 %v4993_v9, %v694_v52  ;;  %v821_v5 = vmul.f32 %v5070_v57, %v5070_v57  ;;  %789 = vst [vmem:[%s5007_s24 + $0x30] sm:$0xff] %v5070_v57  ;;  %v4020_v51 = vld [vmem:[#allocation9 + $0x4] ss:$24 sps:$4 sm:$0xff]  }
  0xee   : > { %v822_v6 = vmul.f32 %v5072_v58, %v5072_v58  ;;  %790 = vst [vmem:[%s5007_s24 + $0x38] sm:$0xff] %v5072_v58  ;;  %v5091_v7 = vadd.f32 %v729_v59, %v664_v49  ;;  %v5093_v10 = vadd.f32 %v730_v60, %v665_v56  ;;  %v728_v13 = vmul.f32 %v4993_v9, %v695_v61  ;;  %v703_v49 = vld [vmem:[%s4956_s22 + $0x88] sm:$0xff]  ;;  %v644_v56 = vld [vmem:[%s4950_s1 + $0xb8] sm:$0xff]  ;;  %v708_v59 = vld [vmem:[%s4956_s22 + $0xb0] sm:$0xff] }
  0xef   : > { %854 = vadd.xlane.f32.xlu1 %v853_v0  ;;  %v5098_v14 = vadd.f32 %v727_v3, %v662_v1  ;;  %v668_v15 = vmul.f32 %v4991_v8, %v635_v62  ;;  %v669_v16 = vmul.f32 %v4991_v8, %v636_v63  ;;  %851 = vadd.xlane.f32.xlu0 %v850_v53  ;;  %v4022_v60 = vld [vmem:[#allocation9 + $0xc] ss:$24 sps:$4 sm:$0xff]   ;;  %v4024_v61 = vld [vmem:[#allocation9] ss:$24 sps:$4 sm:$0xff]  }
  0xf0   : > { %v856_v19 = vadd.f32 %v822_v6, %v821_v5  ;;  %v825_v20 = vmul.f32 %v5091_v7, %v5091_v7  ;;  %v826_v21 = vmul.f32 %v5093_v10, %v5093_v10  ;;  %793 = vst [vmem:[%s5007_s24 + $0x50] sm:$0xff] %v5091_v7  ;;  %794 = vst [vmem:[%s5007_s24 + $0x58] sm:$0xff] %v5093_v10  ;;  %1568 = vmatprep.subr.bf16.mxu0 %v4020_v51  ;;  %v4025_v3 = vld [vmem:[#allocation9 + $0x8] ss:$24 sps:$4 sm:$0xff]  }
  0xf1   : > { %v733_v22 = vmul.f32 %v4993_v9, %v700_v4  ;;  %v5115_v27 = vadd.f32 %v728_v13, %v663_v2  ;;  %v823_v30 = vmul.f32 %v5098_v14, %v5098_v14  ;;  %791 = vst [vmem:[%s5007_s24 + $0x40] sm:$0xff] %v5098_v14  ;;  %v734_v31 = vmul.f32 %v4993_v9, %v701_v11  ;;  %v709_v2 = vld [vmem:[%s4956_s22 + $0xb8] sm:$0xff] }
  0xf2   : > { %v666_v32 = vmul.f32 %v4991_v8, %v633_v12  ;;  %v862_v35 = vadd.f32 %v826_v21, %v825_v20  ;;  %v667_v37 = vmul.f32 %v4991_v8, %v634_v17  ;;  %v731_v38 = vmul.f32 %v4993_v9, %v698_v18  ;;  %1681 = vmatprep.subr.bf16.mxu1 %v4022_v60  ;;  %v4026_v12 = vld [vmem:[#allocation9 + $0x34] ss:$24 sps:$4 sm:$0xff]   ;;  %v641_v17 = vld [vmem:[%s4950_s1 + $0xa0] sm:$0xff] }
  0xf3   : > { %v5125_v36 = vadd.f32 %v733_v22, %v668_v15  ;;  %857 = vadd.xlane.f32.xlu1 %v856_v19  ;;  %v824_v44 = vmul.f32 %v5115_v27, %v5115_v27  ;;  %792 = vst [vmem:[%s5007_s24 + $0x48] sm:$0xff] %v5115_v27  ;;  %v5136_v45 = vadd.f32 %v734_v31, %v669_v16  ;;  %v642_v18 = vld [vmem:[%s4950_s1 + $0xa8] sm:$0xff]  ;;  %v706_v19 = vld [vmem:[%s4956_s22 + $0xa0] sm:$0xff]  ;;  %v648_v31 = vld [vmem:[%s4950_s1 + $0xd8] sm:$0xff] }
  0xf4   : > { %v732_v46 = vmul.f32 %v4993_v9, %v699_v23  ;;  %v672_v47 = vmul.f32 %v4991_v8, %v639_v26  ;;  %v5147_v53 = vadd.f32 %v731_v38, %v666_v32  ;;  %v673_v54 = vmul.f32 %v4991_v8, %v640_v33  ;;  %v707_v26 = vld [vmem:[%s4956_s22 + $0xa8] sm:$0xff]  ;;  %1569 = vmatpush1.bf16.msra.mxu0 %v4024_v61  ;;  %v4028_v32 = vld [vmem:[#allocation9 + $0x3c] ss:$24 sps:$4 sm:$0xff]  }
  0xf5   : > { %v829_v52 = vmul.f32 %v5125_v36, %v5125_v36  ;;  %797 = vst [vmem:[%s5007_s24 + $0x70] sm:$0xff] %v5125_v36  ;;  %v737_v55 = vmul.f32 %v4993_v9, %v704_v34  ;;  %v859_v62 = vadd.f32 %v824_v44, %v823_v30  ;;  %v830_v63 = vmul.f32 %v5136_v45, %v5136_v45  ;;  %v647_v30 = vld [vmem:[%s4950_s1 + $0xd0] sm:$0xff] }
  0xf6   : > { %798 = vst [vmem:[%s5007_s24 + $0x78] sm:$0xff] %v5136_v45  ;;  %v5157_v0 = vadd.f32 %v732_v46, %v667_v37  ;;  %v738_v1 = vmul.f32 %v4993_v9, %v705_v39  ;;  %v827_v4 = vmul.f32 %v5147_v53, %v5147_v53  ;;  %795 = vst [vmem:[%s5007_s24 + $0x60] sm:$0xff] %v5147_v53  ;;  %v712_v38 = vld [vmem:[%s4956_s22 + $0xd0] sm:$0xff]  ;;  %1682 = vmatpush1.bf16.msra.mxu1 %v4025_v3 }
  0xf7   : > { %v5165_v5 = vadd.f32 %v737_v55, %v672_v47  ;;  %v670_v6 = vmul.f32 %v4991_v8, %v637_v40  ;;  %v671_v11 = vmul.f32 %v4991_v8, %v638_v41  ;;  %863 = vadd.xlane.f32.xlu1 %v862_v35  ;;  %860 = vadd.xlane.f32.xlu0 %v859_v62  ;;  %v4030_v39 = vld [vmem:[#allocation9 + $0x30] ss:$24 sps:$4 sm:$0xff]   ;;  %v713_v47 = vld [vmem:[%s4956_s22 + $0xd8] sm:$0xff]  ;;  %v710_v55 = vld [vmem:[%s4956_s22 + $0xc0] sm:$0xff] }
  0xf8   : > { %v868_v13 = vadd.f32 %v830_v63, %v829_v52  ;;  %v828_v15 = vmul.f32 %v5157_v0, %v5157_v0  ;;  %796 = vst [vmem:[%s5007_s24 + $0x68] sm:$0xff] %v5157_v0  ;;  %v5173_v16 = vadd.f32 %v738_v1, %v673_v54  ;;  %v735_v21 = vmul.f32 %v4993_v9, %v702_v48  ;;  %v645_v48 = vld [vmem:[%s4950_s1 + $0xc0] sm:$0xff]  ;;  %v711_v62 = vld [vmem:[%s4956_s22 + $0xc8] sm:$0xff]  ;;  %v651_v63 = vld [vmem:[%s4950_s1 + $0xf0] sm:$0xff] }
  0xf9   : > { %v833_v20 = vmul.f32 %v5165_v5, %v5165_v5  ;;  %801 = vst [vmem:[%s5007_s24 + $0x90] sm:$0xff] %v5165_v5  ;;  %v736_v22 = vmul.f32 %v4993_v9, %v703_v49  ;;  %v676_v23 = vmul.f32 %v4991_v8, %v643_v50  ;;  %v677_v35 = vmul.f32 %v4991_v8, %v644_v56  ;;  %v646_v49 = vld [vmem:[%s4950_s1 + $0xc8] sm:$0xff]  ;;  %v4031_v50 = vld [vmem:[#allocation9 + $0x38] ss:$24 sps:$4 sm:$0xff]  }
  0xfa   : > { %v865_v33 = vadd.f32 %v828_v15, %v827_v4  ;;  %v834_v34 = vmul.f32 %v5173_v16, %v5173_v16  ;;  %802 = vst [vmem:[%s5007_s24 + $0x98] sm:$0xff] %v5173_v16  ;;  %v741_v37 = vmul.f32 %v4993_v9, %v708_v59  ;;  %v5195_v40 = vadd.f32 %v735_v21, %v670_v6  ;;  %v652_v6 = vld [vmem:[%s4950_s1 + $0xf8] sm:$0xff] }
  0xfb   : > { %v5197_v41 = vadd.f32 %v736_v22, %v671_v11  ;;  %v742_v44 = vmul.f32 %v4993_v9, %v709_v2  ;;  %v674_v46 = vmul.f32 %v4991_v8, %v641_v17  ;;  %1570 = vmatprep.subr.bf16.mxu0 %v4026_v12  ;;  %869 = vadd.xlane.f32.xlu1 %v868_v13  ;;  %v716_v11 = vld [vmem:[%s4956_s22 + $0xf0] sm:$0xff]  ;;  %v4032_v12 = vld [vmem:[#allocation9 + $0x64] ss:$24 sps:$4 sm:$0xff]  }
  0xfc   : > { %866 = vadd.xlane.f32.xlu0 %v865_v33  ;;  %v874_v51 = vadd.f32 %v834_v34, %v833_v20  ;;  %v5204_v52 = vadd.f32 %v741_v37, %v676_v23  ;;  %v675_v54 = vmul.f32 %v4991_v8, %v642_v18  ;;  %v831_v56 = vmul.f32 %v5195_v40, %v5195_v40  ;;  %v714_v37 = vld [vmem:[%s4956_s22 + $0xe0] sm:$0xff] }
  0xfd   : > { %v832_v59 = vmul.f32 %v5197_v41, %v5197_v41  ;;  %799 = vst [vmem:[%s5007_s24 + $0x80] sm:$0xff] %v5195_v40  ;;  %800 = vst [vmem:[%s5007_s24 + $0x88] sm:$0xff] %v5197_v41  ;;  %v5216_v60 = vadd.f32 %v742_v44, %v677_v35  ;;  %v739_v61 = vmul.f32 %v4993_v9, %v706_v19  ;;  %1683 = vmatprep.subr.bf16.mxu1 %v4028_v32  ;;  %v4034_v19 = vld [vmem:[#allocation9 + $0x6c] ss:$24 sps:$4 sm:$0xff]  }
  0xfe   : > { %v837_v1 = vmul.f32 %v5204_v52, %v5204_v52  ;;  %805 = vst [vmem:[%s5007_s24 + $0xb0] sm:$0xff] %v5204_v52  ;;  %v740_v2 = vmul.f32 %v4993_v9, %v707_v26  ;;  %v680_v3 = vmul.f32 %v4991_v8, %v647_v30  ;;  %v681_v4 = vmul.f32 %v4991_v8, %v648_v31  ;;  %v717_v26 = vld [vmem:[%s4956_s22 + $0xf8] sm:$0xff]  ;;  %v649_v30 = vld [vmem:[%s4950_s1 + $0xe0] sm:$0xff]  ;;  %v650_v31 = vld [vmem:[%s4950_s1 + $0xe8] sm:$0xff] }
  0xff   : > { %1571 = vmatpush1.bf16.msra.mxu0 %v4030_v39  ;;  %v871_v13 = vadd.f32 %v832_v59, %v831_v56  ;;  %v838_v15 = vmul.f32 %v5216_v60, %v5216_v60  ;;  %806 = vst [vmem:[%s5007_s24 + $0xb8] sm:$0xff] %v5216_v60  ;;  %v5234_v17 = vadd.f32 %v739_v61, %v674_v46  ;;  %v4038_v56 = vld [vmem:[#allocation9 + $0x94] ss:$24 sps:$4 sm:$0xff]  }
 0x100   : > { %v745_v18 = vmul.f32 %v4993_v9, %v712_v38  ;;  %1684 = vmatpush1.bf16.msra.mxu1 %v4031_v50  ;;  %875 = vadd.xlane.f32.xlu1 %v874_v51  ;;  %v5237_v20 = vadd.f32 %v740_v2, %v675_v54  ;;  %v746_v21 = vmul.f32 %v4993_v9, %v713_v47  ;;  %v4036_v38 = vld [vmem:[#allocation9 + $0x60] ss:$24 sps:$4 sm:$0xff]  }
 0x101   : > { %v678_v22 = vmul.f32 %v4991_v8, %v645_v48  ;;  %v679_v23 = vmul.f32 %v4991_v8, %v646_v49  ;;  %872 = vadd.xlane.f32.xlu0 %v871_v13  ;;  %v880_v32 = vadd.f32 %v838_v15, %v837_v1  ;;  %v835_v33 = vmul.f32 %v5234_v17, %v5234_v17  ;;  %v715_v48 = vld [vmem:[%s4956_s22 + $0xe8] sm:$0xff]  ;;  %v4040_v1 = vld [vmem:[#allocation9 + $0x9c] ss:$24 sps:$4 sm:$0xff]   ;;  %s6086_s22 = scalar_lea.vmem %s6321_s9, %s5623_s12 }
 0x102   : > { %803 = vst [vmem:[%s5007_s24 + $0xa0] sm:$0xff] %v5234_v17  ;;  %v5249_v34 = vadd.f32 %v745_v18, %v680_v3  ;;  %v743_v35 = vmul.f32 %v4993_v9, %v710_v55  ;;  %v836_v39 = vmul.f32 %v5237_v20, %v5237_v20  ;;  %804 = vst [vmem:[%s5007_s24 + $0xa8] sm:$0xff] %v5237_v20  ;;  %1572 = vmatprep.subr.bf16.mxu0 %v4032_v12  ;;  %v4037_v55 = vld [vmem:[#allocation9 + $0x68] ss:$24 sps:$4 sm:$0xff]  }
 0x103   : > { %v5257_v44 = vadd.f32 %v746_v21, %v681_v4  ;;  %v744_v46 = vmul.f32 %v4993_v9, %v711_v62  ;;  %v684_v47 = vmul.f32 %v4991_v8, %v651_v63  ;;  %v685_v51 = vmul.f32 %v4991_v8, %v652_v6  ;;  %1685 = vmatprep.subr.bf16.mxu1 %v4034_v19  ;;  %v4044_v19 = vld [vmem:[#allocation9 + $0xc4] ss:$24 sps:$4 sm:$0xff]  }
 0x104   : > { %v841_v49 = vmul.f32 %v5249_v34, %v5249_v34  ;;  %809 = vst [vmem:[%s5007_s24 + $0xd0] sm:$0xff] %v5249_v34  ;;  %v5266_v50 = vadd.f32 %v743_v35, %v678_v22  ;;  %v749_v54 = vmul.f32 %v4993_v9, %v716_v11  ;;  %881 = vadd.xlane.f32.xlu1 %v880_v32  ;;  %v4042_v11 = vld [vmem:[#allocation9 + $0x90] ss:$24 sps:$4 sm:$0xff]  }
 0x105   : > { %v877_v59 = vadd.f32 %v836_v39, %v835_v33  ;;  %v842_v61 = vmul.f32 %v5257_v44, %v5257_v44  ;;  %810 = vst [vmem:[%s5007_s24 + $0xd8] sm:$0xff] %v5257_v44  ;;  %v5274_v62 = vadd.f32 %v744_v46, %v679_v23  ;;  %v750_v63 = vmul.f32 %v4993_v9, %v717_v26  ;;  %v4043_v22 = vld [vmem:[#allocation9 + $0x98] ss:$24 sps:$4 sm:$0xff]   ;;  %v4049_v39 = vld [vmem:[#allocation9 + $0xc8] ss:$24 sps:$4 sm:$0xff]  }
 0x106   : > { %v839_v2 = vmul.f32 %v5266_v50, %v5266_v50  ;;  %807 = vst [vmem:[%s5007_s24 + $0xc0] sm:$0xff] %v5266_v50  ;;  %v5281_v3 = vadd.f32 %v749_v54, %v684_v47  ;;  %v682_v4 = vmul.f32 %v4991_v8, %v649_v30  ;;  %v683_v6 = vmul.f32 %v4991_v8, %v650_v31  ;;  %v4046_v31 = vld [vmem:[#allocation9 + $0xcc] ss:$24 sps:$4 sm:$0xff]   ;;  %v4052_v46 = vld [vmem:[#allocation9 + $0xfc] ss:$24 sps:$4 sm:$0xff]  }
 0x107   : > { %1573 = vmatpush1.bf16.msra.mxu0 %v4036_v38  ;;  %878 = vadd.xlane.f32.xlu0 %v877_v59  ;;  %v886_v12 = vadd.f32 %v842_v61, %v841_v49  ;;  %v840_v13 = vmul.f32 %v5274_v62, %v5274_v62  ;;  %808 = vst [vmem:[%s5007_s24 + $0xc8] sm:$0xff] %v5274_v62  ;;  %v4056_v49 = vld [vmem:[#allocation9 + $0x124] ss:$24 sps:$4 sm:$0xff]   ;;  %v4061_v59 = vld [vmem:[#allocation9 + $0x128] ss:$24 sps:$4 sm:$0xff]  }
 0x108   : > { %v5289_v15 = vadd.f32 %v750_v63, %v685_v51  ;;  %v747_v18 = vmul.f32 %v4993_v9, %v714_v37  ;;  %v845_v21 = vmul.f32 %v5281_v3, %v5281_v3  ;;  %813 = vst [vmem:[%s5007_s24 + $0xf0] sm:$0xff] %v5281_v3  ;;  %v748_v8 = vmul.f32 %v4993_v9, %v715_v48  ;;  %v4048_v9 = vld [vmem:[#allocation9 + $0xc0] ss:$24 sps:$4 sm:$0xff]   ;;  %v4050_v37 = vld [vmem:[#allocation9 + $0xf4] ss:$24 sps:$4 sm:$0xff]  }
 0x109   : > { %1686 = vmatpush1.bf16.msra.mxu1 %v4037_v55  ;;  %1574 = vmatprep.subr.bf16.mxu0 %v4038_v56  ;;  %v883_v23 = vadd.f32 %v840_v13, %v839_v2  ;;  %v4054_v48 = vld [vmem:[#allocation9 + $0xf0] ss:$24 sps:$4 sm:$0xff]   ;;  %v4058_v54 = vld [vmem:[#allocation9 + $0x12c] ss:$24 sps:$4 sm:$0xff]   ;;  %v4060_v55 = vld [vmem:[#allocation9 + $0x120] ss:$24 sps:$4 sm:$0xff]  }
 0x10a   : > { %887 = vadd.xlane.f32.xlu1 %v886_v12  ;;  %v846_v26 = vmul.f32 %v5289_v15, %v5289_v15  ;;  %814 = vst [vmem:[%s5007_s24 + $0xf8] sm:$0xff] %v5289_v15  ;;  %v5301_v30 = vadd.f32 %v747_v18, %v682_v4  ;;  %1687 = vmatprep.subr.bf16.mxu1 %v4040_v1  ;;  %v4055_v51 = vld [vmem:[#allocation9 + $0xf8] ss:$24 sps:$4 sm:$0xff]   ;;  %v4062_v56 = vld [vmem:[#allocation9 + $0x154] ss:$24 sps:$4 sm:$0xff]  }
 0x10b   : > { %v5303_v32 = vadd.f32 %v748_v8, %v683_v6  ;;  %1575 = vmatpush1.bf16.msra.mxu0 %v4042_v11  ;;  %884 = vadd.xlane.f32.xlu0 %v883_v23  ;;  %v4064_v61 = vld [vmem:[#allocation9 + $0x15c] ss:$24 sps:$4 sm:$0xff]   ;;  %v4066_v63 = vld [vmem:[#allocation9 + $0x150] ss:$24 sps:$4 sm:$0xff]   ;;  %v4070_v4 = vld [vmem:[#allocation9 + $0x18c] ss:$24 sps:$4 sm:$0xff]  }
 0x10c   : > { %v892_v33 = vadd.f32 %v846_v26, %v845_v21  ;;  %v843_v35 = vmul.f32 %v5301_v30, %v5301_v30  ;;  %811 = vst [vmem:[%s5007_s24 + $0xe0] sm:$0xff] %v5301_v30  ;;  %1576 = vmatprep.subr.bf16.mxu0 %v4044_v19  ;;  %v4068_v1 = vld [vmem:[#allocation9 + $0x184] ss:$24 sps:$4 sm:$0xff]   ;;  %v4067_v2 = vld [vmem:[#allocation9 + $0x158] ss:$24 sps:$4 sm:$0xff]  }
 0x10d   : > { %v844_v38 = vmul.f32 %v5303_v32, %v5303_v32  ;;  %812 = vst [vmem:[%s5007_s24 + $0xe8] sm:$0xff] %v5303_v32  ;;  %1688 = vmatpush1.bf16.msra.mxu1 %v4043_v22  ;;  %v4072_v6 = vld [vmem:[#allocation9 + $0x180] ss:$24 sps:$4 sm:$0xff]   ;;  %v4074_v11 = vld [vmem:[#allocation9 + $0x1b4] ss:$24 sps:$4 sm:$0xff]  }
 0x10e   : > { %893 = vadd.xlane.f32.xlu1 %v892_v33  ;;  %1689 = vmatprep.subr.bf16.mxu1 %v4046_v31  ;;  %v4073_v12 = vld [vmem:[#allocation9 + $0x188] ss:$24 sps:$4 sm:$0xff]   ;;  %v4076_v13 = vld [vmem:[#allocation9 + $0x1bc] ss:$24 sps:$4 sm:$0xff]   ;;  %v4079_v21 = vld [vmem:[#allocation9 + $0x1b8] ss:$24 sps:$4 sm:$0xff]  }
 0x10f   : > { %v889_v47 = vadd.f32 %v844_v38, %v843_v35  ;;  %1577 = vmatpush1.bf16.msra.mxu0 %v4048_v9  ;;  %v4078_v18 = vld [vmem:[#allocation9 + $0x1b0] ss:$24 sps:$4 sm:$0xff]   ;;  %v4080_v19 = vld [vmem:[#allocation9 + $0x1e4] ss:$24 sps:$4 sm:$0xff]   ;;  %v4084_v22 = vld [vmem:[#allocation9 + $0x1e0] ss:$24 sps:$4 sm:$0xff]  }
 0x110   : > { %1578 = vmatprep.subr.bf16.mxu0 %v4050_v37  ;;  %v4082_v8 = vld [vmem:[#allocation9 + $0x1ec] ss:$24 sps:$4 sm:$0xff]   ;;  %v4085_v26 = vld [vmem:[#allocation9 + $0x1e8] ss:$24 sps:$4 sm:$0xff]   ;;  %v4088_v31 = vld [vmem:[#allocation9 + $0x21c] ss:$24 sps:$4 sm:$0xff]  }
 0x111   : > { %890 = vadd.xlane.f32.xlu0 %v889_v47  ;;  %1690 = vmatpush1.bf16.msra.mxu1 %v4049_v39  ;;  %v4086_v23 = vld [vmem:[#allocation9 + $0x214] ss:$24 sps:$4 sm:$0xff]   ;;  %v4090_v9 = vld [vmem:[#allocation9 + $0x210] ss:$24 sps:$4 sm:$0xff]   ;;  %v4092_v35 = vld [vmem:[#allocation9 + $0x244] ss:$24 sps:$4 sm:$0xff]  }
 0x112   : > { %1691 = vmatprep.subr.bf16.mxu1 %v4052_v46  ;;  %v4091_v33 = vld [vmem:[#allocation9 + $0x218] ss:$24 sps:$4 sm:$0xff]   ;;  %v4094_v37 = vld [vmem:[#allocation9 + $0x24c] ss:$24 sps:$4 sm:$0xff]   ;;  %v4097_v39 = vld [vmem:[#allocation9 + $0x248] ss:$24 sps:$4 sm:$0xff]  }
 0x113   : > { %1579 = vmatpush1.bf16.msra.mxu0 %v4054_v48  ;;  %v4096_v38 = vld [vmem:[#allocation9 + $0x240] ss:$24 sps:$4 sm:$0xff]   ;;  %v4098_v46 = vld [vmem:[#allocation9 + $0x274] ss:$24 sps:$4 sm:$0xff]   ;;  %v4102_v48 = vld [vmem:[#allocation9 + $0x270] ss:$24 sps:$4 sm:$0xff]  }
 0x114   : > { %1580 = vmatprep.subr.bf16.mxu0 %v4056_v49  ;;  %v4100_v47 = vld [vmem:[#allocation9 + $0x27c] ss:$24 sps:$4 sm:$0xff]  }
 0x115   : > { %1692 = vmatpush1.bf16.msra.mxu1 %v4055_v51  ;;  %v4104_v49 = vld [vmem:[#allocation9 + $0x2a4] ss:$24 sps:$4 sm:$0xff]   ;;  %v4103_v51 = vld [vmem:[#allocation9 + $0x278] ss:$24 sps:$4 sm:$0xff]  }
 0x116   : > { %1693 = vmatprep.subr.bf16.mxu1 %v4058_v54  ;;  %v4106_v54 = vld [vmem:[#allocation9 + $0x2ac] ss:$24 sps:$4 sm:$0xff]  }
 0x117   : > { %1581 = vmatpush1.bf16.msra.mxu0 %v4060_v55  ;;  %v4108_v55 = vld [vmem:[#allocation9 + $0x2a0] ss:$24 sps:$4 sm:$0xff]  }
 0x118   : > { %1582 = vmatprep.subr.bf16.mxu0 %v4062_v56  ;;  %v4110_v56 = vld [vmem:[#allocation9 + $0x2d4] ss:$24 sps:$4 sm:$0xff]  }
 0x119   : > { %1694 = vmatpush1.bf16.msra.mxu1 %v4061_v59  ;;  %v4109_v59 = vld [vmem:[#allocation9 + $0x2a8] ss:$24 sps:$4 sm:$0xff]  }
 0x11a   : > { %1695 = vmatprep.subr.bf16.mxu1 %v4064_v61  ;;  %v4112_v61 = vld [vmem:[#allocation9 + $0x2dc] ss:$24 sps:$4 sm:$0xff]  }
 0x11b   : > { %1583 = vmatpush1.bf16.msra.mxu0 %v4066_v63  ;;  %v4114_v63 = vld [vmem:[#allocation9 + $0x2d0] ss:$24 sps:$4 sm:$0xff]  }
 0x11c   : > { %1584 = vmatprep.subr.bf16.mxu0 %v4068_v1  ;;  %v4118_v1 = vld [vmem:[#allocation9 + $0x14] ss:$24 sps:$4 sm:$0xff]  }
 0x11d   : > { %1696 = vmatpush1.bf16.msra.mxu1 %v4067_v2  ;;  %v4115_v2 = vld [vmem:[#allocation9 + $0x2d8] ss:$24 sps:$4 sm:$0xff]  }
 0x11e   : > { %1697 = vmatprep.subr.bf16.mxu1 %v4070_v4 }
 0x11f   : > { %1585 = vmatpush1.bf16.msra.mxu0 %v4072_v6 }
 0x120   : > { %1586 = vmatprep.subr.bf16.mxu0 %v4074_v11 }
 0x121   : > { %1698 = vmatpush1.bf16.msra.mxu1 %v4073_v12 }
 0x122   : > { %1699 = vmatprep.subr.bf16.mxu1 %v4076_v13 }
 0x123   : > { %1587 = vmatpush1.bf16.msra.mxu0 %v4078_v18 }
 0x124   : > { %1588 = vmatprep.subr.bf16.mxu0 %v4080_v19 }
 0x125   : > { %1700 = vmatpush1.bf16.msra.mxu1 %v4079_v21 }
 0x126   : > { %1701 = vmatprep.subr.bf16.mxu1 %v4082_v8 }
 0x127   : > { %1589 = vmatpush1.bf16.msra.mxu0 %v4084_v22 }
 0x128   : > { %1590 = vmatprep.subr.bf16.mxu0 %v4086_v23 }
 0x129   : > { %1702 = vmatpush1.bf16.msra.mxu1 %v4085_v26 }
 0x12a   : > { %1703 = vmatprep.subr.bf16.mxu1 %v4088_v31 }
 0x12b   : > { %1591 = vmatpush1.bf16.msra.mxu0 %v4090_v9 }
 0x12c   : > { %1592 = vmatprep.subr.bf16.mxu0 %v4092_v35 }
 0x12d   : > { %1704 = vmatpush1.bf16.msra.mxu1 %v4091_v33 }
 0x12e   : > { %1705 = vmatprep.subr.bf16.mxu1 %v4094_v37 }
 0x12f   : > { %1593 = vmatpush1.bf16.msra.mxu0 %v4096_v38 }
 0x130   : > { %1594 = vmatprep.subr.bf16.mxu0 %v4098_v46 }
 0x131   : > { %1706 = vmatpush1.bf16.msra.mxu1 %v4097_v39 }
 0x132   : > { %1707 = vmatprep.subr.bf16.mxu1 %v4100_v47 }
 0x133   : > { %1595 = vmatpush1.bf16.msra.mxu0 %v4102_v48 }
 0x134   : > { %1596 = vmatprep.subr.bf16.mxu0 %v4104_v49 }
 0x135   : > { %1708 = vmatpush1.bf16.msra.mxu1 %v4103_v51 }
 0x136   : > { %1709 = vmatprep.subr.bf16.mxu1 %v4106_v54 }
 0x137   : > { %1597 = vmatpush1.bf16.msra.mxu0 %v4108_v55 }
 0x138   : > { %1598 = vmatprep.subr.bf16.mxu0 %v4110_v56 }
 0x139   : > { %1710 = vmatpush1.bf16.msra.mxu1 %v4109_v59 }
 0x13a   : > { %1711 = vmatprep.subr.bf16.mxu1 %v4112_v61 }
 0x13b   : > { %1599 = vmatpush1.bf16.msra.mxu0 %v4114_v63 }
 0x13c   : > { %1794 = vmatprep.subr.bf16.mxu0 %v4118_v1 }
 0x13d   : > { %1712 = vmatpush1.bf16.msra.mxu1 %v4115_v2 }
 0x13e   : > { %3901 = vmatprep.subr.bf16.mxu1 %v4118_v1 }
 0x178   : > { %v849_v4 = vpop.xlane.xlu0 %848 }
 0x179   : > { %v896_v6 = vmul.f32 0.00390625, %v849_v4 }
 0x17b   : > { %v912_v11 = vadd.f32 1.1920929e-07, %v896_v6 }
 0x17c   : > { %v855_v12 = vpop.xlane.xlu1 %854  ;;  %v852_v13 = vpop.xlane.xlu0 %851 }
 0x17d   : > { %v898_v18 = vmul.f32 0.00390625, %v855_v12  ;;  %v897_v19 = vmul.f32 0.00390625, %v852_v13  ;;  %4164 = vrsqrt.f32 %v912_v11 }
 0x17f   : > { %v914_v21 = vadd.f32 1.1920929e-07, %v898_v18  ;;  %v913_v8 = vadd.f32 1.1920929e-07, %v897_v19  ;;  %v4116_v18 = vld [vmem:[#allocation9 + $0x10] ss:$24 sps:$4 sm:$0xff]  }
 0x180   : > { %v858_v22 = vpop.xlane.xlu1 %857 }
 0x181   : > { %4166 = vrsqrt.f32 %v914_v21  ;;  %v899_v23 = vmul.f32 0.00390625, %v858_v22  ;;  %v4121_v21 = vld [vmem:[#allocation9 + $0x44] ss:$24 sps:$4 sm:$0xff]   ;;  %v4119_v22 = vld [vmem:[#allocation9 + $0x40] ss:$24 sps:$4 sm:$0xff]  }
 0x182   : > { %4168 = vrsqrt.f32 %v913_v8 }
 0x183   : > { %v915_v26 = vadd.f32 1.1920929e-07, %v899_v23 }
 0x184   : > { %v864_v31 = vpop.xlane.xlu1 %863  ;;  %v861_v9 = vpop.xlane.xlu0 %860 }
 0x185   : > { %4170 = vrsqrt.f32 %v915_v26  ;;  %v901_v33 = vmul.f32 0.00390625, %v864_v31  ;;  %v900_v35 = vmul.f32 0.00390625, %v861_v9  ;;  %v4124_v26 = vld [vmem:[#allocation9 + $0x74] ss:$24 sps:$4 sm:$0xff]  }
 0x187   : > { %v917_v37 = vadd.f32 1.1920929e-07, %v901_v33  ;;  %v916_v38 = vadd.f32 1.1920929e-07, %v900_v35  ;;  %v4165_v48 = vpop.eup %4164 }
 0x188   : > { %v870_v39 = vpop.xlane.xlu1 %869  ;;  %v945_v61 = vmul.f32 %v4165_v48, %v5017_v25  ;;  %v944_v1 = vmul.f32 %v4165_v48, %v5015_v24 }
 0x189   : > { %v867_v46 = vpop.xlane.xlu0 %866  ;;  %4172 = vrsqrt.f32 %v917_v37  ;;  %v903_v47 = vmul.f32 0.00390625, %v870_v39  ;;  %v4122_v37 = vld [vmem:[#allocation9 + $0x70] ss:$24 sps:$4 sm:$0xff]   ;;  %v4127_v39 = vld [vmem:[#allocation9 + $0xa4] ss:$24 sps:$4 sm:$0xff]  }
 0x18a   : > { %4174 = vrsqrt.f32 %v916_v38  ;;  %v902_v49 = vmul.f32 0.00390625, %v867_v46 }
 0x18b   : > { %v4167_v51 = vpop.eup %4166  ;;  %v919_v54 = vadd.f32 1.1920929e-07, %v903_v47 }
 0x18c   : > { %v4169_v55 = vpop.eup %4168  ;;  %v918_v56 = vadd.f32 1.1920929e-07, %v902_v49  ;;  %v949_v6 = vmul.f32 %v4167_v51, %v5051_v43 }
 0x18d   : > { %v876_v59 = vpop.xlane.xlu1 %875  ;;  %v947_v63 = vmul.f32 %v4169_v55, %v5023_v29  ;;  %v946_v2 = vmul.f32 %v4169_v55, %v5021_v28  ;;  %4176 = vrsqrt.f32 %v919_v54  ;;  %v948_v28 = vmul.f32 %v4167_v51, %v5049_v42  ;;  %v4125_v51 = vld [vmem:[#allocation9 + $0xa0] ss:$24 sps:$4 sm:$0xff]   ;;  %v4130_v55 = vld [vmem:[#allocation9 + $0xd4] ss:$24 sps:$4 sm:$0xff]  }
 0x18e   : > { %v873_v4 = vpop.xlane.xlu0 %872  ;;  %v905_v19 = vmul.f32 0.00390625, %v876_v59  ;;  %4178 = vrsqrt.f32 %v918_v56 }
 0x18f   : > { %v4171_v11 = vpop.eup %4170  ;;  %v5318_v12 = vpack.c.bf16 %v947_v63, %v945_v61  ;;  %v5320_v13 = vpack.c.bf16 %v946_v2, %v944_v1  ;;  %v904_v29 = vmul.f32 0.00390625, %v873_v4  ;;  %v4133_v4 = vld [vmem:[#allocation9 + $0x104] ss:$24 sps:$4 sm:$0xff]  }
 0x190   : > { %v951_v25 = vmul.f32 %v4171_v11, %v5072_v58  ;;  %v950_v43 = vmul.f32 %v4171_v11, %v5070_v57  ;;  %v921_v58 = vadd.f32 1.1920929e-07, %v905_v19 }
 0x191   : > { %1600 = vmatprep.mubr.bf16.mxu0 %v5318_v12  ;;  %1713 = vmatprep.mubr.bf16.mxu1 %v5318_v12  ;;  %v920_v31 = vadd.f32 1.1920929e-07, %v904_v29  ;;  %v882_v9 = vpop.xlane.xlu1 %881  ;;  %v4136_v29 = vld [vmem:[#allocation9 + $0x134] ss:$24 sps:$4 sm:$0xff]  }
 0x192   : > { %1601 = vmatmul.mubr.bf16.vlgmr.msra.gmra.mrb[0].mxu0 %v5320_v13  ;;  %1714 = vmatmul.mubr.bf16.vlgmr.msra.gmra.mrb[0].mxu1 %v5320_v13  ;;  %v5327_v24 = vpack.c.bf16 %v951_v25, %v949_v6  ;;  %v5335_v35 = vpack.c.bf16 %v950_v43, %v948_v28  ;;  %4180 = vrsqrt.f32 %v921_v58  ;;  %v907_v38 = vmul.f32 0.00390625, %v882_v9 }
 0x193   : > { %v4173_v8 = vpop.eup %4172  ;;  %1795 = vmatpush1.bf16.msra.mxu0 %v4116_v18  ;;  %3917 = vmatpush1.bf16.msra.mxu1 %v4116_v18  ;;  %4182 = vrsqrt.f32 %v920_v31 }
 0x194   : > { %v4175_v23 = vpop.eup %4174  ;;  %1796 = vmatprep.subr.bf16.mxu0 %v4121_v21  ;;  %3902 = vmatprep.subr.bf16.mxu1 %v4121_v21  ;;  %v955_v42 = vmul.f32 %v4173_v8, %v5093_v10  ;;  %v879_v57 = vpop.xlane.xlu0 %878  ;;  %v923_v54 = vadd.f32 1.1920929e-07, %v907_v38  ;;  %v4131_v21 = vld [vmem:[#allocation9 + $0x100] ss:$24 sps:$4 sm:$0xff]   ;;  %v4142_v38 = vld [vmem:[#allocation9 + $0x194] ss:$24 sps:$4 sm:$0xff]  }
 0x195   : > { %1610 = vmatprep.mubr.bf16.mxu0 %v5327_v24  ;;  %1723 = vmatprep.mubr.bf16.mxu1 %v5327_v24  ;;  %v953_v33 = vmul.f32 %v4175_v23, %v5115_v27  ;;  %v906_v46 = vmul.f32 0.00390625, %v879_v57  ;;  %v952_v10 = vmul.f32 %v4175_v23, %v5098_v14  ;;  %v954_v27 = vmul.f32 %v4173_v8, %v5091_v7  ;;  %v4128_v7 = vld [vmem:[#allocation9 + $0xd0] ss:$24 sps:$4 sm:$0xff]   ;;  %v4137_v57 = vld [vmem:[#allocation9 + $0x160] ss:$24 sps:$4 sm:$0xff]  }
 0x196   : > { %4184 = vrsqrt.f32 %v923_v54  ;;  %v4143_v54 = vld [vmem:[#allocation9 + $0x1c0] ss:$24 sps:$4 sm:$0xff]  }
 0x197   : > { %1797 = vmatpush1.bf16.msra.mxu0 %v4119_v22  ;;  %3918 = vmatpush1.bf16.msra.mxu1 %v4119_v22  ;;  %v4177_v47 = vpop.eup %4176  ;;  %v5337_v48 = vpack.c.bf16 %v955_v42, %v953_v33  ;;  %v922_v56 = vadd.f32 1.1920929e-07, %v906_v46  ;;  %v888_v59 = vpop.xlane.xlu1 %887  ;;  %v5347_v1 = vpack.c.bf16 %v954_v27, %v952_v10 }
 0x198   : > { %1798 = vmatprep.subr.bf16.mxu0 %v4124_v26  ;;  %3903 = vmatprep.subr.bf16.mxu1 %v4124_v26  ;;  %v4179_v49 = vpop.eup %4178  ;;  %v959_v63 = vmul.f32 %v4177_v47, %v5136_v45  ;;  %v885_v14 = vpop.xlane.xlu0 %884  ;;  %v909_v2 = vmul.f32 0.00390625, %v888_v59  ;;  %v4139_v26 = vld [vmem:[#allocation9 + $0x164] ss:$24 sps:$4 sm:$0xff]  }
 0x199   : > { %v957_v61 = vmul.f32 %v4179_v49, %v5157_v0  ;;  %4186 = vrsqrt.f32 %v922_v56  ;;  %v908_v6 = vmul.f32 0.00390625, %v885_v14  ;;  %v956_v45 = vmul.f32 %v4179_v49, %v5147_v53 }
 0x19a   : > { %1611 = vmatmul.mubr.bf16.gmra.mrb[4].mxu0 %v5335_v35  ;;  %1724 = vmatmul.mubr.bf16.gmra.mrb[4].mxu1 %v5335_v35  ;;  %v958_v0 = vmul.f32 %v4177_v47, %v5125_v36  ;;  %v925_v25 = vadd.f32 1.1920929e-07, %v909_v2  ;;  %v4134_v36 = vld [vmem:[#allocation9 + $0x130] ss:$24 sps:$4 sm:$0xff]  }
 0x19b   : > { %1799 = vmatpush1.bf16.msra.mxu0 %v4122_v37  ;;  %3919 = vmatpush1.bf16.msra.mxu1 %v4122_v37  ;;  %v5349_v18 = vpack.c.bf16 %v959_v63, %v957_v61  ;;  %v924_v28 = vadd.f32 1.1920929e-07, %v908_v6  ;;  %v894_v43 = vpop.xlane.xlu1 %893 }
 0x19c   : > { %1800 = vmatprep.subr.bf16.mxu0 %v4127_v39  ;;  %3904 = vmatprep.subr.bf16.mxu1 %v4127_v39  ;;  %v4181_v11 = vpop.eup %4180  ;;  %v5359_v58 = vpack.c.bf16 %v958_v0, %v956_v45  ;;  %4188 = vrsqrt.f32 %v925_v25  ;;  %v911_v23 = vmul.f32 0.00390625, %v894_v43  ;;  %v4152_v45 = vld [vmem:[#allocation9 + $0x250] ss:$24 sps:$4 sm:$0xff]   ;;  %v4155_v25 = vld [vmem:[#allocation9 + $0x280] ss:$24 sps:$4 sm:$0xff]  }
 0x19d   : > { %1620 = vmatprep.mubr.bf16.mxu0 %v5337_v48  ;;  %1733 = vmatprep.mubr.bf16.mxu1 %v5337_v48  ;;  %v4183_v19 = vpop.eup %4182  ;;  %v963_v22 = vmul.f32 %v4181_v11, %v5173_v16  ;;  %4190 = vrsqrt.f32 %v924_v28  ;;  %v4163_v28 = vld [vmem:[#allocation9 + $0x2e4] ss:$24 sps:$4 sm:$0xff]  }
 0x19e   : > { %v961_v8 = vmul.f32 %v4183_v19, %v5197_v41  ;;  %v891_v53 = vpop.xlane.xlu0 %890  ;;  %v960_v16 = vmul.f32 %v4183_v19, %v5195_v40  ;;  %v962_v41 = vmul.f32 %v4181_v11, %v5165_v5  ;;  %v927_v37 = vadd.f32 1.1920929e-07, %v911_v23  ;;  %v4140_v5 = vld [vmem:[#allocation9 + $0x190] ss:$24 sps:$4 sm:$0xff]   ;;  %v4145_v40 = vld [vmem:[#allocation9 + $0x1c4] ss:$24 sps:$4 sm:$0xff]  }
 0x19f   : > { %1801 = vmatpush1.bf16.msra.mxu0 %v4125_v51  ;;  %3920 = vmatpush1.bf16.msra.mxu1 %v4125_v51  ;;  %v910_v31 = vmul.f32 0.00390625, %v891_v53 }
 0x1a0   : > { %1802 = vmatprep.subr.bf16.mxu0 %v4130_v55  ;;  %3905 = vmatprep.subr.bf16.mxu1 %v4130_v55  ;;  %v4185_v9 = vpop.eup %4184  ;;  %v5361_v33 = vpack.c.bf16 %v963_v22, %v961_v8  ;;  %v5371_v49 = vpack.c.bf16 %v962_v41, %v960_v16  ;;  %4192 = vrsqrt.f32 %v927_v37  ;;  %v4148_v55 = vld [vmem:[#allocation9 + $0x1f4] ss:$24 sps:$4 sm:$0xff]  }
 0x1a1   : > { %v926_v39 = vadd.f32 1.1920929e-07, %v910_v31  ;;  %v967_v47 = vmul.f32 %v4185_v9, %v5216_v60 }
 0x1a2   : > { %1621 = vmatmul.mubr.bf16.gmra.mrb[8].mxu0 %v5347_v1  ;;  %1734 = vmatmul.mubr.bf16.gmra.mrb[8].mxu1 %v5347_v1 }
 0x1a3   : > { %1803 = vmatpush1.bf16.msra.mxu0 %v4128_v7  ;;  %3921 = vmatpush1.bf16.msra.mxu1 %v4128_v7  ;;  %v4187_v42 = vpop.eup %4186  ;;  %4194 = vrsqrt.f32 %v926_v39 }
 0x1a4   : > { %1804 = vmatprep.subr.bf16.mxu0 %v4133_v4  ;;  %3906 = vmatprep.subr.bf16.mxu1 %v4133_v4  ;;  %v965_v46 = vmul.f32 %v4187_v42, %v5237_v20  ;;  %v964_v60 = vmul.f32 %v4187_v42, %v5234_v17  ;;  %v966_v20 = vmul.f32 %v4185_v9, %v5204_v52  ;;  %v4146_v17 = vld [vmem:[#allocation9 + $0x1f0] ss:$24 sps:$4 sm:$0xff]   ;;  %v4151_v52 = vld [vmem:[#allocation9 + $0x224] ss:$24 sps:$4 sm:$0xff]   ;;  %v4154_v4 = vld [vmem:[#allocation9 + $0x254] ss:$24 sps:$4 sm:$0xff]  }
 0x1a5   : > { %1630 = vmatprep.mubr.bf16.mxu0 %v5349_v18  ;;  %1743 = vmatprep.mubr.bf16.mxu1 %v5349_v18 }
 0x1a6   : > { %v4189_v10 = vpop.eup %4188  ;;  %v5373_v27 = vpack.c.bf16 %v967_v47, %v965_v46  ;;  %v5383_v61 = vpack.c.bf16 %v966_v20, %v964_v60 }
 0x1a7   : > { %1805 = vmatpush1.bf16.msra.mxu0 %v4131_v21  ;;  %3922 = vmatpush1.bf16.msra.mxu1 %v4131_v21  ;;  %v4191_v51 = vpop.eup %4190  ;;  %v971_v59 = vmul.f32 %v4189_v10, %v5257_v44  ;;  %v4149_v44 = vld [vmem:[#allocation9 + $0x220] ss:$24 sps:$4 sm:$0xff]  }
 0x1a8   : > { %1806 = vmatprep.subr.bf16.mxu0 %v4136_v29  ;;  %3907 = vmatprep.subr.bf16.mxu1 %v4136_v29  ;;  %v969_v56 = vmul.f32 %v4191_v51, %v5274_v62  ;;  %v968_v2 = vmul.f32 %v4191_v51, %v5266_v50  ;;  %v970_v62 = vmul.f32 %v4189_v10, %v5249_v34  ;;  %v4157_v50 = vld [vmem:[#allocation9 + $0x284] ss:$24 sps:$4 sm:$0xff]   ;;  %v4158_v29 = vld [vmem:[#allocation9 + $0x2b0] ss:$24 sps:$4 sm:$0xff]  }
 0x1aa   : > { %1631 = vmatmul.mubr.bf16.gmra.mrb[12].mxu0 %v5359_v58  ;;  %1744 = vmatmul.mubr.bf16.gmra.mrb[12].mxu1 %v5359_v58  ;;  %v4193_v63 = vpop.eup %4192  ;;  %v989_v14 = vpack.c.bf16 %v971_v59, %v969_v56  ;;  %v988_v19 = vpack.c.bf16 %v970_v62, %v968_v2 }
 0x1ab   : > { %1807 = vmatpush1.bf16.msra.mxu0 %v4134_v36  ;;  %3923 = vmatpush1.bf16.msra.mxu1 %v4134_v36  ;;  %v975_v11 = vmul.f32 %v4193_v63, %v5289_v15  ;;  %v974_v21 = vmul.f32 %v4193_v63, %v5281_v3  ;;  %v4160_v15 = vld [vmem:[#allocation9 + $0x2b4] ss:$24 sps:$4 sm:$0xff]   ;;  %v4161_v3 = vld [vmem:[#allocation9 + $0x2e0] ss:$24 sps:$4 sm:$0xff]  }
 0x1ac   : > { %1808 = vmatprep.subr.bf16.mxu0 %v4139_v26  ;;  %3908 = vmatprep.subr.bf16.mxu1 %v4139_v26 }
 0x1ad   : > { %1640 = vmatprep.mubr.bf16.mxu0 %v5361_v33  ;;  %1753 = vmatprep.mubr.bf16.mxu1 %v5361_v33  ;;  %v4195_v7 = vpop.eup %4194 }
 0x1ae   : > { %v973_v6 = vmul.f32 %v4195_v7, %v5303_v32  ;;  %v972_v0 = vmul.f32 %v4195_v7, %v5301_v30 }
 0x1af   : > { %1809 = vmatpush1.bf16.msra.mxu0 %v4137_v57  ;;  %3924 = vmatpush1.bf16.msra.mxu1 %v4137_v57 }
 0x1b0   : > { %1810 = vmatprep.subr.bf16.mxu0 %v4142_v38  ;;  %3909 = vmatprep.subr.bf16.mxu1 %v4142_v38  ;;  %v991_v34 = vpack.c.bf16 %v975_v11, %v973_v6  ;;  %v990_v32 = vpack.c.bf16 %v974_v21, %v972_v0 }
 0x1b2   : > { %1641 = vmatmul.mubr.bf16.gmra.mrb[16].mxu0 %v5371_v49  ;;  %1754 = vmatmul.mubr.bf16.gmra.mrb[16].mxu1 %v5371_v49 }
 0x1b3   : > { %1811 = vmatpush1.bf16.msra.mxu0 %v4140_v5  ;;  %3925 = vmatpush1.bf16.msra.mxu1 %v4140_v5 }
 0x1b4   : > { %1812 = vmatprep.subr.bf16.mxu0 %v4145_v40  ;;  %3910 = vmatprep.subr.bf16.mxu1 %v4145_v40 }
 0x1b5   : > { %1650 = vmatprep.mubr.bf16.mxu0 %v5373_v27  ;;  %1763 = vmatprep.mubr.bf16.mxu1 %v5373_v27 }
 0x1b7   : > { %1813 = vmatpush1.bf16.msra.mxu0 %v4143_v54  ;;  %3926 = vmatpush1.bf16.msra.mxu1 %v4143_v54 }
 0x1b8   : > { %1814 = vmatprep.subr.bf16.mxu0 %v4148_v55  ;;  %3911 = vmatprep.subr.bf16.mxu1 %v4148_v55 }
 0x1ba   : > { %1651 = vmatmul.mubr.bf16.gmra.mrb[20].mxu0 %v5383_v61  ;;  %1764 = vmatmul.mubr.bf16.gmra.mrb[20].mxu1 %v5383_v61 }
 0x1bb   : > { %1815 = vmatpush1.bf16.msra.mxu0 %v4146_v17  ;;  %3927 = vmatpush1.bf16.msra.mxu1 %v4146_v17 }
 0x1bc   : > { %1816 = vmatprep.subr.bf16.mxu0 %v4151_v52  ;;  %3912 = vmatprep.subr.bf16.mxu1 %v4151_v52 }
 0x1bd   : > { %1660 = vmatprep.mubr.bf16.mxu0 %v989_v14  ;;  %1773 = vmatprep.mubr.bf16.mxu1 %v989_v14 }
 0x1bf   : > { %1817 = vmatpush1.bf16.msra.mxu0 %v4149_v44  ;;  %3928 = vmatpush1.bf16.msra.mxu1 %v4149_v44 }
 0x1c0   : > { %1818 = vmatprep.subr.bf16.mxu0 %v4154_v4  ;;  %3913 = vmatprep.subr.bf16.mxu1 %v4154_v4 }
 0x1c2   : > { %1661 = vmatmul.mubr.bf16.gmra.mrb[24].mxu0 %v988_v19  ;;  %1774 = vmatmul.mubr.bf16.gmra.mrb[24].mxu1 %v988_v19 }
 0x1c3   : > { %1819 = vmatpush1.bf16.msra.mxu0 %v4152_v45  ;;  %3929 = vmatpush1.bf16.msra.mxu1 %v4152_v45 }
 0x1c4   : > { %1820 = vmatprep.subr.bf16.mxu0 %v4157_v50  ;;  %3914 = vmatprep.subr.bf16.mxu1 %v4157_v50 }
 0x1c5   : > { %1670 = vmatprep.mubr.bf16.mxu0 %v991_v34  ;;  %1783 = vmatprep.mubr.bf16.mxu1 %v991_v34 }
 0x1c7   : > { %1821 = vmatpush1.bf16.msra.mxu0 %v4155_v25  ;;  %3930 = vmatpush1.bf16.msra.mxu1 %v4155_v25 }
 0x1c8   : > { %1822 = vmatprep.subr.bf16.mxu0 %v4160_v15  ;;  %3915 = vmatprep.subr.bf16.mxu1 %v4160_v15 }
 0x1ca   : > { %1671 = vmatmul.mubr.bf16.gmra.mrb[28].mxu0 %v990_v32  ;;  %1784 = vmatmul.mubr.bf16.gmra.mrb[28].mxu1 %v990_v32 }
 0x1cb   : > { %1823 = vmatpush1.bf16.msra.mxu0 %v4158_v29  ;;  %3931 = vmatpush1.bf16.msra.mxu1 %v4158_v29 }
 0x1cc   : > { %1826 = vmatprep.mubr.bf16.mxu0 %v5318_v12  ;;  %1824 = vmatprep.subr.bf16.mxu0 %v4163_v28 }
 0x1cd   : > { %3916 = vmatprep.subr.bf16.mxu1 %v4163_v28  ;;  %1866 = vmatprep.mubr.bf16.mxu1 %v5361_v33 }
 0x1cf   : > { %1825 = vmatpush1.bf16.msra.mxu0 %v4161_v3  ;;  %3932 = vmatpush1.bf16.msra.mxu1 %v4161_v3 }
 0x1d2   : > { %1827 = vmatmul.mubr.bf16.vlgmr.msra.gmra.mrb[32].mxu0 %v5320_v13  ;;  %1867 = vmatmul.mubr.bf16.vlgmr.msra.gmra.mrb[32].mxu1 %v5371_v49 }
 0x1d3   : > { %1836 = vmatprep.mubr.bf16.mxu0 %v5327_v24  ;;  %1876 = vmatprep.mubr.bf16.mxu1 %v5373_v27 }
 0x1da   : > { %1837 = vmatmul.mubr.bf16.gmra.mrb[36].mxu0 %v5335_v35  ;;  %1877 = vmatmul.mubr.bf16.gmra.mrb[36].mxu1 %v5383_v61 }
 0x1db   : > { %1846 = vmatprep.mubr.bf16.mxu0 %v5337_v48  ;;  %1886 = vmatprep.mubr.bf16.mxu1 %v989_v14 }
 0x1e2   : > { %1847 = vmatmul.mubr.bf16.gmra.mrb[40].mxu0 %v5347_v1  ;;  %1887 = vmatmul.mubr.bf16.gmra.mrb[40].mxu1 %v988_v19 }
 0x1e3   : > { %1856 = vmatprep.mubr.bf16.mxu0 %v5349_v18  ;;  %1896 = vmatprep.mubr.bf16.mxu1 %v991_v34 }
 0x1ea   : > { %1857 = vmatmul.mubr.bf16.gmra.mrb[44].mxu0 %v5359_v58  ;;  %1897 = vmatmul.mubr.bf16.gmra.mrb[44].mxu1 %v990_v32 }
 0x265   : > { %v5405_v30 = vpop.f32.mrb[0].mxu0  ;;  %v5407_v12 = vpop.f32.mrb[0].mxu1 }
 0x266   : > { %6411 = vst [vmem:[#allocation21_spill] sm:$0xff] %v5405_v30  ;;  %v5409_v13 = vpop.f32.mrb[1].mxu0  ;;  %v5411_v24 = vpop.f32.mrb[1].mxu1  ;;  %v2181_v35 = vmul.f32 %v5405_v30, %v5405_v30  ;;  %v2310_v22 = vmul.f32 %v5407_v12, %v5407_v12 }
 0x267   : > { %6412 = vst [vmem:[#allocation22_spill] sm:$0xff] %v5409_v13  ;;  %6413 = vst [vmem:[#allocation23_spill] sm:$0xff] %v5411_v24  ;;  %v5415_v48 = vpop.f32.mrb[2].mxu0  ;;  %v5417_v1 = vpop.f32.mrb[2].mxu1  ;;  %v2742_v26 = vmul.f32 %v5409_v13, %v5409_v13  ;;  %v2870_v57 = vmul.f32 %v5411_v24, %v5411_v24  ;;  %v1946_v24 = vld [vmem:[%s4962_s26 + $0x30] sm:$0xff]  ;;  %v1947_v13 = vld [vmem:[%s4962_s26 + $0x38] sm:$0xff] }
 0x268   : > { %6414 = vst [vmem:[#allocation24_spill] sm:$0xff] %v5415_v48  ;;  %v5419_v18 = vpop.f32.mrb[3].mxu1  ;;  %2197 = vadd.xlane.f32.xlu0 %v2181_v35  ;;  %v5421_v43 = vpop.f32.mrb[3].mxu0  ;;  %v2182_v8 = vmul.f32 %v5415_v48, %v5415_v48  ;;  %v2311_v53 = vmul.f32 %v5417_v1, %v5417_v1 }
 0x269   : > { %6415 = vst [vmem:[#allocation25_spill] sm:$0xff] %v5419_v18  ;;  %6416 = vst [vmem:[#allocation26_spill] sm:$0xff] %v5421_v43  ;;  %v2743_v16 = vmul.f32 %v5421_v43, %v5421_v43  ;;  %v2871_v37 = vmul.f32 %v5419_v18, %v5419_v18 }
 0x26a   : > { %2199 = vadd.xlane.f32.xlu1 %v2182_v8 }
 0x26c   : > { %2326 = vadd.xlane.f32.xlu0 %v2310_v22 }
 0x26d   : > { %v5429_v58 = vpop.f32.mrb[4].mxu0  ;;  %v5431_v36 = vpop.f32.mrb[4].mxu1 }
 0x26e   : > { %6417 = vst [vmem:[#allocation27_spill] sm:$0xff] %v5429_v58  ;;  %6418 = vst [vmem:[#allocation28_spill] sm:$0xff] %v5431_v36  ;;  %2328 = vadd.xlane.f32.xlu1 %v2311_v53  ;;  %v5433_v23 = vpop.f32.mrb[5].mxu1  ;;  %v5437_v31 = vpop.f32.mrb[5].mxu0  ;;  %v2183_v46 = vmul.f32 %v5429_v58, %v5429_v58  ;;  %v2312_v60 = vmul.f32 %v5431_v36, %v5431_v36 }
 0x26f   : > { %6419 = vst [vmem:[#allocation29_spill] sm:$0xff] %v5433_v23  ;;  %6420 = vst [vmem:[#allocation30_spill] sm:$0xff] %v5437_v31  ;;  %v5439_v9 = vpop.f32.mrb[6].mxu0  ;;  %v5441_v33 = vpop.f32.mrb[6].mxu1  ;;  %v2744_v56 = vmul.f32 %v5437_v31, %v5437_v31  ;;  %v2872_v2 = vmul.f32 %v5433_v23, %v5433_v23 }
 0x270   : > { %6421 = vst [vmem:[#allocation31_spill] sm:$0xff] %v5439_v9  ;;  %6422 = vst [vmem:[#allocation32_spill] sm:$0xff] %v5441_v33  ;;  %2758 = vadd.xlane.f32.xlu0 %v2742_v26  ;;  %v5443_v42 = vpop.f32.mrb[7].mxu1  ;;  %v5447_v41 = vpop.f32.mrb[7].mxu0  ;;  %v2184_v10 = vmul.f32 %v5439_v9, %v5439_v9  ;;  %v2313_v20 = vmul.f32 %v5441_v33, %v5441_v33 }
 0x271   : > { %6423 = vst [vmem:[#allocation33_spill] sm:$0xff] %v5443_v42  ;;  %6424 = vst [vmem:[#allocation34_spill] sm:$0xff] %v5447_v41  ;;  %v2873_v63 = vmul.f32 %v5443_v42, %v5443_v42  ;;  %v2745_v6 = vmul.f32 %v5447_v41, %v5447_v41 }
 0x272   : > { %2760 = vadd.xlane.f32.xlu1 %v2743_v16 }
 0x274   : > { %2886 = vadd.xlane.f32.xlu0 %v2870_v57 }
 0x275   : > { %v5453_v38 = vpop.f32.mrb[8].mxu0  ;;  %v5455_v39 = vpop.f32.mrb[8].mxu1 }
 0x276   : > { %6425 = vst [vmem:[#allocation35_spill] sm:$0xff] %v5453_v38  ;;  %6426 = vst [vmem:[#allocation36_spill] sm:$0xff] %v5455_v39  ;;  %2888 = vadd.xlane.f32.xlu1 %v2871_v37  ;;  %v5459_v47 = vpop.f32.mrb[9].mxu0  ;;  %v5461_v49 = vpop.f32.mrb[9].mxu1  ;;  %v2185_v0 = vmul.f32 %v5453_v38, %v5453_v38  ;;  %v2314_v28 = vmul.f32 %v5455_v39, %v5455_v39  ;;  %v1957_v38 = vld [vmem:[%s4962_s26 + $0x88] sm:$0xff] }
 0x277   : > { %6427 = vst [vmem:[#allocation37_spill] sm:$0xff] %v5459_v47  ;;  %6428 = vst [vmem:[#allocation38_spill] sm:$0xff] %v5461_v49  ;;  %v5463_v5 = vpop.f32.mrb[10].mxu0  ;;  %v5465_v40 = vpop.f32.mrb[10].mxu1  ;;  %v2746_v57 = vmul.f32 %v5459_v47, %v5459_v47  ;;  %v1942_v47 = vld [vmem:[%s4962_s26 + $0x10] sm:$0xff] }
 0x278   : > { %6429 = vst [vmem:[#allocation39_spill] sm:$0xff] %v5463_v5  ;;  %6430 = vst [vmem:[#allocation40_spill] sm:$0xff] %v5465_v40  ;;  %2201 = vadd.xlane.f32.xlu0 %v2183_v46  ;;  %v5469_v27 = vpop.f32.mrb[11].mxu0  ;;  %v5471_v51 = vpop.f32.mrb[11].mxu1  ;;  %v2186_v62 = vmul.f32 %v5463_v5, %v5463_v5  ;;  %v2315_v11 = vmul.f32 %v5465_v40, %v5465_v40 }
 0x279   : > { %6431 = vst [vmem:[#allocation41_spill] sm:$0xff] %v5469_v27  ;;  %6432 = vst [vmem:[#allocation42_spill] sm:$0xff] %v5471_v51  ;;  %v2747_v15 = vmul.f32 %v5469_v27, %v5469_v27  ;;  %v2875_v53 = vmul.f32 %v5471_v51, %v5471_v51  ;;  %v1941_v27 = vld [vmem:[%s4962_s26 + $0x8] sm:$0xff]  ;;  %v1943_v51 = vld [vmem:[%s4962_s26 + $0x18] sm:$0xff] }
 0x27a   : > { %2203 = vadd.xlane.f32.xlu1 %v2184_v10 }
 0x27c   : > { %2330 = vadd.xlane.f32.xlu0 %v2312_v60  ;;  %v2874_v60 = vmul.f32 %v5461_v49, %v5461_v49  ;;  %v5606_v49 = vstv %s3629_s2 }
 0x27d   : > { %v5477_v54 = vpop.f32.mrb[12].mxu0  ;;  %v5479_v55 = vpop.f32.mrb[12].mxu1 }
 0x27e   : > { %6433 = vst [vmem:[#allocation43_spill] sm:$0xff] %v5477_v54  ;;  %6434 = vst [vmem:[#allocation44_spill] sm:$0xff] %v5479_v55  ;;  %2332 = vadd.xlane.f32.xlu1 %v2313_v20  ;;  %v5483_v59 = vpop.f32.mrb[13].mxu0  ;;  %v5485_v61 = vpop.f32.mrb[13].mxu1 }
 0x27f   : > { %6435 = vst [vmem:[#allocation45_spill] sm:$0xff] %v5483_v59  ;;  %6436 = vst [vmem:[#allocation46_spill] sm:$0xff] %v5485_v61  ;;  %v5487_v17 = vpop.f32.mrb[14].mxu0  ;;  %v5489_v52 = vpop.f32.mrb[14].mxu1  ;;  %v2748_v5 = vmul.f32 %v5483_v59, %v5483_v59  ;;  %v2876_v23 = vmul.f32 %v5485_v61, %v5485_v61  ;;  %v1945_v61 = vld [vmem:[%s4962_s26 + $0x28] sm:$0xff] }
 0x280   : > { %6437 = vst [vmem:[#allocation47_spill] sm:$0xff] %v5487_v17  ;;  %6438 = vst [vmem:[#allocation48_spill] sm:$0xff] %v5489_v52  ;;  %2762 = vadd.xlane.f32.xlu0 %v2744_v56  ;;  %v5493_v14 = vpop.f32.mrb[15].mxu0  ;;  %v5495_v7 = vpop.f32.mrb[15].mxu1  ;;  %v2188_v37 = vmul.f32 %v5487_v17, %v5487_v17  ;;  %v2317_v20 = vmul.f32 %v5489_v52, %v5489_v52  ;;  %v5594_v52 = vstv %s3630_s21 }
 0x281   : > { %6439 = vst [vmem:[#allocation49_spill] sm:$0xff] %v5493_v14  ;;  %6440 = vst [vmem:[#allocation50_spill] sm:$0xff] %v5495_v7  ;;  %v1974_v39 = vmul.f32 %v5594_v52, %v1941_v27  ;;  %v1990_v59 = vmul.f32 %v5594_v52, %v1957_v38  ;;  %v1976_v33 = vmul.f32 %v5594_v52, %v1943_v51 }
 0x282   : > { %2892 = vadd.xlane.f32.xlu1 %v2873_v63 }
 0x284   : > { %2890 = vadd.xlane.f32.xlu0 %v2872_v2 }
 0x285   : > { %v5501_v44 = vpop.f32.mrb[16].mxu0  ;;  %v5503_v4 = vpop.f32.mrb[16].mxu1 }
 0x286   : > { %6441 = vst [vmem:[#allocation51_spill] sm:$0xff] %v5501_v44  ;;  %2207 = vadd.xlane.f32.xlu1 %v2186_v62  ;;  %v5509_v19 = vpop.f32.mrb[17].mxu0  ;;  %v5511_v45 = vpop.f32.mrb[17].mxu1 }
 0x287   : > { %v5513_v50 = vpop.f32.mrb[18].mxu0  ;;  %v5515_v34 = vpop.f32.mrb[18].mxu1 }
 0x288   : > { %6442 = vst [vmem:[#allocation52_spill] sm:$0xff] %v5513_v50  ;;  %6443 = vst [vmem:[#allocation53_spill] sm:$0xff] %v5515_v34  ;;  %2764 = vadd.xlane.f32.xlu0 %v2745_v6  ;;  %v5519_v21 = vpop.f32.mrb[19].mxu0  ;;  %v5521_v25 = vpop.f32.mrb[19].mxu1  ;;  %v2187_v6 = vmul.f32 %v5477_v54, %v5477_v54  ;;  %v1940_v54 = vld [vmem:[%s4962_s26] sm:$0xff]  ;;  %v2319_v38 = vmul.f32 %v5515_v34, %v5515_v34 }
 0x289   : > { %v1973_v40 = vmul.f32 %v5594_v52, %v1940_v54 }
 0x28a   : > { %2336 = vadd.xlane.f32.xlu1 %v2315_v11 }
 0x28c   : > { %2205 = vadd.xlane.f32.xlu0 %v2185_v0 }
 0x28d   : > { %v5525_v32 = vpop.f32.mrb[20].mxu0  ;;  %v5527_v29 = vpop.f32.mrb[20].mxu1 }
 0x28e   : > { %2768 = vadd.xlane.f32.xlu1 %v2747_v15  ;;  %v5531_v3 = vpop.f32.mrb[21].mxu0  ;;  %v5533_v35 = vpop.f32.mrb[21].mxu1  ;;  %v2749_v15 = vmul.f32 %v5493_v14, %v5493_v14  ;;  %v2877_v14 = vmul.f32 %v5495_v7, %v5495_v7  ;;  %v1958_v7 = vld [vmem:[%s4962_s26 + $0x90] sm:$0xff] }
 0x28f   : > { %v5535_v8 = vpop.f32.mrb[22].mxu0  ;;  %v5537_v22 = vpop.f32.mrb[22].mxu1  ;;  %v1991_v31 = vmul.f32 %v5594_v52, %v1958_v7 }
 0x290   : > { %2334 = vadd.xlane.f32.xlu0 %v2314_v28  ;;  %v5541_v26 = vpop.f32.mrb[23].mxu0  ;;  %v5543_v16 = vpop.f32.mrb[23].mxu1 }
 0x292   : > { %2896 = vadd.xlane.f32.xlu1 %v2875_v53 }
 0x294   : > { %2766 = vadd.xlane.f32.xlu0 %v2746_v57  ;;  %v2316_v57 = vmul.f32 %v5479_v55, %v5479_v55  ;;  %v1956_v55 = vld [vmem:[%s4962_s26 + $0x80] sm:$0xff] }
 0x295   : > { %v5549_v46 = vpop.f32.mrb[24].mxu0  ;;  %v5551_v10 = vpop.f32.mrb[24].mxu1  ;;  %v1989_v41 = vmul.f32 %v5594_v52, %v1956_v55 }
 0x296   : > { %2211 = vadd.xlane.f32.xlu1 %v2188_v37  ;;  %v5557_v56 = vpop.f32.mrb[25].mxu0  ;;  %v5559_v63 = vpop.f32.mrb[25].mxu1 }
 0x297   : > { %v5561_v2 = vpop.f32.mrb[26].mxu0  ;;  %v5563_v62 = vpop.f32.mrb[26].mxu1 }
 0x298   : > { %2894 = vadd.xlane.f32.xlu0 %v2874_v60  ;;  %v5567_v11 = vpop.f32.mrb[27].mxu0  ;;  %v5569_v0 = vpop.f32.mrb[27].mxu1 }
 0x29a   : > { %2340 = vadd.xlane.f32.xlu1 %v2317_v20 }
 0x29c   : > { %2209 = vadd.xlane.f32.xlu0 %v2187_v6 }
 0x29d   : > { %v5573_v28 = vpop.f32.mrb[28].mxu0  ;;  %v5575_v53 = vpop.f32.mrb[28].mxu1 }
 0x29e   : > { %2772 = vadd.xlane.f32.xlu1 %v2749_v15  ;;  %v5579_v37 = vpop.f32.mrb[29].mxu0  ;;  %v5581_v60 = vpop.f32.mrb[29].mxu1 }
 0x29f   : > { %v5583_v20 = vpop.f32.mrb[30].mxu0  ;;  %v5585_v6 = vpop.f32.mrb[30].mxu1 }
 0x2a0   : > { %2338 = vadd.xlane.f32.xlu0 %v2316_v57  ;;  %v5589_v17 = vpop.f32.mrb[31].mxu0  ;;  %v5591_v15 = vpop.f32.mrb[31].mxu1  ;;  %v2190_v57 = vmul.f32 %v5513_v50, %v5513_v50  ;;  %v1975_v50 = vmul.f32 %v5594_v52, %v1942_v47 }
 0x2a2   : > { %2900 = vadd.xlane.f32.xlu1 %v2877_v14  ;;  %v1959_v14 = vld [vmem:[%s4962_s26 + $0x98] sm:$0xff] }
 0x2a4   : > { %2770 = vadd.xlane.f32.xlu0 %v2748_v5 }
 0x2a5   : > { %v1828_v9 = vpop.f32.mrb[32].mxu0  ;;  %v1868_v42 = vpop.f32.mrb[32].mxu1 }
 0x2a6   : > { %v1908_v5 = vmul.f32 %v5606_v49, %v1828_v9  ;;  %v1924_v54 = vmul.f32 %v5606_v49, %v1868_v42  ;;  %2215 = vadd.xlane.f32.xlu1 %v2190_v57  ;;  %v1830_v55 = vpop.f32.mrb[33].mxu0  ;;  %v1870_v27 = vpop.f32.mrb[33].mxu1  ;;  %v1992_v9 = vmul.f32 %v5594_v52, %v1959_v14  ;;  %v2189_v42 = vmul.f32 %v5501_v44, %v5501_v44  ;;  %v1944_v57 = vld [vmem:[%s4962_s26 + $0x20] sm:$0xff] }
 0x2a7   : > { %v1909_v47 = vmul.f32 %v5606_v49, %v1830_v55  ;;  %v1925_v51 = vmul.f32 %v5606_v49, %v1870_v27  ;;  %v1832_v7 = vpop.f32.mrb[34].mxu0  ;;  %v1872_v58 = vpop.f32.mrb[34].mxu1 }
 0x2a8   : > { %v2005_v34 = vadd.f32 %v1973_v40, %v1908_v5  ;;  %v2021_v43 = vadd.f32 %v1989_v41, %v1924_v54  ;;  %v1910_v36 = vmul.f32 %v5606_v49, %v1832_v7  ;;  %v1926_v55 = vmul.f32 %v5606_v49, %v1872_v58  ;;  %2898 = vadd.xlane.f32.xlu0 %v2876_v23  ;;  %v1834_v27 = vpop.f32.mrb[35].mxu0  ;;  %v1874_v48 = vpop.f32.mrb[35].mxu1  ;;  %v1960_v40 = vld [vmem:[%s4962_s26 + $0xa0] sm:$0xff]  ;;  %v1962_v7 = vld [vmem:[%s4962_s26 + $0xb0] sm:$0xff] }
 0x2a9   : > { %v2006_v14 = vadd.f32 %v1974_v39, %v1909_v47  ;;  %v2022_v30 = vadd.f32 %v1990_v59, %v1925_v51  ;;  %v1911_v18 = vmul.f32 %v5606_v49, %v1834_v27  ;;  %v1927_v44 = vmul.f32 %v5606_v49, %v1874_v48  ;;  %v1948_v48 = vld [vmem:[%s4962_s26 + $0x40] sm:$0xff]  ;;  %v1961_v59 = vld [vmem:[%s4962_s26 + $0xa8] sm:$0xff] }
 0x2aa   : > { %v2007_v58 = vadd.f32 %v1975_v50, %v1910_v36  ;;  %v2023_v23 = vadd.f32 %v1991_v31, %v1926_v55  ;;  %2344 = vadd.xlane.f32.xlu1 %v2319_v38  ;;  %v1977_v41 = vmul.f32 %v5594_v52, %v1944_v57  ;;  %v1978_v39 = vmul.f32 %v5594_v52, %v1945_v61  ;;  %v1963_v57 = vld [vmem:[%s4962_s26 + $0xb8] sm:$0xff] }
 0x2ab   : > { %v3821_v5 = vpack.c.bf16 %v2006_v14, %v2005_v34  ;;  %v3829_v54 = vpack.c.bf16 %v2022_v30, %v2021_v43  ;;  %v2008_v47 = vadd.f32 %v1976_v33, %v1911_v18  ;;  %v2024_v51 = vadd.f32 %v1992_v9, %v1927_v44 }
 0x2ac   : > { %2213 = vadd.xlane.f32.xlu0 %v2189_v42  ;;  %v2751_v36 = vmul.f32 %v5519_v21, %v5519_v21  ;;  %v1979_v31 = vmul.f32 %v5594_v52, %v1946_v24  ;;  %v1980_v50 = vmul.f32 %v5594_v52, %v1947_v13  ;;  %v1993_v38 = vmul.f32 %v5594_v52, %v1960_v40 }
 0x2ad   : > { %2133 = vst [vmem:[%s5643_s13] sm:$0xff] %v3821_v5  ;;  %2141 = vst [vmem:[%s5643_s13 + $0x40] sm:$0xff] %v3829_v54  ;;  %v3822_v61 = vpack.c.bf16 %v2008_v47, %v2007_v58  ;;  %v3830_v30 = vpack.c.bf16 %v2024_v51, %v2023_v23  ;;  %v1838_v18 = vpop.f32.mrb[36].mxu0  ;;  %v5659_v43 = vmul.f32 %v5594_v52, %v1948_v48  ;;  %v1878_v33 = vpop.f32.mrb[36].mxu1  ;;  %v1949_v51 = vld [vmem:[%s4962_s26 + $0x48] sm:$0xff] }
 0x2ae   : > { %v1994_v44 = vmul.f32 %v5594_v52, %v1961_v59  ;;  %v1912_v24 = vmul.f32 %v5606_v49, %v1838_v18  ;;  %2776 = vadd.xlane.f32.xlu1 %v2751_v36  ;;  %v1840_v13 = vpop.f32.mrb[37].mxu0  ;;  %v2318_v34 = vmul.f32 %v5503_v4, %v5503_v4  ;;  %v1928_v9 = vmul.f32 %v5606_v49, %v1878_v33  ;;  %v1880_v42 = vpop.f32.mrb[37].mxu1  ;;  %v1950_v33 = vld [vmem:[%s4962_s26 + $0x50] sm:$0xff] }
 0x2af   : > { %v1995_v55 = vmul.f32 %v5594_v52, %v1962_v7  ;;  %2134 = vst [vmem:[%s5643_s13 + $0x8] sm:$0xff] %v3822_v61  ;;  %2142 = vst [vmem:[%s5643_s13 + $0x48] sm:$0xff] %v3830_v30  ;;  %v1913_v27 = vmul.f32 %v5606_v49, %v1840_v13  ;;  %v1842_v14 = vpop.f32.mrb[38].mxu0  ;;  %v2879_v40 = vmul.f32 %v5521_v25, %v5521_v25  ;;  %v1882_v23 = vpop.f32.mrb[38].mxu1  ;;  %v1951_v13 = vld [vmem:[%s4962_s26 + $0x58] sm:$0xff] }
 0x2b0   : > { %v1929_v58 = vmul.f32 %v5606_v49, %v1880_v42  ;;  %v1996_v48 = vmul.f32 %v5594_v52, %v1963_v57  ;;  %v2009_v59 = vadd.f32 %v1977_v41, %v1912_v24  ;;  %v1914_v5 = vmul.f32 %v5606_v49, %v1842_v14  ;;  %2342 = vadd.xlane.f32.xlu0 %v2318_v34  ;;  %v1844_v54 = vpop.f32.mrb[39].mxu0  ;;  %v1884_v36 = vpop.f32.mrb[39].mxu1  ;;  %v1964_v41 = vld [vmem:[%s4962_s26 + $0xc0] sm:$0xff]  ;;  %v1966_v42 = vld [vmem:[%s4962_s26 + $0xd0] sm:$0xff] }
 0x2b1   : > { %v2025_v47 = vadd.f32 %v1993_v38, %v1928_v9  ;;  %v1930_v7 = vmul.f32 %v5606_v49, %v1882_v23  ;;  %v2010_v61 = vadd.f32 %v1978_v39, %v1913_v27  ;;  %v1915_v30 = vmul.f32 %v5606_v49, %v1844_v54  ;;  %v1965_v39 = vld [vmem:[%s4962_s26 + $0xc8] sm:$0xff]  ;;  %v1967_v54 = vld [vmem:[%s4962_s26 + $0xd8] sm:$0xff] }
 0x2b2   : > { %v2026_v18 = vadd.f32 %v1994_v44, %v1929_v58  ;;  %v1931_v57 = vmul.f32 %v5606_v49, %v1884_v36  ;;  %v2011_v24 = vadd.f32 %v1979_v31, %v1914_v5  ;;  %2904 = vadd.xlane.f32.xlu1 %v2879_v40  ;;  %v2750_v38 = vmul.f32 %v5509_v19, %v5509_v19 }
 0x2b3   : > { %v2192_v34 = vmul.f32 %v5535_v8, %v5535_v8  ;;  %v2027_v9 = vadd.f32 %v1995_v55, %v1930_v7  ;;  %v3823_v44 = vpack.c.bf16 %v2010_v61, %v2009_v59  ;;  %v2012_v27 = vadd.f32 %v1980_v50, %v1915_v30 }
 0x2b4   : > { %v3831_v14 = vpack.c.bf16 %v2026_v18, %v2025_v47  ;;  %v2028_v58 = vadd.f32 %v1996_v48, %v1931_v57  ;;  %2774 = vadd.xlane.f32.xlu0 %v2750_v38  ;;  %v1982_v31 = vmul.f32 %v5594_v52, %v1949_v51  ;;  %v1983_v40 = vmul.f32 %v5594_v52, %v1950_v33 }
 0x2b5   : > { %v1984_v23 = vmul.f32 %v5594_v52, %v1951_v13  ;;  %v1997_v5 = vmul.f32 %v5594_v52, %v1964_v41  ;;  %2135 = vst [vmem:[%s5643_s13 + $0x10] sm:$0xff] %v3823_v44  ;;  %v3824_v55 = vpack.c.bf16 %v2012_v27, %v2011_v24  ;;  %v1848_v7 = vpop.f32.mrb[40].mxu0  ;;  %v1888_v50 = vpop.f32.mrb[40].mxu1  ;;  %v1998_v48 = vmul.f32 %v5594_v52, %v1965_v39  ;;  %v1952_v24 = vld [vmem:[%s4962_s26 + $0x60] sm:$0xff] }
 0x2b6   : > { %2143 = vst [vmem:[%s5643_s13 + $0x50] sm:$0xff] %v3831_v14  ;;  %v3832_v59 = vpack.c.bf16 %v2028_v58, %v2027_v9  ;;  %v1999_v47 = vmul.f32 %v5594_v52, %v1966_v42  ;;  %v1916_v51 = vmul.f32 %v5606_v49, %v1848_v7  ;;  %2219 = vadd.xlane.f32.xlu1 %v2192_v34  ;;  %v1850_v36 = vpop.f32.mrb[41].mxu0  ;;  %v1890_v33 = vpop.f32.mrb[41].mxu1 }
 0x2b7   : > { %v2878_v61 = vmul.f32 %v5511_v45, %v5511_v45  ;;  %v2321_v30 = vmul.f32 %v5537_v22, %v5537_v22  ;;  %v1932_v18 = vmul.f32 %v5606_v49, %v1888_v50  ;;  %2136 = vst [vmem:[%s5643_s13 + $0x18] sm:$0xff] %v3824_v55  ;;  %v1917_v13 = vmul.f32 %v5606_v49, %v1850_v36  ;;  %v1852_v57 = vpop.f32.mrb[42].mxu0  ;;  %v1892_v34 = vpop.f32.mrb[42].mxu1  ;;  %v1954_v50 = vld [vmem:[%s4962_s26 + $0x70] sm:$0xff] }
 0x2b8   : > { %2144 = vst [vmem:[%s5643_s13 + $0x58] sm:$0xff] %v3832_v59  ;;  %v2191_v41 = vmul.f32 %v5525_v32, %v5525_v32  ;;  %v1933_v38 = vmul.f32 %v5606_v49, %v1890_v33  ;;  %v2000_v9 = vmul.f32 %v5594_v52, %v1967_v54  ;;  %v2013_v39 = vadd.f32 %v5659_v43, %v1916_v51  ;;  %v1854_v44 = vpop.f32.mrb[43].mxu0  ;;  %v1894_v58 = vpop.f32.mrb[43].mxu1  ;;  %v1953_v59 = vld [vmem:[%s4962_s26 + $0x68] sm:$0xff]  ;;  %v1968_v43 = vld [vmem:[%s4962_s26 + $0xe0] sm:$0xff] }
 0x2b9   : > { %v1918_v42 = vmul.f32 %v5606_v49, %v1852_v57  ;;  %2902 = vadd.xlane.f32.xlu0 %v2878_v61  ;;  %v2029_v27 = vadd.f32 %v1997_v5, %v1932_v18  ;;  %v1934_v14 = vmul.f32 %v5606_v49, %v1892_v34  ;;  %v2014_v55 = vadd.f32 %v1982_v31, %v1917_v13  ;;  %v1955_v5 = vld [vmem:[%s4962_s26 + $0x78] sm:$0xff]  ;;  %v1969_v33 = vld [vmem:[%s4962_s26 + $0xe8] sm:$0xff] }
 0x2ba   : > { %v1919_v7 = vmul.f32 %v5606_v49, %v1854_v44  ;;  %v2030_v36 = vadd.f32 %v1998_v48, %v1933_v38  ;;  %v1935_v54 = vmul.f32 %v5606_v49, %v1894_v58  ;;  %2348 = vadd.xlane.f32.xlu1 %v2321_v30  ;;  %v1985_v61 = vmul.f32 %v5594_v52, %v1952_v24  ;;  %v1970_v44 = vld [vmem:[%s4962_s26 + $0xf0] sm:$0xff]  ;;  %v1971_v24 = vld [vmem:[%s4962_s26 + $0xf8] sm:$0xff] }
 0x2bb   : > { %v2015_v51 = vadd.f32 %v1983_v40, %v1918_v42  ;;  %v2031_v18 = vadd.f32 %v1999_v47, %v1934_v14  ;;  %v3825_v31 = vpack.c.bf16 %v2014_v55, %v2013_v39  ;;  %v2753_v48 = vmul.f32 %v5541_v26, %v5541_v26 }
 0x2bc   : > { %v2016_v13 = vadd.f32 %v1984_v23, %v1919_v7  ;;  %v3833_v57 = vpack.c.bf16 %v2030_v36, %v2029_v27  ;;  %v2032_v34 = vadd.f32 %v2000_v9, %v1935_v54  ;;  %v1986_v40 = vmul.f32 %v5594_v52, %v1953_v59 }
 0x2bd   : > { %2217 = vadd.xlane.f32.xlu0 %v2191_v41  ;;  %v1987_v30 = vmul.f32 %v5594_v52, %v1954_v50  ;;  %v2001_v38 = vmul.f32 %v5594_v52, %v1968_v43  ;;  %2137 = vst [vmem:[%s5643_s13 + $0x20] sm:$0xff] %v3825_v31  ;;  %v1858_v42 = vpop.f32.mrb[44].mxu0  ;;  %v1988_v23 = vmul.f32 %v5594_v52, %v1955_v5  ;;  %v1898_v41 = vpop.f32.mrb[44].mxu1 }
 0x2be   : > { %v3826_v47 = vpack.c.bf16 %v2016_v13, %v2015_v51  ;;  %2145 = vst [vmem:[%s5643_s13 + $0x60] sm:$0xff] %v3833_v57  ;;  %v3834_v9 = vpack.c.bf16 %v2032_v34, %v2031_v18  ;;  %v2002_v39 = vmul.f32 %v5594_v52, %v1969_v33  ;;  %v1920_v27 = vmul.f32 %v5606_v49, %v1858_v42  ;;  %v1860_v14 = vpop.f32.mrb[45].mxu0  ;;  %v1900_v7 = vpop.f32.mrb[45].mxu1 }
 0x2bf   : > { %2780 = vadd.xlane.f32.xlu1 %v2753_v48  ;;  %v2320_v58 = vmul.f32 %v5527_v29, %v5527_v29  ;;  %v1936_v55 = vmul.f32 %v5606_v49, %v1898_v41  ;;  %v2003_v59 = vmul.f32 %v5594_v52, %v1970_v44  ;;  %v1921_v50 = vmul.f32 %v5606_v49, %v1860_v14  ;;  %v1862_v36 = vpop.f32.mrb[46].mxu0  ;;  %v1902_v51 = vpop.f32.mrb[46].mxu1 }
 0x2c0   : > { %2138 = vst [vmem:[%s5643_s13 + $0x28] sm:$0xff] %v3826_v47  ;;  %v2881_v54 = vmul.f32 %v5543_v16, %v5543_v16  ;;  %2146 = vst [vmem:[%s5643_s13 + $0x68] sm:$0xff] %v3834_v9  ;;  %v1937_v43 = vmul.f32 %v5606_v49, %v1900_v7  ;;  %v2004_v5 = vmul.f32 %v5594_v52, %v1971_v24  ;;  %v1864_v31 = vpop.f32.mrb[47].mxu0  ;;  %v1904_v34 = vpop.f32.mrb[47].mxu1 }
 0x2c1   : > { %v2017_v18 = vadd.f32 %v1985_v61, %v1920_v27  ;;  %v1922_v33 = vmul.f32 %v5606_v49, %v1862_v36  ;;  %2346 = vadd.xlane.f32.xlu0 %v2320_v58  ;;  %v2033_v13 = vadd.f32 %v2001_v38, %v1936_v55  ;;  %v1938_v57 = vmul.f32 %v5606_v49, %v1902_v51 }
 0x2c2   : > { %v2018_v44 = vadd.f32 %v1986_v40, %v1921_v50  ;;  %v1923_v48 = vmul.f32 %v5606_v49, %v1864_v31  ;;  %v2034_v47 = vadd.f32 %v2002_v39, %v1937_v43  ;;  %v1939_v42 = vmul.f32 %v5606_v49, %v1904_v34 }
 0x2c3   : > { %v2019_v9 = vadd.f32 %v1987_v30, %v1922_v33  ;;  %2908 = vadd.xlane.f32.xlu1 %v2881_v54  ;;  %v2752_v52 = vmul.f32 %v5531_v3, %v5531_v3  ;;  %v2194_v61 = vmul.f32 %v5561_v2, %v5561_v2  ;;  %v2035_v38 = vadd.f32 %v2003_v59, %v1938_v57 }
 0x2c4   : > { %v3827_v24 = vpack.c.bf16 %v2018_v44, %v2017_v18  ;;  %v2020_v41 = vadd.f32 %v1988_v23, %v1923_v48  ;;  %v3835_v40 = vpack.c.bf16 %v2034_v47, %v2033_v13  ;;  %v2036_v27 = vadd.f32 %v2004_v5, %v1939_v42 }
 0x2c5   : > { %2778 = vadd.xlane.f32.xlu0 %v2752_v52  ;;  %v2880_v30 = vmul.f32 %v5533_v35, %v5533_v35  ;;  %v2323_v14 = vmul.f32 %v5563_v62, %v5563_v62  ;;  %v2193_v23 = vmul.f32 %v5549_v46, %v5549_v46  ;;  %v2755_v58 = vmul.f32 %v5567_v11, %v5567_v11 }
 0x2c6   : > { %2139 = vst [vmem:[%s5643_s13 + $0x30] sm:$0xff] %v3827_v24  ;;  %v3828_v39 = vpack.c.bf16 %v2020_v41, %v2019_v9  ;;  %2147 = vst [vmem:[%s5643_s13 + $0x70] sm:$0xff] %v3835_v40  ;;  %v3836_v49 = vpack.c.bf16 %v2036_v27, %v2035_v38  ;;  %v2322_v55 = vmul.f32 %v5551_v10, %v5551_v10 }
 0x2c7   : > { %2223 = vadd.xlane.f32.xlu1 %v2194_v61  ;;  %v2883_v7 = vmul.f32 %v5569_v0, %v5569_v0  ;;  %v2754_v59 = vmul.f32 %v5557_v56, %v5557_v56  ;;  %v2196_v50 = vmul.f32 %v5583_v20, %v5583_v20  ;;  %v2882_v36 = vmul.f32 %v5559_v63, %v5559_v63 }
 0x2c8   : > { %2140 = vst [vmem:[%s5643_s13 + $0x38] sm:$0xff] %v3828_v39  ;;  %2148 = vst [vmem:[%s5643_s13 + $0x78] sm:$0xff] %v3836_v49  ;;  %v2325_v54 = vmul.f32 %v5585_v6, %v5585_v6  ;;  %v2195_v43 = vmul.f32 %v5573_v28, %v5573_v28  ;;  %v2757_v51 = vmul.f32 %v5589_v17, %v5589_v17 }
 0x2c9   : > { %2906 = vadd.xlane.f32.xlu0 %v2880_v30  ;;  %v2324_v5 = vmul.f32 %v5575_v53, %v5575_v53  ;;  %v2885_v18 = vmul.f32 %v5591_v15, %v5591_v15  ;;  %v2756_v33 = vmul.f32 %v5579_v37, %v5579_v37  ;;  %v2884_v31 = vmul.f32 %v5581_v60, %v5581_v60 }
 0x2cb   : > { %2352 = vadd.xlane.f32.xlu1 %v2323_v14 }
 0x2cd   : > { %2221 = vadd.xlane.f32.xlu0 %v2193_v23 }
 0x2cf   : > { %2784 = vadd.xlane.f32.xlu1 %v2755_v58 }
 0x2d1   : > { %2350 = vadd.xlane.f32.xlu0 %v2322_v55 }
 0x2d3   : > { %2912 = vadd.xlane.f32.xlu1 %v2883_v7 }
 0x2d5   : > { %2782 = vadd.xlane.f32.xlu0 %v2754_v59 }
 0x2d7   : > { %2227 = vadd.xlane.f32.xlu1 %v2196_v50 }
 0x2d9   : > { %2910 = vadd.xlane.f32.xlu0 %v2882_v36 }
 0x2db   : > { %2356 = vadd.xlane.f32.xlu1 %v2325_v54 }
 0x2dd   : > { %2225 = vadd.xlane.f32.xlu0 %v2195_v43 }
 0x2df   : > { %2788 = vadd.xlane.f32.xlu1 %v2757_v51 }
 0x2e1   : > { %2354 = vadd.xlane.f32.xlu0 %v2324_v5 }
 0x2e3   : > { %2916 = vadd.xlane.f32.xlu1 %v2885_v18 }
 0x2e5   : > { %2786 = vadd.xlane.f32.xlu0 %v2756_v33 }
 0x2e9   : > { %2914 = vadd.xlane.f32.xlu0 %v2884_v31 }
 0x2f5   : > { %v2198_v13 = vpop.xlane.xlu0 %2197 }
 0x2f6   : > { %v2230_v47 = vmul.f32 0.0078125, %v2198_v13 }
 0x2f7   : > { %v2200_v57 = vpop.xlane.xlu1 %2199 }
 0x2f8   : > { %v2231_v52 = vmul.f32 0.0078125, %v2200_v57  ;;  %v2246_v40 = vadd.f32 1.1920929e-07, %v2230_v47 }
 0x2f9   : > { %v2327_v34 = vpop.xlane.xlu0 %2326 }
 0x2fa   : > { %v2358_v44 = vmul.f32 0.0078125, %v2327_v34  ;;  %v2247_v39 = vadd.f32 1.1920929e-07, %v2231_v52 }
 0x2fb   : > { %v2329_v48 = vpop.xlane.xlu1 %2328 }
 0x2fc   : > { %v2374_v42 = vadd.f32 1.1920929e-07, %v2358_v44  ;;  %v2359_v9 = vmul.f32 0.0078125, %v2329_v48 }
 0x2fd   : > { %v2759_v61 = vpop.xlane.xlu0 %2758 }
 0x2fe   : > { %4196 = vrsqrt.f32 %v2374_v42  ;;  %v2375_v38 = vadd.f32 1.1920929e-07, %v2359_v9  ;;  %v2790_v24 = vmul.f32 0.0078125, %v2759_v61 }
 0x2ff   : > { %v2761_v41 = vpop.xlane.xlu1 %2760 }
 0x300   : > { %4198 = vrsqrt.f32 %v2375_v38  ;;  %v2806_v27 = vadd.f32 1.1920929e-07, %v2790_v24  ;;  %v2791_v30 = vmul.f32 0.0078125, %v2761_v41  ;;  %v6444_v38 = vld [vmem:[#allocation22_spill] sm:$0xff] }
 0x301   : > { %v2887_v49 = vpop.xlane.xlu0 %2886 }
 0x302   : > { %4200 = vrsqrt.f32 %v2806_v27  ;;  %v2918_v14 = vmul.f32 0.0078125, %v2887_v49  ;;  %v2807_v59 = vadd.f32 1.1920929e-07, %v2791_v30  ;;  %v6445_v30 = vld [vmem:[#allocation23_spill] sm:$0xff] }
 0x303   : > { %v2889_v23 = vpop.xlane.xlu1 %2888  ;;  %4202 = vrsqrt.f32 %v2246_v40 }
 0x304   : > { %v2934_v58 = vadd.f32 1.1920929e-07, %v2918_v14  ;;  %v2919_v55 = vmul.f32 0.0078125, %v2889_v23  ;;  %4204 = vrsqrt.f32 %v2247_v39 }
 0x305   : > { %v2202_v7 = vpop.xlane.xlu0 %2201 }
 0x306   : > { %4206 = vrsqrt.f32 %v2934_v58  ;;  %v2935_v50 = vadd.f32 1.1920929e-07, %v2919_v55  ;;  %v2232_v36 = vmul.f32 0.0078125, %v2202_v7 }
 0x307   : > { %v2204_v54 = vpop.xlane.xlu1 %2203 }
 0x308   : > { %v4197_v43 = vpop.eup %4196  ;;  %4208 = vrsqrt.f32 %v2935_v50  ;;  %v2248_v51 = vadd.f32 1.1920929e-07, %v2232_v36  ;;  %v2233_v27 = vmul.f32 0.0078125, %v2204_v54  ;;  %v6446_v50 = vld [vmem:[#allocation25_spill] sm:$0xff] }
 0x309   : > { %v2331_v5 = vpop.xlane.xlu0 %2330  ;;  %v5790_v18 = vmul.f32 %v4197_v43, %v5407_v12  ;;  %4210 = vrsqrt.f32 %v2807_v59 }
 0x30a   : > { %v4199_v33 = vpop.eup %4198  ;;  %v2360_v31 = vmul.f32 0.0078125, %v2331_v5  ;;  %4212 = vrsqrt.f32 %v2248_v51  ;;  %v2249_v51 = vadd.f32 1.1920929e-07, %v2233_v27  ;;  %v6450_v27 = vld [vmem:[#allocation26_spill] sm:$0xff] }
 0x30b   : > { %v2333_v13 = vpop.xlane.xlu1 %2332  ;;  %2598 = vrot.lane.b32.xlu0 %v5790_v18, %s4586_s17  ;;  %v5795_v57 = vmul.f32 %v4199_v33, %v5417_v1  ;;  %v6447_v33 = vld [vmem:[#allocation21_spill] sm:$0xff] }
 0x30c   : > { %v4201_v34 = vpop.eup %4200  ;;  %v2376_v44 = vadd.f32 1.1920929e-07, %v2360_v31  ;;  %v2361_v47 = vmul.f32 0.0078125, %v2333_v13 }
 0x30d   : > { %v2838_v48 = vmul.f32 0.088388346, %v4201_v34  ;;  %2600 = vrot.lane.b32.xlu1 %v5795_v57, %s4586_s17  ;;  %v2763_v12 = vpop.xlane.xlu0 %2762  ;;  %v4203_v42 = vpop.eup %4202 }
 0x30e   : > { %4214 = vrsqrt.f32 %v2376_v44  ;;  %v2792_v9 = vmul.f32 0.0078125, %v2763_v12  ;;  %v4205_v52 = vpop.eup %4204  ;;  %v2278_v40 = vmul.f32 0.088388346, %v4203_v42  ;;  %v2377_v39 = vadd.f32 1.1920929e-07, %v2361_v47  ;;  %v6448_v12 = vld [vmem:[#allocation24_spill] sm:$0xff] }
 0x30f   : > { %v2893_v61 = vpop.xlane.xlu1 %2892  ;;  %v5800_v24 = vmul.f32 %v2838_v48, %v6444_v38  ;;  %v2279_v7 = vmul.f32 0.088388346, %v4205_v52 }
 0x310   : > { %v4207_v41 = vpop.eup %4206  ;;  %v2808_v1 = vadd.f32 1.1920929e-07, %v2792_v9  ;;  %v2921_v58 = vmul.f32 0.0078125, %v2893_v61  ;;  %v5815_v31 = vmul.f32 %v2278_v40, %v6447_v33  ;;  %v6449_v61 = vld [vmem:[#allocation28_spill] sm:$0xff] }
 0x311   : > { %2998 = vrot.lane.b32.xlu1 %v5800_v24, %s4586_s17  ;;  %v2891_v49 = vpop.xlane.xlu0 %2890  ;;  %v5805_v14 = vmul.f32 %v4207_v41, %v6445_v30  ;;  %v5820_v42 = vmul.f32 %v2279_v7, %v6448_v12 }
 0x312   : > { %v4209_v23 = vpop.eup %4208  ;;  %v2920_v55 = vmul.f32 0.0078125, %v2891_v49  ;;  %4216 = vrsqrt.f32 %v2808_v1  ;;  %v2937_v13 = vadd.f32 1.1920929e-07, %v2921_v58 }
 0x313   : > { %v2208_v59 = vpop.xlane.xlu1 %2207  ;;  %3158 = vrot.lane.b32.xlu0 %v5805_v14, %s4586_s17  ;;  %v5810_v36 = vmul.f32 %v4209_v23, %v6446_v50  ;;  %v4211_v54 = vpop.eup %4210  ;;  %4218 = vrsqrt.f32 %v2377_v39 }
 0x314   : > { %v2936_v43 = vadd.f32 1.1920929e-07, %v2920_v55  ;;  %v4213_v44 = vpop.eup %4212  ;;  %v2839_v48 = vmul.f32 0.088388346, %v4211_v54  ;;  %v2235_v7 = vmul.f32 0.0078125, %v2208_v59  ;;  %v6451_v54 = vld [vmem:[#allocation27_spill] sm:$0xff] }
 0x315   : > { %3160 = vrot.lane.b32.xlu1 %v5810_v36, %s4586_s17  ;;  %v2765_v5 = vpop.xlane.xlu0 %2764  ;;  %v2280_v1 = vmul.f32 0.088388346, %v4213_v44 }
 0x316   : > { %4220 = vrsqrt.f32 %v2936_v43  ;;  %v2793_v34 = vmul.f32 0.0078125, %v2765_v5  ;;  %v5830_v39 = vmul.f32 %v2839_v48, %v6450_v27  ;;  %v6453_v48 = vld [vmem:[#allocation29_spill] sm:$0xff]  ;;  %v2251_v59 = vadd.f32 1.1920929e-07, %v2235_v7 }
 0x317   : > { %v2337_v47 = vpop.xlane.xlu1 %2336  ;;  %2438 = vrot.lane.b32.xlu0 %v5815_v31, %s4586_s17  ;;  %4222 = vrsqrt.f32 %v2249_v51  ;;  %v5835_v43 = vmul.f32 %v2280_v1, %v6451_v54 }
 0x318   : > { %v4215_v9 = vpop.eup %4214  ;;  %4224 = vrsqrt.f32 %v2937_v13  ;;  %v2809_v41 = vadd.f32 1.1920929e-07, %v2793_v34  ;;  %v2363_v23 = vmul.f32 0.0078125, %v2337_v47 }
 0x319   : > { %2440 = vrot.lane.b32.xlu1 %v5820_v42, %s4586_s17  ;;  %v2206_v52 = vpop.xlane.xlu0 %2205  ;;  %v5825_v38 = vmul.f32 %v4215_v9, %v6449_v61  ;;  %6452 = vst [vmem:[#allocation22_spill] sm:$0xff] %v5835_v43 }
 0x31a   : > { %4226 = vrsqrt.f32 %v2809_v41  ;;  %v2234_v5 = vmul.f32 0.0078125, %v2206_v52  ;;  %v2379_v47 = vadd.f32 1.1920929e-07, %v2363_v23  ;;  %v6455_v41 = vld [vmem:[#allocation32_spill] sm:$0xff] }
 0x31b   : > { %v2769_v40 = vpop.xlane.xlu1 %2768  ;;  %2602 = vrot.lane.b32.xlu0 %v5825_v38, %s4586_s17 }
 0x31c   : > { %v4217_v30 = vpop.eup %4216  ;;  %v2250_v27 = vadd.f32 1.1920929e-07, %v2234_v5  ;;  %v2795_v7 = vmul.f32 0.0078125, %v2769_v40 }
 0x31d   : > { %3000 = vrot.lane.b32.xlu1 %v5830_v39, %s4586_s17  ;;  %v2335_v49 = vpop.xlane.xlu0 %2334  ;;  %v4219_v55 = vpop.eup %4218  ;;  %v2840_v13 = vmul.f32 0.088388346, %v4217_v30 }
 0x31e   : > { %v2362_v58 = vmul.f32 0.0078125, %v2335_v49  ;;  %v5845_v52 = vmul.f32 %v4219_v55, %v6455_v41  ;;  %v6459_v55 = vld [vmem:[#allocation33_spill] sm:$0xff]  ;;  %v2811_v40 = vadd.f32 1.1920929e-07, %v2795_v7 }
 0x31f   : > { %v2897_v50 = vpop.xlane.xlu1 %2896 }
 0x320   : > { %v4221_v51 = vpop.eup %4220  ;;  %v2378_v33 = vadd.f32 1.1920929e-07, %v2362_v58  ;;  %v2923_v34 = vmul.f32 0.0078125, %v2897_v50  ;;  %6456 = vst [vmem:[#allocation25_spill] sm:$0xff] %v5845_v52  ;;  %v6457_v50 = vld [vmem:[#allocation30_spill] sm:$0xff] }
 0x321   : > { %2442 = vrot.lane.b32.xlu1 %v5835_v43, %s4586_s17  ;;  %v2767_v44 = vpop.xlane.xlu0 %2766  ;;  %v5840_v12 = vmul.f32 %v4221_v51, %v6453_v48  ;;  %v4223_v9 = vpop.eup %4222  ;;  %v5850_v23 = vmul.f32 %v2840_v13, %v6457_v50 }
 0x322   : > { %4228 = vrsqrt.f32 %v2378_v33  ;;  %v4225_v1 = vpop.eup %4224  ;;  %v2794_v49 = vmul.f32 0.0078125, %v2767_v44  ;;  %v2939_v30 = vadd.f32 1.1920929e-07, %v2923_v34  ;;  %v2281_v51 = vmul.f32 0.088388346, %v4223_v9 }
 0x323   : > { %6454 = vst [vmem:[#allocation23_spill] sm:$0xff] %v5840_v12  ;;  %v2212_v61 = vpop.xlane.xlu1 %2211  ;;  %3162 = vrot.lane.b32.xlu0 %v5840_v12, %s4586_s17  ;;  %6458 = vst [vmem:[#allocation21_spill] sm:$0xff] %v5850_v23  ;;  %4230 = vrsqrt.f32 %v2379_v47  ;;  %v5855_v5 = vmul.f32 %v4225_v1, %v6459_v55  ;;  %v6465_v55 = vld [vmem:[#allocation34_spill] sm:$0xff] }
 0x324   : > { %4232 = vrsqrt.f32 %v2251_v59  ;;  %v4227_v34 = vpop.eup %4226  ;;  %v2810_v44 = vadd.f32 1.1920929e-07, %v2794_v49  ;;  %v6461_v59 = vld [vmem:[#allocation31_spill] sm:$0xff] }
 0x325   : > { %2604 = vrot.lane.b32.xlu1 %v5845_v52, %s4586_s17  ;;  %v2895_v58 = vpop.xlane.xlu0 %2894  ;;  %6460 = vst [vmem:[#allocation24_spill] sm:$0xff] %v5855_v5  ;;  %4234 = vrsqrt.f32 %v2250_v27  ;;  %v2841_v47 = vmul.f32 0.088388346, %v4227_v34  ;;  %v5860_v41 = vmul.f32 %v2281_v51, %v6461_v59  ;;  %v6463_v27 = vld [vmem:[#allocation36_spill] sm:$0xff] }
 0x326   : > { %v2922_v54 = vmul.f32 0.0078125, %v2895_v58  ;;  %4236 = vrsqrt.f32 %v2939_v30 }
 0x327   : > { %v2341_v33 = vpop.xlane.xlu1 %2340  ;;  %3002 = vrot.lane.b32.xlu0 %v5850_v23, %s4586_s17  ;;  %6462 = vst [vmem:[#allocation28_spill] sm:$0xff] %v5860_v41  ;;  %v5870_v51 = vmul.f32 %v2841_v47, %v6465_v55 }
 0x328   : > { %v2938_v48 = vadd.f32 1.1920929e-07, %v2922_v54  ;;  %v2365_v30 = vmul.f32 0.0078125, %v2341_v33  ;;  %v2237_v54 = vmul.f32 0.0078125, %v2212_v61 }
 0x329   : > { %3164 = vrot.lane.b32.xlu1 %v5855_v5, %s4586_s17  ;;  %v2210_v13 = vpop.xlane.xlu0 %2209  ;;  %6466 = vst [vmem:[#allocation27_spill] sm:$0xff] %v5870_v51  ;;  %v6467_v5 = vld [vmem:[#allocation40_spill] sm:$0xff] }
 0x32a   : > { %4238 = vrsqrt.f32 %v2938_v48  ;;  %v2381_v33 = vadd.f32 1.1920929e-07, %v2365_v30  ;;  %v2253_v61 = vadd.f32 1.1920929e-07, %v2237_v54 }
 0x32b   : > { %v2773_v9 = vpop.xlane.xlu1 %2772  ;;  %4240 = vrsqrt.f32 %v2810_v44  ;;  %v2236_v44 = vmul.f32 0.0078125, %v2210_v13 }
 0x32c   : > { %v4229_v58 = vpop.eup %4228  ;;  %4242 = vrsqrt.f32 %v2811_v40  ;;  %v2797_v54 = vmul.f32 0.0078125, %v2773_v9 }
 0x32d   : > { %2444 = vrot.lane.b32.xlu1 %v5860_v41, %s4586_s17  ;;  %v2339_v1 = vpop.xlane.xlu0 %2338  ;;  %v5865_v49 = vmul.f32 %v4229_v58, %v6463_v27  ;;  %v4231_v34 = vpop.eup %4230  ;;  %v2252_v47 = vadd.f32 1.1920929e-07, %v2236_v44 }
 0x32e   : > { %v2364_v50 = vmul.f32 0.0078125, %v2339_v1  ;;  %v4233_v59 = vpop.eup %4232  ;;  %v5875_v23 = vmul.f32 %v4231_v34, %v6467_v5  ;;  %v6471_v34 = vld [vmem:[#allocation42_spill] sm:$0xff] }
 0x32f   : > { %6464 = vst [vmem:[#allocation26_spill] sm:$0xff] %v5865_v49  ;;  %v2901_v7 = vpop.xlane.xlu1 %2900  ;;  %2606 = vrot.lane.b32.xlu0 %v5865_v49, %s4586_s17  ;;  %v4235_v40 = vpop.eup %4234  ;;  %v2283_v43 = vmul.f32 0.088388346, %v4233_v59  ;;  %v2813_v59 = vadd.f32 1.1920929e-07, %v2797_v54 }
 0x330   : > { %v2380_v48 = vadd.f32 1.1920929e-07, %v2364_v50  ;;  %v2925_v41 = vmul.f32 0.0078125, %v2901_v7  ;;  %v4237_v1 = vpop.eup %4236  ;;  %6468 = vst [vmem:[#allocation29_spill] sm:$0xff] %v5875_v23  ;;  %v2282_v13 = vmul.f32 0.088388346, %v4235_v40 }
 0x331   : > { %3004 = vrot.lane.b32.xlu1 %v5870_v51, %s4586_s17  ;;  %v2771_v58 = vpop.xlane.xlu0 %2770  ;;  %v6469_v51 = vld [vmem:[#allocation38_spill] sm:$0xff]  ;;  %v5885_v44 = vmul.f32 %v4237_v1, %v6471_v34  ;;  %v6475_v1 = vld [vmem:[#allocation39_spill] sm:$0xff] }
 0x332   : > { %4244 = vrsqrt.f32 %v2380_v48  ;;  %v2796_v55 = vmul.f32 0.0078125, %v2771_v58  ;;  %v2941_v50 = vadd.f32 1.1920929e-07, %v2925_v41 }
 0x333   : > { %v2216_v27 = vpop.xlane.xlu1 %2215  ;;  %4246 = vrsqrt.f32 %v2381_v33  ;;  %6472 = vst [vmem:[#allocation30_spill] sm:$0xff] %v5885_v44 }
 0x334   : > { %v4239_v49 = vpop.eup %4238  ;;  %4248 = vrsqrt.f32 %v2253_v61  ;;  %v2812_v48 = vadd.f32 1.1920929e-07, %v2796_v55  ;;  %v6477_v55 = vld [vmem:[#allocation37_spill] sm:$0xff]  ;;  %v2239_v54 = vmul.f32 0.0078125, %v2216_v27 }
 0x335   : > { %2608 = vrot.lane.b32.xlu1 %v5875_v23, %s4586_s17  ;;  %v2899_v7 = vpop.xlane.xlu0 %2898  ;;  %v5880_v52 = vmul.f32 %v4239_v49, %v6469_v51  ;;  %v4241_v30 = vpop.eup %4240  ;;  %4250 = vrsqrt.f32 %v2252_v47  ;;  %v6473_v49 = vld [vmem:[#allocation35_spill] sm:$0xff]  ;;  %v5895_v47 = vmul.f32 %v2283_v43, %v6475_v1 }
 0x336   : > { %v2924_v12 = vmul.f32 0.0078125, %v2899_v7  ;;  %v4243_v41 = vpop.eup %4242  ;;  %v2842_v40 = vmul.f32 0.088388346, %v4241_v30  ;;  %4252 = vrsqrt.f32 %v2941_v50  ;;  %v5890_v51 = vmul.f32 %v2282_v13, %v6473_v49 }
 0x337   : > { %6470 = vst [vmem:[#allocation32_spill] sm:$0xff] %v5880_v52  ;;  %v2345_v5 = vpop.xlane.xlu1 %2344  ;;  %3166 = vrot.lane.b32.xlu0 %v5880_v52, %s4586_s17  ;;  %v2843_v33 = vmul.f32 0.088388346, %v4243_v41  ;;  %6476 = vst [vmem:[#allocation31_spill] sm:$0xff] %v5895_v47  ;;  %v6479_v41 = vld [vmem:[#allocation41_spill] sm:$0xff] }
 0x338   : > { %v2940_v58 = vadd.f32 1.1920929e-07, %v2924_v12  ;;  %6474 = vst [vmem:[#allocation33_spill] sm:$0xff] %v5890_v51  ;;  %v5900_v50 = vmul.f32 %v2842_v40, %v6477_v55  ;;  %v2367_v7 = vmul.f32 0.0078125, %v2345_v5 }
 0x339   : > { %3168 = vrot.lane.b32.xlu1 %v5885_v44, %s4586_s17  ;;  %v2214_v9 = vpop.xlane.xlu0 %2213  ;;  %v5905_v43 = vmul.f32 %v2843_v33, %v6479_v41  ;;  %v6483_v33 = vld [vmem:[#allocation48_spill] sm:$0xff] }
 0x33a   : > { %4254 = vrsqrt.f32 %v2940_v58  ;;  %6478 = vst [vmem:[#allocation36_spill] sm:$0xff] %v5900_v50  ;;  %v2238_v58 = vmul.f32 0.0078125, %v2214_v9 }
 0x33b   : > { %v2777_v61 = vpop.xlane.xlu1 %2776  ;;  %2446 = vrot.lane.b32.xlu0 %v5890_v51, %s4586_s17  ;;  %4256 = vrsqrt.f32 %v2812_v48  ;;  %6480 = vst [vmem:[#allocation34_spill] sm:$0xff] %v5905_v43  ;;  %v2255_v51 = vadd.f32 1.1920929e-07, %v2239_v54 }
 0x33c   : > { %v4245_v13 = vpop.eup %4244  ;;  %4258 = vrsqrt.f32 %v2813_v59  ;;  %v6481_v59 = vld [vmem:[#allocation44_spill] sm:$0xff]  ;;  %v2799_v52 = vmul.f32 0.0078125, %v2777_v61 }
 0x33d   : > { %2448 = vrot.lane.b32.xlu1 %v5895_v47, %s4586_s17  ;;  %v2343_v12 = vpop.xlane.xlu0 %2342  ;;  %v4247_v48 = vpop.eup %4246  ;;  %v5910_v5 = vmul.f32 %v4245_v13, %v6481_v59 }
 0x33e   : > { %v2366_v30 = vmul.f32 0.0078125, %v2343_v12  ;;  %v4249_v1 = vpop.eup %4248  ;;  %v2383_v12 = vadd.f32 1.1920929e-07, %v2367_v7  ;;  %v5915_v9 = vmul.f32 %v4247_v48, %v6483_v33  ;;  %v6484_v7 = vld [vmem:[#allocation46_spill] sm:$0xff] }
 0x33f   : > { %v2905_v34 = vpop.xlane.xlu1 %2904  ;;  %3006 = vrot.lane.b32.xlu0 %v5900_v50, %s4586_s17  ;;  %6482 = vst [vmem:[#allocation40_spill] sm:$0xff] %v5910_v5  ;;  %v4251_v27 = vpop.eup %4250  ;;  %v2285_v23 = vmul.f32 0.088388346, %v4249_v1 }
 0x340   : > { %v2382_v49 = vadd.f32 1.1920929e-07, %v2366_v30  ;;  %v2927_v47 = vmul.f32 0.0078125, %v2905_v34  ;;  %v4253_v55 = vpop.eup %4252  ;;  %v2254_v34 = vadd.f32 1.1920929e-07, %v2238_v58  ;;  %v6485_v58 = vld [vmem:[#allocation50_spill] sm:$0xff] }
 0x341   : > { %3008 = vrot.lane.b32.xlu1 %v5905_v43, %s4586_s17  ;;  %v2775_v40 = vpop.xlane.xlu0 %2774  ;;  %v2284_v43 = vmul.f32 0.088388346, %v4251_v27 }
 0x342   : > { %4260 = vrsqrt.f32 %v2382_v49  ;;  %v2798_v41 = vmul.f32 0.0078125, %v2775_v40  ;;  %v2943_v44 = vadd.f32 1.1920929e-07, %v2927_v47  ;;  %v5925_v49 = vmul.f32 %v4253_v55, %v6485_v58  ;;  %v6489_v55 = vld [vmem:[#allocation47_spill] sm:$0xff] }
 0x343   : > { %v2220_v50 = vpop.xlane.xlu1 %2219  ;;  %2610 = vrot.lane.b32.xlu0 %v5910_v5, %s4586_s17  ;;  %4262 = vrsqrt.f32 %v2383_v12  ;;  %v6487_v12 = vld [vmem:[#allocation43_spill] sm:$0xff] }
 0x344   : > { %v4255_v30 = vpop.eup %4254  ;;  %4264 = vrsqrt.f32 %v2255_v51  ;;  %6486 = vst [vmem:[#allocation38_spill] sm:$0xff] %v5925_v49  ;;  %v2814_v40 = vadd.f32 1.1920929e-07, %v2798_v41  ;;  %v5930_v1 = vmul.f32 %v2284_v43, %v6487_v12  ;;  %v2815_v51 = vadd.f32 1.1920929e-07, %v2799_v52 }
 0x345   : > { %2612 = vrot.lane.b32.xlu1 %v5915_v9, %s4586_s17  ;;  %v5920_v59 = vmul.f32 %v4255_v30, %v6484_v7  ;;  %v4257_v54 = vpop.eup %4256  ;;  %4266 = vrsqrt.f32 %v2254_v34  ;;  %v5935_v34 = vmul.f32 %v2285_v23, %v6489_v55 }
 0x346   : > { %v2903_v13 = vpop.xlane.xlu0 %2902  ;;  %v4259_v47 = vpop.eup %4258  ;;  %v2844_v33 = vmul.f32 0.088388346, %v4257_v54  ;;  %4268 = vrsqrt.f32 %v2943_v44  ;;  %6488 = vst [vmem:[#allocation42_spill] sm:$0xff] %v5930_v1  ;;  %v2241_v54 = vmul.f32 0.0078125, %v2220_v50 }
 0x347   : > { %v2926_v5 = vmul.f32 0.0078125, %v2903_v13  ;;  %v2349_v48 = vpop.xlane.xlu1 %2348  ;;  %3170 = vrot.lane.b32.xlu0 %v5920_v59, %s4586_s17  ;;  %v2845_v30 = vmul.f32 0.088388346, %v4259_v47  ;;  %6490 = vst [vmem:[#allocation35_spill] sm:$0xff] %v5935_v34  ;;  %v6493_v47 = vld [vmem:[#allocation49_spill] sm:$0xff] }
 0x348   : > { %v2369_v52 = vmul.f32 0.0078125, %v2349_v48 }
 0x349   : > { %v2942_v27 = vadd.f32 1.1920929e-07, %v2926_v5  ;;  %3172 = vrot.lane.b32.xlu1 %v5925_v49, %s4586_s17  ;;  %v6491_v5 = vld [vmem:[#allocation45_spill] sm:$0xff]  ;;  %v5945_v23 = vmul.f32 %v2845_v30, %v6493_v47 }
 0x34a   : > { %v2218_v61 = vpop.xlane.xlu0 %2217  ;;  %v5938_v44 = vmul.f32 %v2844_v33, %v6491_v5  ;;  %v6496_v30 = vld [vmem:[#allocation53_spill] sm:$0xff] }
 0x34b   : > { %4270 = vrsqrt.f32 %v2942_v27  ;;  %2450 = vrot.lane.b32.xlu0 %v5930_v1, %s4586_s17  ;;  %6494 = vst [vmem:[#allocation37_spill] sm:$0xff] %v5945_v23  ;;  %v2240_v27 = vmul.f32 0.0078125, %v2218_v61 }
 0x34c   : > { %v2781_v13 = vpop.xlane.xlu1 %2780  ;;  %4272 = vrsqrt.f32 %v2814_v40  ;;  %6492 = vst [vmem:[#allocation39_spill] sm:$0xff] %v5938_v44  ;;  %v4261_v43 = vpop.eup %4260 }
 0x34d   : > { %2452 = vrot.lane.b32.xlu1 %v5935_v34, %s4586_s17  ;;  %4274 = vrsqrt.f32 %v2815_v51  ;;  %v4263_v40 = vpop.eup %4262  ;;  %v5950_v48 = vmul.f32 %v4261_v43, %v5503_v4  ;;  %v2385_v51 = vadd.f32 1.1920929e-07, %v2369_v52  ;;  %v2257_v34 = vadd.f32 1.1920929e-07, %v2241_v54 }
 0x34e   : > { %v2347_v41 = vpop.xlane.xlu0 %2346  ;;  %v4265_v12 = vpop.eup %4264  ;;  %v5955_v61 = vmul.f32 %v4263_v40, %v6496_v30  ;;  %v2801_v54 = vmul.f32 0.0078125, %v2781_v13 }
 0x34f   : > { %v2368_v7 = vmul.f32 0.0078125, %v2347_v41  ;;  %3010 = vrot.lane.b32.xlu0 %v5938_v44, %s4586_s17  ;;  %6495 = vst [vmem:[#allocation41_spill] sm:$0xff] %v5950_v48  ;;  %v4267_v50 = vpop.eup %4266  ;;  %v2287_v49 = vmul.f32 0.088388346, %v4265_v12 }
 0x350   : > { %v2909_v58 = vpop.xlane.xlu1 %2908  ;;  %v4269_v41 = vpop.eup %4268 }
 0x351   : > { %v2384_v33 = vadd.f32 1.1920929e-07, %v2368_v7  ;;  %v2929_v55 = vmul.f32 0.0078125, %v2909_v58  ;;  %3012 = vrot.lane.b32.xlu1 %v5945_v23, %s4586_s17  ;;  %v2256_v58 = vadd.f32 1.1920929e-07, %v2240_v27  ;;  %v2286_v23 = vmul.f32 0.088388346, %v4267_v50  ;;  %v6497_v50 = vld [vmem:[#allocation51_spill] sm:$0xff] }
 0x352   : > { %v2779_v5 = vpop.xlane.xlu0 %2778  ;;  %v5965_v27 = vmul.f32 %v4269_v41, %v5521_v25  ;;  %v6498_v25 = vld [vmem:[#allocation52_spill] sm:$0xff] }
 0x353   : > { %2614 = vrot.lane.b32.xlu0 %v5950_v48, %s4586_s17  ;;  %4276 = vrsqrt.f32 %v2384_v33  ;;  %v2800_v47 = vmul.f32 0.0078125, %v2779_v5  ;;  %v2945_v1 = vadd.f32 1.1920929e-07, %v2929_v55  ;;  %v5975_v41 = vmul.f32 %v2287_v49, %v6498_v25 }
 0x354   : > { %v2224_v44 = vpop.xlane.xlu1 %2223  ;;  %4278 = vrsqrt.f32 %v2385_v51 }
 0x355   : > { %v4271_v7 = vpop.eup %4270  ;;  %2616 = vrot.lane.b32.xlu1 %v5955_v61, %s4586_s17  ;;  %4280 = vrsqrt.f32 %v2257_v34  ;;  %v2816_v55 = vadd.f32 1.1920929e-07, %v2800_v47  ;;  %v2817_v34 = vadd.f32 1.1920929e-07, %v2801_v54 }
 0x356   : > { %v2907_v4 = vpop.xlane.xlu0 %2906  ;;  %v5960_v43 = vmul.f32 %v4271_v7, %v5511_v45  ;;  %v4273_v52 = vpop.eup %4272  ;;  %4282 = vrsqrt.f32 %v2256_v58  ;;  %v5968_v45 = vmul.f32 %v2286_v23, %v6497_v50 }
 0x357   : > { %v2928_v48 = vmul.f32 0.0078125, %v2907_v4  ;;  %v4275_v33 = vpop.eup %4274  ;;  %v2846_v30 = vmul.f32 0.088388346, %v4273_v52  ;;  %4284 = vrsqrt.f32 %v2945_v1  ;;  %v2243_v4 = vmul.f32 0.0078125, %v2224_v44 }
 0x358   : > { %v2353_v40 = vpop.xlane.xlu1 %2352  ;;  %3174 = vrot.lane.b32.xlu0 %v5960_v43, %s4586_s17  ;;  %v2847_v12 = vmul.f32 0.088388346, %v4275_v33 }
 0x359   : > { %v2944_v5 = vadd.f32 1.1920929e-07, %v2928_v48  ;;  %3176 = vrot.lane.b32.xlu1 %v5965_v27, %s4586_s17  ;;  %v5978_v23 = vmul.f32 %v2846_v30, %v5509_v19  ;;  %v2371_v7 = vmul.f32 0.0078125, %v2353_v40  ;;  %v2259_v44 = vadd.f32 1.1920929e-07, %v2243_v4 }
 0x35a   : > { %v2222_v13 = vpop.xlane.xlu0 %2221  ;;  %v5983_v47 = vmul.f32 %v2847_v12, %v5519_v21 }
 0x35b   : > { %4286 = vrsqrt.f32 %v2944_v5  ;;  %v2242_v54 = vmul.f32 0.0078125, %v2222_v13  ;;  %v2387_v21 = vadd.f32 1.1920929e-07, %v2371_v7 }
 0x35c   : > { %v2785_v51 = vpop.xlane.xlu1 %2784  ;;  %2454 = vrot.lane.b32.xlu0 %v5968_v45, %s4586_s17  ;;  %4288 = vrsqrt.f32 %v2816_v55  ;;  %6499 = vst [vmem:[#allocation44_spill] sm:$0xff] %v5983_v47 }
 0x35d   : > { %2456 = vrot.lane.b32.xlu1 %v5975_v41, %s4586_s17  ;;  %v4277_v48 = vpop.eup %4276  ;;  %4290 = vrsqrt.f32 %v2817_v34  ;;  %v2258_v25 = vadd.f32 1.1920929e-07, %v2242_v54  ;;  %v2803_v4 = vmul.f32 0.0078125, %v2785_v51 }
 0x35e   : > { %v2351_v1 = vpop.xlane.xlu0 %2350  ;;  %v4279_v49 = vpop.eup %4278  ;;  %v5990_v40 = vmul.f32 %v4277_v48, %v5527_v29 }
 0x35f   : > { %v2370_v58 = vmul.f32 0.0078125, %v2351_v1  ;;  %v4281_v33 = vpop.eup %4280  ;;  %v5995_v13 = vmul.f32 %v4279_v49, %v5537_v22 }
 0x360   : > { %v2913_v52 = vpop.xlane.xlu1 %2912  ;;  %3014 = vrot.lane.b32.xlu0 %v5978_v23, %s4586_s17  ;;  %6500 = vst [vmem:[#allocation48_spill] sm:$0xff] %v5990_v40  ;;  %v4283_v50 = vpop.eup %4282 }
 0x361   : > { %v2386_v19 = vadd.f32 1.1920929e-07, %v2370_v58  ;;  %v2931_v55 = vmul.f32 0.0078125, %v2913_v52  ;;  %3016 = vrot.lane.b32.xlu1 %v5983_v47, %s4586_s17  ;;  %v4285_v30 = vpop.eup %4284  ;;  %v2288_v58 = vmul.f32 0.088388346, %v4283_v50  ;;  %v2289_v47 = vmul.f32 0.088388346, %v4281_v33 }
 0x362   : > { %v2783_v5 = vpop.xlane.xlu0 %2782  ;;  %v6005_v22 = vmul.f32 %v4285_v30, %v5543_v16  ;;  %v2819_v33 = vadd.f32 1.1920929e-07, %v2803_v4 }
 0x363   : > { %4292 = vrsqrt.f32 %v2386_v19  ;;  %v2802_v1 = vmul.f32 0.0078125, %v2783_v5  ;;  %v2947_v52 = vadd.f32 1.1920929e-07, %v2931_v55  ;;  %v6008_v55 = vmul.f32 %v2288_v58, %v5525_v32 }
 0x364   : > { %v2228_v34 = vpop.xlane.xlu1 %2227  ;;  %2618 = vrot.lane.b32.xlu0 %v5990_v40, %s4586_s17  ;;  %4294 = vrsqrt.f32 %v2387_v21  ;;  %v6013_v50 = vmul.f32 %v2289_v47, %v5535_v8 }
 0x365   : > { %v4287_v12 = vpop.eup %4286  ;;  %2620 = vrot.lane.b32.xlu1 %v5995_v13, %s4586_s17  ;;  %4296 = vrsqrt.f32 %v2259_v44  ;;  %v2818_v54 = vadd.f32 1.1920929e-07, %v2802_v1 }
 0x366   : > { %v2911_v29 = vpop.xlane.xlu0 %2910  ;;  %v6000_v48 = vmul.f32 %v4287_v12, %v5533_v35  ;;  %v4289_v7 = vpop.eup %4288  ;;  %4298 = vrsqrt.f32 %v2258_v25 }
 0x367   : > { %v2930_v40 = vmul.f32 0.0078125, %v2911_v29  ;;  %v4291_v49 = vpop.eup %4290  ;;  %v2848_v35 = vmul.f32 0.088388346, %v4289_v7  ;;  %4300 = vrsqrt.f32 %v2947_v52 }
 0x368   : > { %3178 = vrot.lane.b32.xlu0 %v6000_v48, %s4586_s17  ;;  %v2357_v5 = vpop.xlane.xlu1 %2356  ;;  %v2849_v16 = vmul.f32 0.088388346, %v4291_v49 }
 0x369   : > { %v2946_v19 = vadd.f32 1.1920929e-07, %v2930_v40  ;;  %3180 = vrot.lane.b32.xlu1 %v6005_v22, %s4586_s17  ;;  %v6018_v32 = vmul.f32 %v2848_v35, %v5531_v3  ;;  %v2245_v40 = vmul.f32 0.0078125, %v2228_v34  ;;  %v2373_v12 = vmul.f32 0.0078125, %v2357_v5 }
 0x36a   : > { %v2226_v51 = vpop.xlane.xlu0 %2225  ;;  %v6023_v8 = vmul.f32 %v2849_v16, %v5541_v26 }
 0x36b   : > { %4302 = vrsqrt.f32 %v2946_v19  ;;  %v2244_v21 = vmul.f32 0.0078125, %v2226_v51  ;;  %v2261_v34 = vadd.f32 1.1920929e-07, %v2245_v40  ;;  %v2389_v49 = vadd.f32 1.1920929e-07, %v2373_v12 }
 0x36c   : > { %2458 = vrot.lane.b32.xlu0 %v6008_v55, %s4586_s17  ;;  %4304 = vrsqrt.f32 %v2818_v54  ;;  %v2789_v1 = vpop.xlane.xlu1 %2788 }
 0x36d   : > { %2460 = vrot.lane.b32.xlu1 %v6013_v50, %s4586_s17  ;;  %v4293_v44 = vpop.eup %4292  ;;  %4306 = vrsqrt.f32 %v2819_v33  ;;  %v2260_v47 = vadd.f32 1.1920929e-07, %v2244_v21  ;;  %v2805_v26 = vmul.f32 0.0078125, %v2789_v1 }
 0x36e   : > { %v2355_v30 = vpop.xlane.xlu0 %2354  ;;  %v4295_v58 = vpop.eup %4294  ;;  %v6030_v7 = vmul.f32 %v4293_v44, %v5551_v10 }
 0x36f   : > { %v2372_v25 = vmul.f32 0.0078125, %v2355_v30  ;;  %v4297_v52 = vpop.eup %4296  ;;  %4308 = vrsqrt.f32 %v2260_v47  ;;  %v6035_v35 = vmul.f32 %v4295_v58, %v5563_v62  ;;  %v2821_v40 = vadd.f32 1.1920929e-07, %v2805_v26 }
 0x370   : > { %3018 = vrot.lane.b32.xlu0 %v6018_v32, %s4586_s17  ;;  %v4299_v4 = vpop.eup %4298  ;;  %v2291_v30 = vmul.f32 0.088388346, %v4297_v52  ;;  %v2917_v44 = vpop.xlane.xlu1 %2916 }
 0x371   : > { %v2388_v3 = vadd.f32 1.1920929e-07, %v2372_v25  ;;  %3020 = vrot.lane.b32.xlu1 %v6023_v8, %s4586_s17  ;;  %v4301_v19 = vpop.eup %4300  ;;  %v2290_v33 = vmul.f32 0.088388346, %v4299_v4  ;;  %v2933_v1 = vmul.f32 0.0078125, %v2917_v44 }
 0x372   : > { %v2787_v29 = vpop.xlane.xlu0 %2786  ;;  %v6045_v62 = vmul.f32 %v4301_v19, %v5569_v0  ;;  %v6053_v58 = vmul.f32 %v2291_v30, %v5561_v2  ;;  %v6058_v0 = vld [vmem:[%s4974_s29] sm:$0xff] }
 0x373   : > { %v2804_v54 = vmul.f32 0.0078125, %v2787_v29  ;;  %4310 = vrsqrt.f32 %v2388_v3  ;;  %v2149_v29 = vld [vmem:[%s4968_s30] sm:$0xff]  ;;  %v2949_v26 = vadd.f32 1.1920929e-07, %v2933_v1 }
 0x374   : > { %2622 = vrot.lane.b32.xlu0 %v6030_v7, %s4586_s17  ;;  %4312 = vrsqrt.f32 %v2261_v34 }
 0x375   : > { %v4303_v5 = vpop.eup %4302  ;;  %v2820_v51 = vadd.f32 1.1920929e-07, %v2804_v54  ;;  %2624 = vrot.lane.b32.xlu1 %v6035_v35, %s4586_s17  ;;  %4314 = vrsqrt.f32 %v2389_v49  ;;  %v6067_v49 = vld [vmem:[%s4974_s29 + $0x8] sm:$0xff]  ;;  %v2582_v54 = vmul.f32 %v5790_v18, %v2149_v29 }
 0x376   : > { %v2915_v10 = vpop.xlane.xlu0 %2914  ;;  %v6040_v16 = vmul.f32 %v4303_v5, %v5559_v63  ;;  %v4305_v21 = vpop.eup %4304  ;;  %v6048_v63 = vmul.f32 %v2290_v33, %v5549_v46 }
 0x377   : > { %v4307_v12 = vpop.eup %4306  ;;  %4316 = vrsqrt.f32 %v2820_v51  ;;  %v2932_v25 = vmul.f32 0.0078125, %v2915_v10  ;;  %v2850_v47 = vmul.f32 0.088388346, %v4305_v21 }
 0x378   : > { %3182 = vrot.lane.b32.xlu0 %v6040_v16, %s4586_s17  ;;  %4318 = vrsqrt.f32 %v2821_v40  ;;  %v2851_v3 = vmul.f32 0.088388346, %v4307_v12 }
 0x379   : > { %3184 = vrot.lane.b32.xlu1 %v6045_v62, %s4586_s17  ;;  %v2948_v52 = vadd.f32 1.1920929e-07, %v2932_v25  ;;  %v4309_v34 = vpop.eup %4308  ;;  %v6061_v46 = vmul.f32 %v2850_v47, %v5557_v56  ;;  %v6075_v56 = vld [vmem:[%s4968_s30 + $0x8] sm:$0xff] }
 0x37a   : > { %v6072_v51 = vmul.f32 %v2851_v3, %v5567_v11  ;;  %v2583_v40 = vmul.f32 %v5795_v57, %v6075_v56  ;;  %v2292_v30 = vmul.f32 0.088388346, %v4309_v34 }
 0x37b   : > { %4320 = vrsqrt.f32 %v2948_v52 }
 0x37c   : > { %2462 = vrot.lane.b32.xlu0 %v6048_v63, %s4586_s17  ;;  %4322 = vrsqrt.f32 %v2949_v26 }
 0x37d   : > { %2464 = vrot.lane.b32.xlu1 %v6053_v58, %s4586_s17  ;;  %v2599_v4 = vpop.permute.xlu0 %2598  ;;  %v4311_v2 = vpop.eup %4310 }
 0x37e   : > { %v2630_v19 = vmul.f32 %v2599_v4, %v6058_v0  ;;  %v4313_v5 = vpop.eup %4312  ;;  %v6091_v11 = vmul.f32 %v4311_v2, %v5575_v53  ;;  %v2982_v53 = vmul.f32 %v5800_v24, %v2149_v29  ;;  %v6102_v4 = vmul.f32 %v2292_v30, %v5573_v28 }
 0x37f   : > { %v2601_v33 = vpop.permute.xlu1 %2600  ;;  %v4315_v10 = vpop.eup %4314  ;;  %v2293_v25 = vmul.f32 0.088388346, %v4313_v5 }
 0x380   : > { %3022 = vrot.lane.b32.xlu0 %v6061_v46, %s4586_s17  ;;  %v2646_v21 = vadd.f32 %v2630_v19, %v2582_v54  ;;  %v2631_v18 = vmul.f32 %v2601_v33, %v6067_v49  ;;  %v6096_v1 = vmul.f32 %v4315_v10, %v5585_v6  ;;  %v3142_v6 = vmul.f32 %v5805_v14, %v2149_v29 }
 0x381   : > { %3024 = vrot.lane.b32.xlu1 %v6072_v51, %s4586_s17  ;;  %v4317_v44 = vpop.eup %4316  ;;  %v6110_v5 = vmul.f32 %v2293_v25, %v5583_v20  ;;  %v3143_v14 = vmul.f32 %v5810_v36, %v6075_v56 }
 0x382   : > { %v3853_v12 = vpack.c.bf16 %v2646_v21, %v2646_v21  ;;  %v2647_v57 = vadd.f32 %v2631_v18, %v2583_v40  ;;  %v4319_v3 = vpop.eup %4318  ;;  %v2852_v2 = vmul.f32 0.088388346, %v4317_v44 }
 0x383   : > { %v2999_v47 = vpop.permute.xlu1 %2998  ;;  %v2853_v24 = vmul.f32 0.088388346, %v4319_v3 }
 0x384   : > { %2626 = vrot.lane.b32.xlu0 %v6091_v11, %s4586_s17  ;;  %2726 = vst [vmem:[%s6086_s22] sm:$0xf] %v3853_v12  ;;  %v3854_v52 = vpack.c.bf16 %v2647_v57, %v2647_v57  ;;  %v3030_v34 = vmul.f32 %v2999_v47, %v6058_v0  ;;  %v6124_v21 = vmul.f32 %v2852_v2, %v5579_v37  ;;  %v2167_v37 = vld [vmem:[%s4974_s29 + $0x10] sm:$0xff] }
 0x385   : > { %2628 = vrot.lane.b32.xlu1 %v6096_v1, %s4586_s17  ;;  %v3159_v26 = vpop.permute.xlu0 %3158  ;;  %v4321_v18 = vpop.eup %4320  ;;  %v2422_v12 = vmul.f32 %v5815_v31, %v2149_v29  ;;  %v6132_v57 = vmul.f32 %v2853_v24, %v5589_v17  ;;  %v2151_v17 = vld [vmem:[%s4968_s30 + $0x10] sm:$0xff]  ;;  %v2983_v24 = vmul.f32 %v5830_v39, %v6075_v56 }
 0x386   : > { %2727 = vst [vmem:[%s6086_s22 + $0x8] sm:$0xf] %v3854_v52  ;;  %v3046_v54 = vadd.f32 %v3030_v34, %v2982_v53  ;;  %v3190_v19 = vmul.f32 %v3159_v26, %v6058_v0  ;;  %v4323_v47 = vpop.eup %4322  ;;  %v2423_v53 = vmul.f32 %v5820_v42, %v6075_v56  ;;  %v6145_v29 = vmul.f32 %v4321_v18, %v5581_v60  ;;  %v6502_v56 = vld [vmem:[#allocation23_spill] sm:$0xff] }
 0x387   : > { %v3161_v28 = vpop.permute.xlu1 %3160  ;;  %v2584_v26 = vmul.f32 %v5825_v38, %v2151_v17  ;;  %v6152_v42 = vmul.f32 %v4323_v47, %v5591_v15 }
 0x388   : > { %2466 = vrot.lane.b32.xlu0 %v6102_v4, %s4586_s17  ;;  %v3869_v33 = vpack.c.bf16 %v3046_v54, %v3046_v54  ;;  %v3206_v10 = vadd.f32 %v3190_v19, %v3142_v6  ;;  %v3191_v20 = vmul.f32 %v3161_v28, %v6067_v49 }
 0x389   : > { %2468 = vrot.lane.b32.xlu1 %v6110_v5, %s4586_s17  ;;  %v2439_v40 = vpop.permute.xlu0 %2438 }
 0x38a   : > { %3126 = vst [vmem:[%s6116_s16 + $0x4] sm:$0xf] %v3869_v33  ;;  %v3885_v30 = vpack.c.bf16 %v3206_v10, %v3206_v10  ;;  %v3207_v44 = vadd.f32 %v3191_v20, %v3143_v14  ;;  %v2470_v36 = vmul.f32 %v2439_v40, %v6058_v0  ;;  %v6501_v14 = vld [vmem:[#allocation22_spill] sm:$0xff] }
 0x38b   : > { %v2441_v25 = vpop.permute.xlu1 %2440  ;;  %v2424_v20 = vmul.f32 %v6501_v14, %v2151_v17  ;;  %v2169_v14 = vld [vmem:[%s4974_s29 + $0x20] sm:$0xff] }
 0x38c   : > { %3026 = vrot.lane.b32.xlu0 %v6124_v21, %s4586_s17  ;;  %3286 = vst [vmem:[%s6086_s22 + $0x4] sm:$0xf] %v3885_v30  ;;  %v3886_v3 = vpack.c.bf16 %v3207_v44, %v3207_v44  ;;  %v2486_v52 = vadd.f32 %v2470_v36, %v2422_v12  ;;  %v2471_v31 = vmul.f32 %v2441_v25, %v6067_v49  ;;  %v2168_v30 = vld [vmem:[%s4974_s29 + $0x18] sm:$0xff] }
 0x38d   : > { %3028 = vrot.lane.b32.xlu1 %v6132_v57, %s4586_s17  ;;  %v2603_v0 = vpop.permute.xlu0 %2602  ;;  %v2152_v12 = vld [vmem:[%s4968_s30 + $0x18] sm:$0xff] }
 0x38e   : > { %3287 = vst [vmem:[%s6086_s22 + $0xc] sm:$0xf] %v3886_v3  ;;  %v3837_v34 = vpack.c.bf16 %v2486_v52, %v2486_v52  ;;  %v2487_v2 = vadd.f32 %v2471_v31, %v2423_v53  ;;  %v2632_v54 = vmul.f32 %v2603_v0, %v2167_v37  ;;  %v6503_v3 = vld [vmem:[#allocation25_spill] sm:$0xff] }
 0x38f   : > { %v3001_v6 = vpop.permute.xlu1 %3000  ;;  %v2585_v52 = vmul.f32 %v6503_v3, %v2152_v12 }
 0x390   : > { %3186 = vrot.lane.b32.xlu0 %v6145_v29, %s4586_s17  ;;  %2566 = vst [vmem:[%s6116_s16] sm:$0xf] %v3837_v34  ;;  %v3838_v19 = vpack.c.bf16 %v2487_v2, %v2487_v2  ;;  %v2648_v60 = vadd.f32 %v2632_v54, %v2584_v26  ;;  %v3031_v28 = vmul.f32 %v3001_v6, %v6067_v49  ;;  %v6504_v2 = vld [vmem:[#allocation21_spill] sm:$0xff] }
 0x391   : > { %3188 = vrot.lane.b32.xlu1 %v6152_v42, %s4586_s17  ;;  %v3144_v49 = vmul.f32 %v6502_v56, %v2151_v17  ;;  %v2984_v26 = vmul.f32 %v6504_v2, %v2151_v17  ;;  %v6506_v17 = vld [vmem:[#allocation28_spill] sm:$0xff] }
 0x392   : > { %2567 = vst [vmem:[%s6116_s16 + $0x8] sm:$0xf] %v3838_v19  ;;  %v3855_v38 = vpack.c.bf16 %v2648_v60, %v2648_v60  ;;  %v3047_v33 = vadd.f32 %v3031_v28, %v2983_v24  ;;  %v6505_v24 = vld [vmem:[#allocation24_spill] sm:$0xff] }
 0x393   : > { %v2443_v10 = vpop.permute.xlu1 %2442  ;;  %v3145_v28 = vmul.f32 %v6505_v24, %v2152_v12 }
 0x394   : > { %2728 = vst [vmem:[%s6086_s22 + $0x10] sm:$0xf] %v3855_v38  ;;  %v3870_v15 = vpack.c.bf16 %v3047_v33, %v3047_v33  ;;  %v2472_v40 = vmul.f32 %v2443_v10, %v2167_v37 }
 0x395   : > { %v3163_v18 = vpop.permute.xlu0 %3162 }
 0x396   : > { %3127 = vst [vmem:[%s6116_s16 + $0xc] sm:$0xf] %v3870_v15  ;;  %v2488_v39 = vadd.f32 %v2472_v40, %v2424_v20  ;;  %v3192_v44 = vmul.f32 %v3163_v18, %v2167_v37  ;;  %v2153_v18 = vld [vmem:[%s4968_s30 + $0x20] sm:$0xff] }
 0x397   : > { %v2605_v36 = vpop.permute.xlu1 %2604 }
 0x398   : > { %v3839_v25 = vpack.c.bf16 %v2488_v39, %v2488_v39  ;;  %v3208_v47 = vadd.f32 %v3192_v44, %v3144_v49  ;;  %v2633_v53 = vmul.f32 %v2605_v36, %v2168_v30  ;;  %v6507_v49 = vld [vmem:[#allocation26_spill] sm:$0xff] }
 0x399   : > { %v3003_v31 = vpop.permute.xlu0 %3002  ;;  %v2586_v44 = vmul.f32 %v6507_v49, %v2153_v18 }
 0x39a   : > { %2568 = vst [vmem:[%s6116_s16 + $0x10] sm:$0xf] %v3839_v25  ;;  %v3887_v0 = vpack.c.bf16 %v3208_v47, %v3208_v47  ;;  %v2649_v34 = vadd.f32 %v2633_v53, %v2585_v52  ;;  %v3032_v54 = vmul.f32 %v3003_v31, %v2167_v37  ;;  %v2425_v37 = vmul.f32 %v6506_v17, %v2152_v12  ;;  %v6508_v52 = vld [vmem:[#allocation27_spill] sm:$0xff]  ;;  %v6511_v17 = vld [vmem:[#allocation30_spill] sm:$0xff] }
 0x39b   : > { %v3165_v6 = vpop.permute.xlu1 %3164  ;;  %v2985_v53 = vmul.f32 %v6508_v52, %v2152_v12 }
 0x39c   : > { %3288 = vst [vmem:[%s6086_s22 + $0x14] sm:$0xf] %v3887_v0  ;;  %v3856_v19 = vpack.c.bf16 %v2649_v34, %v2649_v34  ;;  %v3048_v60 = vadd.f32 %v3032_v54, %v2984_v26  ;;  %v3193_v38 = vmul.f32 %v3165_v6, %v2168_v30  ;;  %v2170_v0 = vld [vmem:[%s4974_s29 + $0x28] sm:$0xff] }
 0x39d   : > { %v2154_v26 = vld [vmem:[%s4968_s30 + $0x28] sm:$0xff] }
 0x39e   : > { %2729 = vst [vmem:[%s6086_s22 + $0x18] sm:$0xf] %v3856_v19  ;;  %v3871_v33 = vpack.c.bf16 %v3048_v60, %v3048_v60  ;;  %v3209_v10 = vadd.f32 %v3193_v38, %v3145_v28  ;;  %v6509_v19 = vld [vmem:[#allocation29_spill] sm:$0xff] }
 0x39f   : > { %v2445_v15 = vpop.permute.xlu1 %2444  ;;  %v2587_v60 = vmul.f32 %v6509_v19, %v2154_v26  ;;  %v6514_v19 = vld [vmem:[#allocation36_spill] sm:$0xff] }
 0x3a0   : > { %3128 = vst [vmem:[%s6116_s16 + $0x14] sm:$0xf] %v3871_v33  ;;  %v3888_v20 = vpack.c.bf16 %v3209_v10, %v3209_v10  ;;  %v2473_v40 = vmul.f32 %v2445_v15, %v2168_v30  ;;  %v6510_v33 = vld [vmem:[#allocation32_spill] sm:$0xff] }
 0x3a1   : > { %v2607_v39 = vpop.permute.xlu0 %2606  ;;  %v3146_v10 = vmul.f32 %v6510_v33, %v2153_v18 }
 0x3a2   : > { %3289 = vst [vmem:[%s6086_s22 + $0x1c] sm:$0xf] %v3888_v20  ;;  %v2489_v56 = vadd.f32 %v2473_v40, %v2425_v37  ;;  %v2634_v36 = vmul.f32 %v2607_v39, %v2169_v14  ;;  %v3147_v37 = vmul.f32 %v6511_v17, %v2154_v26 }
 0x3a3   : > { %v3005_v25 = vpop.permute.xlu1 %3004 }
 0x3a4   : > { %v3840_v47 = vpack.c.bf16 %v2489_v56, %v2489_v56  ;;  %v2650_v3 = vadd.f32 %v2634_v36, %v2586_v44  ;;  %v3033_v31 = vmul.f32 %v3005_v25, %v2168_v30  ;;  %v6512_v44 = vld [vmem:[#allocation33_spill] sm:$0xff] }
 0x3a5   : > { %v2426_v36 = vmul.f32 %v6512_v44, %v2153_v18 }
 0x3a6   : > { %2569 = vst [vmem:[%s6116_s16 + $0x18] sm:$0xf] %v3840_v47  ;;  %v3857_v34 = vpack.c.bf16 %v2650_v3, %v2650_v3  ;;  %v3049_v2 = vadd.f32 %v3033_v31, %v2985_v53  ;;  %v6513_v53 = vld [vmem:[#allocation31_spill] sm:$0xff] }
 0x3a7   : > { %v2609_v54 = vpop.permute.xlu1 %2608  ;;  %v2427_v31 = vmul.f32 %v6513_v53, %v2154_v26 }
 0x3a8   : > { %2730 = vst [vmem:[%s6086_s22 + $0x20] sm:$0xf] %v3857_v34  ;;  %v3872_v6 = vpack.c.bf16 %v3049_v2, %v3049_v2  ;;  %v2635_v24 = vmul.f32 %v2609_v54, %v2170_v0 }
 0x3a9   : > { %v3167_v28 = vpop.permute.xlu0 %3166 }
 0x3aa   : > { %3129 = vst [vmem:[%s6116_s16 + $0x1c] sm:$0xf] %v3872_v6  ;;  %v2651_v38 = vadd.f32 %v2635_v24, %v2587_v60  ;;  %v3194_v12 = vmul.f32 %v3167_v28, %v2169_v14  ;;  %v2986_v60 = vmul.f32 %v6514_v19, %v2153_v18 }
 0x3ab   : > { %v3169_v30 = vpop.permute.xlu1 %3168 }
 0x3ac   : > { %v3858_v15 = vpack.c.bf16 %v2651_v38, %v2651_v38  ;;  %v3210_v20 = vadd.f32 %v3194_v12, %v3146_v10  ;;  %v3195_v40 = vmul.f32 %v3169_v30, %v2170_v0  ;;  %v2171_v38 = vld [vmem:[%s4974_s29 + $0x30] sm:$0xff]  ;;  %v6515_v12 = vld [vmem:[#allocation34_spill] sm:$0xff] }
 0x3ad   : > { %v2447_v39 = vpop.permute.xlu0 %2446  ;;  %v2987_v30 = vmul.f32 %v6515_v12, %v2154_v26 }
 0x3ae   : > { %2731 = vst [vmem:[%s6086_s22 + $0x28] sm:$0xf] %v3858_v15  ;;  %v3889_v56 = vpack.c.bf16 %v3210_v20, %v3210_v20  ;;  %v3211_v49 = vadd.f32 %v3195_v40, %v3147_v37  ;;  %v2474_v25 = vmul.f32 %v2447_v39, %v2169_v14  ;;  %v2155_v20 = vld [vmem:[%s4968_s30 + $0x30] sm:$0xff]  ;;  %v2172_v37 = vld [vmem:[%s4974_s29 + $0x38] sm:$0xff] }
 0x3af   : > { %v2449_v47 = vpop.permute.xlu1 %2448  ;;  %v3148_v53 = vmul.f32 %v5920_v59, %v2155_v20 }
 0x3b0   : > { %3290 = vst [vmem:[%s6086_s22 + $0x24] sm:$0xf] %v3889_v56  ;;  %v3890_v3 = vpack.c.bf16 %v3211_v49, %v3211_v49  ;;  %v2490_v52 = vadd.f32 %v2474_v25, %v2426_v36  ;;  %v2475_v34 = vmul.f32 %v2449_v47, %v2170_v0  ;;  %v6516_v56 = vld [vmem:[#allocation40_spill] sm:$0xff] }
 0x3b1   : > { %v3007_v2 = vpop.permute.xlu0 %3006  ;;  %v2588_v18 = vmul.f32 %v6516_v56, %v2155_v20  ;;  %v2156_v49 = vld [vmem:[%s4968_s30 + $0x38] sm:$0xff] }
 0x3b2   : > { %3291 = vst [vmem:[%s6086_s22 + $0x2c] sm:$0xf] %v3890_v3  ;;  %v3841_v54 = vpack.c.bf16 %v2490_v52, %v2490_v52  ;;  %v2491_v6 = vadd.f32 %v2475_v34, %v2427_v31  ;;  %v3034_v24 = vmul.f32 %v3007_v2, %v2169_v14  ;;  %v2589_v26 = vmul.f32 %v5915_v9, %v2156_v49 }
 0x3b3   : > { %v3009_v28 = vpop.permute.xlu1 %3008 }
 0x3b4   : > { %2570 = vst [vmem:[%s6116_s16 + $0x20] sm:$0xf] %v3841_v54  ;;  %v3842_v33 = vpack.c.bf16 %v2491_v6, %v2491_v6  ;;  %v3050_v10 = vadd.f32 %v3034_v24, %v2986_v60  ;;  %v3035_v15 = vmul.f32 %v3009_v28, %v2170_v0  ;;  %v6517_v6 = vld [vmem:[#allocation38_spill] sm:$0xff] }
 0x3b5   : > { %v2611_v17 = vpop.permute.xlu0 %2610  ;;  %v3149_v19 = vmul.f32 %v6517_v6, %v2156_v49 }
 0x3b6   : > { %2571 = vst [vmem:[%s6116_s16 + $0x28] sm:$0xf] %v3842_v33  ;;  %v3873_v40 = vpack.c.bf16 %v3050_v10, %v3050_v10  ;;  %v3051_v39 = vadd.f32 %v3035_v15, %v2987_v30  ;;  %v2636_v14 = vmul.f32 %v2611_v17, %v2171_v38  ;;  %v6518_v33 = vld [vmem:[#allocation42_spill] sm:$0xff]  ;;  %v6519_v17 = vld [vmem:[#allocation35_spill] sm:$0xff] }
 0x3b7   : > { %v2613_v44 = vpop.permute.xlu1 %2612  ;;  %v2428_v10 = vmul.f32 %v6518_v33, %v2155_v20 }
 0x3b8   : > { %3130 = vst [vmem:[%s6116_s16 + $0x24] sm:$0xf] %v3873_v40  ;;  %v3874_v36 = vpack.c.bf16 %v3051_v39, %v3051_v39  ;;  %v2652_v25 = vadd.f32 %v2636_v14, %v2588_v18  ;;  %v2637_v0 = vmul.f32 %v2613_v44, %v2172_v37  ;;  %v2429_v40 = vmul.f32 %v6519_v17, %v2156_v49  ;;  %v6520_v44 = vld [vmem:[#allocation39_spill] sm:$0xff] }
 0x3b9   : > { %v3171_v47 = vpop.permute.xlu0 %3170 }
 0x3ba   : > { %3131 = vst [vmem:[%s6116_s16 + $0x2c] sm:$0xf] %v3874_v36  ;;  %v3859_v3 = vpack.c.bf16 %v2652_v25, %v2652_v25  ;;  %v2653_v52 = vadd.f32 %v2637_v0, %v2589_v26  ;;  %v3196_v31 = vmul.f32 %v3171_v47, %v2171_v38  ;;  %v2988_v36 = vmul.f32 %v6520_v44, %v2155_v20  ;;  %v2173_v0 = vld [vmem:[%s4974_s29 + $0x40] sm:$0xff] }
 0x3bb   : > { %v3173_v34 = vpop.permute.xlu1 %3172 }
 0x3bc   : > { %2732 = vst [vmem:[%s6086_s22 + $0x30] sm:$0xf] %v3859_v3  ;;  %v3860_v2 = vpack.c.bf16 %v2653_v52, %v2653_v52  ;;  %v3212_v54 = vadd.f32 %v3196_v31, %v3148_v53  ;;  %v3197_v60 = vmul.f32 %v3173_v34, %v2172_v37  ;;  %v6521_v52 = vld [vmem:[#allocation37_spill] sm:$0xff] }
 0x3bd   : > { %v2451_v24 = vpop.permute.xlu0 %2450  ;;  %v2989_v53 = vmul.f32 %v6521_v52, %v2156_v49  ;;  %v2157_v34 = vld [vmem:[%s4968_s30 + $0x40] sm:$0xff] }
 0x3be   : > { %2733 = vst [vmem:[%s6086_s22 + $0x38] sm:$0xf] %v3860_v2  ;;  %v3891_v9 = vpack.c.bf16 %v3212_v54, %v3212_v54  ;;  %v3213_v28 = vadd.f32 %v3197_v60, %v3149_v19  ;;  %v2476_v12 = vmul.f32 %v2451_v24, %v2171_v38  ;;  %v2174_v54 = vld [vmem:[%s4974_s29 + $0x48] sm:$0xff]  ;;  %v6522_v60 = vld [vmem:[#allocation41_spill] sm:$0xff] }
 0x3bf   : > { %v2453_v30 = vpop.permute.xlu1 %2452  ;;  %v2590_v20 = vmul.f32 %v6522_v60, %v2157_v34  ;;  %v2158_v24 = vld [vmem:[%s4968_s30 + $0x48] sm:$0xff] }
 0x3c0   : > { %3292 = vst [vmem:[%s6086_s22 + $0x34] sm:$0xf] %v3891_v9  ;;  %v3892_v59 = vpack.c.bf16 %v3213_v28, %v3213_v28  ;;  %v2492_v15 = vadd.f32 %v2476_v12, %v2428_v10  ;;  %v2477_v39 = vmul.f32 %v2453_v30, %v2172_v37  ;;  %v2591_v49 = vmul.f32 %v5955_v61, %v2158_v24 }
 0x3c1   : > { %v3011_v56 = vpop.permute.xlu0 %3010 }
 0x3c2   : > { %3293 = vst [vmem:[%s6086_s22 + $0x3c] sm:$0xf] %v3892_v59  ;;  %v3843_v18 = vpack.c.bf16 %v2492_v15, %v2492_v15  ;;  %v2493_v14 = vadd.f32 %v2477_v39, %v2429_v40  ;;  %v3036_v25 = vmul.f32 %v3011_v56, %v2171_v38  ;;  %v3150_v59 = vmul.f32 %v5960_v43, %v2157_v34 }
 0x3c3   : > { %v3013_v26 = vpop.permute.xlu1 %3012  ;;  %v3151_v56 = vmul.f32 %v5965_v27, %v2158_v24 }
 0x3c4   : > { %2572 = vst [vmem:[%s6116_s16 + $0x30] sm:$0xf] %v3843_v18  ;;  %v3844_v47 = vpack.c.bf16 %v2493_v14, %v2493_v14  ;;  %v3052_v3 = vadd.f32 %v3036_v25, %v2988_v36  ;;  %v3037_v31 = vmul.f32 %v3013_v26, %v2172_v37  ;;  %v2430_v36 = vmul.f32 %v5968_v45, %v2157_v34 }
 0x3c5   : > { %v2615_v2 = vpop.permute.xlu0 %2614 }
 0x3c6   : > { %2573 = vst [vmem:[%s6116_s16 + $0x38] sm:$0xf] %v3844_v47  ;;  %v3875_v6 = vpack.c.bf16 %v3052_v3, %v3052_v3  ;;  %v3053_v19 = vadd.f32 %v3037_v31, %v2989_v53  ;;  %v2638_v38 = vmul.f32 %v2615_v2, %v2173_v0  ;;  %v2431_v3 = vmul.f32 %v5975_v41, %v2158_v24 }
 0x3c7   : > { %v2617_v9 = vpop.permute.xlu1 %2616  ;;  %v2990_v2 = vmul.f32 %v5978_v23, %v2157_v34  ;;  %v2160_v34 = vld [vmem:[%s4968_s30 + $0x58] sm:$0xff] }
 0x3c8   : > { %3132 = vst [vmem:[%s6116_s16 + $0x34] sm:$0xf] %v3875_v6  ;;  %v3876_v28 = vpack.c.bf16 %v3053_v19, %v3053_v19  ;;  %v2654_v33 = vadd.f32 %v2638_v38, %v2590_v20  ;;  %v2639_v37 = vmul.f32 %v2617_v9, %v2174_v54  ;;  %v2175_v19 = vld [vmem:[%s4974_s29 + $0x50] sm:$0xff]  ;;  %v6523_v38 = vld [vmem:[#allocation44_spill] sm:$0xff] }
 0x3c9   : > { %v2991_v9 = vmul.f32 %v6523_v38, %v2158_v24  ;;  %v2593_v24 = vmul.f32 %v5995_v13, %v2160_v34 }
 0x3ca   : > { %v3175_v10 = vpop.permute.xlu0 %3174  ;;  %3133 = vst [vmem:[%s6116_s16 + $0x3c] sm:$0xf] %v3876_v28  ;;  %v3861_v12 = vpack.c.bf16 %v2654_v33, %v2654_v33  ;;  %v2655_v30 = vadd.f32 %v2639_v37, %v2591_v49  ;;  %v2159_v28 = vld [vmem:[%s4968_s30 + $0x50] sm:$0xff]  ;;  %v2176_v49 = vld [vmem:[%s4974_s29 + $0x58] sm:$0xff] }
 0x3cb   : > { %v3198_v15 = vmul.f32 %v3175_v10, %v2173_v0  ;;  %v3177_v17 = vpop.permute.xlu1 %3176 }
 0x3cc   : > { %2734 = vst [vmem:[%s6086_s22 + $0x40] sm:$0xf] %v3861_v12  ;;  %v3862_v40 = vpack.c.bf16 %v2655_v30, %v2655_v30  ;;  %v3199_v18 = vmul.f32 %v3177_v17, %v2174_v54  ;;  %v6524_v12 = vld [vmem:[#allocation48_spill] sm:$0xff] }
 0x3cd   : > { %v3214_v39 = vadd.f32 %v3198_v15, %v3150_v59  ;;  %v2592_v23 = vmul.f32 %v6524_v12, %v2159_v28 }
 0x3ce   : > { %v2455_v14 = vpop.permute.xlu0 %2454  ;;  %2735 = vst [vmem:[%s6086_s22 + $0x48] sm:$0xf] %v3862_v40  ;;  %v3215_v44 = vadd.f32 %v3199_v18, %v3151_v56  ;;  %v3152_v56 = vmul.f32 %v6000_v48, %v2159_v28 }
 0x3cf   : > { %v3893_v61 = vpack.c.bf16 %v3214_v39, %v3214_v39  ;;  %v2478_v25 = vmul.f32 %v2455_v14, %v2173_v0  ;;  %v2457_v26 = vpop.permute.xlu1 %2456 }
 0x3d0   : > { %v3894_v43 = vpack.c.bf16 %v3215_v44, %v3215_v44  ;;  %v2479_v52 = vmul.f32 %v2457_v26, %v2174_v54 }
 0x3d1   : > { %3294 = vst [vmem:[%s6086_s22 + $0x44] sm:$0xf] %v3893_v61  ;;  %v2494_v47 = vadd.f32 %v2478_v25, %v2430_v36  ;;  %v3153_v36 = vmul.f32 %v6005_v22, %v2160_v34 }
 0x3d2   : > { %v3015_v27 = vpop.permute.xlu0 %3014  ;;  %3295 = vst [vmem:[%s6086_s22 + $0x4c] sm:$0xf] %v3894_v43  ;;  %v2495_v31 = vadd.f32 %v2479_v52, %v2431_v3 }
 0x3d3   : > { %v3845_v53 = vpack.c.bf16 %v2494_v47, %v2494_v47  ;;  %v3038_v6 = vmul.f32 %v3015_v27, %v2173_v0  ;;  %v3017_v45 = vpop.permute.xlu1 %3016  ;;  %v2432_v47 = vmul.f32 %v6008_v55, %v2159_v28 }
 0x3d4   : > { %v3846_v60 = vpack.c.bf16 %v2495_v31, %v2495_v31  ;;  %v3039_v41 = vmul.f32 %v3017_v45, %v2174_v54  ;;  %v2992_v45 = vmul.f32 %v6018_v32, %v2159_v28  ;;  %v2162_v28 = vld [vmem:[%s4968_s30 + $0x68] sm:$0xff] }
 0x3d5   : > { %2574 = vst [vmem:[%s6116_s16 + $0x40] sm:$0xf] %v3845_v53  ;;  %v3054_v20 = vadd.f32 %v3038_v6, %v2990_v2  ;;  %v2433_v53 = vmul.f32 %v6013_v50, %v2160_v34 }
 0x3d6   : > { %v2619_v33 = vpop.permute.xlu0 %2618  ;;  %2575 = vst [vmem:[%s6116_s16 + $0x48] sm:$0xf] %v3846_v60  ;;  %v3055_v10 = vadd.f32 %v3039_v41, %v2991_v9  ;;  %v2993_v41 = vmul.f32 %v6023_v8, %v2160_v34  ;;  %v2595_v8 = vmul.f32 %v6035_v35, %v2162_v28 }
 0x3d7   : > { %v3877_v37 = vpack.c.bf16 %v3054_v20, %v3054_v20  ;;  %v2640_v0 = vmul.f32 %v2619_v33, %v2175_v19  ;;  %v2621_v30 = vpop.permute.xlu1 %2620  ;;  %v2177_v20 = vld [vmem:[%s4974_s29 + $0x60] sm:$0xff] }
 0x3d8   : > { %v3878_v59 = vpack.c.bf16 %v3055_v10, %v3055_v10  ;;  %v2641_v54 = vmul.f32 %v2621_v30, %v2176_v49  ;;  %v2161_v33 = vld [vmem:[%s4968_s30 + $0x60] sm:$0xff]  ;;  %v2178_v10 = vld [vmem:[%s4974_s29 + $0x68] sm:$0xff] }
 0x3d9   : > { %3134 = vst [vmem:[%s6116_s16 + $0x44] sm:$0xf] %v3877_v37  ;;  %v2656_v15 = vadd.f32 %v2640_v0, %v2592_v23  ;;  %v2594_v32 = vmul.f32 %v6030_v7, %v2161_v33 }
 0x3da   : > { %v3179_v17 = vpop.permute.xlu0 %3178  ;;  %3135 = vst [vmem:[%s6116_s16 + $0x4c] sm:$0xf] %v3878_v59  ;;  %v2657_v39 = vadd.f32 %v2641_v54, %v2593_v24  ;;  %v3154_v54 = vmul.f32 %v6040_v16, %v2161_v33 }
 0x3db   : > { %v3863_v40 = vpack.c.bf16 %v2656_v15, %v2656_v15  ;;  %v3200_v18 = vmul.f32 %v3179_v17, %v2175_v19  ;;  %v3181_v14 = vpop.permute.xlu1 %3180 }
 0x3dc   : > { %v3864_v61 = vpack.c.bf16 %v2657_v39, %v2657_v39  ;;  %v3201_v25 = vmul.f32 %v3181_v14, %v2176_v49 }
 0x3dd   : > { %2736 = vst [vmem:[%s6086_s22 + $0x50] sm:$0xf] %v3863_v40  ;;  %v3216_v44 = vadd.f32 %v3200_v18, %v3152_v56  ;;  %v3155_v56 = vmul.f32 %v6045_v62, %v2162_v28 }
 0x3de   : > { %v2459_v26 = vpop.permute.xlu0 %2458  ;;  %2737 = vst [vmem:[%s6086_s22 + $0x58] sm:$0xf] %v3864_v61  ;;  %v3217_v43 = vadd.f32 %v3201_v25, %v3153_v36 }
 0x3df   : > { %v3895_v13 = vpack.c.bf16 %v3216_v44, %v3216_v44  ;;  %v2480_v3 = vmul.f32 %v2459_v26, %v2175_v19  ;;  %v2461_v52 = vpop.permute.xlu1 %2460  ;;  %v2434_v44 = vmul.f32 %v6048_v63, %v2161_v33 }
 0x3e0   : > { %v3896_v48 = vpack.c.bf16 %v3217_v43, %v3217_v43  ;;  %v2481_v31 = vmul.f32 %v2461_v52, %v2176_v49  ;;  %v2994_v52 = vmul.f32 %v6061_v46, %v2161_v33 }
 0x3e1   : > { %3296 = vst [vmem:[%s6086_s22 + $0x54] sm:$0xf] %v3895_v13  ;;  %v2496_v27 = vadd.f32 %v2480_v3, %v2432_v47  ;;  %v2435_v13 = vmul.f32 %v6053_v58, %v2162_v28 }
 0x3e2   : > { %v3019_v22 = vpop.permute.xlu0 %3018  ;;  %3297 = vst [vmem:[%s6086_s22 + $0x5c] sm:$0xf] %v3896_v48  ;;  %v2497_v6 = vadd.f32 %v2481_v31, %v2433_v53 }
 0x3e3   : > { %v3847_v2 = vpack.c.bf16 %v2496_v27, %v2496_v27  ;;  %v3040_v60 = vmul.f32 %v3019_v22, %v2175_v19  ;;  %v3021_v55 = vpop.permute.xlu1 %3020  ;;  %v2179_v27 = vld [vmem:[%s4974_s29 + $0x70] sm:$0xff]  ;;  %v2995_v22 = vmul.f32 %v6072_v51, %v2162_v28 }
 0x3e4   : > { %v3848_v38 = vpack.c.bf16 %v2497_v6, %v2497_v6  ;;  %v3041_v50 = vmul.f32 %v3021_v55, %v2176_v49 }
 0x3e5   : > { %2576 = vst [vmem:[%s6116_s16 + $0x50] sm:$0xf] %v3847_v2  ;;  %v3056_v9 = vadd.f32 %v3040_v60, %v2992_v45  ;;  %v2163_v2 = vld [vmem:[%s4968_s30 + $0x70] sm:$0xff]  ;;  %v2180_v45 = vld [vmem:[%s4974_s29 + $0x78] sm:$0xff] }
 0x3e6   : > { %v2623_v37 = vpop.permute.xlu0 %2622  ;;  %2577 = vst [vmem:[%s6116_s16 + $0x58] sm:$0xf] %v3848_v38  ;;  %v3057_v23 = vadd.f32 %v3041_v50, %v2993_v41  ;;  %v2596_v46 = vmul.f32 %v6091_v11, %v2163_v2  ;;  %v2164_v38 = vld [vmem:[%s4968_s30 + $0x78] sm:$0xff] }
 0x3e7   : > { %v3879_v12 = vpack.c.bf16 %v3056_v9, %v3056_v9  ;;  %v2642_v19 = vmul.f32 %v2623_v37, %v2177_v20  ;;  %v2625_v0 = vpop.permute.xlu1 %2624  ;;  %v2597_v51 = vmul.f32 %v6096_v1, %v2164_v38 }
 0x3e8   : > { %v3880_v30 = vpack.c.bf16 %v3057_v23, %v3057_v23  ;;  %v2643_v49 = vmul.f32 %v2625_v0, %v2178_v10  ;;  %v2436_v23 = vmul.f32 %v6102_v4, %v2163_v2  ;;  %v2437_v0 = vmul.f32 %v6110_v5, %v2164_v38 }
 0x3e9   : > { %3136 = vst [vmem:[%s6116_s16 + $0x54] sm:$0xf] %v3879_v12  ;;  %v2658_v59 = vadd.f32 %v2642_v19, %v2594_v32 }
 0x3ea   : > { %v3183_v34 = vpop.permute.xlu0 %3182  ;;  %3137 = vst [vmem:[%s6116_s16 + $0x5c] sm:$0xf] %v3880_v30  ;;  %v2659_v24 = vadd.f32 %v2643_v49, %v2595_v8  ;;  %v2996_v49 = vmul.f32 %v6124_v21, %v2163_v2 }
 0x3eb   : > { %v3865_v15 = vpack.c.bf16 %v2658_v59, %v2658_v59  ;;  %v3202_v17 = vmul.f32 %v3183_v34, %v2177_v20  ;;  %v3185_v7 = vpop.permute.xlu1 %3184 }
 0x3ec   : > { %v3866_v40 = vpack.c.bf16 %v2659_v24, %v2659_v24  ;;  %v3203_v18 = vmul.f32 %v3185_v7, %v2178_v10 }
 0x3ed   : > { %2738 = vst [vmem:[%s6086_s22 + $0x60] sm:$0xf] %v3865_v15  ;;  %v3218_v39 = vadd.f32 %v3202_v17, %v3154_v54  ;;  %v2997_v54 = vmul.f32 %v6132_v57, %v2164_v38 }
 0x3ee   : > { %v2463_v14 = vpop.permute.xlu0 %2462  ;;  %2739 = vst [vmem:[%s6086_s22 + $0x68] sm:$0xf] %v3866_v40  ;;  %v3219_v61 = vadd.f32 %v3203_v18, %v3155_v56 }
 0x3ef   : > { %v3897_v35 = vpack.c.bf16 %v3218_v39, %v3218_v39  ;;  %v2482_v36 = vmul.f32 %v2463_v14, %v2177_v20  ;;  %v2465_v25 = vpop.permute.xlu1 %2464  ;;  %v3156_v39 = vmul.f32 %v6145_v29, %v2163_v2 }
 0x3f0   : > { %v3898_v16 = vpack.c.bf16 %v3219_v61, %v3219_v61  ;;  %v2483_v43 = vmul.f32 %v2465_v25, %v2178_v10 }
 0x3f1   : > { %3298 = vst [vmem:[%s6086_s22 + $0x64] sm:$0xf] %v3897_v35  ;;  %v2498_v26 = vadd.f32 %v2482_v36, %v2434_v44  ;;  %v3157_v35 = vmul.f32 %v6152_v42, %v2164_v38 }
 0x3f2   : > { %v3023_v62 = vpop.permute.xlu0 %3022  ;;  %3299 = vst [vmem:[%s6086_s22 + $0x6c] sm:$0xf] %v3898_v16  ;;  %v2499_v3 = vadd.f32 %v2483_v43, %v2435_v13 }
 0x3f3   : > { %v3849_v47 = vpack.c.bf16 %v2498_v26, %v2498_v26  ;;  %v3042_v48 = vmul.f32 %v3023_v62, %v2177_v20  ;;  %v3025_v63 = vpop.permute.xlu1 %3024 }
 0x3f4   : > { %v3850_v53 = vpack.c.bf16 %v2499_v3, %v2499_v3  ;;  %v3043_v58 = vmul.f32 %v3025_v63, %v2178_v10 }
 0x3f5   : > { %2578 = vst [vmem:[%s6116_s16 + $0x60] sm:$0xf] %v3849_v47  ;;  %v3058_v31 = vadd.f32 %v3042_v48, %v2994_v52 }
 0x3f6   : > { %v2627_v6 = vpop.permute.xlu0 %2626  ;;  %2579 = vst [vmem:[%s6116_s16 + $0x68] sm:$0xf] %v3850_v53  ;;  %v3059_v55 = vadd.f32 %v3043_v58, %v2995_v22 }
 0x3f7   : > { %v3881_v60 = vpack.c.bf16 %v3058_v31, %v3058_v31  ;;  %v2644_v20 = vmul.f32 %v2627_v6, %v2179_v27  ;;  %v2629_v9 = vpop.permute.xlu1 %2628 }
 0x3f8   : > { %v3882_v41 = vpack.c.bf16 %v3059_v55, %v3059_v55  ;;  %v2645_v33 = vmul.f32 %v2629_v9, %v2180_v45 }
 0x3f9   : > { %3138 = vst [vmem:[%s6116_s16 + $0x64] sm:$0xf] %v3881_v60  ;;  %v2660_v50 = vadd.f32 %v2644_v20, %v2596_v46 }
 0x3fa   : > { %v2467_v37 = vpop.permute.xlu0 %2466  ;;  %3139 = vst [vmem:[%s6116_s16 + $0x6c] sm:$0xf] %v3882_v41  ;;  %v2661_v12 = vadd.f32 %v2645_v33, %v2597_v51 }
 0x3fb   : > { %v3867_v10 = vpack.c.bf16 %v2660_v50, %v2660_v50  ;;  %v2484_v32 = vmul.f32 %v2467_v37, %v2179_v27  ;;  %v2469_v11 = vpop.permute.xlu1 %2468 }
 0x3fc   : > { %v3868_v19 = vpack.c.bf16 %v2661_v12, %v2661_v12  ;;  %v2485_v30 = vmul.f32 %v2469_v11, %v2180_v45 }
 0x3fd   : > { %2740 = vst [vmem:[%s6086_s22 + $0x70] sm:$0xf] %v3867_v10  ;;  %v2500_v28 = vadd.f32 %v2484_v32, %v2436_v23 }
 0x3fe   : > { %v3027_v59 = vpop.permute.xlu0 %3026  ;;  %2741 = vst [vmem:[%s6086_s22 + $0x78] sm:$0xf] %v3868_v19  ;;  %v2501_v8 = vadd.f32 %v2485_v30, %v2437_v0 }
 0x3ff   : > { %v3851_v1 = vpack.c.bf16 %v2500_v28, %v2500_v28  ;;  %v3044_v34 = vmul.f32 %v3027_v59, %v2179_v27  ;;  %v3029_v15 = vpop.permute.xlu1 %3028 }
 0x400   : > { %v3852_v4 = vpack.c.bf16 %v2501_v8, %v2501_v8  ;;  %v3045_v17 = vmul.f32 %v3029_v15, %v2180_v45 }
 0x401   : > { %2580 = vst [vmem:[%s6116_s16 + $0x70] sm:$0xf] %v3851_v1  ;;  %v3060_v24 = vadd.f32 %v3044_v34, %v2996_v49 }
 0x402   : > { %v3187_v7 = vpop.permute.xlu0 %3186  ;;  %2581 = vst [vmem:[%s6116_s16 + $0x78] sm:$0xf] %v3852_v4  ;;  %v3061_v40 = vadd.f32 %v3045_v17, %v2997_v54 }
 0x403   : > { %v3883_v5 = vpack.c.bf16 %v3060_v24, %v3060_v24  ;;  %v3204_v56 = vmul.f32 %v3187_v7, %v2179_v27  ;;  %v3189_v18 = vpop.permute.xlu1 %3188 }
 0x404   : > { %v3884_v21 = vpack.c.bf16 %v3061_v40, %v3061_v40  ;;  %v3205_v61 = vmul.f32 %v3189_v18, %v2180_v45 }
 0x405   : > { %3140 = vst [vmem:[%s6116_s16 + $0x74] sm:$0xf] %v3883_v5  ;;  %v3220_v14 = vadd.f32 %v3204_v56, %v3156_v39 }
 0x406   : > { %3141 = vst [vmem:[%s6116_s16 + $0x7c] sm:$0xf] %v3884_v21  ;;  %v3221_v57 = vadd.f32 %v3205_v61, %v3157_v35 }
 0x407   : > { %v3899_v44 = vpack.c.bf16 %v3220_v14, %v3220_v14 }
 0x408   : > { %v3900_v36 = vpack.c.bf16 %v3221_v57, %v3221_v57 }
 0x409   : > { %3300 = vst [vmem:[%s6086_s22 + $0x74] sm:$0xf] %v3899_v44 }
 0x40a   : > { %3301 = vst [vmem:[%s6086_s22 + $0x7c] sm:$0xf] %v3900_v36 }
 0x40b PF: > { %s6525_s16 = sld [smem:[#allocation19_spill]]  ;;  %s6526_s30 = sld [smem:[#allocation20_spill]] }
 0x40c   : > { %s6527_s13 = smov %s4563_s14  ;;  %s6528_s14 = smov %s4567_s15 }
 0x411   : > { %p26_p12 = scmp.ge.s32.totalorder %s6525_s16, 4   ;;  %s6529_s15 = smov %s6526_s30 }
 0x413   :  { %28 = sbr.rel (!%p26_p12) target bundleno = 11 (0xb), region = 179 }
 0x41a   :  { %3383 = vsyncpa [#allocation3], 1 }
 0x41b   :  { %3385 = vsyncpa [#allocation3 + $0x1], 1 }
 0x41c   :  { %3386 = vsyncpa [#allocation7], 1 }
 0x41d   :  { %3388 = vsyncpa [#allocation7 + $0x1], 1 }
 0x41e   :  { %3389 = vsyncpa [#allocation10], 1 }
 0x41f   :  { %3390 = vsyncpa [#allocation4], 1 }
 0x420   :  { %3392 = vsyncpa [#allocation4 + $0x1], 1 }

// kernel: block_forward.5
= control target key start
LH: loop header
LB: loop body
LE: loop exit
PB: predicated region body
PF: predicated region fallthrough
CT: control target
= control target key end

     0   :  { %s4619_s18 = smov 0   ;;  %s6169_s0 = inlined_call_operand.vmem [shape: f32[256,256], index: 0, kind: input, shape index: {}, may-alias: {0,5}]   ;;  %s6170_s1 = inlined_call_operand.vmem [shape: bf16[256,256], index: 1, kind: input, shape index: {}]   ;;  %s6171_s2 = inlined_call_operand.vmem [shape: bf16[256,256], index: 2, kind: input, shape index: {}]   ;;  %s6172_s3 = inlined_call_operand.vmem [shape: bf16[256,1024], index: 3, kind: input, shape index: {}]   ;;  %s6173_s4 = inlined_call_operand.vmem [shape: bf16[1024,256], index: 4, kind: input, shape index: {}]   ;;  %s6174_s5 = inlined_call_operand.vmem [shape: f32[256,256], index: 5, kind: output, shape index: {}, may-alias: {0,5}]  }
   0x1 LB: > { %s3794_s19 = sadd.s32 4294967295, %s4587_s18   ;;  %p3798_p0 = scmp.ge.s32.totalorder %s4587_s18, 1  ;;  %s4587_s18 = sphi %s4619_s18, %s15_s18  }
   0x2   : > { %p201_p1 = scmp.lt.s32.totalorder %s4587_s18, 3 }
   0x4   : > { %p202_p2 = pnand %p3798_p0, %p201_p1 }
   0x6   : > { %205 = sbr.rel (%p202_p2) target bundleno = 1119 (0x45f), region = 40 }
   0xd   : > { %v4253_v0 = vld [vmem:[%s6171_s2 + $0x4] ss:$8 sps:$4 sm:$0xff]   ;;  %v4255_v1 = vld [vmem:[%s6171_s2] ss:$8 sps:$4 sm:$0xff]   ;;  %v4256_v2 = vld [vmem:[%s6171_s2 + $0x14] ss:$8 sps:$4 sm:$0xff]  }
   0xe   : > { %578 = vmatprep.subr.bf16.mxu0 %v4253_v0  ;;  %v4258_v3 = vld [vmem:[%s6171_s2 + $0x10] ss:$8 sps:$4 sm:$0xff]   ;;  %v4259_v4 = vld [vmem:[%s6171_s2 + $0x24] ss:$8 sps:$4 sm:$0xff]   ;;  %s3799_s30 = sshll.u32 %s3794_s19, 4 }
   0xf   : > { %579 = vmatpush1.bf16.msra.mxu0 %v4255_v1  ;;  %v4261_v5 = vld [vmem:[%s6171_s2 + $0x20] ss:$8 sps:$4 sm:$0xff]   ;;  %v4262_v6 = vld [vmem:[%s6171_s2 + $0x34] ss:$8 sps:$4 sm:$0xff]   ;;  %p238_p3 = scmp.lt.s32.totalorder %s3799_s30, 31 }
  0x10   : > { %580 = vmatprep.subr.bf16.mxu0 %v4256_v2  ;;  %v4264_v7 = vld [vmem:[%s6171_s2 + $0x30] ss:$8 sps:$4 sm:$0xff]   ;;  %v4265_v8 = vld [vmem:[%s6171_s2 + $0x44] ss:$8 sps:$4 sm:$0xff]   ;;  %v4267_v9 = vld [vmem:[%s6171_s2 + $0x40] ss:$8 sps:$4 sm:$0xff]  }
  0x11   : > { %s6243_s30 = smov (!%p238_p3, %s3799_s30), 31  ;;  %v4268_v10 = vld [vmem:[%s6171_s2 + $0x54] ss:$8 sps:$4 sm:$0xff]   ;;  %v4270_v11 = vld [vmem:[%s6171_s2 + $0x50] ss:$8 sps:$4 sm:$0xff]   ;;  %v900_v48 = vld [vmem:[%s6172_s3] sm:$0xff] }
  0x12   : > { %s4115_s19 = sshll.u32 %s6243_s30, 3  ;;  %v4271_v12 = vld [vmem:[%s6171_s2 + $0x64] ss:$8 sps:$4 sm:$0xff]   ;;  %v4273_v14 = vld [vmem:[%s6171_s2 + $0x60] ss:$8 sps:$4 sm:$0xff]   ;;  %v902_v50 = vld [vmem:[%s6172_s3 + $0x10] sm:$0xff] }
  0x13   : > { %581 = vmatpush1.bf16.msra.mxu0 %v4258_v3  ;;  %s4669_s24 = scalar_lea.vmem %s6170_s1, %s4115_s19  ;;  %v4274_v15 = vld [vmem:[%s6171_s2 + $0x74] ss:$8 sps:$4 sm:$0xff]   ;;  %v4276_v16 = vld [vmem:[%s6171_s2 + $0x70] ss:$8 sps:$4 sm:$0xff]   ;;  %v4277_v17 = vld [vmem:[%s6171_s2 + $0x84] ss:$8 sps:$4 sm:$0xff]  }
  0x14   : > { %582 = vmatprep.subr.bf16.mxu0 %v4259_v4  ;;  %v4303_v13 = vld [vmem:[%s4669_s24 + $0x4] ss:$8 sps:$4 sm:$0xff]   ;;  %v4279_v18 = vld [vmem:[%s6171_s2 + $0x80] ss:$8 sps:$4 sm:$0xff]   ;;  %v4280_v19 = vld [vmem:[%s6171_s2 + $0x94] ss:$8 sps:$4 sm:$0xff]  }
  0x15   : > { %610 = vmatprep.mubr.bf16.mxu0 %v4303_v13  ;;  %v4282_v20 = vld [vmem:[%s6171_s2 + $0x90] ss:$8 sps:$4 sm:$0xff]   ;;  %v4283_v21 = vld [vmem:[%s6171_s2 + $0xa4] ss:$8 sps:$4 sm:$0xff]   ;;  %v4285_v22 = vld [vmem:[%s6171_s2 + $0xa0] ss:$8 sps:$4 sm:$0xff]  }
  0x16   : > { %v4286_v23 = vld [vmem:[%s6171_s2 + $0xb4] ss:$8 sps:$4 sm:$0xff]   ;;  %v4288_v24 = vld [vmem:[%s6171_s2 + $0xb0] ss:$8 sps:$4 sm:$0xff]   ;;  %v4289_v25 = vld [vmem:[%s6171_s2 + $0xc4] ss:$8 sps:$4 sm:$0xff]  }
  0x17   : > { %583 = vmatpush1.bf16.msra.mxu0 %v4261_v5  ;;  %v4291_v26 = vld [vmem:[%s6171_s2 + $0xc0] ss:$8 sps:$4 sm:$0xff]   ;;  %v4292_v27 = vld [vmem:[%s6171_s2 + $0xd4] ss:$8 sps:$4 sm:$0xff]   ;;  %v4294_v28 = vld [vmem:[%s6171_s2 + $0xd0] ss:$8 sps:$4 sm:$0xff]  }
  0x18   : > { %584 = vmatprep.subr.bf16.mxu0 %v4262_v6  ;;  %v4295_v29 = vld [vmem:[%s6171_s2 + $0xe4] ss:$8 sps:$4 sm:$0xff]   ;;  %v4297_v30 = vld [vmem:[%s6171_s2 + $0xe0] ss:$8 sps:$4 sm:$0xff]   ;;  %v4298_v31 = vld [vmem:[%s6171_s2 + $0xf4] ss:$8 sps:$4 sm:$0xff]  }
  0x19   : > { %v4300_v32 = vld [vmem:[%s6171_s2 + $0xf0] ss:$8 sps:$4 sm:$0xff]   ;;  %v4301_v33 = vld [vmem:[%s4669_s24] ss:$8 sps:$4 sm:$0xff]   ;;  %v4304_v34 = vld [vmem:[%s4669_s24 + $0x14] ss:$8 sps:$4 sm:$0xff]  }
  0x1a   : > { %v4306_v35 = vld [vmem:[%s4669_s24 + $0x10] ss:$8 sps:$4 sm:$0xff]   ;;  %v4307_v36 = vld [vmem:[%s4669_s24 + $0x24] ss:$8 sps:$4 sm:$0xff]   ;;  %v4309_v37 = vld [vmem:[%s4669_s24 + $0x20] ss:$8 sps:$4 sm:$0xff]  }
  0x1b   : > { %585 = vmatpush1.bf16.msra.mxu0 %v4264_v7  ;;  %v4310_v38 = vld [vmem:[%s4669_s24 + $0x34] ss:$8 sps:$4 sm:$0xff]   ;;  %v4312_v39 = vld [vmem:[%s4669_s24 + $0x30] ss:$8 sps:$4 sm:$0xff]   ;;  %v4313_v40 = vld [vmem:[%s4669_s24 + $0x44] ss:$8 sps:$4 sm:$0xff]  }
  0x1c   : > { %586 = vmatprep.subr.bf16.mxu0 %v4265_v8  ;;  %v4315_v41 = vld [vmem:[%s4669_s24 + $0x40] ss:$8 sps:$4 sm:$0xff]   ;;  %v4316_v42 = vld [vmem:[%s4669_s24 + $0x54] ss:$8 sps:$4 sm:$0xff]   ;;  %v4318_v43 = vld [vmem:[%s4669_s24 + $0x50] ss:$8 sps:$4 sm:$0xff]  }
  0x1d   : > { %v4319_v44 = vld [vmem:[%s4669_s24 + $0x64] ss:$8 sps:$4 sm:$0xff]   ;;  %v4321_v45 = vld [vmem:[%s4669_s24 + $0x60] ss:$8 sps:$4 sm:$0xff]   ;;  %v4322_v46 = vld [vmem:[%s4669_s24 + $0x74] ss:$8 sps:$4 sm:$0xff]  }
  0x1e   : > { %v4324_v47 = vld [vmem:[%s4669_s24 + $0x70] ss:$8 sps:$4 sm:$0xff]   ;;  %v904_v49 = vld [vmem:[%s6172_s3 + $0x20] sm:$0xff]  ;;  %s4114_s11 = sshll.u32 %s6243_s30, 4 }
  0x1f   : > { %587 = vmatpush1.bf16.msra.mxu0 %v4267_v9  ;;  %v3856_v51 = vcombine.low %v900_v48, %v904_v49  ;;  %v3857_v52 = vcombine.high %v900_v48, %v904_v49  ;;  %v906_v53 = vld [vmem:[%s6172_s3 + $0x30] sm:$0xff]  ;;  %v908_v54 = vld [vmem:[%s6172_s3 + $0x40] sm:$0xff]  ;;  %s4879_s14 = scalar_lea.vmem %s6169_s0, %s4114_s11  ;;  %s6100_s28 = scalar_lea.vmem %s6174_s5, %s4114_s11 }
  0x20   : > { %588 = vmatprep.subr.bf16.mxu0 %v4268_v10  ;;  %v912_v55 = vld [vmem:[%s6172_s3 + $0x60] sm:$0xff]  ;;  %v3861_v56 = vcombine.high %v902_v50, %v906_v53  ;;  %v3860_v57 = vcombine.low %v902_v50, %v906_v53  ;;  %v910_v59 = vld [vmem:[%s6172_s3 + $0x50] sm:$0xff] }
  0x21   : > { %v3865_v58 = vcombine.high %v908_v54, %v912_v55  ;;  %v914_v60 = vld [vmem:[%s6172_s3 + $0x70] sm:$0xff]  ;;  %v916_v61 = vld [vmem:[%s6172_s3 + $0x80] sm:$0xff]  ;;  %v3864_v2 = vcombine.low %v908_v54, %v912_v55 }
  0x22   : > { %v3869_v62 = vcombine.high %v910_v59, %v914_v60  ;;  %v920_v63 = vld [vmem:[%s6172_s3 + $0xa0] sm:$0xff]  ;;  %v918_v0 = vld [vmem:[%s6172_s3 + $0x90] sm:$0xff]  ;;  %1894 = vmatprep.subr.bf16.mxu1 %v3861_v56  ;;  %v3868_v3 = vcombine.low %v910_v59, %v914_v60 }
  0x23   : > { %589 = vmatpush1.bf16.msra.mxu0 %v4270_v11  ;;  %v922_v1 = vld [vmem:[%s6172_s3 + $0xb0] sm:$0xff]  ;;  %1895 = vmatpush1.bf16.msra.mxu1 %v3860_v57  ;;  %v3873_v4 = vcombine.high %v916_v61, %v920_v63  ;;  %v924_v6 = vld [vmem:[%s6172_s3 + $0xc0] sm:$0xff]  ;;  %v3872_v10 = vcombine.low %v916_v61, %v920_v63 }
  0x24   : > { %590 = vmatprep.subr.bf16.mxu0 %v4271_v12  ;;  %1896 = vmatprep.subr.bf16.mxu1 %v3869_v62  ;;  %v3877_v5 = vcombine.high %v918_v0, %v922_v1  ;;  %v928_v7 = vld [vmem:[%s6172_s3 + $0xe0] sm:$0xff]  ;;  %v926_v8 = vld [vmem:[%s6172_s3 + $0xd0] sm:$0xff]  ;;  %v3876_v11 = vcombine.low %v918_v0, %v922_v1 }
  0x25   : > { %v930_v9 = vld [vmem:[%s6172_s3 + $0xf0] sm:$0xff]  ;;  %v3881_v12 = vcombine.high %v924_v6, %v928_v7  ;;  %v972_v54 = vld [vmem:[%s6172_s3 + $0x240] sm:$0xff] }
  0x26   : > { %v3885_v13 = vcombine.high %v926_v8, %v930_v9  ;;  %v966_v48 = vld [vmem:[%s6172_s3 + $0x210] sm:$0xff]  ;;  %v976_v55 = vld [vmem:[%s6172_s3 + $0x260] sm:$0xff] }
  0x27   : > { %591 = vmatpush1.bf16.msra.mxu0 %v4273_v14  ;;  %1897 = vmatpush1.bf16.msra.mxu1 %v3868_v3  ;;  %v932_v14 = vld [vmem:[%s6172_s3 + $0x100] sm:$0xff]  ;;  %v970_v49 = vld [vmem:[%s6172_s3 + $0x230] sm:$0xff]  ;;  %v3929_v60 = vcombine.high %v972_v54, %v976_v55  ;;  %v3928_v0 = vcombine.low %v972_v54, %v976_v55 }
  0x28   : > { %592 = vmatprep.subr.bf16.mxu0 %v4274_v15  ;;  %1898 = vmatprep.subr.bf16.mxu1 %v3877_v5  ;;  %v936_v15 = vld [vmem:[%s6172_s3 + $0x120] sm:$0xff]  ;;  %v3925_v53 = vcombine.high %v966_v48, %v970_v49  ;;  %v974_v56 = vld [vmem:[%s6172_s3 + $0x250] sm:$0xff]  ;;  %v3924_v59 = vcombine.low %v966_v48, %v970_v49  ;;  %v259_v5 = vld [vmem:[%s4879_s14 + $0x8] sm:$0xff] }
  0x29   : > { %v978_v57 = vld [vmem:[%s6172_s3 + $0x270] sm:$0xff]  ;;  %v980_v62 = vld [vmem:[%s6172_s3 + $0x280] sm:$0xff] }
  0x2a   : > { %v3933_v61 = vcombine.high %v974_v56, %v978_v57  ;;  %v984_v63 = vld [vmem:[%s6172_s3 + $0x2a0] sm:$0xff]  ;;  %v3932_v1 = vcombine.low %v974_v56, %v978_v57 }
  0x2b   : > { %593 = vmatpush1.bf16.msra.mxu0 %v4276_v16  ;;  %v934_v16 = vld [vmem:[%s6172_s3 + $0x110] sm:$0xff]  ;;  %1899 = vmatpush1.bf16.msra.mxu1 %v3876_v11  ;;  %v3936_v3 = vcombine.low %v980_v62, %v984_v63 }
  0x2c   : > { %594 = vmatprep.subr.bf16.mxu0 %v4277_v17  ;;  %v938_v17 = vld [vmem:[%s6172_s3 + $0x130] sm:$0xff]  ;;  %1900 = vmatprep.subr.bf16.mxu1 %v3885_v13 }
  0x2f   : > { %595 = vmatpush1.bf16.msra.mxu0 %v4279_v18  ;;  %v3880_v18 = vcombine.low %v924_v6, %v928_v7  ;;  %v260_v7 = vld [vmem:[%s4879_s14 + $0x10] sm:$0xff] }
  0x30   : > { %596 = vmatprep.subr.bf16.mxu0 %v4280_v19  ;;  %v3884_v19 = vcombine.low %v926_v8, %v930_v9 }
  0x32   : > { %1901 = vmatpush1.bf16.msra.mxu1 %v3884_v19 }
  0x33   : > { %597 = vmatpush1.bf16.msra.mxu0 %v4282_v20  ;;  %v3889_v20 = vcombine.high %v932_v14, %v936_v15 }
  0x34   : > { %598 = vmatprep.subr.bf16.mxu0 %v4283_v21  ;;  %v3893_v21 = vcombine.high %v934_v16, %v938_v17 }
  0x36   : > { %1902 = vmatprep.subr.bf16.mxu1 %v3893_v21 }
  0x37   : > { %599 = vmatpush1.bf16.msra.mxu0 %v4285_v22  ;;  %v940_v22 = vld [vmem:[%s6172_s3 + $0x140] sm:$0xff] }
  0x38   : > { %600 = vmatprep.subr.bf16.mxu0 %v4286_v23  ;;  %v944_v23 = vld [vmem:[%s6172_s3 + $0x160] sm:$0xff] }
  0x3b   : > { %601 = vmatpush1.bf16.msra.mxu0 %v4288_v24  ;;  %v942_v24 = vld [vmem:[%s6172_s3 + $0x150] sm:$0xff] }
  0x3c   : > { %602 = vmatprep.subr.bf16.mxu0 %v4289_v25  ;;  %v946_v25 = vld [vmem:[%s6172_s3 + $0x170] sm:$0xff] }
  0x3f   : > { %603 = vmatpush1.bf16.msra.mxu0 %v4291_v26  ;;  %v3888_v26 = vcombine.low %v932_v14, %v936_v15 }
  0x40   : > { %604 = vmatprep.subr.bf16.mxu0 %v4292_v27  ;;  %v3892_v27 = vcombine.low %v934_v16, %v938_v17 }
  0x42   : > { %1903 = vmatpush1.bf16.msra.mxu1 %v3892_v27  ;;  %v265_v27 = vld [vmem:[%s4879_s14 + $0x38] sm:$0xff] }
  0x43   : > { %605 = vmatpush1.bf16.msra.mxu0 %v4294_v28  ;;  %v3897_v28 = vcombine.high %v940_v22, %v944_v23 }
  0x44   : > { %606 = vmatprep.subr.bf16.mxu0 %v4295_v29  ;;  %v3901_v29 = vcombine.high %v942_v24, %v946_v25 }
  0x46   : > { %1904 = vmatprep.subr.bf16.mxu1 %v3901_v29 }
  0x47   : > { %607 = vmatpush1.bf16.msra.mxu0 %v4297_v30  ;;  %v948_v30 = vld [vmem:[%s6172_s3 + $0x180] sm:$0xff] }
  0x48   : > { %608 = vmatprep.subr.bf16.mxu0 %v4298_v31  ;;  %v952_v31 = vld [vmem:[%s6172_s3 + $0x1a0] sm:$0xff] }
  0x4b   : > { %609 = vmatpush1.bf16.msra.mxu0 %v4300_v32  ;;  %v950_v32 = vld [vmem:[%s6172_s3 + $0x190] sm:$0xff] }
  0x4c   : > { %1668 = vmatprep.subr.bf16.mxu0 %v3857_v52 }
  0x4e   : > { %611 = vmatmul.mubr.bf16.vlgmr.msra.gmra.mrb[0].mxu0 %v4301_v33  ;;  %v954_v33 = vld [vmem:[%s6172_s3 + $0x1b0] sm:$0xff] }
  0x4f   : > { %620 = vmatprep.mubr.bf16.mxu0 %v4304_v34  ;;  %1669 = vmatpush1.bf16.msra.mxu0 %v3856_v51  ;;  %v3896_v34 = vcombine.low %v940_v22, %v944_v23  ;;  %v263_v22 = vld [vmem:[%s4879_s14 + $0x28] sm:$0xff] }
  0x50   : > { %1670 = vmatprep.subr.bf16.mxu0 %v3865_v58 }
  0x53   : > { %1671 = vmatpush1.bf16.msra.mxu0 %v3864_v2  ;;  %v3937_v2 = vcombine.high %v980_v62, %v984_v63  ;;  %v988_v63 = vld [vmem:[%s6172_s3 + $0x2c0] sm:$0xff] }
  0x54   : > { %1672 = vmatprep.subr.bf16.mxu0 %v3873_v4  ;;  %v258_v4 = vld [vmem:[%s4879_s14] sm:$0xff] }
  0x56   : > { %621 = vmatmul.mubr.bf16.gmra.mrb[4].mxu0 %v4306_v35  ;;  %v3900_v35 = vcombine.low %v942_v24, %v946_v25  ;;  %v264_v24 = vld [vmem:[%s4879_s14 + $0x30] sm:$0xff] }
  0x57   : > { %630 = vmatprep.mubr.bf16.mxu0 %v4307_v36  ;;  %1673 = vmatpush1.bf16.msra.mxu0 %v3872_v10  ;;  %v3905_v36 = vcombine.high %v948_v30, %v952_v31  ;;  %v261_v10 = vld [vmem:[%s4879_s14 + $0x18] sm:$0xff] }
  0x58   : > { %1674 = vmatprep.subr.bf16.mxu0 %v3881_v12  ;;  %1905 = vmatpush1.bf16.msra.mxu1 %v3900_v35 }
  0x5b   : > { %1675 = vmatpush1.bf16.msra.mxu0 %v3880_v18  ;;  %v262_v18 = vld [vmem:[%s4879_s14 + $0x20] sm:$0xff] }
  0x5c   : > { %1676 = vmatprep.subr.bf16.mxu0 %v3889_v20 }
  0x5e   : > { %631 = vmatmul.mubr.bf16.gmra.mrb[8].mxu0 %v4309_v37  ;;  %v3909_v37 = vcombine.high %v950_v32, %v954_v33 }
  0x5f   : > { %640 = vmatprep.mubr.bf16.mxu0 %v4310_v38  ;;  %1677 = vmatpush1.bf16.msra.mxu0 %v3888_v26  ;;  %v956_v38 = vld [vmem:[%s6172_s3 + $0x1c0] sm:$0xff] }
  0x60   : > { %1678 = vmatprep.subr.bf16.mxu0 %v3897_v28  ;;  %1906 = vmatprep.subr.bf16.mxu1 %v3909_v37 }
  0x63   : > { %1679 = vmatpush1.bf16.msra.mxu0 %v3896_v34 }
  0x64   : > { %1680 = vmatprep.subr.bf16.mxu0 %v3905_v36  ;;  %v266_v36 = vld [vmem:[%s4879_s14 + $0x40] sm:$0xff] }
  0x66   : > { %641 = vmatmul.mubr.bf16.gmra.mrb[12].mxu0 %v4312_v39  ;;  %v960_v39 = vld [vmem:[%s6172_s3 + $0x1e0] sm:$0xff] }
  0x67   : > { %650 = vmatprep.mubr.bf16.mxu0 %v4313_v40  ;;  %v958_v40 = vld [vmem:[%s6172_s3 + $0x1d0] sm:$0xff]  ;;  %v3912_v50 = vcombine.low %v956_v38, %v960_v39 }
  0x6e   : > { %651 = vmatmul.mubr.bf16.gmra.mrb[16].mxu0 %v4315_v41  ;;  %v962_v41 = vld [vmem:[%s6172_s3 + $0x1f0] sm:$0xff] }
  0x6f   : > { %660 = vmatprep.mubr.bf16.mxu0 %v4316_v42  ;;  %v3904_v42 = vcombine.low %v948_v30, %v952_v31  ;;  %v3916_v51 = vcombine.low %v958_v40, %v962_v41 }
  0x71   : > { %1681 = vmatpush1.bf16.msra.mxu0 %v3904_v42  ;;  %v268_v42 = vld [vmem:[%s4879_s14 + $0x50] sm:$0xff] }
  0x76   : > { %661 = vmatmul.mubr.bf16.gmra.mrb[20].mxu0 %v4318_v43  ;;  %v3908_v43 = vcombine.low %v950_v32, %v954_v33 }
  0x77   : > { %670 = vmatprep.mubr.bf16.mxu0 %v4319_v44  ;;  %v3913_v44 = vcombine.high %v956_v38, %v960_v39 }
  0x78   : > { %1907 = vmatpush1.bf16.msra.mxu1 %v3908_v43 }
  0x79   : > { %1682 = vmatprep.subr.bf16.mxu0 %v3913_v44 }
  0x7a   : > { %1683 = vmatpush1.bf16.msra.mxu0 %v3912_v50 }
  0x7e   : > { %671 = vmatmul.mubr.bf16.gmra.mrb[24].mxu0 %v4321_v45  ;;  %v3917_v45 = vcombine.high %v958_v40, %v962_v41  ;;  %v267_v40 = vld [vmem:[%s4879_s14 + $0x48] sm:$0xff] }
  0x7f   : > { %680 = vmatprep.mubr.bf16.mxu0 %v4322_v46  ;;  %v964_v46 = vld [vmem:[%s6172_s3 + $0x200] sm:$0xff] }
  0x80   : > { %1908 = vmatprep.subr.bf16.mxu1 %v3917_v45  ;;  %v269_v45 = vld [vmem:[%s4879_s14 + $0x58] sm:$0xff] }
  0x81   : > { %1909 = vmatpush1.bf16.msra.mxu1 %v3916_v51 }
  0x82   : > { %1910 = vmatprep.subr.bf16.mxu1 %v3925_v53  ;;  %v986_v53 = vld [vmem:[%s6172_s3 + $0x2b0] sm:$0xff] }
  0x85   : > { %1911 = vmatpush1.bf16.msra.mxu1 %v3924_v59  ;;  %v270_v59 = vld [vmem:[%s4879_s14 + $0x60] sm:$0xff] }
  0x86   : > { %681 = vmatmul.mubr.bf16.gmra.mrb[28].mxu0 %v4324_v47  ;;  %v968_v47 = vld [vmem:[%s6172_s3 + $0x220] sm:$0xff]  ;;  %1912 = vmatprep.subr.bf16.mxu1 %v3933_v61  ;;  %v271_v61 = vld [vmem:[%s4879_s14 + $0x68] sm:$0xff] }
  0x87   : > { %v3921_v52 = vcombine.high %v964_v46, %v968_v47  ;;  %v3920_v58 = vcombine.low %v964_v46, %v968_v47 }
  0x89   : > { %1684 = vmatprep.subr.bf16.mxu0 %v3921_v52  ;;  %1913 = vmatpush1.bf16.msra.mxu1 %v3932_v1  ;;  %v982_v52 = vld [vmem:[%s6172_s3 + $0x290] sm:$0xff] }
  0x8a   : > { %1685 = vmatpush1.bf16.msra.mxu0 %v3920_v58  ;;  %v3941_v56 = vcombine.high %v982_v52, %v986_v53  ;;  %v3940_v58 = vcombine.low %v982_v52, %v986_v53  ;;  %v990_v1 = vld [vmem:[%s6172_s3 + $0x2d0] sm:$0xff] }
  0x8b   : > { %1686 = vmatprep.subr.bf16.mxu0 %v3929_v60 }
  0x8c   : > { %1914 = vmatprep.subr.bf16.mxu1 %v3941_v56 }
  0x8d   : > { %1915 = vmatpush1.bf16.msra.mxu1 %v3940_v58 }
  0x8e   : > { %1687 = vmatpush1.bf16.msra.mxu0 %v3928_v0  ;;  %v992_v0 = vld [vmem:[%s6172_s3 + $0x2e0] sm:$0xff] }
  0x8f   : > { %1688 = vmatprep.subr.bf16.mxu0 %v3937_v2 }
  0x92   : > { %1689 = vmatpush1.bf16.msra.mxu0 %v3936_v3  ;;  %v272_v3 = vld [vmem:[%s4879_s14 + $0x70] sm:$0xff] }
 0x121   : > { %v612_v6 = vpop.f32.mrb[0].mxu0 }
 0x122   : > { %v4884_v8 = vadd.f32 %v612_v6, %v258_v4  ;;  %v614_v9 = vpop.f32.mrb[1].mxu0  ;;  %v994_v6 = vld [vmem:[%s6172_s3 + $0x2f0] sm:$0xff] }
 0x123   : > { %v4887_v11 = vadd.f32 %v614_v9, %v259_v5  ;;  %v616_v12 = vpop.f32.mrb[2].mxu0  ;;  %v3945_v5 = vcombine.high %v988_v63, %v992_v0 }
 0x124   : > { %v4889_v13 = vadd.f32 %v616_v12, %v260_v7  ;;  %v618_v14 = vpop.f32.mrb[3].mxu0  ;;  %v723_v15 = vmul.f32 %v4884_v8, %v4884_v8  ;;  %v3944_v12 = vcombine.low %v988_v63, %v992_v0  ;;  %v1012_v0 = vld [vmem:[%s6172_s3 + $0x380] sm:$0xff] }
 0x125   : > { %v4893_v16 = vadd.f32 %v618_v14, %v261_v10  ;;  %v724_v17 = vmul.f32 %v4887_v11, %v4887_v11  ;;  %v273_v10 = vld [vmem:[%s4879_s14 + $0x78] sm:$0xff]  ;;  %v3949_v14 = vcombine.high %v990_v1, %v994_v6  ;;  %1690 = vmatprep.subr.bf16.mxu0 %v3945_v5 }
 0x126   : > { %v725_v20 = vmul.f32 %v4889_v13, %v4889_v13  ;;  %1691 = vmatpush1.bf16.msra.mxu0 %v3944_v12 }
 0x127   : > { %v755_v19 = vadd.f32 %v724_v17, %v723_v15  ;;  %v726_v21 = vmul.f32 %v4893_v16, %v4893_v16  ;;  %v3948_v15 = vcombine.low %v990_v1, %v994_v6  ;;  %1916 = vmatprep.subr.bf16.mxu1 %v3949_v14  ;;  %v1016_v1 = vld [vmem:[%s6172_s3 + $0x3a0] sm:$0xff]  ;;  %v1018_v6 = vld [vmem:[%s6172_s3 + $0x3b0] sm:$0xff] }
 0x128   : > { %v3969_v5 = vcombine.high %v1012_v0, %v1016_v1 }
 0x129   : > { %v622_v23 = vpop.f32.mrb[4].mxu0  ;;  %756 = vadd.xlane.f32.xlu0 %v755_v19  ;;  %v758_v30 = vadd.f32 %v726_v21, %v725_v20  ;;  %1917 = vmatpush1.bf16.msra.mxu1 %v3948_v15  ;;  %v278_v15 = vld [vmem:[%s4879_s14 + $0xa0] sm:$0xff] }
 0x12a   : > { %v4904_v25 = vadd.f32 %v622_v23, %v262_v18  ;;  %v624_v26 = vpop.f32.mrb[5].mxu0  ;;  %v1000_v23 = vld [vmem:[%s6172_s3 + $0x320] sm:$0xff] }
 0x12b   : > { %v4907_v28 = vadd.f32 %v624_v26, %v263_v22  ;;  %v626_v29 = vpop.f32.mrb[6].mxu0  ;;  %v996_v22 = vld [vmem:[%s6172_s3 + $0x300] sm:$0xff] }
 0x12c   : > { %v4909_v31 = vadd.f32 %v626_v29, %v264_v24  ;;  %v628_v32 = vpop.f32.mrb[7].mxu0  ;;  %v727_v33 = vmul.f32 %v4904_v25, %v4904_v25  ;;  %v998_v24 = vld [vmem:[%s6172_s3 + $0x310] sm:$0xff]  ;;  %v3953_v29 = vcombine.high %v996_v22, %v1000_v23 }
 0x12d   : > { %v4913_v34 = vadd.f32 %v628_v32, %v265_v27  ;;  %759 = vadd.xlane.f32.xlu0 %v758_v30  ;;  %v728_v35 = vmul.f32 %v4907_v28, %v4907_v28  ;;  %v1002_v30 = vld [vmem:[%s6172_s3 + $0x330] sm:$0xff] }
 0x12e   : > { %v729_v38 = vmul.f32 %v4909_v31, %v4909_v31  ;;  %1692 = vmatprep.subr.bf16.mxu0 %v3953_v29  ;;  %v280_v29 = vld [vmem:[%s4879_s14 + $0xb0] sm:$0xff] }
 0x12f   : > { %v761_v37 = vadd.f32 %v728_v35, %v727_v33  ;;  %v730_v39 = vmul.f32 %v4913_v34, %v4913_v34  ;;  %v3952_v33 = vcombine.low %v996_v22, %v1000_v23  ;;  %v3957_v35 = vcombine.high %v998_v24, %v1002_v30  ;;  %v1020_v22 = vld [vmem:[%s6172_s3 + $0x3c0] sm:$0xff] }
 0x130   : > { %v1024_v23 = vld [vmem:[%s6172_s3 + $0x3e0] sm:$0xff] }
 0x131   : > { %v632_v41 = vpop.f32.mrb[8].mxu0  ;;  %762 = vadd.xlane.f32.xlu1 %v761_v37  ;;  %v764_v48 = vadd.f32 %v730_v39, %v729_v38  ;;  %v274_v37 = vld [vmem:[%s4879_s14 + $0x80] sm:$0xff]  ;;  %v275_v39 = vld [vmem:[%s4879_s14 + $0x88] sm:$0xff]  ;;  %1693 = vmatpush1.bf16.msra.mxu0 %v3952_v33  ;;  %v1026_v33 = vld [vmem:[%s6172_s3 + $0x3f0] sm:$0xff] }
 0x132   : > { %v4924_v43 = vadd.f32 %v632_v41, %v266_v36  ;;  %v634_v44 = vpop.f32.mrb[9].mxu0  ;;  %v3956_v36 = vcombine.low %v998_v24, %v1002_v30  ;;  %1918 = vmatprep.subr.bf16.mxu1 %v3957_v35  ;;  %v1004_v41 = vld [vmem:[%s6172_s3 + $0x340] sm:$0xff]  ;;  %v1022_v24 = vld [vmem:[%s6172_s3 + $0x3d0] sm:$0xff] }
 0x133   : > { %v4927_v46 = vadd.f32 %v634_v44, %v267_v40  ;;  %v636_v47 = vpop.f32.mrb[10].mxu0  ;;  %v1006_v44 = vld [vmem:[%s6172_s3 + $0x350] sm:$0xff] }
 0x134   : > { %v4929_v49 = vadd.f32 %v636_v47, %v268_v42  ;;  %v638_v50 = vpop.f32.mrb[11].mxu0  ;;  %v731_v51 = vmul.f32 %v4924_v43, %v4924_v43  ;;  %v1008_v42 = vld [vmem:[%s6172_s3 + $0x360] sm:$0xff]  ;;  %v276_v47 = vld [vmem:[%s4879_s14 + $0x90] sm:$0xff]  ;;  %1919 = vmatpush1.bf16.msra.mxu1 %v3956_v36 }
 0x135   : > { %v4939_v54 = vadd.f32 %v638_v50, %v269_v45  ;;  %765 = vadd.xlane.f32.xlu1 %v764_v48  ;;  %v732_v55 = vmul.f32 %v4927_v46, %v4927_v46  ;;  %v3961_v50 = vcombine.high %v1004_v41, %v1008_v42  ;;  %v3960_v56 = vcombine.low %v1004_v41, %v1008_v42 }
 0x136   : > { %v733_v57 = vmul.f32 %v4929_v49, %v4929_v49 }
 0x137   : > { %v767_v60 = vadd.f32 %v732_v55, %v731_v51  ;;  %v734_v62 = vmul.f32 %v4939_v54, %v4939_v54  ;;  %v1010_v51 = vld [vmem:[%s6172_s3 + $0x370] sm:$0xff]  ;;  %v277_v55 = vld [vmem:[%s4879_s14 + $0x98] sm:$0xff]  ;;  %1694 = vmatprep.subr.bf16.mxu0 %v3961_v50  ;;  %v5067_v50 = vld [vmem:[%s6172_s3 + $0x28] sm:$0xff] }
 0x138   : > { %v3964_v58 = vcombine.low %v1006_v44, %v1010_v51  ;;  %1695 = vmatpush1.bf16.msra.mxu0 %v3960_v56 }
 0x139   : > { %v642_v2 = vpop.f32.mrb[12].mxu0  ;;  %768 = vadd.xlane.f32.xlu0 %v767_v60  ;;  %v770_v4 = vadd.f32 %v734_v62, %v733_v57  ;;  %v3965_v57 = vcombine.high %v1006_v44, %v1010_v51  ;;  %1696 = vmatprep.subr.bf16.mxu0 %v3969_v5 }
 0x13a   : > { %v4962_v7 = vadd.f32 %v642_v2, %v270_v59  ;;  %v644_v9 = vpop.f32.mrb[13].mxu0  ;;  %v1014_v2 = vld [vmem:[%s6172_s3 + $0x390] sm:$0xff] }
 0x13b   : > { %v4965_v17 = vadd.f32 %v644_v9, %v271_v61  ;;  %v646_v18 = vpop.f32.mrb[14].mxu0  ;;  %771 = vadd.xlane.f32.xlu1 %v770_v4  ;;  %1920 = vmatprep.subr.bf16.mxu1 %v3965_v57  ;;  %v3973_v12 = vcombine.high %v1014_v2, %v1018_v6  ;;  %v3972_v14 = vcombine.low %v1014_v2, %v1018_v6  ;;  %v285_v6 = vld [vmem:[%s4879_s14 + $0xd8] sm:$0xff] }
 0x13c   : > { %v4967_v19 = vadd.f32 %v646_v18, %v272_v3  ;;  %v648_v20 = vpop.f32.mrb[15].mxu0  ;;  %v735_v21 = vmul.f32 %v4962_v7, %v4962_v7  ;;  %1921 = vmatpush1.bf16.msra.mxu1 %v3964_v58  ;;  %v282_v58 = vld [vmem:[%s4879_s14 + $0xc0] sm:$0xff] }
 0x13d   : > { %v4980_v26 = vadd.f32 %v648_v20, %v273_v10  ;;  %v736_v27 = vmul.f32 %v4965_v17, %v4965_v17  ;;  %v3968_v10 = vcombine.low %v1012_v0, %v1016_v1  ;;  %v279_v20 = vld [vmem:[%s4879_s14 + $0xa8] sm:$0xff]  ;;  %1922 = vmatprep.subr.bf16.mxu1 %v3973_v12  ;;  %v284_v1 = vld [vmem:[%s4879_s14 + $0xd0] sm:$0xff] }
 0x13e   : > { %v737_v32 = vmul.f32 %v4967_v19, %v4967_v19 }
 0x13f   : > { %6192 = vst [vmem:[#allocation2_spill] sm:$0xff] %v4980_v26  ;;  %v773_v38 = vadd.f32 %v736_v27, %v735_v21  ;;  %v738_v40 = vmul.f32 %v4980_v26, %v4980_v26  ;;  %1697 = vmatpush1.bf16.msra.mxu0 %v3968_v10 }
 0x140   : > { %1923 = vmatpush1.bf16.msra.mxu1 %v3972_v14 }
 0x141   : > { %v652_v45 = vpop.f32.mrb[16].mxu0  ;;  %774 = vadd.xlane.f32.xlu0 %v773_v38  ;;  %v776_v48 = vadd.f32 %v738_v40, %v737_v32  ;;  %v3977_v32 = vcombine.high %v1020_v22, %v1024_v23  ;;  %v3976_v38 = vcombine.low %v1020_v22, %v1024_v23  ;;  %v3980_v40 = vcombine.low %v1022_v24, %v1026_v33  ;;  %v286_v22 = vld [vmem:[%s4879_s14 + $0xe0] sm:$0xff] }
 0x142   : > { %v5006_v52 = vadd.f32 %v652_v45, %v274_v37  ;;  %v654_v53 = vpop.f32.mrb[17].mxu0  ;;  %v281_v37 = vld [vmem:[%s4879_s14 + $0xb8] sm:$0xff] }
 0x143   : > { %v5009_v59 = vadd.f32 %v654_v53, %v275_v39  ;;  %v656_v60 = vpop.f32.mrb[18].mxu0  ;;  %777 = vadd.xlane.f32.xlu1 %v776_v48  ;;  %v3981_v39 = vcombine.high %v1022_v24, %v1026_v33  ;;  %1698 = vmatprep.subr.bf16.mxu0 %v3977_v32  ;;  %v5062_v48 = vld [vmem:[%s6172_s3 + $0x8] sm:$0xff] }
 0x144   : > { %6193 = vst [vmem:[#allocation3_spill] sm:$0xff] %v5006_v52  ;;  %v5011_v61 = vadd.f32 %v656_v60, %v276_v47  ;;  %v658_v62 = vpop.f32.mrb[19].mxu0  ;;  %v739_v63 = vmul.f32 %v5006_v52, %v5006_v52  ;;  %1699 = vmatpush1.bf16.msra.mxu0 %v3976_v38  ;;  %v3858_v57 = vcombine.low %v5062_v48, %v5067_v50 }
 0x145   : > { %6194 = vst [vmem:[#allocation4_spill] sm:$0xff] %v5009_v59  ;;  %v5024_v3 = vadd.f32 %v658_v62, %v277_v55  ;;  %v740_v4 = vmul.f32 %v5009_v59, %v5009_v59  ;;  %1924 = vmatprep.subr.bf16.mxu1 %v3981_v39  ;;  %v3859_v55 = vcombine.high %v5062_v48, %v5067_v50  ;;  %v925_v48 = vld [vmem:[%s6172_s3 + $0xc8] sm:$0xff] }
 0x146   : > { %6195 = vst [vmem:[#allocation5_spill] sm:$0xff] %v5011_v61  ;;  %v741_v9 = vmul.f32 %v5011_v61, %v5011_v61  ;;  %1925 = vmatpush1.bf16.msra.mxu1 %v3980_v40  ;;  %v929_v50 = vld [vmem:[%s6172_s3 + $0xe8] sm:$0xff] }
 0x147   : > { %6196 = vst [vmem:[#allocation6_spill] sm:$0xff] %v5024_v3  ;;  %v779_v18 = vadd.f32 %v740_v4, %v739_v63  ;;  %v742_v21 = vmul.f32 %v5024_v3, %v5024_v3  ;;  %1781 = vmatprep.subr.bf16.mxu0 %v3859_v55  ;;  %v283_v63 = vld [vmem:[%s4879_s14 + $0xc8] sm:$0xff] }
 0x149   : > { %v662_v27 = vpop.f32.mrb[20].mxu0  ;;  %780 = vadd.xlane.f32.xlu0 %v779_v18  ;;  %v782_v30 = vadd.f32 %v742_v21, %v741_v9 }
 0x14a   : > { %v5050_v35 = vadd.f32 %v662_v27, %v278_v15  ;;  %v664_v36 = vpop.f32.mrb[21].mxu0  ;;  %v287_v27 = vld [vmem:[%s4879_s14 + $0xe8] sm:$0xff] }
 0x14b   : > { %v5053_v41 = vadd.f32 %v664_v36, %v279_v20  ;;  %v666_v42 = vpop.f32.mrb[22].mxu0  ;;  %783 = vadd.xlane.f32.xlu1 %v782_v30  ;;  %v288_v30 = vld [vmem:[%s4879_s14 + $0xf0] sm:$0xff] }
 0x14c   : > { %6197 = vst [vmem:[#allocation7_spill] sm:$0xff] %v5050_v35  ;;  %v5055_v44 = vadd.f32 %v666_v42, %v280_v29  ;;  %v668_v45 = vpop.f32.mrb[23].mxu0  ;;  %v743_v47 = vmul.f32 %v5050_v35, %v5050_v35 }
 0x14d   : > { %6198 = vst [vmem:[#allocation8_spill] sm:$0xff] %v5053_v41  ;;  %v5069_v51 = vadd.f32 %v668_v45, %v281_v37  ;;  %v744_v53 = vmul.f32 %v5053_v41, %v5053_v41  ;;  %v289_v37 = vld [vmem:[%s4879_s14 + $0xf8] sm:$0xff] }
 0x14e   : > { %6199 = vst [vmem:[#allocation9_spill] sm:$0xff] %v5055_v44  ;;  %v745_v56 = vmul.f32 %v5055_v44, %v5055_v44 }
 0x14f   : > { %6200 = vst [vmem:[#allocation10_spill] sm:$0xff] %v5069_v51  ;;  %v785_v60 = vadd.f32 %v744_v53, %v743_v47  ;;  %v746_v62 = vmul.f32 %v5069_v51, %v5069_v51 }
 0x151   : > { %v672_v0 = vpop.f32.mrb[24].mxu0  ;;  %786 = vadd.xlane.f32.xlu0 %v785_v60  ;;  %v788_v2 = vadd.f32 %v746_v62, %v745_v56 }
 0x152   : > { %v5084_v4 = vadd.f32 %v672_v0, %v282_v58  ;;  %v674_v5 = vpop.f32.mrb[25].mxu0 }
 0x153   : > { %v5087_v9 = vadd.f32 %v674_v5, %v283_v63  ;;  %v676_v10 = vpop.f32.mrb[26].mxu0  ;;  %789 = vadd.xlane.f32.xlu1 %v788_v2 }
 0x154   : > { %6201 = vst [vmem:[#allocation11_spill] sm:$0xff] %v5084_v4  ;;  %v5089_v12 = vadd.f32 %v676_v10, %v284_v1  ;;  %v678_v14 = vpop.f32.mrb[27].mxu0  ;;  %v747_v15 = vmul.f32 %v5084_v4, %v5084_v4 }
 0x155   : > { %6202 = vst [vmem:[#allocation12_spill] sm:$0xff] %v5087_v9  ;;  %v5093_v18 = vadd.f32 %v678_v14, %v285_v6  ;;  %v748_v20 = vmul.f32 %v5087_v9, %v5087_v9 }
 0x156   : > { %6203 = vst [vmem:[#allocation13_spill] sm:$0xff] %v5089_v12  ;;  %v749_v21 = vmul.f32 %v5089_v12, %v5089_v12 }
 0x157   : > { %6204 = vst [vmem:[#allocation14_spill] sm:$0xff] %v5093_v18  ;;  %v791_v23 = vadd.f32 %v748_v20, %v747_v15  ;;  %v750_v24 = vmul.f32 %v5093_v18, %v5093_v18 }
 0x159   : > { %v682_v29 = vpop.f32.mrb[28].mxu0  ;;  %792 = vadd.xlane.f32.xlu0 %v791_v23  ;;  %v794_v32 = vadd.f32 %v750_v24, %v749_v21 }
 0x15a   : > { %v5104_v33 = vadd.f32 %v682_v29, %v286_v22  ;;  %v684_v36 = vpop.f32.mrb[29].mxu0 }
 0x15b   : > { %v5107_v38 = vadd.f32 %v684_v36, %v287_v27  ;;  %v686_v39 = vpop.f32.mrb[30].mxu0  ;;  %795 = vadd.xlane.f32.xlu1 %v794_v32 }
 0x15c   : > { %6205 = vst [vmem:[#allocation15_spill] sm:$0xff] %v5104_v33  ;;  %v5109_v40 = vadd.f32 %v686_v39, %v288_v30  ;;  %v688_v42 = vpop.f32.mrb[31].mxu0  ;;  %v751_v45 = vmul.f32 %v5104_v33, %v5104_v33 }
 0x15d   : > { %6206 = vst [vmem:[#allocation16_spill] sm:$0xff] %v5107_v38  ;;  %v5113_v47 = vadd.f32 %v688_v42, %v289_v37  ;;  %v752_v53 = vmul.f32 %v5107_v38, %v5107_v38 }
 0x15e   : > { %6207 = vst [vmem:[#allocation17_spill] sm:$0xff] %v5109_v40  ;;  %v753_v55 = vmul.f32 %v5109_v40, %v5109_v40 }
 0x15f   : > { %6208 = vst [vmem:[#allocation18_spill] sm:$0xff] %v5113_v47  ;;  %v797_v56 = vadd.f32 %v752_v53, %v751_v45  ;;  %v754_v58 = vmul.f32 %v5113_v47, %v5113_v47  ;;  %v909_v45 = vld [vmem:[%s6172_s3 + $0x48] sm:$0xff] }
 0x160   : > { %v913_v53 = vld [vmem:[%s6172_s3 + $0x68] sm:$0xff] }
 0x161   : > { %798 = vadd.xlane.f32.xlu0 %v797_v56  ;;  %v800_v60 = vadd.f32 %v754_v58, %v753_v55 }
 0x163   : > { %801 = vadd.xlane.f32.xlu1 %v800_v60  ;;  %v3867_v60 = vcombine.high %v909_v45, %v913_v53 }
 0x1b6   : > { %v757_v62 = vpop.xlane.xlu0 %756 }
 0x1b7   : > { %v804_v63 = vmul.f32 0.00390625, %v757_v62 }
 0x1b9   : > { %v820_v0 = vadd.f32 1.1920929e-07, %v804_v63  ;;  %v917_v63 = vld [vmem:[%s6172_s3 + $0x88] sm:$0xff] }
 0x1ba   : > { %v760_v1 = vpop.xlane.xlu0 %759 }
 0x1bb   : > { %v805_v2 = vmul.f32 0.00390625, %v760_v1  ;;  %4517 = vrsqrt.f32 %v820_v0  ;;  %v921_v0 = vld [vmem:[%s6172_s3 + $0xa8] sm:$0xff] }
 0x1bd   : > { %v821_v5 = vadd.f32 1.1920929e-07, %v805_v2 }
 0x1be   : > { %v763_v6 = vpop.xlane.xlu1 %762 }
 0x1bf   : > { %4519 = vrsqrt.f32 %v821_v5  ;;  %v806_v10 = vmul.f32 0.00390625, %v763_v6  ;;  %v3866_v6 = vcombine.low %v909_v45, %v913_v53 }
 0x1c1   : > { %v822_v14 = vadd.f32 1.1920929e-07, %v806_v10 }
 0x1c2   : > { %v766_v15 = vpop.xlane.xlu1 %765 }
 0x1c3   : > { %v807_v20 = vmul.f32 0.00390625, %v766_v15  ;;  %4521 = vrsqrt.f32 %v822_v14 }
 0x1c5   : > { %v823_v21 = vadd.f32 1.1920929e-07, %v807_v20  ;;  %v4518_v23 = vpop.eup %4517  ;;  %v3875_v20 = vcombine.high %v917_v63, %v921_v0 }
 0x1c6   : > { %v769_v22 = vpop.xlane.xlu0 %768  ;;  %v852_v36 = vmul.f32 %v4518_v23, %v4884_v8  ;;  %v853_v39 = vmul.f32 %v4518_v23, %v4887_v11 }
 0x1c7   : > { %4523 = vrsqrt.f32 %v823_v21  ;;  %v808_v24 = vmul.f32 0.00390625, %v769_v22 }
 0x1c8   : > { %v772_v27 = vpop.xlane.xlu1 %771 }
 0x1c9   : > { %v4520_v29 = vpop.eup %4519  ;;  %v824_v30 = vadd.f32 1.1920929e-07, %v808_v24  ;;  %v809_v32 = vmul.f32 0.00390625, %v772_v27 }
 0x1ca   : > { %v854_v37 = vmul.f32 %v4520_v29, %v4889_v13  ;;  %v855_v42 = vmul.f32 %v4520_v29, %v4893_v16  ;;  %v3874_v29 = vcombine.low %v917_v63, %v921_v0 }
 0x1cb   : > { %4525 = vrsqrt.f32 %v824_v30  ;;  %v825_v55 = vadd.f32 1.1920929e-07, %v809_v32 }
 0x1cc   : > { %v5131_v56 = vpack.c.bf16 %v855_v42, %v853_v39  ;;  %v5133_v58 = vpack.c.bf16 %v854_v37, %v852_v36  ;;  %v3883_v36 = vcombine.high %v925_v48, %v929_v50  ;;  %v933_v39 = vld [vmem:[%s6172_s3 + $0x108] sm:$0xff] }
 0x1cd   : > { %4527 = vrsqrt.f32 %v825_v55  ;;  %v4522_v1 = vpop.eup %4521  ;;  %v937_v42 = vld [vmem:[%s6172_s3 + $0x128] sm:$0xff] }
 0x1ce   : > { %1700 = vmatprep.mubr.bf16.mxu0 %v5131_v56  ;;  %1926 = vmatprep.mubr.bf16.mxu1 %v5131_v56  ;;  %v775_v62 = vpop.xlane.xlu0 %774  ;;  %v857_v21 = vmul.f32 %v4522_v1, %v4907_v28  ;;  %v856_v23 = vmul.f32 %v4522_v1, %v4904_v25 }
 0x1cf   : > { %v810_v2 = vmul.f32 0.00390625, %v775_v62  ;;  %1701 = vmatmul.mubr.bf16.vlgmr.msra.gmra.mrb[32].mxu0 %v5133_v58  ;;  %1927 = vmatmul.mubr.bf16.vlgmr.msra.gmra.mrb[0].mxu1 %v5133_v58 }
 0x1d0   : > { %1782 = vmatpush1.bf16.msra.mxu0 %v3858_v57  ;;  %v778_v5 = vpop.xlane.xlu1 %777 }
 0x1d1   : > { %v4524_v10 = vpop.eup %4523  ;;  %v826_v14 = vadd.f32 1.1920929e-07, %v810_v2  ;;  %v811_v15 = vmul.f32 0.00390625, %v778_v5  ;;  %1783 = vmatprep.subr.bf16.mxu0 %v3867_v60  ;;  %v3882_v60 = vcombine.low %v925_v48, %v929_v50  ;;  %v3891_v2 = vcombine.high %v933_v39, %v937_v42  ;;  %v949_v50 = vld [vmem:[%s6172_s3 + $0x188] sm:$0xff] }
 0x1d2   : > { %v859_v22 = vmul.f32 %v4524_v10, %v4913_v34  ;;  %v858_v24 = vmul.f32 %v4524_v10, %v4909_v31  ;;  %v941_v10 = vld [vmem:[%s6172_s3 + $0x148] sm:$0xff] }
 0x1d3   : > { %4529 = vrsqrt.f32 %v826_v14  ;;  %v827_v57 = vadd.f32 1.1920929e-07, %v811_v15  ;;  %v945_v14 = vld [vmem:[%s6172_s3 + $0x168] sm:$0xff] }
 0x1d4   : > { %1784 = vmatpush1.bf16.msra.mxu0 %v3866_v6  ;;  %v5158_v27 = vpack.c.bf16 %v859_v22, %v857_v21  ;;  %v5160_v30 = vpack.c.bf16 %v858_v24, %v856_v23  ;;  %v3890_v21 = vcombine.low %v933_v39, %v937_v42  ;;  %v3899_v24 = vcombine.high %v941_v10, %v945_v14 }
 0x1d5   : > { %v4526_v32 = vpop.eup %4525  ;;  %4531 = vrsqrt.f32 %v827_v57  ;;  %1785 = vmatprep.subr.bf16.mxu0 %v3875_v20  ;;  %v953_v57 = vld [vmem:[%s6172_s3 + $0x1a8] sm:$0xff] }
 0x1d6   : > { %1710 = vmatprep.mubr.bf16.mxu0 %v5158_v27  ;;  %1936 = vmatprep.mubr.bf16.mxu1 %v5158_v27  ;;  %v781_v37 = vpop.xlane.xlu0 %780  ;;  %v861_v62 = vmul.f32 %v4526_v32, %v4927_v46  ;;  %v860_v20 = vmul.f32 %v4526_v32, %v4924_v43 }
 0x1d7   : > { %v4528_v45 = vpop.eup %4527  ;;  %v812_v53 = vmul.f32 0.00390625, %v781_v37  ;;  %1711 = vmatmul.mubr.bf16.gmra.mrb[36].mxu0 %v5160_v30  ;;  %1937 = vmatmul.mubr.bf16.gmra.mrb[4].mxu1 %v5160_v30  ;;  %v3898_v37 = vcombine.low %v941_v10, %v945_v14 }
 0x1d8   : > { %1786 = vmatpush1.bf16.msra.mxu0 %v3874_v29  ;;  %v784_v55 = vpop.xlane.xlu1 %783  ;;  %v863_v63 = vmul.f32 %v4528_v45, %v4939_v54  ;;  %v862_v5 = vmul.f32 %v4528_v45, %v4929_v49 }
 0x1d9   : > { %v828_v0 = vadd.f32 1.1920929e-07, %v812_v53  ;;  %v813_v1 = vmul.f32 0.00390625, %v784_v55  ;;  %1787 = vmatprep.subr.bf16.mxu0 %v3883_v36  ;;  %v3907_v55 = vcombine.high %v949_v50, %v953_v57 }
 0x1da   : > { %v5175_v6 = vpack.c.bf16 %v863_v63, %v861_v62  ;;  %v5186_v23 = vpack.c.bf16 %v862_v5, %v860_v20  ;;  %v957_v63 = vld [vmem:[%s6172_s3 + $0x1c8] sm:$0xff]  ;;  %v3906_v5 = vcombine.low %v949_v50, %v953_v57 }
 0x1db   : > { %4533 = vrsqrt.f32 %v828_v0  ;;  %v829_v15 = vadd.f32 1.1920929e-07, %v813_v1  ;;  %v961_v0 = vld [vmem:[%s6172_s3 + $0x1e8] sm:$0xff] }
 0x1dc   : > { %1788 = vmatpush1.bf16.msra.mxu0 %v3882_v60  ;;  %1720 = vmatprep.mubr.bf16.mxu0 %v5175_v6  ;;  %v3914_v57 = vcombine.low %v957_v63, %v961_v0 }
 0x1dd   : > { %v4530_v22 = vpop.eup %4529  ;;  %4535 = vrsqrt.f32 %v829_v15  ;;  %1946 = vmatprep.mubr.bf16.mxu1 %v5175_v6  ;;  %1789 = vmatprep.subr.bf16.mxu0 %v3891_v2  ;;  %v3915_v15 = vcombine.high %v957_v63, %v961_v0  ;;  %v977_v63 = vld [vmem:[%s6172_s3 + $0x268] sm:$0xff] }
 0x1de   : > { %v787_v48 = vpop.xlane.xlu0 %786  ;;  %v865_v39 = vmul.f32 %v4530_v22, %v4965_v17  ;;  %v864_v2 = vmul.f32 %v4530_v22, %v4962_v7  ;;  %v969_v22 = vld [vmem:[%s6172_s3 + $0x228] sm:$0xff] }
 0x1df   : > { %v4532_v29 = vpop.eup %4531  ;;  %v814_v32 = vmul.f32 0.00390625, %v787_v48  ;;  %1721 = vmatmul.mubr.bf16.gmra.mrb[40].mxu0 %v5186_v23  ;;  %1947 = vmatmul.mubr.bf16.gmra.mrb[8].mxu1 %v5186_v23 }
 0x1e0   : > { %1790 = vmatpush1.bf16.msra.mxu0 %v3890_v21  ;;  %v790_v36 = vpop.xlane.xlu1 %789  ;;  %v867_v42 = vmul.f32 %v4532_v29, %v4980_v26  ;;  %v866_v60 = vmul.f32 %v4532_v29, %v4967_v19  ;;  %v965_v21 = vld [vmem:[%s6172_s3 + $0x208] sm:$0xff] }
 0x1e1   : > { %v830_v45 = vadd.f32 1.1920929e-07, %v814_v32  ;;  %v815_v53 = vmul.f32 0.00390625, %v790_v36  ;;  %1791 = vmatprep.subr.bf16.mxu0 %v3899_v24  ;;  %v4325_v36 = vld [vmem:[%s6173_s4] ss:$8 sps:$4 sm:$0xff]  }
 0x1e2   : > { %v5199_v62 = vpack.c.bf16 %v867_v42, %v865_v39  ;;  %v5210_v14 = vpack.c.bf16 %v866_v60, %v864_v2  ;;  %v973_v60 = vld [vmem:[%s6172_s3 + $0x248] sm:$0xff]  ;;  %v3922_v2 = vcombine.low %v965_v21, %v969_v22 }
 0x1e3   : > { %4537 = vrsqrt.f32 %v830_v45  ;;  %v831_v1 = vadd.f32 1.1920929e-07, %v815_v53  ;;  %v3923_v45 = vcombine.high %v965_v21, %v969_v22  ;;  %v3930_v22 = vcombine.low %v973_v60, %v977_v63 }
 0x1e4   : > { %1792 = vmatpush1.bf16.msra.mxu0 %v3898_v37  ;;  %1730 = vmatprep.mubr.bf16.mxu0 %v5199_v62  ;;  %v4327_v37 = vld [vmem:[%s6173_s4 + $0x4] ss:$8 sps:$4 sm:$0xff]  }
 0x1e5   : > { %v4534_v10 = vpop.eup %4533  ;;  %4539 = vrsqrt.f32 %v831_v1  ;;  %1956 = vmatprep.mubr.bf16.mxu1 %v5199_v62  ;;  %1793 = vmatprep.subr.bf16.mxu0 %v3907_v55 }
 0x1e6   : > { %v793_v20 = vpop.xlane.xlu0 %792  ;;  %v869_v29 = vmul.f32 %v4534_v10, %v5009_v59  ;;  %3208 = vmatprep.subr.bf16.mxu1 %v4327_v37  ;;  %v868_v1 = vmul.f32 %v4534_v10, %v5006_v52  ;;  %v985_v10 = vld [vmem:[%s6172_s3 + $0x2a8] sm:$0xff]  ;;  %v4330_v37 = vld [vmem:[%s6173_s4 + $0x14] ss:$8 sps:$4 sm:$0xff]  }
 0x1e7   : > { %v4536_v24 = vpop.eup %4535  ;;  %v816_v48 = vmul.f32 0.00390625, %v793_v20  ;;  %1731 = vmatmul.mubr.bf16.gmra.mrb[44].mxu0 %v5210_v14  ;;  %1957 = vmatmul.mubr.bf16.gmra.mrb[12].mxu1 %v5210_v14  ;;  %v3931_v20 = vcombine.high %v973_v60, %v977_v63  ;;  %v989_v60 = vld [vmem:[%s6172_s3 + $0x2c8] sm:$0xff] }
 0x1e8   : > { %1794 = vmatpush1.bf16.msra.mxu0 %v3906_v5  ;;  %v796_v50 = vpop.xlane.xlu1 %795  ;;  %v871_v32 = vmul.f32 %v4536_v24, %v5024_v3  ;;  %v870_v53 = vmul.f32 %v4536_v24, %v5011_v61  ;;  %3209 = vmatpush1.bf16.msra.mxu1 %v4325_v36  ;;  %v4328_v36 = vld [vmem:[%s6173_s4 + $0x10] ss:$8 sps:$4 sm:$0xff]   ;;  %v993_v63 = vld [vmem:[%s6172_s3 + $0x2e8] sm:$0xff] }
 0x1e9   : > { %v832_v39 = vadd.f32 1.1920929e-07, %v816_v48  ;;  %v817_v42 = vmul.f32 0.00390625, %v796_v50  ;;  %1795 = vmatprep.subr.bf16.mxu0 %v3915_v15  ;;  %v981_v48 = vld [vmem:[%s6172_s3 + $0x288] sm:$0xff]  ;;  %3210 = vmatprep.subr.bf16.mxu1 %v4330_v37  ;;  %v4336_v37 = vld [vmem:[%s6173_s4 + $0x34] ss:$8 sps:$4 sm:$0xff]  }
 0x1ea   : > { %v5229_v55 = vpack.c.bf16 %v871_v32, %v869_v29  ;;  %v5240_v15 = vpack.c.bf16 %v870_v53, %v868_v1  ;;  %v4333_v1 = vld [vmem:[%s6173_s4 + $0x24] ss:$8 sps:$4 sm:$0xff]  }
 0x1eb   : > { %4541 = vrsqrt.f32 %v832_v39  ;;  %v833_v0 = vadd.f32 1.1920929e-07, %v817_v42 }
 0x1ec   : > { %1796 = vmatpush1.bf16.msra.mxu0 %v3914_v57  ;;  %1740 = vmatprep.mubr.bf16.mxu0 %v5229_v55 }
 0x1ed   : > { %v4538_v5 = vpop.eup %4537  ;;  %4543 = vrsqrt.f32 %v833_v0  ;;  %1966 = vmatprep.mubr.bf16.mxu1 %v5229_v55  ;;  %1797 = vmatprep.subr.bf16.mxu0 %v3923_v45  ;;  %v3939_v45 = vcombine.high %v981_v48, %v985_v10 }
 0x1ee   : > { %v799_v24 = vpop.xlane.xlu0 %798  ;;  %v873_v29 = vmul.f32 %v4538_v5, %v5053_v41  ;;  %3211 = vmatpush1.bf16.msra.mxu1 %v4328_v36 }
 0x1ef   : > { %v4540_v50 = vpop.eup %4539  ;;  %v818_v57 = vmul.f32 0.00390625, %v799_v24  ;;  %1741 = vmatmul.mubr.bf16.gmra.mrb[48].mxu0 %v5240_v15  ;;  %1967 = vmatmul.mubr.bf16.gmra.mrb[16].mxu1 %v5240_v15  ;;  %v3938_v24 = vcombine.low %v981_v48, %v985_v10  ;;  %v1001_v48 = vld [vmem:[%s6172_s3 + $0x328] sm:$0xff] }
 0x1f0   : > { %1798 = vmatpush1.bf16.msra.mxu0 %v3922_v2  ;;  %v802_v21 = vpop.xlane.xlu1 %801  ;;  %v875_v32 = vmul.f32 %v4540_v50, %v5069_v51  ;;  %v874_v53 = vmul.f32 %v4540_v50, %v5055_v44  ;;  %v4331_v50 = vld [vmem:[%s6173_s4 + $0x20] ss:$8 sps:$4 sm:$0xff]   ;;  %3212 = vmatprep.subr.bf16.mxu1 %v4333_v1 }
 0x1f1   : > { %v834_v39 = vadd.f32 1.1920929e-07, %v818_v57  ;;  %v819_v42 = vmul.f32 0.00390625, %v802_v21  ;;  %1799 = vmatprep.subr.bf16.mxu0 %v3931_v20  ;;  %v872_v20 = vmul.f32 %v4538_v5, %v5050_v35  ;;  %v997_v5 = vld [vmem:[%s6172_s3 + $0x308] sm:$0xff] }
 0x1f2   : > { %v5259_v0 = vpack.c.bf16 %v875_v32, %v873_v29  ;;  %v3947_v29 = vcombine.high %v989_v60, %v993_v63  ;;  %3213 = vmatpush1.bf16.msra.mxu1 %v4331_v50 }
 0x1f3   : > { %4545 = vrsqrt.f32 %v834_v39  ;;  %v835_v2 = vadd.f32 1.1920929e-07, %v819_v42  ;;  %v5276_v21 = vpack.c.bf16 %v874_v53, %v872_v20  ;;  %v3955_v39 = vcombine.high %v997_v5, %v1001_v48  ;;  %v1005_v53 = vld [vmem:[%s6172_s3 + $0x348] sm:$0xff]  ;;  %3214 = vmatprep.subr.bf16.mxu1 %v4336_v37  ;;  %v4342_v37 = vld [vmem:[%s6173_s4 + $0x54] ss:$8 sps:$4 sm:$0xff]  }
 0x1f4   : > { %1800 = vmatpush1.bf16.msra.mxu0 %v3930_v22  ;;  %1750 = vmatprep.mubr.bf16.mxu0 %v5259_v0  ;;  %v3946_v22 = vcombine.low %v989_v60, %v993_v63  ;;  %v1009_v60 = vld [vmem:[%s6172_s3 + $0x368] sm:$0xff]  ;;  %v4334_v63 = vld [vmem:[%s6173_s4 + $0x30] ss:$8 sps:$4 sm:$0xff]  }
 0x1f5   : > { %v4542_v57 = vpop.eup %4541  ;;  %4547 = vrsqrt.f32 %v835_v2  ;;  %1976 = vmatprep.mubr.bf16.mxu1 %v5259_v0  ;;  %1801 = vmatprep.subr.bf16.mxu0 %v3939_v45  ;;  %v3954_v2 = vcombine.low %v997_v5, %v1001_v48  ;;  %v4339_v20 = vld [vmem:[%s6173_s4 + $0x44] ss:$8 sps:$4 sm:$0xff]   ;;  %v4337_v5 = vld [vmem:[%s6173_s4 + $0x40] ss:$8 sps:$4 sm:$0xff]  }
 0x1f6   : > { %v877_v32 = vmul.f32 %v4542_v57, %v5087_v9  ;;  %v876_v1 = vmul.f32 %v4542_v57, %v5084_v4  ;;  %v1017_v57 = vld [vmem:[%s6172_s3 + $0x3a8] sm:$0xff]  ;;  %3215 = vmatpush1.bf16.msra.mxu1 %v4334_v63 }
 0x1f7   : > { %v4544_v10 = vpop.eup %4543  ;;  %1751 = vmatmul.mubr.bf16.gmra.mrb[52].mxu0 %v5276_v21  ;;  %1977 = vmatmul.mubr.bf16.gmra.mrb[20].mxu1 %v5276_v21 }
 0x1f8   : > { %1802 = vmatpush1.bf16.msra.mxu0 %v3938_v24  ;;  %v879_v36 = vmul.f32 %v4544_v10, %v5093_v18  ;;  %v878_v42 = vmul.f32 %v4544_v10, %v5089_v12  ;;  %v1013_v10 = vld [vmem:[%s6172_s3 + $0x388] sm:$0xff]  ;;  %3216 = vmatprep.subr.bf16.mxu1 %v4339_v20 }
 0x1f9   : > { %1803 = vmatprep.subr.bf16.mxu0 %v3947_v29  ;;  %v3963_v29 = vcombine.high %v1005_v53, %v1009_v60  ;;  %v3970_v20 = vcombine.low %v1013_v10, %v1017_v57 }
 0x1fa   : > { %v5292_v45 = vpack.c.bf16 %v879_v36, %v877_v32  ;;  %v5309_v50 = vpack.c.bf16 %v878_v42, %v876_v1  ;;  %v1021_v1 = vld [vmem:[%s6172_s3 + $0x3c8] sm:$0xff]  ;;  %3217 = vmatpush1.bf16.msra.mxu1 %v4337_v5 }
 0x1fb   : > { %3218 = vmatprep.subr.bf16.mxu1 %v4342_v37  ;;  %v4345_v5 = vld [vmem:[%s6173_s4 + $0x64] ss:$8 sps:$4 sm:$0xff]   ;;  %v911_v37 = vld [vmem:[%s6172_s3 + $0x58] sm:$0xff] }
 0x1fc   : > { %1804 = vmatpush1.bf16.msra.mxu0 %v3946_v22  ;;  %1760 = vmatprep.mubr.bf16.mxu0 %v5292_v45  ;;  %v3962_v22 = vcombine.low %v1005_v53, %v1009_v60  ;;  %v1025_v53 = vld [vmem:[%s6172_s3 + $0x3e8] sm:$0xff]  ;;  %v4340_v60 = vld [vmem:[%s6173_s4 + $0x50] ss:$8 sps:$4 sm:$0xff]  }
 0x1fd   : > { %v4546_v24 = vpop.eup %4545  ;;  %1986 = vmatprep.mubr.bf16.mxu1 %v5292_v45  ;;  %1805 = vmatprep.subr.bf16.mxu0 %v3955_v39  ;;  %v3971_v39 = vcombine.high %v1013_v10, %v1017_v57  ;;  %v4343_v10 = vld [vmem:[%s6173_s4 + $0x60] ss:$8 sps:$4 sm:$0xff]   ;;  %v4348_v57 = vld [vmem:[%s6173_s4 + $0x74] ss:$8 sps:$4 sm:$0xff]  }
 0x1fe   : > { %v881_v32 = vmul.f32 %v4546_v24, %v5107_v38  ;;  %3219 = vmatpush1.bf16.msra.mxu1 %v4340_v60 }
 0x1ff   : > { %v4548_v48 = vpop.eup %4547  ;;  %1761 = vmatmul.mubr.bf16.gmra.mrb[56].mxu0 %v5309_v50  ;;  %1987 = vmatmul.mubr.bf16.gmra.mrb[24].mxu1 %v5309_v50 }
 0x200   : > { %1806 = vmatpush1.bf16.msra.mxu0 %v3954_v2  ;;  %v883_v36 = vmul.f32 %v4548_v48, %v5113_v47  ;;  %v882_v42 = vmul.f32 %v4548_v48, %v5109_v40  ;;  %v880_v2 = vmul.f32 %v4546_v24, %v5104_v33  ;;  %v3979_v48 = vcombine.high %v1021_v1, %v1025_v53  ;;  %v907_v24 = vld [vmem:[%s6172_s3 + $0x38] sm:$0xff] }
 0x201   : > { %1807 = vmatprep.subr.bf16.mxu0 %v3963_v29  ;;  %3220 = vmatprep.subr.bf16.mxu1 %v4345_v5  ;;  %v4354_v5 = vld [vmem:[%s6173_s4 + $0x94] ss:$8 sps:$4 sm:$0xff]  }
 0x202   : > { %v5328_v63 = vpack.c.bf16 %v883_v36, %v881_v32  ;;  %v5342_v29 = vpack.c.bf16 %v882_v42, %v880_v2  ;;  %v903_v32 = vld [vmem:[%s6172_s3 + $0x18] sm:$0xff]  ;;  %3221 = vmatpush1.bf16.msra.mxu1 %v4343_v10 }
 0x203   : > { %v3863_v36 = vcombine.high %v903_v32, %v907_v24  ;;  %v4346_v42 = vld [vmem:[%s6173_s4 + $0x70] ss:$8 sps:$4 sm:$0xff]   ;;  %3222 = vmatprep.subr.bf16.mxu1 %v4348_v57 }
 0x204   : > { %1808 = vmatpush1.bf16.msra.mxu0 %v3962_v22  ;;  %1770 = vmatprep.mubr.bf16.mxu0 %v5328_v63  ;;  %v3978_v22 = vcombine.low %v1021_v1, %v1025_v53  ;;  %v4351_v1 = vld [vmem:[%s6173_s4 + $0x84] ss:$8 sps:$4 sm:$0xff]   ;;  %v3862_v53 = vcombine.low %v903_v32, %v907_v24  ;;  %v919_v2 = vld [vmem:[%s6172_s3 + $0x98] sm:$0xff] }
 0x205   : > { %1996 = vmatprep.mubr.bf16.mxu1 %v5328_v63  ;;  %1809 = vmatprep.subr.bf16.mxu0 %v3971_v39  ;;  %v915_v39 = vld [vmem:[%s6172_s3 + $0x78] sm:$0xff] }
 0x206   : > { %v3871_v60 = vcombine.high %v911_v37, %v915_v39  ;;  %3223 = vmatpush1.bf16.msra.mxu1 %v4346_v42  ;;  %v3870_v32 = vcombine.low %v911_v37, %v915_v39  ;;  %v927_v10 = vld [vmem:[%s6172_s3 + $0xd8] sm:$0xff] }
 0x207   : > { %1771 = vmatmul.mubr.bf16.gmra.mrb[60].mxu0 %v5342_v29  ;;  %1997 = vmatmul.mubr.bf16.gmra.mrb[28].mxu1 %v5342_v29  ;;  %v931_v57 = vld [vmem:[%s6172_s3 + $0xf8] sm:$0xff] }
 0x208   : > { %1810 = vmatpush1.bf16.msra.mxu0 %v3970_v20  ;;  %1813 = vmatprep.mubr.bf16.mxu0 %v5131_v56  ;;  %v923_v20 = vld [vmem:[%s6172_s3 + $0xb8] sm:$0xff]  ;;  %v3887_v39 = vcombine.high %v927_v10, %v931_v57 }
 0x209   : > { %1811 = vmatprep.subr.bf16.mxu0 %v3979_v48  ;;  %v4349_v48 = vld [vmem:[%s6173_s4 + $0x80] ss:$8 sps:$4 sm:$0xff]   ;;  %3224 = vmatprep.subr.bf16.mxu1 %v4351_v1  ;;  %v3879_v24 = vcombine.high %v919_v2, %v923_v20  ;;  %v3878_v37 = vcombine.low %v919_v2, %v923_v20  ;;  %v935_v42 = vld [vmem:[%s6172_s3 + $0x118] sm:$0xff]  ;;  %v3886_v2 = vcombine.low %v927_v10, %v931_v57 }
 0x20a   : > { %3225 = vmatpush1.bf16.msra.mxu1 %v4349_v48  ;;  %v939_v1 = vld [vmem:[%s6172_s3 + $0x138] sm:$0xff] }
 0x20b   : > { %3226 = vmatprep.subr.bf16.mxu1 %v4354_v5  ;;  %v3895_v20 = vcombine.high %v935_v42, %v939_v1  ;;  %v943_v48 = vld [vmem:[%s6172_s3 + $0x158] sm:$0xff]  ;;  %v3894_v10 = vcombine.low %v935_v42, %v939_v1 }
 0x20c   : > { %1812 = vmatpush1.bf16.msra.mxu0 %v3978_v22  ;;  %v4352_v22 = vld [vmem:[%s6173_s4 + $0x90] ss:$8 sps:$4 sm:$0xff]  }
 0x20d   : > { %2007 = vmatprep.subr.bf16.mxu0 %v3863_v36  ;;  %v4357_v36 = vld [vmem:[%s6173_s4 + $0xa4] ss:$8 sps:$4 sm:$0xff]   ;;  %v947_v5 = vld [vmem:[%s6172_s3 + $0x178] sm:$0xff] }
 0x20e   : > { %3227 = vmatpush1.bf16.msra.mxu1 %v4352_v22  ;;  %v3903_v57 = vcombine.high %v943_v48, %v947_v5  ;;  %v951_v22 = vld [vmem:[%s6172_s3 + $0x198] sm:$0xff]  ;;  %v3902_v42 = vcombine.low %v943_v48, %v947_v5  ;;  %v4369_v48 = vld [vmem:[%s6173_s4 + $0xe4] ss:$8 sps:$4 sm:$0xff]  }
 0x20f   : > { %1814 = vmatmul.mubr.bf16.vlgmr.msra.gmra.mrb[64].mxu0 %v5133_v58  ;;  %3228 = vmatprep.subr.bf16.mxu1 %v4357_v36  ;;  %v955_v36 = vld [vmem:[%s6172_s3 + $0x1b8] sm:$0xff] }
 0x210   : > { %1823 = vmatprep.mubr.bf16.mxu0 %v5158_v27  ;;  %2008 = vmatpush1.bf16.msra.mxu0 %v3862_v53  ;;  %v4355_v53 = vld [vmem:[%s6173_s4 + $0xa0] ss:$8 sps:$4 sm:$0xff]   ;;  %v3911_v1 = vcombine.high %v951_v22, %v955_v36 }
 0x211   : > { %2009 = vmatprep.subr.bf16.mxu0 %v3871_v60  ;;  %v4360_v60 = vld [vmem:[%s6173_s4 + $0xb4] ss:$8 sps:$4 sm:$0xff]  }
 0x212   : > { %3229 = vmatpush1.bf16.msra.mxu1 %v4355_v53  ;;  %v959_v53 = vld [vmem:[%s6172_s3 + $0x1d8] sm:$0xff] }
 0x213   : > { %3230 = vmatprep.subr.bf16.mxu1 %v4360_v60  ;;  %v963_v60 = vld [vmem:[%s6172_s3 + $0x1f8] sm:$0xff] }
 0x214   : > { %2010 = vmatpush1.bf16.msra.mxu0 %v3870_v32  ;;  %v4358_v32 = vld [vmem:[%s6173_s4 + $0xb0] ss:$8 sps:$4 sm:$0xff]   ;;  %v3919_v5 = vcombine.high %v959_v53, %v963_v60 }
 0x215   : > { %2011 = vmatprep.subr.bf16.mxu0 %v3879_v24  ;;  %v4363_v24 = vld [vmem:[%s6173_s4 + $0xc4] ss:$8 sps:$4 sm:$0xff]  }
 0x216   : > { %3231 = vmatpush1.bf16.msra.mxu1 %v4358_v32  ;;  %v967_v32 = vld [vmem:[%s6172_s3 + $0x218] sm:$0xff] }
 0x217   : > { %1824 = vmatmul.mubr.bf16.gmra.mrb[68].mxu0 %v5160_v30  ;;  %3232 = vmatprep.subr.bf16.mxu1 %v4363_v24  ;;  %v971_v24 = vld [vmem:[%s6172_s3 + $0x238] sm:$0xff] }
 0x218   : > { %1833 = vmatprep.mubr.bf16.mxu0 %v5175_v6  ;;  %2012 = vmatpush1.bf16.msra.mxu0 %v3878_v37  ;;  %v4361_v37 = vld [vmem:[%s6173_s4 + $0xc0] ss:$8 sps:$4 sm:$0xff]  }
 0x219   : > { %2013 = vmatprep.subr.bf16.mxu0 %v3887_v39  ;;  %v4366_v39 = vld [vmem:[%s6173_s4 + $0xd4] ss:$8 sps:$4 sm:$0xff]  }
 0x21a   : > { %3233 = vmatpush1.bf16.msra.mxu1 %v4361_v37  ;;  %v975_v37 = vld [vmem:[%s6172_s3 + $0x258] sm:$0xff] }
 0x21b   : > { %3234 = vmatprep.subr.bf16.mxu1 %v4366_v39  ;;  %v979_v39 = vld [vmem:[%s6172_s3 + $0x278] sm:$0xff] }
 0x21c   : > { %2014 = vmatpush1.bf16.msra.mxu0 %v3886_v2  ;;  %v4364_v2 = vld [vmem:[%s6173_s4 + $0xd0] ss:$8 sps:$4 sm:$0xff]  }
 0x21d   : > { %2015 = vmatprep.subr.bf16.mxu0 %v3895_v20  ;;  %v3910_v20 = vcombine.low %v951_v22, %v955_v36  ;;  %v4372_v22 = vld [vmem:[%s6173_s4 + $0xf4] ss:$8 sps:$4 sm:$0xff]   ;;  %v3927_v36 = vcombine.high %v967_v32, %v971_v24 }
 0x21e   : > { %3235 = vmatpush1.bf16.msra.mxu1 %v4364_v2  ;;  %v983_v2 = vld [vmem:[%s6172_s3 + $0x298] sm:$0xff] }
 0x21f   : > { %1834 = vmatmul.mubr.bf16.gmra.mrb[72].mxu0 %v5186_v23  ;;  %3236 = vmatprep.subr.bf16.mxu1 %v4369_v48  ;;  %v3934_v48 = vcombine.low %v975_v37, %v979_v39 }
 0x220   : > { %1843 = vmatprep.mubr.bf16.mxu0 %v5199_v62  ;;  %2016 = vmatpush1.bf16.msra.mxu0 %v3894_v10  ;;  %v4367_v10 = vld [vmem:[%s6173_s4 + $0xe0] ss:$8 sps:$4 sm:$0xff]  }
 0x221   : > { %2017 = vmatprep.subr.bf16.mxu0 %v3903_v57  ;;  %v3918_v57 = vcombine.low %v959_v53, %v963_v60  ;;  %v4375_v53 = vld [vmem:[%s6173_s4 + $0x104] ss:$8 sps:$4 sm:$0xff]   ;;  %v3935_v60 = vcombine.high %v975_v37, %v979_v39 }
 0x222   : > { %3237 = vmatpush1.bf16.msra.mxu1 %v4367_v10 }
 0x223   : > { %3238 = vmatprep.subr.bf16.mxu1 %v4372_v22  ;;  %v999_v22 = vld [vmem:[%s6172_s3 + $0x318] sm:$0xff] }
 0x224   : > { %2018 = vmatpush1.bf16.msra.mxu0 %v3902_v42  ;;  %v4370_v42 = vld [vmem:[%s6173_s4 + $0xf0] ss:$8 sps:$4 sm:$0xff]  }
 0x225   : > { %2019 = vmatprep.subr.bf16.mxu0 %v3911_v1  ;;  %v3926_v1 = vcombine.low %v967_v32, %v971_v24  ;;  %v991_v32 = vld [vmem:[%s6172_s3 + $0x2d8] sm:$0xff] }
 0x226   : > { %3239 = vmatpush1.bf16.msra.mxu1 %v4370_v42  ;;  %v995_v24 = vld [vmem:[%s6172_s3 + $0x2f8] sm:$0xff] }
 0x227   : > { %1844 = vmatmul.mubr.bf16.gmra.mrb[76].mxu0 %v5210_v14  ;;  %3321 = vmatprep.subr.bf16.mxu1 %v4375_v53  ;;  %v3950_v37 = vcombine.low %v991_v32, %v995_v24  ;;  %v1007_v42 = vld [vmem:[%s6172_s3 + $0x358] sm:$0xff] }
 0x228   : > { %1853 = vmatprep.mubr.bf16.mxu0 %v5229_v55  ;;  %2020 = vmatpush1.bf16.msra.mxu0 %v3910_v20  ;;  %v987_v20 = vld [vmem:[%s6172_s3 + $0x2b8] sm:$0xff] }
 0x229   : > { %2021 = vmatprep.subr.bf16.mxu0 %v3919_v5  ;;  %v3943_v5 = vcombine.high %v983_v2, %v987_v20  ;;  %v3942_v10 = vcombine.low %v983_v2, %v987_v20  ;;  %v1015_v2 = vld [vmem:[%s6172_s3 + $0x398] sm:$0xff] }
 0x22a   : > { %v1019_v20 = vld [vmem:[%s6172_s3 + $0x3b8] sm:$0xff] }
 0x22c   : > { %2022 = vmatpush1.bf16.msra.mxu0 %v3918_v57  ;;  %v3951_v57 = vcombine.high %v991_v32, %v995_v24  ;;  %v1023_v32 = vld [vmem:[%s6172_s3 + $0x3d8] sm:$0xff] }
 0x22d   : > { %2023 = vmatprep.subr.bf16.mxu0 %v3927_v36  ;;  %v1003_v36 = vld [vmem:[%s6172_s3 + $0x338] sm:$0xff] }
 0x22e   : > { %v3959_v39 = vcombine.high %v999_v22, %v1003_v36  ;;  %v3958_v53 = vcombine.low %v999_v22, %v1003_v36  ;;  %v1027_v24 = vld [vmem:[%s6172_s3 + $0x3f8] sm:$0xff] }
 0x22f   : > { %1854 = vmatmul.mubr.bf16.gmra.mrb[80].mxu0 %v5240_v15  ;;  %v3982_v22 = vcombine.low %v1023_v32, %v1027_v24  ;;  %v4466_v36 = vld [vmem:[%s6173_s4 + $0x370] ss:$8 sps:$4 sm:$0xff]  }
 0x230   : > { %1863 = vmatprep.mubr.bf16.mxu0 %v5259_v0  ;;  %2024 = vmatpush1.bf16.msra.mxu0 %v3926_v1  ;;  %v1011_v1 = vld [vmem:[%s6172_s3 + $0x378] sm:$0xff] }
 0x231   : > { %2025 = vmatprep.subr.bf16.mxu0 %v3935_v60  ;;  %v3967_v60 = vcombine.high %v1007_v42, %v1011_v1 }
 0x234   : > { %2026 = vmatpush1.bf16.msra.mxu0 %v3934_v48  ;;  %v3966_v48 = vcombine.low %v1007_v42, %v1011_v1  ;;  %v4478_v42 = vld [vmem:[%s6173_s4 + $0x390] ss:$8 sps:$4 sm:$0xff]   ;;  %v4486_v1 = vld [vmem:[%s6173_s4 + $0x3a4] ss:$8 sps:$4 sm:$0xff]  }
 0x235   : > { %2027 = vmatprep.subr.bf16.mxu0 %v3943_v5  ;;  %v3975_v5 = vcombine.high %v1015_v2, %v1019_v20 }
 0x237   : > { %1864 = vmatmul.mubr.bf16.gmra.mrb[84].mxu0 %v5276_v21 }
 0x238   : > { %1873 = vmatprep.mubr.bf16.mxu0 %v5292_v45  ;;  %2028 = vmatpush1.bf16.msra.mxu0 %v3942_v10  ;;  %v3974_v10 = vcombine.low %v1015_v2, %v1019_v20  ;;  %v4490_v2 = vld [vmem:[%s6173_s4 + $0x3b0] ss:$8 sps:$4 sm:$0xff]   ;;  %v4498_v20 = vld [vmem:[%s6173_s4 + $0x3c4] ss:$8 sps:$4 sm:$0xff]  }
 0x239   : > { %2029 = vmatprep.subr.bf16.mxu0 %v3951_v57  ;;  %v3983_v57 = vcombine.high %v1023_v32, %v1027_v24  ;;  %v4502_v32 = vld [vmem:[%s6173_s4 + $0x3d0] ss:$8 sps:$4 sm:$0xff]  }
 0x23c   : > { %2030 = vmatpush1.bf16.msra.mxu0 %v3950_v37  ;;  %v4474_v37 = vld [vmem:[%s6173_s4 + $0x384] ss:$8 sps:$4 sm:$0xff]  }
 0x23d   : > { %2031 = vmatprep.subr.bf16.mxu0 %v3959_v39  ;;  %v4472_v39 = vld [vmem:[%s6173_s4 + $0x380] ss:$8 sps:$4 sm:$0xff]  }
 0x23f   : > { %1874 = vmatmul.mubr.bf16.gmra.mrb[88].mxu0 %v5309_v50 }
 0x240   : > { %1883 = vmatprep.mubr.bf16.mxu0 %v5328_v63  ;;  %2032 = vmatpush1.bf16.msra.mxu0 %v3958_v53  ;;  %v4484_v53 = vld [vmem:[%s6173_s4 + $0x3a0] ss:$8 sps:$4 sm:$0xff]  }
 0x241   : > { %2033 = vmatprep.subr.bf16.mxu0 %v3967_v60  ;;  %v4492_v60 = vld [vmem:[%s6173_s4 + $0x3b4] ss:$8 sps:$4 sm:$0xff]  }
 0x244   : > { %2034 = vmatpush1.bf16.msra.mxu0 %v3966_v48  ;;  %v4496_v48 = vld [vmem:[%s6173_s4 + $0x3c0] ss:$8 sps:$4 sm:$0xff]  }
 0x245   : > { %2035 = vmatprep.subr.bf16.mxu0 %v3975_v5  ;;  %v4504_v5 = vld [vmem:[%s6173_s4 + $0x3d4] ss:$8 sps:$4 sm:$0xff]  }
 0x247   : > { %1884 = vmatmul.mubr.bf16.gmra.mrb[92].mxu0 %v5342_v29 }
 0x248   : > { %2036 = vmatpush1.bf16.msra.mxu0 %v3974_v10  ;;  %2039 = vmatprep.mubr.bf16.mxu0 %v5131_v56  ;;  %v4426_v56 = vld [vmem:[%s6173_s4 + $0x304] ss:$8 sps:$4 sm:$0xff]  }
 0x249   : > { %2037 = vmatprep.subr.bf16.mxu0 %v3983_v57 }
 0x24c   : > { %2038 = vmatpush1.bf16.msra.mxu0 %v3982_v22 }
 0x24d   : > { %3547 = vmatprep.subr.bf16.mxu0 %v4426_v56 }
 0x24f   : > { %2040 = vmatmul.mubr.bf16.vlgmr.msra.gmra.mrb[96].mxu0 %v5133_v58  ;;  %v4424_v58 = vld [vmem:[%s6173_s4 + $0x300] ss:$8 sps:$4 sm:$0xff]  }
 0x250   : > { %2049 = vmatprep.mubr.bf16.mxu0 %v5158_v27  ;;  %3548 = vmatpush1.bf16.msra.mxu0 %v4424_v58  ;;  %v4432_v27 = vld [vmem:[%s6173_s4 + $0x314] ss:$8 sps:$4 sm:$0xff]  }
 0x251   : > { %3549 = vmatprep.subr.bf16.mxu0 %v4432_v27 }
 0x257   : > { %2050 = vmatmul.mubr.bf16.gmra.mrb[100].mxu0 %v5160_v30  ;;  %v4430_v30 = vld [vmem:[%s6173_s4 + $0x310] ss:$8 sps:$4 sm:$0xff]  }
 0x258   : > { %2059 = vmatprep.mubr.bf16.mxu0 %v5175_v6  ;;  %3550 = vmatpush1.bf16.msra.mxu0 %v4430_v30  ;;  %v4438_v6 = vld [vmem:[%s6173_s4 + $0x324] ss:$8 sps:$4 sm:$0xff]  }
 0x259   : > { %3551 = vmatprep.subr.bf16.mxu0 %v4438_v6 }
 0x25f   : > { %2060 = vmatmul.mubr.bf16.gmra.mrb[104].mxu0 %v5186_v23  ;;  %v4436_v23 = vld [vmem:[%s6173_s4 + $0x320] ss:$8 sps:$4 sm:$0xff]  }
 0x260   : > { %2069 = vmatprep.mubr.bf16.mxu0 %v5199_v62  ;;  %3552 = vmatpush1.bf16.msra.mxu0 %v4436_v23  ;;  %v4444_v62 = vld [vmem:[%s6173_s4 + $0x334] ss:$8 sps:$4 sm:$0xff]  }
 0x261   : > { %3553 = vmatprep.subr.bf16.mxu0 %v4444_v62 }
 0x267   : > { %2070 = vmatmul.mubr.bf16.gmra.mrb[108].mxu0 %v5210_v14  ;;  %v4442_v14 = vld [vmem:[%s6173_s4 + $0x330] ss:$8 sps:$4 sm:$0xff]  }
 0x268   : > { %2079 = vmatprep.mubr.bf16.mxu0 %v5229_v55  ;;  %3554 = vmatpush1.bf16.msra.mxu0 %v4442_v14  ;;  %v4450_v55 = vld [vmem:[%s6173_s4 + $0x344] ss:$8 sps:$4 sm:$0xff]  }
 0x269   : > { %3555 = vmatprep.subr.bf16.mxu0 %v4450_v55 }
 0x26f   : > { %2080 = vmatmul.mubr.bf16.gmra.mrb[112].mxu0 %v5240_v15  ;;  %v4448_v15 = vld [vmem:[%s6173_s4 + $0x340] ss:$8 sps:$4 sm:$0xff]  }
 0x270   : > { %2089 = vmatprep.mubr.bf16.mxu0 %v5259_v0  ;;  %3556 = vmatpush1.bf16.msra.mxu0 %v4448_v15  ;;  %v4456_v0 = vld [vmem:[%s6173_s4 + $0x354] ss:$8 sps:$4 sm:$0xff]  }
 0x271   : > { %3557 = vmatprep.subr.bf16.mxu0 %v4456_v0 }
 0x277   : > { %2090 = vmatmul.mubr.bf16.gmra.mrb[116].mxu0 %v5276_v21  ;;  %v4454_v21 = vld [vmem:[%s6173_s4 + $0x350] ss:$8 sps:$4 sm:$0xff]  }
 0x278   : > { %2099 = vmatprep.mubr.bf16.mxu0 %v5292_v45  ;;  %3558 = vmatpush1.bf16.msra.mxu0 %v4454_v21  ;;  %v4462_v45 = vld [vmem:[%s6173_s4 + $0x364] ss:$8 sps:$4 sm:$0xff]  }
 0x279   : > { %3559 = vmatprep.subr.bf16.mxu0 %v4462_v45  ;;  %v4508_v45 = vld [vmem:[%s6173_s4 + $0x3e0] ss:$8 sps:$4 sm:$0xff]  }
 0x27f   : > { %2100 = vmatmul.mubr.bf16.gmra.mrb[120].mxu0 %v5309_v50  ;;  %v4460_v50 = vld [vmem:[%s6173_s4 + $0x360] ss:$8 sps:$4 sm:$0xff]  }
 0x280   : > { %2109 = vmatprep.mubr.bf16.mxu0 %v5328_v63  ;;  %3560 = vmatpush1.bf16.msra.mxu0 %v4460_v50  ;;  %v4468_v63 = vld [vmem:[%s6173_s4 + $0x374] ss:$8 sps:$4 sm:$0xff]   ;;  %v4510_v50 = vld [vmem:[%s6173_s4 + $0x3e4] ss:$8 sps:$4 sm:$0xff]  }
 0x281   : > { %3561 = vmatprep.subr.bf16.mxu0 %v4468_v63 }
 0x284   : > { %3562 = vmatpush1.bf16.msra.mxu0 %v4466_v36 }
 0x285   : > { %3563 = vmatprep.subr.bf16.mxu0 %v4474_v37 }
 0x287   : > { %2110 = vmatmul.mubr.bf16.gmra.mrb[124].mxu0 %v5342_v29  ;;  %v4480_v29 = vld [vmem:[%s6173_s4 + $0x394] ss:$8 sps:$4 sm:$0xff]  }
 0x288   : > { %3564 = vmatpush1.bf16.msra.mxu0 %v4472_v39 }
 0x289   : > { %3565 = vmatprep.subr.bf16.mxu0 %v4480_v29 }
 0x28c   : > { %3566 = vmatpush1.bf16.msra.mxu0 %v4478_v42 }
 0x28d   : > { %3567 = vmatprep.subr.bf16.mxu0 %v4486_v1 }
 0x290   : > { %3568 = vmatpush1.bf16.msra.mxu0 %v4484_v53 }
 0x291   : > { %3569 = vmatprep.subr.bf16.mxu0 %v4492_v60  ;;  %v4516_v60 = vld [vmem:[%s6173_s4 + $0x3f4] ss:$8 sps:$4 sm:$0xff]  }
 0x294   : > { %3570 = vmatpush1.bf16.msra.mxu0 %v4490_v2 }
 0x295   : > { %3571 = vmatprep.subr.bf16.mxu0 %v4498_v20 }
 0x298   : > { %3572 = vmatpush1.bf16.msra.mxu0 %v4496_v48  ;;  %v4514_v48 = vld [vmem:[%s6173_s4 + $0x3f0] ss:$8 sps:$4 sm:$0xff]  }
 0x299   : > { %3573 = vmatprep.subr.bf16.mxu0 %v4504_v5 }
 0x29c   : > { %3574 = vmatpush1.bf16.msra.mxu0 %v4502_v32 }
 0x29d   : > { %3575 = vmatprep.subr.bf16.mxu0 %v4510_v50 }
 0x2a0   : > { %3576 = vmatpush1.bf16.msra.mxu0 %v4508_v45 }
 0x2a1   : > { %3577 = vmatprep.subr.bf16.mxu0 %v4516_v60 }
 0x2a2   : > { %v1702_v24 = vpop.f32.mrb[32].mxu0  ;;  %v1928_v10 = vpop.f32.mrb[0].mxu1 }
 0x2a3   : > { %v2120_v57 = vmax.f32 %v1702_v24, 0.0  ;;  %v2124_v22 = vmax.f32 %v1928_v10, 0.0  ;;  %v1704_v56 = vpop.f32.mrb[33].mxu0  ;;  %v1930_v58 = vpop.f32.mrb[1].mxu1 }
 0x2a4   : > { %v2121_v27 = vmax.f32 %v1704_v56, 0.0  ;;  %v2125_v30 = vmax.f32 %v1930_v58, 0.0  ;;  %v1706_v6 = vpop.f32.mrb[34].mxu0  ;;  %v1932_v23 = vpop.f32.mrb[2].mxu1  ;;  %3578 = vmatpush1.bf16.msra.mxu0 %v4514_v48 }
 0x2a5   : > { %v2128_v62 = vmax.f32 %v1706_v6, 0.0  ;;  %v2132_v14 = vmax.f32 %v1932_v23, 0.0  ;;  %v1708_v55 = vpop.f32.mrb[35].mxu0  ;;  %v1934_v15 = vpop.f32.mrb[3].mxu1  ;;  %v2248_v63 = vmul.f32 %v2120_v57, %v2120_v57  ;;  %v5627_v36 = vmul.f32 %v2124_v22, %v2124_v22  ;;  %v4373_v57 = vld [vmem:[%s6173_s4 + $0x100] ss:$8 sps:$4 sm:$0xff]  }
 0x2a6   : > { %v2129_v0 = vmax.f32 %v1708_v55, 0.0  ;;  %v2133_v21 = vmax.f32 %v1934_v15, 0.0  ;;  %v2249_v29 = vmul.f32 %v2121_v27, %v2121_v27  ;;  %v5631_v42 = vmul.f32 %v2125_v30, %v2125_v30  ;;  %v4378_v30 = vld [vmem:[%s6173_s4 + $0x114] ss:$8 sps:$4 sm:$0xff]  }
 0x2a7   : > { %v2256_v37 = vmul.f32 %v2128_v62, %v2128_v62  ;;  %v5629_v39 = vmul.f32 %v2132_v14, %v2132_v14 }
 0x2a8   : > { %v2257_v1 = vmul.f32 %v2129_v0, %v2129_v0  ;;  %v5633_v53 = vmul.f32 %v2133_v21, %v2133_v21 }
 0x2a9   : > { %v2376_v2 = vpack.c.bf16 %v2256_v37, %v2248_v63  ;;  %v4376_v63 = vld [vmem:[%s6173_s4 + $0x110] ss:$8 sps:$4 sm:$0xff]  }
 0x2aa   : > { %v2377_v5 = vpack.c.bf16 %v2257_v1, %v2249_v29  ;;  %v1712_v24 = vpop.f32.mrb[36].mxu0  ;;  %v1938_v10 = vpop.f32.mrb[4].mxu1 }
 0x2ab   : > { %v2136_v22 = vmax.f32 %v1712_v24, 0.0  ;;  %v2140_v56 = vmax.f32 %v1938_v10, 0.0  ;;  %v1714_v58 = vpop.f32.mrb[37].mxu0  ;;  %v1940_v27 = vpop.f32.mrb[5].mxu1 }
 0x2ac   : > { %v2137_v6 = vmax.f32 %v1714_v58, 0.0  ;;  %v2141_v23 = vmax.f32 %v1940_v27, 0.0  ;;  %v1716_v62 = vpop.f32.mrb[38].mxu0  ;;  %v1942_v14 = vpop.f32.mrb[6].mxu1  ;;  %3240 = vmatprep.mubr.bf16.mxu1 %v2377_v5  ;;  %v4381_v5 = vld [vmem:[%s6173_s4 + $0x124] ss:$8 sps:$4 sm:$0xff]  }
 0x2ad   : > { %v2144_v55 = vmax.f32 %v1716_v62, 0.0  ;;  %v2148_v15 = vmax.f32 %v1942_v14, 0.0  ;;  %v1718_v0 = vpop.f32.mrb[39].mxu0  ;;  %v1944_v21 = vpop.f32.mrb[7].mxu1  ;;  %3241 = vmatmul.mubr.bf16.vlgmr.msra.gmra.mrb[32].mxu1 %v2376_v2  ;;  %v2264_v37 = vmul.f32 %v2136_v22, %v2136_v22  ;;  %v5654_v29 = vmul.f32 %v2140_v56, %v2140_v56 }
 0x2ae   : > { %v2145_v45 = vmax.f32 %v1718_v0, 0.0  ;;  %v2149_v50 = vmax.f32 %v1944_v21, 0.0  ;;  %3322 = vmatpush1.bf16.msra.mxu1 %v4373_v57  ;;  %v2265_v2 = vmul.f32 %v2137_v6, %v2137_v6  ;;  %v5661_v48 = vmul.f32 %v2141_v23, %v2141_v23  ;;  %v4379_v6 = vld [vmem:[%s6173_s4 + $0x120] ss:$8 sps:$4 sm:$0xff]  }
 0x2af   : > { %v2272_v1 = vmul.f32 %v2144_v55, %v2144_v55  ;;  %v5656_v60 = vmul.f32 %v2148_v15, %v2148_v15  ;;  %3323 = vmatprep.subr.bf16.mxu1 %v4378_v30  ;;  %v4384_v15 = vld [vmem:[%s6173_s4 + $0x134] ss:$8 sps:$4 sm:$0xff]  }
 0x2b0   : > { %v2273_v24 = vmul.f32 %v2145_v45, %v2145_v45  ;;  %v5663_v10 = vmul.f32 %v2149_v50, %v2149_v50 }
 0x2b1   : > { %v2384_v57 = vpack.c.bf16 %v2272_v1, %v2264_v37 }
 0x2b2   : > { %v2385_v56 = vpack.c.bf16 %v2273_v24, %v2265_v2  ;;  %3324 = vmatpush1.bf16.msra.mxu1 %v4376_v63  ;;  %v1722_v27 = vpop.f32.mrb[40].mxu0  ;;  %v1948_v30 = vpop.f32.mrb[8].mxu1 }
 0x2b3   : > { %v2152_v23 = vmax.f32 %v1722_v27, 0.0  ;;  %v2156_v62 = vmax.f32 %v1948_v30, 0.0  ;;  %v1724_v14 = vpop.f32.mrb[41].mxu0  ;;  %v1950_v55 = vpop.f32.mrb[9].mxu1  ;;  %3325 = vmatprep.subr.bf16.mxu1 %v4381_v5  ;;  %v4382_v5 = vld [vmem:[%s6173_s4 + $0x130] ss:$8 sps:$4 sm:$0xff]  }
 0x2b4   : > { %v2153_v0 = vmax.f32 %v1724_v14, 0.0  ;;  %v2157_v21 = vmax.f32 %v1950_v55, 0.0  ;;  %v1726_v45 = vpop.f32.mrb[42].mxu0  ;;  %v1952_v50 = vpop.f32.mrb[10].mxu1  ;;  %3250 = vmatprep.mubr.bf16.mxu1 %v2385_v56  ;;  %v4387_v56 = vld [vmem:[%s6173_s4 + $0x144] ss:$8 sps:$4 sm:$0xff]  }
 0x2b5   : > { %v2160_v63 = vmax.f32 %v1726_v45, 0.0  ;;  %v2164_v37 = vmax.f32 %v1952_v50, 0.0  ;;  %v1728_v1 = vpop.f32.mrb[43].mxu0  ;;  %v1954_v2 = vpop.f32.mrb[11].mxu1  ;;  %3251 = vmatmul.mubr.bf16.gmra.mrb[36].mxu1 %v2384_v57  ;;  %v2280_v30 = vmul.f32 %v2152_v23, %v2152_v23  ;;  %v5678_v22 = vmul.f32 %v2156_v62, %v2156_v62 }
 0x2b6   : > { %v2161_v24 = vmax.f32 %v1728_v1, 0.0  ;;  %v2165_v27 = vmax.f32 %v1954_v2, 0.0  ;;  %3326 = vmatpush1.bf16.msra.mxu1 %v4379_v6  ;;  %v2281_v45 = vmul.f32 %v2153_v0, %v2153_v0  ;;  %v5685_v57 = vmul.f32 %v2157_v21, %v2157_v21  ;;  %v4385_v0 = vld [vmem:[%s6173_s4 + $0x140] ss:$8 sps:$4 sm:$0xff]  }
 0x2b7   : > { %v2288_v14 = vmul.f32 %v2160_v63, %v2160_v63  ;;  %v5680_v55 = vmul.f32 %v2164_v37, %v2164_v37  ;;  %3327 = vmatprep.subr.bf16.mxu1 %v4384_v15 }
 0x2b8   : > { %v2289_v50 = vmul.f32 %v2161_v24, %v2161_v24  ;;  %v5687_v6 = vmul.f32 %v2165_v27, %v2165_v27 }
 0x2b9   : > { %v2392_v1 = vpack.c.bf16 %v2288_v14, %v2280_v30  ;;  %v4390_v30 = vld [vmem:[%s6173_s4 + $0x154] ss:$8 sps:$4 sm:$0xff]  }
 0x2ba   : > { %v2393_v62 = vpack.c.bf16 %v2289_v50, %v2281_v45  ;;  %3328 = vmatpush1.bf16.msra.mxu1 %v4382_v5  ;;  %v1732_v15 = vpop.f32.mrb[44].mxu0  ;;  %v1958_v37 = vpop.f32.mrb[12].mxu1 }
 0x2bb   : > { %v2168_v21 = vmax.f32 %v1732_v15, 0.0  ;;  %v2172_v2 = vmax.f32 %v1958_v37, 0.0  ;;  %v1734_v24 = vpop.f32.mrb[45].mxu0  ;;  %v1960_v27 = vpop.f32.mrb[13].mxu1  ;;  %3329 = vmatprep.subr.bf16.mxu1 %v4387_v56  ;;  %v4388_v56 = vld [vmem:[%s6173_s4 + $0x150] ss:$8 sps:$4 sm:$0xff]  }
 0x2bc   : > { %v2169_v14 = vmax.f32 %v1734_v24, 0.0  ;;  %v2173_v45 = vmax.f32 %v1960_v27, 0.0  ;;  %v1736_v50 = vpop.f32.mrb[46].mxu0  ;;  %v1962_v23 = vpop.f32.mrb[14].mxu1  ;;  %3260 = vmatprep.mubr.bf16.mxu1 %v2393_v62 }
 0x2bd   : > { %v2176_v5 = vmax.f32 %v1736_v50, 0.0  ;;  %v2180_v63 = vmax.f32 %v1962_v23, 0.0  ;;  %v1738_v58 = vpop.f32.mrb[47].mxu0  ;;  %v1964_v20 = vpop.f32.mrb[15].mxu1  ;;  %3261 = vmatmul.mubr.bf16.gmra.mrb[40].mxu1 %v2392_v1  ;;  %v2296_v37 = vmul.f32 %v2168_v21, %v2168_v21  ;;  %v5702_v47 = vmul.f32 %v2172_v2, %v2172_v2  ;;  %v4393_v23 = vld [vmem:[%s6173_s4 + $0x164] ss:$8 sps:$4 sm:$0xff]  }
 0x2be   : > { %v2177_v32 = vmax.f32 %v1738_v58, 0.0  ;;  %v2181_v15 = vmax.f32 %v1964_v20, 0.0  ;;  %3330 = vmatpush1.bf16.msra.mxu1 %v4385_v0  ;;  %v2297_v62 = vmul.f32 %v2169_v14, %v2169_v14  ;;  %v5709_v1 = vmul.f32 %v2173_v45, %v2173_v45  ;;  %v4391_v14 = vld [vmem:[%s6173_s4 + $0x160] ss:$8 sps:$4 sm:$0xff]  }
 0x2bf   : > { %v2304_v24 = vmul.f32 %v2176_v5, %v2176_v5  ;;  %v5704_v27 = vmul.f32 %v2180_v63, %v2180_v63  ;;  %3331 = vmatprep.subr.bf16.mxu1 %v4390_v30 }
 0x2c0   : > { %v2305_v20 = vmul.f32 %v2177_v32, %v2177_v32  ;;  %v5711_v58 = vmul.f32 %v2181_v15, %v2181_v15 }
 0x2c1   : > { %v2400_v0 = vpack.c.bf16 %v2304_v24, %v2296_v37  ;;  %v4396_v37 = vld [vmem:[%s6173_s4 + $0x174] ss:$8 sps:$4 sm:$0xff]  }
 0x2c2   : > { %v2401_v2 = vpack.c.bf16 %v2305_v20, %v2297_v62  ;;  %3332 = vmatpush1.bf16.msra.mxu1 %v4388_v56  ;;  %v1742_v30 = vpop.f32.mrb[48].mxu0  ;;  %v1968_v50 = vpop.f32.mrb[16].mxu1 }
 0x2c3   : > { %v2184_v45 = vmax.f32 %v1742_v30, 0.0  ;;  %v2188_v5 = vmax.f32 %v1968_v50, 0.0  ;;  %v1744_v32 = vpop.f32.mrb[49].mxu0  ;;  %v1970_v15 = vpop.f32.mrb[17].mxu1  ;;  %3333 = vmatprep.subr.bf16.mxu1 %v4393_v23  ;;  %v4394_v23 = vld [vmem:[%s6173_s4 + $0x170] ss:$8 sps:$4 sm:$0xff]  }
 0x2c4   : > { %v2185_v24 = vmax.f32 %v1744_v32, 0.0  ;;  %v2189_v62 = vmax.f32 %v1970_v15, 0.0  ;;  %v1746_v20 = vpop.f32.mrb[50].mxu0  ;;  %v1972_v21 = vpop.f32.mrb[18].mxu1  ;;  %3270 = vmatprep.mubr.bf16.mxu1 %v2401_v2 }
 0x2c5   : > { %v2192_v56 = vmax.f32 %v1746_v20, 0.0  ;;  %v2196_v63 = vmax.f32 %v1972_v21, 0.0  ;;  %v1748_v40 = vpop.f32.mrb[51].mxu0  ;;  %v1974_v38 = vpop.f32.mrb[19].mxu1  ;;  %3271 = vmatmul.mubr.bf16.gmra.mrb[44].mxu1 %v2400_v0  ;;  %v2312_v50 = vmul.f32 %v2184_v45, %v2184_v45  ;;  %v5726_v18 = vmul.f32 %v2188_v5, %v2188_v5  ;;  %v4399_v21 = vld [vmem:[%s6173_s4 + $0x184] ss:$8 sps:$4 sm:$0xff]  }
 0x2c6   : > { %v2193_v33 = vmax.f32 %v1748_v40, 0.0  ;;  %v2197_v30 = vmax.f32 %v1974_v38, 0.0  ;;  %3334 = vmatpush1.bf16.msra.mxu1 %v4391_v14  ;;  %v2313_v2 = vmul.f32 %v2185_v24, %v2185_v24  ;;  %v5733_v0 = vmul.f32 %v2189_v62, %v2189_v62  ;;  %v4397_v24 = vld [vmem:[%s6173_s4 + $0x180] ss:$8 sps:$4 sm:$0xff]  }
 0x2c7   : > { %v2320_v32 = vmul.f32 %v2192_v56, %v2192_v56  ;;  %v5728_v15 = vmul.f32 %v2196_v63, %v2196_v63  ;;  %3335 = vmatprep.subr.bf16.mxu1 %v4396_v37 }
 0x2c8   : > { %v2321_v38 = vmul.f32 %v2193_v33, %v2193_v33  ;;  %v5735_v40 = vmul.f32 %v2197_v30, %v2197_v30 }
 0x2c9   : > { %v2408_v14 = vpack.c.bf16 %v2320_v32, %v2312_v50  ;;  %v4402_v50 = vld [vmem:[%s6173_s4 + $0x194] ss:$8 sps:$4 sm:$0xff]  }
 0x2ca   : > { %v2409_v5 = vpack.c.bf16 %v2321_v38, %v2313_v2  ;;  %3336 = vmatpush1.bf16.msra.mxu1 %v4394_v23  ;;  %v1752_v37 = vpop.f32.mrb[52].mxu0  ;;  %v1978_v20 = vpop.f32.mrb[20].mxu1 }
 0x2cb   : > { %v2200_v62 = vmax.f32 %v1752_v37, 0.0  ;;  %v2204_v56 = vmax.f32 %v1978_v20, 0.0  ;;  %v1754_v33 = vpop.f32.mrb[53].mxu0  ;;  %v1980_v30 = vpop.f32.mrb[21].mxu1  ;;  %3337 = vmatprep.subr.bf16.mxu1 %v4399_v21  ;;  %v4400_v21 = vld [vmem:[%s6173_s4 + $0x190] ss:$8 sps:$4 sm:$0xff]  }
 0x2cc   : > { %v2201_v32 = vmax.f32 %v1754_v33, 0.0  ;;  %v2205_v2 = vmax.f32 %v1980_v30, 0.0  ;;  %v1756_v38 = vpop.f32.mrb[54].mxu0  ;;  %v1982_v45 = vpop.f32.mrb[22].mxu1  ;;  %3280 = vmatprep.mubr.bf16.mxu1 %v2409_v5 }
 0x2cd   : > { %v2208_v23 = vmax.f32 %v1756_v38, 0.0  ;;  %v2212_v63 = vmax.f32 %v1982_v45, 0.0  ;;  %v1758_v12 = vpop.f32.mrb[55].mxu0  ;;  %v1984_v9 = vpop.f32.mrb[23].mxu1  ;;  %3281 = vmatmul.mubr.bf16.gmra.mrb[48].mxu1 %v2408_v14  ;;  %v2328_v20 = vmul.f32 %v2200_v62, %v2200_v62  ;;  %v5750_v51 = vmul.f32 %v2204_v56, %v2204_v56  ;;  %v4405_v45 = vld [vmem:[%s6173_s4 + $0x1a4] ss:$8 sps:$4 sm:$0xff]  }
 0x2ce   : > { %v2209_v4 = vmax.f32 %v1758_v12, 0.0  ;;  %v2213_v37 = vmax.f32 %v1984_v9, 0.0  ;;  %3338 = vmatpush1.bf16.msra.mxu1 %v4397_v24  ;;  %v2329_v5 = vmul.f32 %v2201_v32, %v2201_v32  ;;  %v5757_v14 = vmul.f32 %v2205_v2, %v2205_v2  ;;  %v4403_v32 = vld [vmem:[%s6173_s4 + $0x1a0] ss:$8 sps:$4 sm:$0xff]  }
 0x2cf   : > { %v2336_v33 = vmul.f32 %v2208_v23, %v2208_v23  ;;  %v5752_v30 = vmul.f32 %v2212_v63, %v2212_v63  ;;  %3339 = vmatprep.subr.bf16.mxu1 %v4402_v50 }
 0x2d0   : > { %v2337_v9 = vmul.f32 %v2209_v4, %v2209_v4  ;;  %v5759_v12 = vmul.f32 %v2213_v37, %v2213_v37 }
 0x2d1   : > { %v2416_v24 = vpack.c.bf16 %v2336_v33, %v2328_v20  ;;  %v4408_v20 = vld [vmem:[%s6173_s4 + $0x1b4] ss:$8 sps:$4 sm:$0xff]  }
 0x2d2   : > { %v2417_v56 = vpack.c.bf16 %v2337_v9, %v2329_v5  ;;  %3340 = vmatpush1.bf16.msra.mxu1 %v4400_v21  ;;  %v1762_v50 = vpop.f32.mrb[56].mxu0  ;;  %v1988_v38 = vpop.f32.mrb[24].mxu1 }
 0x2d3   : > { %v2216_v2 = vmax.f32 %v1762_v50, 0.0  ;;  %v2220_v23 = vmax.f32 %v1988_v38, 0.0  ;;  %v1764_v4 = vpop.f32.mrb[57].mxu0  ;;  %v1990_v37 = vpop.f32.mrb[25].mxu1  ;;  %3341 = vmatprep.subr.bf16.mxu1 %v4405_v45  ;;  %v4406_v45 = vld [vmem:[%s6173_s4 + $0x1b0] ss:$8 sps:$4 sm:$0xff]  }
 0x2d4   : > { %v2217_v33 = vmax.f32 %v1764_v4, 0.0  ;;  %v2221_v5 = vmax.f32 %v1990_v37, 0.0  ;;  %v1766_v9 = vpop.f32.mrb[58].mxu0  ;;  %v1992_v62 = vpop.f32.mrb[26].mxu1  ;;  %3290 = vmatprep.mubr.bf16.mxu1 %v2417_v56 }
 0x2d5   : > { %v2224_v21 = vmax.f32 %v1766_v9, 0.0  ;;  %v2228_v63 = vmax.f32 %v1992_v62, 0.0  ;;  %v1768_v44 = vpop.f32.mrb[59].mxu0  ;;  %v1994_v41 = vpop.f32.mrb[27].mxu1  ;;  %3291 = vmatmul.mubr.bf16.gmra.mrb[52].mxu1 %v2416_v24  ;;  %v2344_v38 = vmul.f32 %v2216_v2, %v2216_v2  ;;  %v5774_v3 = vmul.f32 %v2220_v23, %v2220_v23  ;;  %v4411_v62 = vld [vmem:[%s6173_s4 + $0x1c4] ss:$8 sps:$4 sm:$0xff]  }
 0x2d6   : > { %v2225_v35 = vmax.f32 %v1768_v44, 0.0  ;;  %v2229_v50 = vmax.f32 %v1994_v41, 0.0  ;;  %3342 = vmatpush1.bf16.msra.mxu1 %v4403_v32  ;;  %v2345_v56 = vmul.f32 %v2217_v33, %v2217_v33  ;;  %v5781_v24 = vmul.f32 %v2221_v5, %v2221_v5  ;;  %v4409_v33 = vld [vmem:[%s6173_s4 + $0x1c0] ss:$8 sps:$4 sm:$0xff]  }
 0x2d7   : > { %v2352_v4 = vmul.f32 %v2224_v21, %v2224_v21  ;;  %v5776_v37 = vmul.f32 %v2228_v63, %v2228_v63  ;;  %3343 = vmatprep.subr.bf16.mxu1 %v4408_v20 }
 0x2d8   : > { %v2353_v41 = vmul.f32 %v2225_v35, %v2225_v35  ;;  %v5783_v44 = vmul.f32 %v2229_v50, %v2229_v50 }
 0x2d9   : > { %v2424_v32 = vpack.c.bf16 %v2352_v4, %v2344_v38  ;;  %v4414_v38 = vld [vmem:[%s6173_s4 + $0x1d4] ss:$8 sps:$4 sm:$0xff]  }
 0x2da   : > { %v2425_v23 = vpack.c.bf16 %v2353_v41, %v2345_v56  ;;  %3344 = vmatpush1.bf16.msra.mxu1 %v4406_v45  ;;  %v1772_v20 = vpop.f32.mrb[60].mxu0  ;;  %v1998_v9 = vpop.f32.mrb[28].mxu1 }
 0x2db   : > { %v2232_v5 = vmax.f32 %v1772_v20, 0.0  ;;  %v2236_v21 = vmax.f32 %v1998_v9, 0.0  ;;  %v1774_v35 = vpop.f32.mrb[61].mxu0  ;;  %v2000_v50 = vpop.f32.mrb[29].mxu1  ;;  %3345 = vmatprep.subr.bf16.mxu1 %v4411_v62  ;;  %v4412_v62 = vld [vmem:[%s6173_s4 + $0x1d0] ss:$8 sps:$4 sm:$0xff]  }
 0x2dc   : > { %v2233_v4 = vmax.f32 %v1774_v35, 0.0  ;;  %v2237_v56 = vmax.f32 %v2000_v50, 0.0  ;;  %v1776_v41 = vpop.f32.mrb[62].mxu0  ;;  %v2002_v2 = vpop.f32.mrb[30].mxu1  ;;  %3300 = vmatprep.mubr.bf16.mxu1 %v2425_v23 }
 0x2dd   : > { %v2240_v45 = vmax.f32 %v1776_v41, 0.0  ;;  %v2244_v63 = vmax.f32 %v2002_v2, 0.0  ;;  %v1778_v61 = vpop.f32.mrb[63].mxu0  ;;  %v2004_v59 = vpop.f32.mrb[31].mxu1  ;;  %3301 = vmatmul.mubr.bf16.gmra.mrb[56].mxu1 %v2424_v32  ;;  %v2360_v9 = vmul.f32 %v2232_v5, %v2232_v5  ;;  %v5798_v26 = vmul.f32 %v2236_v21, %v2236_v21  ;;  %v4417_v2 = vld [vmem:[%s6173_s4 + $0x1e4] ss:$8 sps:$4 sm:$0xff]  }
 0x2de   : > { %v2241_v52 = vmax.f32 %v1778_v61, 0.0  ;;  %v2245_v20 = vmax.f32 %v2004_v59, 0.0  ;;  %3346 = vmatpush1.bf16.msra.mxu1 %v4409_v33  ;;  %v2361_v23 = vmul.f32 %v2233_v4, %v2233_v4  ;;  %v5805_v32 = vmul.f32 %v2237_v56, %v2237_v56  ;;  %v4415_v41 = vld [vmem:[%s6173_s4 + $0x1e0] ss:$8 sps:$4 sm:$0xff]  }
 0x2df   : > { %v2368_v35 = vmul.f32 %v2240_v45, %v2240_v45  ;;  %v5800_v50 = vmul.f32 %v2244_v63, %v2244_v63  ;;  %3347 = vmatprep.subr.bf16.mxu1 %v4414_v38 }
 0x2e0   : > { %v2369_v59 = vmul.f32 %v2241_v52, %v2241_v52  ;;  %v5807_v61 = vmul.f32 %v2245_v20, %v2245_v20  ;;  %v4420_v52 = vld [vmem:[%s6173_s4 + $0x1f4] ss:$8 sps:$4 sm:$0xff]  }
 0x2e1   : > { %v2432_v33 = vpack.c.bf16 %v2368_v35, %v2360_v9 }
 0x2e2   : > { %v2433_v21 = vpack.c.bf16 %v2369_v59, %v2361_v23  ;;  %3348 = vmatpush1.bf16.msra.mxu1 %v4412_v62  ;;  %v1815_v38 = vpop.f32.mrb[64].mxu0  ;;  %v4418_v62 = vld [vmem:[%s6173_s4 + $0x1f0] ss:$8 sps:$4 sm:$0xff]  }
 0x2e3   : > { %v2122_v4 = vmax.f32 %v1815_v38, 0.0  ;;  %v1817_v56 = vpop.f32.mrb[65].mxu0  ;;  %3349 = vmatprep.subr.bf16.mxu1 %v4417_v2  ;;  %v4423_v2 = vld [vmem:[%s6173_s4 + $0x204] ss:$8 sps:$4 sm:$0xff]  }
 0x2e4   : > { %v2123_v45 = vmax.f32 %v1817_v56, 0.0  ;;  %v1819_v20 = vpop.f32.mrb[66].mxu0  ;;  %3310 = vmatprep.mubr.bf16.mxu1 %v2433_v21 }
 0x2e5   : > { %v2130_v9 = vmax.f32 %v1819_v20, 0.0  ;;  %v1821_v35 = vpop.f32.mrb[67].mxu0  ;;  %3311 = vmatmul.mubr.bf16.gmra.mrb[60].mxu1 %v2432_v33  ;;  %v2250_v59 = vmul.f32 %v2122_v4, %v2122_v4  ;;  %v4421_v33 = vld [vmem:[%s6173_s4 + $0x200] ss:$8 sps:$4 sm:$0xff]   ;;  %v4429_v4 = vld [vmem:[%s6173_s4 + $0x214] ss:$8 sps:$4 sm:$0xff]  }
 0x2e6   : > { %v2131_v23 = vmax.f32 %v1821_v35, 0.0  ;;  %3350 = vmatpush1.bf16.msra.mxu1 %v4415_v41  ;;  %v2251_v5 = vmul.f32 %v2123_v45, %v2123_v45 }
 0x2e7   : > { %v2258_v38 = vmul.f32 %v2130_v9, %v2130_v9  ;;  %3351 = vmatprep.subr.bf16.mxu1 %v4420_v52 }
 0x2e8   : > { %v2259_v56 = vmul.f32 %v2131_v23, %v2131_v23 }
 0x2e9   : > { %v2378_v63 = vpack.c.bf16 %v2258_v38, %v2250_v59 }
 0x2ea   : > { %v2379_v21 = vpack.c.bf16 %v2259_v56, %v2251_v5  ;;  %3352 = vmatpush1.bf16.msra.mxu1 %v4418_v62  ;;  %v1825_v20 = vpop.f32.mrb[68].mxu0  ;;  %v4427_v62 = vld [vmem:[%s6173_s4 + $0x210] ss:$8 sps:$4 sm:$0xff]  }
 0x2eb   : > { %v2138_v41 = vmax.f32 %v1825_v20, 0.0  ;;  %v1827_v35 = vpop.f32.mrb[69].mxu0  ;;  %3434 = vmatprep.subr.bf16.mxu1 %v4423_v2  ;;  %v4435_v2 = vld [vmem:[%s6173_s4 + $0x224] ss:$8 sps:$4 sm:$0xff]  }
 0x2ec   : > { %v2139_v52 = vmax.f32 %v1827_v35, 0.0  ;;  %v1829_v9 = vpop.f32.mrb[70].mxu0  ;;  %3353 = vmatprep.mubr.bf16.mxu1 %v2379_v21 }
 0x2ed   : > { %v2146_v45 = vmax.f32 %v1829_v9, 0.0  ;;  %v1831_v23 = vpop.f32.mrb[71].mxu0  ;;  %3354 = vmatmul.mubr.bf16.vlgmr.msra.gmra.mrb[32].mxu1 %v2378_v63  ;;  %v2266_v59 = vmul.f32 %v2138_v41, %v2138_v41  ;;  %v4433_v63 = vld [vmem:[%s6173_s4 + $0x220] ss:$8 sps:$4 sm:$0xff]   ;;  %v4441_v41 = vld [vmem:[%s6173_s4 + $0x234] ss:$8 sps:$4 sm:$0xff]  }
 0x2ee   : > { %v2147_v5 = vmax.f32 %v1831_v23, 0.0  ;;  %3435 = vmatpush1.bf16.msra.mxu1 %v4421_v33  ;;  %v2267_v56 = vmul.f32 %v2139_v52, %v2139_v52 }
 0x2ef   : > { %v2274_v38 = vmul.f32 %v2146_v45, %v2146_v45  ;;  %3436 = vmatprep.subr.bf16.mxu1 %v4429_v4 }
 0x2f0   : > { %v2275_v20 = vmul.f32 %v2147_v5, %v2147_v5 }
 0x2f1   : > { %v2386_v35 = vpack.c.bf16 %v2274_v38, %v2266_v59 }
 0x2f2   : > { %v2387_v21 = vpack.c.bf16 %v2275_v20, %v2267_v56  ;;  %3437 = vmatpush1.bf16.msra.mxu1 %v4427_v62  ;;  %v1835_v9 = vpop.f32.mrb[72].mxu0  ;;  %v4439_v62 = vld [vmem:[%s6173_s4 + $0x230] ss:$8 sps:$4 sm:$0xff]  }
 0x2f3   : > { %v2154_v33 = vmax.f32 %v1835_v9, 0.0  ;;  %v1837_v23 = vpop.f32.mrb[73].mxu0  ;;  %3438 = vmatprep.subr.bf16.mxu1 %v4435_v2  ;;  %v4447_v2 = vld [vmem:[%s6173_s4 + $0x244] ss:$8 sps:$4 sm:$0xff]  }
 0x2f4   : > { %v2155_v4 = vmax.f32 %v1837_v23, 0.0  ;;  %v1839_v45 = vpop.f32.mrb[74].mxu0  ;;  %3363 = vmatprep.mubr.bf16.mxu1 %v2387_v21 }
 0x2f5   : > { %v2162_v52 = vmax.f32 %v1839_v45, 0.0  ;;  %v1841_v5 = vpop.f32.mrb[75].mxu0  ;;  %3364 = vmatmul.mubr.bf16.gmra.mrb[36].mxu1 %v2386_v35  ;;  %v2282_v38 = vmul.f32 %v2154_v33, %v2154_v33  ;;  %v4445_v35 = vld [vmem:[%s6173_s4 + $0x240] ss:$8 sps:$4 sm:$0xff]   ;;  %v4453_v33 = vld [vmem:[%s6173_s4 + $0x254] ss:$8 sps:$4 sm:$0xff]  }
 0x2f6   : > { %v2163_v59 = vmax.f32 %v1841_v5, 0.0  ;;  %3439 = vmatpush1.bf16.msra.mxu1 %v4433_v63  ;;  %v2283_v20 = vmul.f32 %v2155_v4, %v2155_v4 }
 0x2f7   : > { %v2290_v56 = vmul.f32 %v2162_v52, %v2162_v52  ;;  %3440 = vmatprep.subr.bf16.mxu1 %v4441_v41 }
 0x2f8   : > { %v2291_v9 = vmul.f32 %v2163_v59, %v2163_v59 }
 0x2f9   : > { %v2394_v23 = vpack.c.bf16 %v2290_v56, %v2282_v38 }
 0x2fa   : > { %v2395_v21 = vpack.c.bf16 %v2291_v9, %v2283_v20  ;;  %3441 = vmatpush1.bf16.msra.mxu1 %v4439_v62  ;;  %v1845_v45 = vpop.f32.mrb[76].mxu0  ;;  %v4451_v62 = vld [vmem:[%s6173_s4 + $0x250] ss:$8 sps:$4 sm:$0xff]  }
 0x2fb   : > { %v2170_v63 = vmax.f32 %v1845_v45, 0.0  ;;  %v1847_v5 = vpop.f32.mrb[77].mxu0  ;;  %3442 = vmatprep.subr.bf16.mxu1 %v4447_v2  ;;  %v4459_v2 = vld [vmem:[%s6173_s4 + $0x264] ss:$8 sps:$4 sm:$0xff]  }
 0x2fc   : > { %v2171_v41 = vmax.f32 %v1847_v5, 0.0  ;;  %v1849_v52 = vpop.f32.mrb[78].mxu0  ;;  %3373 = vmatprep.mubr.bf16.mxu1 %v2395_v21 }
 0x2fd   : > { %v2178_v4 = vmax.f32 %v1849_v52, 0.0  ;;  %v1851_v59 = vpop.f32.mrb[79].mxu0  ;;  %3374 = vmatmul.mubr.bf16.gmra.mrb[40].mxu1 %v2394_v23  ;;  %v2298_v56 = vmul.f32 %v2170_v63, %v2170_v63  ;;  %v4457_v23 = vld [vmem:[%s6173_s4 + $0x260] ss:$8 sps:$4 sm:$0xff]   ;;  %v4465_v63 = vld [vmem:[%s6173_s4 + $0x274] ss:$8 sps:$4 sm:$0xff]  }
 0x2fe   : > { %v2179_v38 = vmax.f32 %v1851_v59, 0.0  ;;  %3443 = vmatpush1.bf16.msra.mxu1 %v4445_v35  ;;  %v2299_v9 = vmul.f32 %v2171_v41, %v2171_v41 }
 0x2ff   : > { %v2306_v20 = vmul.f32 %v2178_v4, %v2178_v4  ;;  %3444 = vmatprep.subr.bf16.mxu1 %v4453_v33 }
 0x300   : > { %v2307_v45 = vmul.f32 %v2179_v38, %v2179_v38 }
 0x301   : > { %v2402_v5 = vpack.c.bf16 %v2306_v20, %v2298_v56 }
 0x302   : > { %v2403_v21 = vpack.c.bf16 %v2307_v45, %v2299_v9  ;;  %3445 = vmatpush1.bf16.msra.mxu1 %v4451_v62  ;;  %v1855_v52 = vpop.f32.mrb[80].mxu0  ;;  %v4463_v62 = vld [vmem:[%s6173_s4 + $0x270] ss:$8 sps:$4 sm:$0xff]  }
 0x303   : > { %v2186_v35 = vmax.f32 %v1855_v52, 0.0  ;;  %v1857_v59 = vpop.f32.mrb[81].mxu0  ;;  %3446 = vmatprep.subr.bf16.mxu1 %v4459_v2  ;;  %v4471_v2 = vld [vmem:[%s6173_s4 + $0x284] ss:$8 sps:$4 sm:$0xff]  }
 0x304   : > { %v2187_v33 = vmax.f32 %v1857_v59, 0.0  ;;  %v1859_v4 = vpop.f32.mrb[82].mxu0  ;;  %3383 = vmatprep.mubr.bf16.mxu1 %v2403_v21 }
 0x305   : > { %v2194_v41 = vmax.f32 %v1859_v4, 0.0  ;;  %v1861_v38 = vpop.f32.mrb[83].mxu0  ;;  %3384 = vmatmul.mubr.bf16.gmra.mrb[44].mxu1 %v2402_v5  ;;  %v2314_v20 = vmul.f32 %v2186_v35, %v2186_v35  ;;  %v4469_v5 = vld [vmem:[%s6173_s4 + $0x280] ss:$8 sps:$4 sm:$0xff]   ;;  %v4477_v35 = vld [vmem:[%s6173_s4 + $0x294] ss:$8 sps:$4 sm:$0xff]  }
 0x306   : > { %v2195_v56 = vmax.f32 %v1861_v38, 0.0  ;;  %3447 = vmatpush1.bf16.msra.mxu1 %v4457_v23  ;;  %v2315_v45 = vmul.f32 %v2187_v33, %v2187_v33 }
 0x307   : > { %v2322_v9 = vmul.f32 %v2194_v41, %v2194_v41  ;;  %3448 = vmatprep.subr.bf16.mxu1 %v4465_v63 }
 0x308   : > { %v2323_v52 = vmul.f32 %v2195_v56, %v2195_v56 }
 0x309   : > { %v2410_v59 = vpack.c.bf16 %v2322_v9, %v2314_v20 }
 0x30a   : > { %v2411_v21 = vpack.c.bf16 %v2323_v52, %v2315_v45  ;;  %3449 = vmatpush1.bf16.msra.mxu1 %v4463_v62  ;;  %v1865_v4 = vpop.f32.mrb[84].mxu0  ;;  %v4475_v62 = vld [vmem:[%s6173_s4 + $0x290] ss:$8 sps:$4 sm:$0xff]  }
 0x30b   : > { %v2202_v23 = vmax.f32 %v1865_v4, 0.0  ;;  %v1867_v38 = vpop.f32.mrb[85].mxu0  ;;  %3450 = vmatprep.subr.bf16.mxu1 %v4471_v2  ;;  %v4483_v2 = vld [vmem:[%s6173_s4 + $0x2a4] ss:$8 sps:$4 sm:$0xff]  }
 0x30c   : > { %v2203_v63 = vmax.f32 %v1867_v38, 0.0  ;;  %v1869_v41 = vpop.f32.mrb[86].mxu0  ;;  %3393 = vmatprep.mubr.bf16.mxu1 %v2411_v21 }
 0x30d   : > { %v2210_v33 = vmax.f32 %v1869_v41, 0.0  ;;  %v1871_v56 = vpop.f32.mrb[87].mxu0  ;;  %3394 = vmatmul.mubr.bf16.gmra.mrb[48].mxu1 %v2410_v59  ;;  %v2330_v9 = vmul.f32 %v2202_v23, %v2202_v23  ;;  %v4481_v59 = vld [vmem:[%s6173_s4 + $0x2a0] ss:$8 sps:$4 sm:$0xff]   ;;  %v4489_v23 = vld [vmem:[%s6173_s4 + $0x2b4] ss:$8 sps:$4 sm:$0xff]  }
 0x30e   : > { %v2211_v20 = vmax.f32 %v1871_v56, 0.0  ;;  %3451 = vmatpush1.bf16.msra.mxu1 %v4469_v5  ;;  %v2331_v52 = vmul.f32 %v2203_v63, %v2203_v63 }
 0x30f   : > { %v2338_v45 = vmul.f32 %v2210_v33, %v2210_v33  ;;  %3452 = vmatprep.subr.bf16.mxu1 %v4477_v35 }
 0x310   : > { %v2339_v4 = vmul.f32 %v2211_v20, %v2211_v20 }
 0x311   : > { %v2418_v38 = vpack.c.bf16 %v2338_v45, %v2330_v9 }
 0x312   : > { %v2419_v21 = vpack.c.bf16 %v2339_v4, %v2331_v52  ;;  %3453 = vmatpush1.bf16.msra.mxu1 %v4475_v62  ;;  %v1875_v41 = vpop.f32.mrb[88].mxu0  ;;  %v4487_v62 = vld [vmem:[%s6173_s4 + $0x2b0] ss:$8 sps:$4 sm:$0xff]  }
 0x313   : > { %v2218_v5 = vmax.f32 %v1875_v41, 0.0  ;;  %v1877_v56 = vpop.f32.mrb[89].mxu0  ;;  %3454 = vmatprep.subr.bf16.mxu1 %v4483_v2  ;;  %v4495_v2 = vld [vmem:[%s6173_s4 + $0x2c4] ss:$8 sps:$4 sm:$0xff]  }
 0x314   : > { %v2219_v35 = vmax.f32 %v1877_v56, 0.0  ;;  %v1879_v33 = vpop.f32.mrb[90].mxu0  ;;  %3403 = vmatprep.mubr.bf16.mxu1 %v2419_v21 }
 0x315   : > { %v2226_v63 = vmax.f32 %v1879_v33, 0.0  ;;  %v1881_v20 = vpop.f32.mrb[91].mxu0  ;;  %3404 = vmatmul.mubr.bf16.gmra.mrb[52].mxu1 %v2418_v38  ;;  %v2346_v45 = vmul.f32 %v2218_v5, %v2218_v5  ;;  %v4493_v38 = vld [vmem:[%s6173_s4 + $0x2c0] ss:$8 sps:$4 sm:$0xff]   ;;  %v4501_v5 = vld [vmem:[%s6173_s4 + $0x2d4] ss:$8 sps:$4 sm:$0xff]  }
 0x316   : > { %v2227_v9 = vmax.f32 %v1881_v20, 0.0  ;;  %3455 = vmatpush1.bf16.msra.mxu1 %v4481_v59  ;;  %v2347_v4 = vmul.f32 %v2219_v35, %v2219_v35 }
 0x317   : > { %v2354_v52 = vmul.f32 %v2226_v63, %v2226_v63  ;;  %3456 = vmatprep.subr.bf16.mxu1 %v4489_v23 }
 0x318   : > { %v2355_v41 = vmul.f32 %v2227_v9, %v2227_v9 }
 0x319   : > { %v2426_v56 = vpack.c.bf16 %v2354_v52, %v2346_v45 }
 0x31a   : > { %v2427_v21 = vpack.c.bf16 %v2355_v41, %v2347_v4  ;;  %3457 = vmatpush1.bf16.msra.mxu1 %v4487_v62  ;;  %v1885_v33 = vpop.f32.mrb[92].mxu0  ;;  %v4499_v62 = vld [vmem:[%s6173_s4 + $0x2d0] ss:$8 sps:$4 sm:$0xff]  }
 0x31b   : > { %v2234_v59 = vmax.f32 %v1885_v33, 0.0  ;;  %v1887_v20 = vpop.f32.mrb[93].mxu0  ;;  %3458 = vmatprep.subr.bf16.mxu1 %v4495_v2  ;;  %v4507_v2 = vld [vmem:[%s6173_s4 + $0x2e4] ss:$8 sps:$4 sm:$0xff]  }
 0x31c   : > { %v2235_v23 = vmax.f32 %v1887_v20, 0.0  ;;  %v1889_v63 = vpop.f32.mrb[94].mxu0  ;;  %3413 = vmatprep.mubr.bf16.mxu1 %v2427_v21 }
 0x31d   : > { %v2242_v35 = vmax.f32 %v1889_v63, 0.0  ;;  %v1891_v9 = vpop.f32.mrb[95].mxu0  ;;  %3414 = vmatmul.mubr.bf16.gmra.mrb[56].mxu1 %v2426_v56  ;;  %v2362_v52 = vmul.f32 %v2234_v59, %v2234_v59  ;;  %v4505_v56 = vld [vmem:[%s6173_s4 + $0x2e0] ss:$8 sps:$4 sm:$0xff]   ;;  %v4513_v59 = vld [vmem:[%s6173_s4 + $0x2f4] ss:$8 sps:$4 sm:$0xff]  }
 0x31e   : > { %v2243_v45 = vmax.f32 %v1891_v9, 0.0  ;;  %3459 = vmatpush1.bf16.msra.mxu1 %v4493_v38  ;;  %v2363_v41 = vmul.f32 %v2235_v23, %v2235_v23 }
 0x31f   : > { %v2370_v4 = vmul.f32 %v2242_v35, %v2242_v35  ;;  %3460 = vmatprep.subr.bf16.mxu1 %v4501_v5 }
 0x320   : > { %v2371_v33 = vmul.f32 %v2243_v45, %v2243_v45 }
 0x321   : > { %v2434_v20 = vpack.c.bf16 %v2370_v4, %v2362_v52  ;;  %v4511_v4 = vld [vmem:[%s6173_s4 + $0x2f0] ss:$8 sps:$4 sm:$0xff]  }
 0x322   : > { %v2435_v21 = vpack.c.bf16 %v2371_v33, %v2363_v41  ;;  %3461 = vmatpush1.bf16.msra.mxu1 %v4499_v62  ;;  %v2041_v63 = vpop.f32.mrb[96].mxu0  ;;  %v6209_v62 = vpack.c.bf16 %v5633_v53, %v5631_v42  ;;  %v4549_v42 = vld [vmem:[%s6173_s4 + $0x304] ss:$8 sps:$4 sm:$0xff]  }
 0x323   : > { %v2126_v38 = vmax.f32 %v2041_v63, 0.0  ;;  %v2043_v9 = vpop.f32.mrb[97].mxu0  ;;  %3462 = vmatprep.subr.bf16.mxu1 %v4507_v2 }
 0x324   : > { %v2127_v5 = vmax.f32 %v2043_v9, 0.0  ;;  %v2045_v35 = vpop.f32.mrb[98].mxu0  ;;  %3423 = vmatprep.mubr.bf16.mxu1 %v2435_v21 }
 0x325   : > { %v2134_v23 = vmax.f32 %v2045_v35, 0.0  ;;  %v2047_v45 = vpop.f32.mrb[99].mxu0  ;;  %3424 = vmatmul.mubr.bf16.gmra.mrb[60].mxu1 %v2434_v20  ;;  %v2254_v2 = vmul.f32 %v2126_v38, %v2126_v38 }
 0x326   : > { %v2135_v52 = vmax.f32 %v2047_v45, 0.0  ;;  %3463 = vmatpush1.bf16.msra.mxu1 %v4505_v56  ;;  %3466 = vmatprep.mubr.bf16.mxu1 %v6209_v62  ;;  %v2255_v33 = vmul.f32 %v2127_v5, %v2127_v5 }
 0x327   : > { %v2262_v41 = vmul.f32 %v2134_v23, %v2134_v23  ;;  %3464 = vmatprep.subr.bf16.mxu1 %v4513_v59  ;;  %v6210_v59 = vpack.c.bf16 %v5629_v39, %v5627_v36  ;;  %v4550_v23 = vld [vmem:[%s6173_s4 + $0x300] ss:$8 sps:$4 sm:$0xff]  }
 0x328   : > { %v2263_v63 = vmul.f32 %v2135_v52, %v2135_v52  ;;  %v6211_v52 = vpack.c.bf16 %v5663_v10, %v5661_v48  ;;  %v4553_v10 = vld [vmem:[%s6173_s4 + $0x324] ss:$8 sps:$4 sm:$0xff]  }
 0x329   : > { %v2382_v9 = vpack.c.bf16 %v2262_v41, %v2254_v2  ;;  %v4551_v41 = vld [vmem:[%s6173_s4 + $0x314] ss:$8 sps:$4 sm:$0xff]  }
 0x32a   : > { %v2383_v21 = vpack.c.bf16 %v2263_v63, %v2255_v33  ;;  %3465 = vmatpush1.bf16.msra.mxu1 %v4511_v4  ;;  %v2051_v35 = vpop.f32.mrb[100].mxu0 }
 0x32b   : > { %v2142_v20 = vmax.f32 %v2051_v35, 0.0  ;;  %v2053_v45 = vpop.f32.mrb[101].mxu0  ;;  %4117 = vmatprep.subr.bf16.mxu1 %v4549_v42 }
 0x32c   : > { %v2143_v53 = vmax.f32 %v2053_v45, 0.0  ;;  %v2055_v56 = vpop.f32.mrb[102].mxu0  ;;  %3579 = vmatprep.mubr.bf16.mxu0 %v2383_v21 }
 0x32d   : > { %v2150_v62 = vmax.f32 %v2055_v56, 0.0  ;;  %v2057_v38 = vpop.f32.mrb[103].mxu0  ;;  %3467 = vmatmul.mubr.bf16.vlgmr.msra.gmra.mrb[32].mxu1 %v6210_v59  ;;  %3580 = vmatmul.mubr.bf16.vlgmr.msra.gmra.mrb[128].mxu0 %v2382_v9  ;;  %v2270_v4 = vmul.f32 %v2142_v20, %v2142_v20  ;;  %v4552_v9 = vld [vmem:[%s6173_s4 + $0x310] ss:$8 sps:$4 sm:$0xff]   ;;  %v6212_v56 = vpack.c.bf16 %v5656_v60, %v5654_v29  ;;  %v6213_v59 = vpack.c.bf16 %v5687_v6, %v5685_v57  ;;  %v4557_v6 = vld [vmem:[%s6173_s4 + $0x344] ss:$8 sps:$4 sm:$0xff]  }
 0x32e   : > { %v2151_v5 = vmax.f32 %v2057_v38, 0.0  ;;  %4133 = vmatpush1.bf16.msra.mxu1 %v4550_v23  ;;  %3476 = vmatprep.mubr.bf16.mxu1 %v6211_v52  ;;  %v2271_v36 = vmul.f32 %v2143_v53, %v2143_v53  ;;  %v4554_v38 = vld [vmem:[%s6173_s4 + $0x320] ss:$8 sps:$4 sm:$0xff]   ;;  %v4555_v52 = vld [vmem:[%s6173_s4 + $0x334] ss:$8 sps:$4 sm:$0xff]  }
 0x32f   : > { %v2278_v2 = vmul.f32 %v2150_v62, %v2150_v62  ;;  %4118 = vmatprep.subr.bf16.mxu1 %v4551_v41  ;;  %v4556_v41 = vld [vmem:[%s6173_s4 + $0x330] ss:$8 sps:$4 sm:$0xff]  }
 0x330   : > { %v2279_v39 = vmul.f32 %v2151_v5, %v2151_v5 }
 0x331   : > { %v2390_v33 = vpack.c.bf16 %v2278_v2, %v2270_v4 }
 0x332   : > { %v2391_v63 = vpack.c.bf16 %v2279_v39, %v2271_v36  ;;  %4134 = vmatpush1.bf16.msra.mxu1 %v4552_v9  ;;  %v2061_v21 = vpop.f32.mrb[104].mxu0 }
 0x333   : > { %v2158_v35 = vmax.f32 %v2061_v21, 0.0  ;;  %v2063_v48 = vpop.f32.mrb[105].mxu0  ;;  %4119 = vmatprep.subr.bf16.mxu1 %v4553_v10  ;;  %v4558_v10 = vld [vmem:[%s6173_s4 + $0x340] ss:$8 sps:$4 sm:$0xff]  }
 0x334   : > { %v2159_v20 = vmax.f32 %v2063_v48, 0.0  ;;  %v2065_v45 = vpop.f32.mrb[106].mxu0  ;;  %3589 = vmatprep.mubr.bf16.mxu0 %v2391_v63 }
 0x335   : > { %v2166_v42 = vmax.f32 %v2065_v45, 0.0  ;;  %v2067_v53 = vpop.f32.mrb[107].mxu0  ;;  %3477 = vmatmul.mubr.bf16.gmra.mrb[36].mxu1 %v6212_v56  ;;  %3590 = vmatmul.mubr.bf16.gmra.mrb[132].mxu0 %v2390_v33  ;;  %v2286_v5 = vmul.f32 %v2158_v35, %v2158_v35  ;;  %v6214_v35 = vpack.c.bf16 %v5680_v55, %v5678_v22 }
 0x336   : > { %v2167_v62 = vmax.f32 %v2067_v53, 0.0  ;;  %4135 = vmatpush1.bf16.msra.mxu1 %v4554_v38  ;;  %3486 = vmatprep.mubr.bf16.mxu1 %v6213_v59  ;;  %v2287_v29 = vmul.f32 %v2159_v20, %v2159_v20  ;;  %v6215_v20 = vpack.c.bf16 %v5711_v58, %v5709_v1  ;;  %v4559_v53 = vld [vmem:[%s6173_s4 + $0x354] ss:$8 sps:$4 sm:$0xff]   ;;  %v4560_v38 = vld [vmem:[%s6173_s4 + $0x350] ss:$8 sps:$4 sm:$0xff]  }
 0x337   : > { %v2294_v23 = vmul.f32 %v2166_v42, %v2166_v42  ;;  %4120 = vmatprep.subr.bf16.mxu1 %v4555_v52  ;;  %v4561_v58 = vld [vmem:[%s6173_s4 + $0x364] ss:$8 sps:$4 sm:$0xff]  }
 0x338   : > { %v2295_v60 = vmul.f32 %v2167_v62, %v2167_v62 }
 0x339   : > { %v2398_v4 = vpack.c.bf16 %v2294_v23, %v2286_v5 }
 0x33a   : > { %v2399_v2 = vpack.c.bf16 %v2295_v60, %v2287_v29  ;;  %4136 = vmatpush1.bf16.msra.mxu1 %v4556_v41  ;;  %v2071_v36 = vpop.f32.mrb[108].mxu0  ;;  %v4562_v41 = vld [vmem:[%s6173_s4 + $0x360] ss:$8 sps:$4 sm:$0xff]  }
 0x33b   : > { %v2174_v39 = vmax.f32 %v2071_v36, 0.0  ;;  %v2073_v57 = vpop.f32.mrb[109].mxu0  ;;  %4121 = vmatprep.subr.bf16.mxu1 %v4557_v6  ;;  %v6217_v36 = vpack.c.bf16 %v5735_v40, %v5733_v0  ;;  %v4564_v40 = vld [vmem:[%s6173_s4 + $0x370] ss:$8 sps:$4 sm:$0xff]  }
 0x33c   : > { %v2175_v33 = vmax.f32 %v2073_v57, 0.0  ;;  %v2075_v63 = vpop.f32.mrb[110].mxu0  ;;  %3599 = vmatprep.mubr.bf16.mxu0 %v2399_v2 }
 0x33d   : > { %v2182_v9 = vmax.f32 %v2075_v63, 0.0  ;;  %v2077_v21 = vpop.f32.mrb[111].mxu0  ;;  %3487 = vmatmul.mubr.bf16.gmra.mrb[40].mxu1 %v6214_v35  ;;  %3600 = vmatmul.mubr.bf16.gmra.mrb[136].mxu0 %v2398_v4  ;;  %v2302_v45 = vmul.f32 %v2174_v39, %v2174_v39  ;;  %v6216_v4 = vpack.c.bf16 %v5704_v27, %v5702_v47  ;;  %v4563_v47 = vld [vmem:[%s6173_s4 + $0x374] ss:$8 sps:$4 sm:$0xff]   ;;  %v4565_v35 = vld [vmem:[%s6173_s4 + $0x384] ss:$8 sps:$4 sm:$0xff]  }
 0x33e   : > { %v2183_v48 = vmax.f32 %v2077_v21, 0.0  ;;  %4137 = vmatpush1.bf16.msra.mxu1 %v4558_v10  ;;  %3496 = vmatprep.mubr.bf16.mxu1 %v6215_v20  ;;  %v2303_v22 = vmul.f32 %v2175_v33, %v2175_v33 }
 0x33f   : > { %v2310_v42 = vmul.f32 %v2182_v9, %v2182_v9  ;;  %4122 = vmatprep.subr.bf16.mxu1 %v4559_v53 }
 0x340   : > { %v2311_v55 = vmul.f32 %v2183_v48, %v2183_v48 }
 0x341   : > { %v2406_v56 = vpack.c.bf16 %v2310_v42, %v2302_v45  ;;  %v6218_v42 = vpack.c.bf16 %v5728_v15, %v5726_v18 }
 0x342   : > { %v2407_v62 = vpack.c.bf16 %v2311_v55, %v2303_v22  ;;  %4138 = vmatpush1.bf16.msra.mxu1 %v4560_v38  ;;  %v2081_v59 = vpop.f32.mrb[112].mxu0  ;;  %v4566_v22 = vld [vmem:[%s6173_s4 + $0x380] ss:$8 sps:$4 sm:$0xff]   ;;  %v6219_v55 = vpack.c.bf16 %v5759_v12, %v5757_v14  ;;  %v4567_v38 = vld [vmem:[%s6173_s4 + $0x394] ss:$8 sps:$4 sm:$0xff]  }
 0x343   : > { %v2190_v5 = vmax.f32 %v2081_v59, 0.0  ;;  %v2083_v1 = vpop.f32.mrb[113].mxu0  ;;  %4123 = vmatprep.subr.bf16.mxu1 %v4561_v58  ;;  %v4568_v12 = vld [vmem:[%s6173_s4 + $0x390] ss:$8 sps:$4 sm:$0xff]  }
 0x344   : > { %v2191_v23 = vmax.f32 %v2083_v1, 0.0  ;;  %v2085_v52 = vpop.f32.mrb[114].mxu0  ;;  %3609 = vmatprep.mubr.bf16.mxu0 %v2407_v62 }
 0x345   : > { %v2198_v29 = vmax.f32 %v2085_v52, 0.0  ;;  %v2087_v60 = vpop.f32.mrb[115].mxu0  ;;  %3497 = vmatmul.mubr.bf16.gmra.mrb[44].mxu1 %v6216_v4  ;;  %3610 = vmatmul.mubr.bf16.gmra.mrb[140].mxu0 %v2406_v56  ;;  %v5987_v39 = vmul.f32 %v2190_v5, %v2190_v5 }
 0x346   : > { %v2199_v2 = vmax.f32 %v2087_v60, 0.0  ;;  %4139 = vmatpush1.bf16.msra.mxu1 %v4562_v41  ;;  %3506 = vmatprep.mubr.bf16.mxu1 %v6217_v36  ;;  %v5994_v27 = vmul.f32 %v2191_v23, %v2191_v23  ;;  %v4569_v23 = vld [vmem:[%s6173_s4 + $0x3a4] ss:$8 sps:$4 sm:$0xff]   ;;  %v4570_v36 = vld [vmem:[%s6173_s4 + $0x3a0] ss:$8 sps:$4 sm:$0xff]  }
 0x347   : > { %v5989_v57 = vmul.f32 %v2198_v29, %v2198_v29  ;;  %4124 = vmatprep.subr.bf16.mxu1 %v4563_v47  ;;  %v6221_v47 = vpack.c.bf16 %v5783_v44, %v5781_v24  ;;  %v4573_v44 = vld [vmem:[%s6173_s4 + $0x3c4] ss:$8 sps:$4 sm:$0xff]  }
 0x348   : > { %v5996_v6 = vmul.f32 %v2199_v2, %v2199_v2  ;;  %v6220_v2 = vpack.c.bf16 %v5752_v30, %v5750_v51 }
 0x349   : > { %v2414_v33 = vpack.c.bf16 %v5989_v57, %v5987_v39 }
 0x34a   : > { %v2415_v0 = vpack.c.bf16 %v5996_v6, %v5994_v27  ;;  %4140 = vmatpush1.bf16.msra.mxu1 %v4564_v40  ;;  %v2091_v63 = vpop.f32.mrb[116].mxu0 }
 0x34b   : > { %v2206_v9 = vmax.f32 %v2091_v63, 0.0  ;;  %v2093_v21 = vpop.f32.mrb[117].mxu0  ;;  %4125 = vmatprep.subr.bf16.mxu1 %v4565_v35 }
 0x34c   : > { %v2207_v48 = vmax.f32 %v2093_v21, 0.0  ;;  %v2095_v10 = vpop.f32.mrb[118].mxu0 }
 0x34d   : > { %v2214_v20 = vmax.f32 %v2095_v10, 0.0  ;;  %v2097_v45 = vpop.f32.mrb[119].mxu0  ;;  %3507 = vmatmul.mubr.bf16.gmra.mrb[48].mxu1 %v6218_v42  ;;  %v6017_v56 = vmul.f32 %v2206_v9, %v2206_v9  ;;  %v4571_v9 = vld [vmem:[%s6173_s4 + $0x3b4] ss:$8 sps:$4 sm:$0xff]  }
 0x34e   : > { %v2215_v53 = vmax.f32 %v2097_v45, 0.0  ;;  %4141 = vmatpush1.bf16.msra.mxu1 %v4566_v22  ;;  %3516 = vmatprep.mubr.bf16.mxu1 %v6219_v55  ;;  %v6024_v18 = vmul.f32 %v2207_v48, %v2207_v48  ;;  %v4572_v48 = vld [vmem:[%s6173_s4 + $0x3b0] ss:$8 sps:$4 sm:$0xff]   ;;  %v6222_v55 = vpack.c.bf16 %v5776_v37, %v5774_v3 }
 0x34f   : > { %v6019_v62 = vmul.f32 %v2214_v20, %v2214_v20  ;;  %4126 = vmatprep.subr.bf16.mxu1 %v4567_v38 }
 0x350   : > { %v6026_v15 = vmul.f32 %v2215_v53, %v2215_v53 }
 0x351   : > { %v2422_v59 = vpack.c.bf16 %v6019_v62, %v6017_v56 }
 0x352   : > { %v2423_v14 = vpack.c.bf16 %v6026_v15, %v6024_v18  ;;  %4142 = vmatpush1.bf16.msra.mxu1 %v4568_v12  ;;  %v2101_v5 = vpop.f32.mrb[120].mxu0  ;;  %v4574_v18 = vld [vmem:[%s6173_s4 + $0x3c0] ss:$8 sps:$4 sm:$0xff]   ;;  %v6223_v15 = vpack.c.bf16 %v5807_v61, %v5805_v32  ;;  %v4577_v32 = vld [vmem:[%s6173_s4 + $0x3e4] ss:$8 sps:$4 sm:$0xff]   ;;  %v6224_v61 = vpack.c.bf16 %v5800_v50, %v5798_v26 }
 0x353   : > { %v2222_v1 = vmax.f32 %v2101_v5, 0.0  ;;  %v2103_v58 = vpop.f32.mrb[121].mxu0  ;;  %4127 = vmatprep.subr.bf16.mxu1 %v4569_v23  ;;  %v4580_v26 = vld [vmem:[%s6173_s4 + $0x3f0] ss:$8 sps:$4 sm:$0xff]  }
 0x354   : > { %v2223_v52 = vmax.f32 %v2103_v58, 0.0  ;;  %v2105_v29 = vpop.f32.mrb[122].mxu0 }
 0x355   : > { %v2230_v60 = vmax.f32 %v2105_v29, 0.0  ;;  %v2107_v4 = vpop.f32.mrb[123].mxu0  ;;  %3517 = vmatmul.mubr.bf16.gmra.mrb[52].mxu1 %v6220_v2  ;;  %v2350_v40 = vmul.f32 %v2222_v1, %v2222_v1  ;;  %v4575_v1 = vld [vmem:[%s6173_s4 + $0x3d4] ss:$8 sps:$4 sm:$0xff]   ;;  %v4578_v29 = vld [vmem:[%s6173_s4 + $0x3e0] ss:$8 sps:$4 sm:$0xff]  }
 0x356   : > { %v2231_v41 = vmax.f32 %v2107_v4, 0.0  ;;  %4143 = vmatpush1.bf16.msra.mxu1 %v4570_v36  ;;  %3526 = vmatprep.mubr.bf16.mxu1 %v6221_v47  ;;  %v2351_v21 = vmul.f32 %v2223_v52, %v2223_v52  ;;  %v4576_v52 = vld [vmem:[%s6173_s4 + $0x3d0] ss:$8 sps:$4 sm:$0xff]  }
 0x357   : > { %v2358_v63 = vmul.f32 %v2230_v60, %v2230_v60  ;;  %4128 = vmatprep.subr.bf16.mxu1 %v4571_v9  ;;  %v4579_v60 = vld [vmem:[%s6173_s4 + $0x3f4] ss:$8 sps:$4 sm:$0xff]  }
 0x358   : > { %v2359_v51 = vmul.f32 %v2231_v41, %v2231_v41 }
 0x359   : > { %v2430_v30 = vpack.c.bf16 %v2358_v63, %v2350_v40 }
 0x35a   : > { %v2431_v35 = vpack.c.bf16 %v2359_v51, %v2351_v21  ;;  %4144 = vmatpush1.bf16.msra.mxu1 %v4572_v48  ;;  %v2111_v10 = vpop.f32.mrb[124].mxu0 }
 0x35b   : > { %v2238_v20 = vmax.f32 %v2111_v10, 0.0  ;;  %v2113_v24 = vpop.f32.mrb[125].mxu0  ;;  %4129 = vmatprep.subr.bf16.mxu1 %v4573_v44 }
 0x35c   : > { %v2239_v45 = vmax.f32 %v2113_v24, 0.0  ;;  %v2115_v42 = vpop.f32.mrb[126].mxu0 }
 0x35d   : > { %v2246_v53 = vmax.f32 %v2115_v42, 0.0  ;;  %v2117_v22 = vpop.f32.mrb[127].mxu0  ;;  %3527 = vmatmul.mubr.bf16.gmra.mrb[56].mxu1 %v6222_v55  ;;  %v2366_v12 = vmul.f32 %v2238_v20, %v2238_v20 }
 0x35e   : > { %v2247_v38 = vmax.f32 %v2117_v22, 0.0  ;;  %4145 = vmatpush1.bf16.msra.mxu1 %v4574_v18  ;;  %3536 = vmatprep.mubr.bf16.mxu1 %v6223_v15  ;;  %v2367_v58 = vmul.f32 %v2239_v45, %v2239_v45 }
 0x35f   : > { %v2374_v5 = vmul.f32 %v2246_v53, %v2246_v53  ;;  %4130 = vmatprep.subr.bf16.mxu1 %v4575_v1 }
 0x360   : > { %v2375_v3 = vmul.f32 %v2247_v38, %v2247_v38 }
 0x361   : > { %v2438_v37 = vpack.c.bf16 %v2374_v5, %v2366_v12 }
 0x362   : > { %v2439_v23 = vpack.c.bf16 %v2375_v3, %v2367_v58  ;;  %4146 = vmatpush1.bf16.msra.mxu1 %v4576_v52 }
 0x363   : > { %4131 = vmatprep.subr.bf16.mxu1 %v4577_v32 }
 0x365   : > { %3537 = vmatmul.mubr.bf16.gmra.mrb[60].mxu1 %v6224_v61 }
 0x366   : > { %4147 = vmatpush1.bf16.msra.mxu1 %v4578_v29  ;;  %3619 = vmatprep.mubr.bf16.mxu1 %v2415_v0 }
 0x367   : > { %4132 = vmatprep.subr.bf16.mxu1 %v4579_v60 }
 0x36a   : > { %4148 = vmatpush1.bf16.msra.mxu1 %v4580_v26 }
 0x36d   : > { %3620 = vmatmul.mubr.bf16.vlgmr.msra.gmra.mrb[48].mxu1 %v2414_v33 }
 0x36e   : > { %3629 = vmatprep.mubr.bf16.mxu1 %v2423_v14 }
 0x375   : > { %3630 = vmatmul.mubr.bf16.gmra.mrb[52].mxu1 %v2422_v59 }
 0x376   : > { %3639 = vmatprep.mubr.bf16.mxu1 %v2431_v35 }
 0x37d   : > { %3640 = vmatmul.mubr.bf16.gmra.mrb[56].mxu1 %v2430_v30 }
 0x37e   : > { %3649 = vmatprep.mubr.bf16.mxu1 %v2439_v23 }
 0x385   : > { %3650 = vmatmul.mubr.bf16.gmra.mrb[60].mxu1 %v2438_v37 }
 0x400   : > { %v3468_v50 = vpop.f32.mrb[32].mxu1  ;;  %v3581_v27 = vpop.f32.mrb[128].mxu0 }
 0x401   : > { %v4149_v6 = vadd.f32 %v3581_v27, %v3468_v50  ;;  %v3470_v0 = vpop.f32.mrb[33].mxu1  ;;  %v3583_v4 = vpop.f32.mrb[129].mxu0 }
 0x402   : > { %v4150_v39 = vadd.f32 %v3583_v4, %v3470_v0  ;;  %v3472_v57 = vpop.f32.mrb[34].mxu1  ;;  %v3585_v33 = vpop.f32.mrb[130].mxu0 }
 0x403   : > { %v3660_v56 = vadd.f32 %v4149_v6, %v4884_v8  ;;  %v4151_v62 = vadd.f32 %v3585_v33, %v3472_v57  ;;  %v3474_v59 = vpop.f32.mrb[35].mxu1  ;;  %v3587_v14 = vpop.f32.mrb[131].mxu0  ;;  %v6225_v6 = vld [vmem:[#allocation2_spill] sm:$0xff]  ;;  %v6227_v33 = vld [vmem:[#allocation4_spill] sm:$0xff] }
 0x404   : > { %v3661_v2 = vadd.f32 %v4150_v39, %v4887_v11  ;;  %v4152_v41 = vadd.f32 %v3587_v14, %v3474_v59  ;;  %v6229_v14 = vld [vmem:[#allocation6_spill] sm:$0xff] }
 0x405   : > { %3692 = vst [vmem:[%s6100_s28] sm:$0xff] %v3660_v56  ;;  %v3662_v36 = vadd.f32 %v4151_v62, %v4889_v13  ;;  %v6228_v62 = vld [vmem:[#allocation5_spill] sm:$0xff] }
 0x406   : > { %3693 = vst [vmem:[%s6100_s28 + $0x8] sm:$0xff] %v3661_v2  ;;  %v3663_v47 = vadd.f32 %v4152_v41, %v4893_v16 }
 0x407   : > { %3694 = vst [vmem:[%s6100_s28 + $0x10] sm:$0xff] %v3662_v36  ;;  %v6230_v36 = vld [vmem:[#allocation7_spill] sm:$0xff] }
 0x408   : > { %3695 = vst [vmem:[%s6100_s28 + $0x18] sm:$0xff] %v3663_v47  ;;  %v3478_v40 = vpop.f32.mrb[36].mxu1  ;;  %v3591_v63 = vpop.f32.mrb[132].mxu0 }
 0x409   : > { %v4153_v9 = vadd.f32 %v3591_v63, %v3478_v40  ;;  %v3480_v8 = vpop.f32.mrb[37].mxu1  ;;  %v3593_v21 = vpop.f32.mrb[133].mxu0  ;;  %v6231_v63 = vld [vmem:[#allocation8_spill] sm:$0xff] }
 0x40a   : > { %v4154_v51 = vadd.f32 %v3593_v21, %v3480_v8  ;;  %v3482_v11 = vpop.f32.mrb[38].mxu1  ;;  %v3595_v30 = vpop.f32.mrb[134].mxu0  ;;  %v6232_v21 = vld [vmem:[#allocation9_spill] sm:$0xff] }
 0x40b   : > { %v3664_v35 = vadd.f32 %v4153_v9, %v4904_v25  ;;  %v4155_v13 = vadd.f32 %v3595_v30, %v3482_v11  ;;  %v3484_v48 = vpop.f32.mrb[39].mxu1  ;;  %v3597_v10 = vpop.f32.mrb[135].mxu0  ;;  %v6233_v30 = vld [vmem:[#allocation10_spill] sm:$0xff] }
 0x40c   : > { %v3665_v16 = vadd.f32 %v4154_v51, %v4907_v28  ;;  %v4156_v20 = vadd.f32 %v3597_v10, %v3484_v48  ;;  %v6234_v48 = vld [vmem:[#allocation11_spill] sm:$0xff] }
 0x40d   : > { %3696 = vst [vmem:[%s6100_s28 + $0x20] sm:$0xff] %v3664_v35  ;;  %v3666_v24 = vadd.f32 %v4155_v13, %v4909_v31 }
 0x40e   : > { %3697 = vst [vmem:[%s6100_s28 + $0x28] sm:$0xff] %v3665_v16  ;;  %v3667_v44 = vadd.f32 %v4156_v20, %v4913_v34  ;;  %v6235_v20 = vld [vmem:[#allocation12_spill] sm:$0xff] }
 0x40f   : > { %3698 = vst [vmem:[%s6100_s28 + $0x30] sm:$0xff] %v3666_v24 }
 0x410   : > { %3699 = vst [vmem:[%s6100_s28 + $0x38] sm:$0xff] %v3667_v44  ;;  %v3488_v45 = vpop.f32.mrb[40].mxu1  ;;  %v3601_v42 = vpop.f32.mrb[136].mxu0 }
 0x411   : > { %v4157_v53 = vadd.f32 %v3601_v42, %v3488_v45  ;;  %v3490_v25 = vpop.f32.mrb[41].mxu1  ;;  %v3603_v22 = vpop.f32.mrb[137].mxu0  ;;  %v6236_v45 = vld [vmem:[#allocation13_spill] sm:$0xff] }
 0x412   : > { %v4158_v55 = vadd.f32 %v3603_v22, %v3490_v25  ;;  %v3492_v28 = vpop.f32.mrb[42].mxu1  ;;  %v3605_v38 = vpop.f32.mrb[138].mxu0  ;;  %v6237_v25 = vld [vmem:[#allocation14_spill] sm:$0xff] }
 0x413   : > { %v3668_v18 = vadd.f32 %v4157_v53, %v4924_v43  ;;  %v4159_v31 = vadd.f32 %v3605_v38, %v3492_v28  ;;  %v3494_v15 = vpop.f32.mrb[43].mxu1  ;;  %v3607_v12 = vpop.f32.mrb[139].mxu0  ;;  %v6238_v28 = vld [vmem:[#allocation15_spill] sm:$0xff] }
 0x414   : > { %v3669_v34 = vadd.f32 %v4158_v55, %v4927_v46  ;;  %v4160_v5 = vadd.f32 %v3607_v12, %v3494_v15 }
 0x415   : > { %3700 = vst [vmem:[%s6100_s28 + $0x40] sm:$0xff] %v3668_v18  ;;  %v3670_v1 = vadd.f32 %v4159_v31, %v4929_v49  ;;  %v6239_v31 = vld [vmem:[#allocation16_spill] sm:$0xff] }
 0x416   : > { %3701 = vst [vmem:[%s6100_s28 + $0x48] sm:$0xff] %v3669_v34  ;;  %v3671_v58 = vadd.f32 %v4160_v5, %v4939_v54  ;;  %v6240_v34 = vld [vmem:[#allocation17_spill] sm:$0xff] }
 0x417   : > { %3702 = vst [vmem:[%s6100_s28 + $0x50] sm:$0xff] %v3670_v1 }
 0x418   : > { %3703 = vst [vmem:[%s6100_s28 + $0x58] sm:$0xff] %v3671_v58  ;;  %v3498_v3 = vpop.f32.mrb[44].mxu1  ;;  %v3611_v37 = vpop.f32.mrb[140].mxu0  ;;  %v6241_v58 = vld [vmem:[#allocation18_spill] sm:$0xff] }
 0x419   : > { %v4161_v23 = vadd.f32 %v3611_v37, %v3498_v3  ;;  %v3500_v43 = vpop.f32.mrb[45].mxu1  ;;  %v3613_v52 = vpop.f32.mrb[141].mxu0 }
 0x41a   : > { %v4162_v32 = vadd.f32 %v3613_v52, %v3500_v43  ;;  %v3502_v46 = vpop.f32.mrb[46].mxu1  ;;  %v3615_v61 = vpop.f32.mrb[142].mxu0 }
 0x41b   : > { %v3672_v29 = vadd.f32 %v4161_v23, %v4962_v7  ;;  %v4163_v49 = vadd.f32 %v3615_v61, %v3502_v46  ;;  %v3504_v60 = vpop.f32.mrb[47].mxu1  ;;  %v3617_v54 = vpop.f32.mrb[143].mxu0  ;;  %v6226_v7 = vld [vmem:[#allocation3_spill] sm:$0xff] }
 0x41c   : > { %v3673_v26 = vadd.f32 %v4162_v32, %v4965_v17  ;;  %v4164_v50 = vadd.f32 %v3617_v54, %v3504_v60 }
 0x41d   : > { %3704 = vst [vmem:[%s6100_s28 + $0x60] sm:$0xff] %v3672_v29  ;;  %v3674_v27 = vadd.f32 %v4163_v49, %v4967_v19 }
 0x41e   : > { %3705 = vst [vmem:[%s6100_s28 + $0x68] sm:$0xff] %v3673_v26  ;;  %v3675_v0 = vadd.f32 %v4164_v50, %v6225_v6 }
 0x41f   : > { %3706 = vst [vmem:[%s6100_s28 + $0x70] sm:$0xff] %v3674_v27 }
 0x420   : > { %3707 = vst [vmem:[%s6100_s28 + $0x78] sm:$0xff] %v3675_v0 }
 0x440   : > { %v3621_v4 = vpop.f32.mrb[48].mxu1 }
 0x441   : > { %v3676_v39 = vadd.f32 %v3621_v4, %v6226_v7  ;;  %v3623_v57 = vpop.f32.mrb[49].mxu1 }
 0x442   : > { %v3677_v56 = vadd.f32 %v3623_v57, %v6227_v33  ;;  %v3625_v17 = vpop.f32.mrb[50].mxu1 }
 0x443   : > { %3708 = vst [vmem:[%s6100_s28 + $0x80] sm:$0xff] %v3676_v39  ;;  %v3678_v59 = vadd.f32 %v3625_v17, %v6228_v62  ;;  %v3627_v19 = vpop.f32.mrb[51].mxu1 }
 0x444   : > { %3709 = vst [vmem:[%s6100_s28 + $0x88] sm:$0xff] %v3677_v56  ;;  %v3679_v2 = vadd.f32 %v3627_v19, %v6229_v14 }
 0x445   : > { %3710 = vst [vmem:[%s6100_s28 + $0x90] sm:$0xff] %v3678_v59 }
 0x446   : > { %3711 = vst [vmem:[%s6100_s28 + $0x98] sm:$0xff] %v3679_v2 }
 0x448   : > { %v3631_v41 = vpop.f32.mrb[52].mxu1 }
 0x449   : > { %v3680_v47 = vadd.f32 %v3631_v41, %v6230_v36  ;;  %v3633_v40 = vpop.f32.mrb[53].mxu1 }
 0x44a   : > { %v3681_v9 = vadd.f32 %v3633_v40, %v6231_v63  ;;  %v3635_v8 = vpop.f32.mrb[54].mxu1 }
 0x44b   : > { %3712 = vst [vmem:[%s6100_s28 + $0xa0] sm:$0xff] %v3680_v47  ;;  %v3682_v51 = vadd.f32 %v3635_v8, %v6232_v21  ;;  %v3637_v11 = vpop.f32.mrb[55].mxu1 }
 0x44c   : > { %3713 = vst [vmem:[%s6100_s28 + $0xa8] sm:$0xff] %v3681_v9  ;;  %v3683_v35 = vadd.f32 %v3637_v11, %v6233_v30 }
 0x44d   : > { %3714 = vst [vmem:[%s6100_s28 + $0xb0] sm:$0xff] %v3682_v51 }
 0x44e   : > { %3715 = vst [vmem:[%s6100_s28 + $0xb8] sm:$0xff] %v3683_v35 }
 0x450   : > { %v3641_v13 = vpop.f32.mrb[56].mxu1 }
 0x451   : > { %v3684_v10 = vadd.f32 %v3641_v13, %v6234_v48  ;;  %v3643_v16 = vpop.f32.mrb[57].mxu1 }
 0x452   : > { %v3685_v24 = vadd.f32 %v3643_v16, %v6235_v20  ;;  %v3645_v44 = vpop.f32.mrb[58].mxu1 }
 0x453   : > { %3716 = vst [vmem:[%s6100_s28 + $0xc0] sm:$0xff] %v3684_v10  ;;  %v3686_v42 = vadd.f32 %v3645_v44, %v6236_v45  ;;  %v3647_v53 = vpop.f32.mrb[59].mxu1 }
 0x454   : > { %3717 = vst [vmem:[%s6100_s28 + $0xc8] sm:$0xff] %v3685_v24  ;;  %v3687_v22 = vadd.f32 %v3647_v53, %v6237_v25 }
 0x455   : > { %3718 = vst [vmem:[%s6100_s28 + $0xd0] sm:$0xff] %v3686_v42 }
 0x456   : > { %3719 = vst [vmem:[%s6100_s28 + $0xd8] sm:$0xff] %v3687_v22 }
 0x458   : > { %v3651_v55 = vpop.f32.mrb[60].mxu1 }
 0x459   : > { %v3688_v38 = vadd.f32 %v3651_v55, %v6238_v28  ;;  %v3653_v18 = vpop.f32.mrb[61].mxu1 }
 0x45a   : > { %v3689_v15 = vadd.f32 %v3653_v18, %v6239_v31  ;;  %v3655_v12 = vpop.f32.mrb[62].mxu1 }
 0x45b   : > { %3720 = vst [vmem:[%s6100_s28 + $0xe0] sm:$0xff] %v3688_v38  ;;  %v3690_v5 = vadd.f32 %v3655_v12, %v6240_v34  ;;  %v3657_v1 = vpop.f32.mrb[63].mxu1 }
 0x45c   : > { %3721 = vst [vmem:[%s6100_s28 + $0xe8] sm:$0xff] %v3689_v15  ;;  %v3691_v3 = vadd.f32 %v3657_v1, %v6241_v58 }
 0x45d   : > { %3722 = vst [vmem:[%s6100_s28 + $0xf0] sm:$0xff] %v3690_v5 }
 0x45e   : > { %3723 = vst [vmem:[%s6100_s28 + $0xf8] sm:$0xff] %v3691_v3 }
 0x45f PF: > { %s15_s18 = sadd.s32 1, %s4587_s18  }
 0x460   : > { %p12_p4 = scmp.ge.s32.totalorder %s15_s18, 4  }
 0x462   :  { %14 = sbr.rel (!%p12_p4) target bundleno = 1 (0x1), region = 73 }

// kernel: block_forward.4
= control target key start
LH: loop header
LB: loop body
LE: loop exit
PB: predicated region body
PF: predicated region fallthrough
CT: control target
= control target key end

     0   :  { %s6936_s0 = inlined_call_operand.vmem [shape: s32[3], index: 0, kind: input, shape index: {}]   ;;  %s6937_s2 = inlined_call_operand.vmem [shape: bf16[256,256], index: 2, kind: input, shape index: {}]   ;;  %s6938_s3 = inlined_call_operand.vmem [shape: bf16[256,256], index: 3, kind: input, shape index: {}]   ;;  %s6939_s4 = inlined_call_operand.vmem [shape: bf16[256,256], index: 4, kind: input, shape index: {}]   ;;  %s6940_s5 = inlined_call_operand.vmem [shape: bf16[256,256], index: 5, kind: output, shape index: {}]   ;;  %s6941_s1 = inlined_call_operand.vmem [shape: s32[3], index: 1, kind: input, shape index: {}]  }
   0x1   :  { %s10_s20 = sshll.u32 %s6936_s0, 4  ;;  %s14_s23 = sshll.u32 %s6941_s1, 4  ;;  %s11_s20 = int_to_ptr.vmem [resolvable:$true] %s10_s20  ;;  %s15_s23 = int_to_ptr.vmem [resolvable:$true] %s14_s23 }
   0x2   :  { %s4983_s24 = scalar_lea.vmem %s11_s20, 16  ;;  %p4988_p1 = scmp.lt.s32.totalorder %s11_s20, %s11_s20 }
   0x3   :  { %p4984_p0 = scmp.ne.s32.totalorder %s11_s20, %s4983_s24  ;;  %p4989_p2 = scmp.lt.s32.totalorder %s4983_s24, %s4983_s24 }
   0x5   :  { %p4990_p3 = por %p4989_p2, %p4988_p1 }
   0x7   :  { %p4991_p4 = pnand %p4990_p3, %p4984_p0 }
   0x9   :  { %4994 = shalt.err (!%p4991_p4)  }
   0xa   :  { %s5017_s25 = smov [#allocation6]   ;;  %s4995_s26 = scalar_lea.vmem %s15_s23, 16 }
   0xb   :  { %13 = dma.vmem_to_smem %s11_s20, 16, %s5017_s25, [#allocation5] }
   0xc   :  { %p4996_p5 = scmp.ne.s32.totalorder %s15_s23, %s4995_s26  ;;  %p5000_p6 = scmp.lt.s32.totalorder %s15_s23, %s15_s23 }
   0xd   :  { %p5001_p7 = scmp.lt.s32.totalorder %s4995_s26, %s4995_s26 }
   0xf   :  { %p5002_p8 = por %p5001_p7, %p5000_p6 }
  0x11   :  { %p5003_p9 = pnand %p5002_p8, %p4996_p5 }
  0x13   :  { %5006 = shalt.err (!%p5003_p9)  }
  0x14   :  { %s5018_s0 = smov [#allocation7]  }
  0x15   :  { %17 = dma.vmem_to_smem %s15_s23, 16, %s5018_s0, [#allocation5] }
  0x16   :  { %5011 = dma.done.wait [#allocation5], 32 }
  0x17   :  { %5012 = vsyncadd [#allocation5], 4294967264 }
  0x18   :  { %19 = sfence }
  0x19   :  { %s5060_s1 = smov 0  }
  0x1a LB: > { %s3994_s27 = sadd.s32 4294967295, %s5015_s1   ;;  %p3998_p10 = scmp.ge.s32.totalorder %s5015_s1, 1  ;;  %s5015_s1 = sphi %s5060_s1, %s25_s1  }
  0x1b   : > { %p189_p11 = scmp.lt.s32.totalorder %s5015_s1, 4 }
  0x1d   : > { %p190_p12 = pnand %p3998_p10, %p189_p11 }
  0x1e   : > { %s231_s28 = sld [smem:[#allocation6 + %s3994_s27]] (!%p190_p12) }
  0x1f   : > { %193 = sbr.rel (%p190_p12) target bundleno = 2902 (0xb56), region = 32  ;;  %s240_s29 = sld [smem:[#allocation7 + %s3994_s27]] (!%p190_p12) }
  0x20   : > { %s249_s30 = sld [smem:[#allocation7 + %s3994_s27]] (!%p190_p12) }
  0x21   : > { %s258_s6 = sld [smem:[#allocation6 + %s3994_s27]] (!%p190_p12) }
  0x22   : > { %s5068_s7 = sld [smem:[#allocation6 + %s3994_s27]] (!%p190_p12) }
  0x23   : > { %s5070_s8 = sld [smem:[#allocation7 + %s3994_s27]] (!%p190_p12) }
  0x24   : > { %s3999_s9 = sshll.u32 (!%p190_p12), %s231_s28, 4 }
  0x25   : > { %s4002_s10 = sshll.u32 (!%p190_p12), %s240_s29, 4  ;;  %p233_p13 = scmp.lt.s32.totalorder (!%p190_p12), %s3999_s9, 31 }
  0x26   : > { %p242_p0 = scmp.lt.s32.totalorder %s4002_s10, 31  ;;  %s4005_s11 = sshll.u32 %s249_s30, 4 }
  0x27   : > { %s4008_s12 = sshll.u32 %s258_s6, 4  ;;  %s7167_s9 = smov (!%p233_p13, %s3999_s9), 31 }
  0x28   : > { %s7169_s10 = smov (!%p242_p0, %s4002_s10), 31  ;;  %s4128_s13 = sshll.u32 %s7167_s9, 3 }
  0x29   : > { %p251_p1 = scmp.lt.s32.totalorder %s4005_s11, 31  ;;  %s5075_s16 = scalar_lea.vmem %s6937_s2, %s4128_s13 }
  0x2a   : > { %s4129_s17 = sshll.u32 %s7169_s10, 3  ;;  %p260_p2 = scmp.lt.s32.totalorder %s4008_s12, 31 }
  0x2b   : > { %s5080_s20 = scalar_lea.vmem %s6938_s3, %s4129_s17  ;;  %s7171_s11 = smov (!%p251_p1, %s4005_s11), 31 }
  0x2c   : > { %s7173_s12 = smov (!%p260_p2, %s4008_s12), 31  ;;  %s4130_s21 = sshll.u32 %s7171_s11, 3 }
  0x2d   : > { %s5085_s24 = scalar_lea.vmem %s6939_s4, %s4130_s21  ;;  %s4131_s25 = sshll.u32 %s7173_s12, 3 }
  0x2e   : > { %s5090_s27 = scalar_lea.vmem %s6940_s5, %s4131_s25  ;;  %p4011_p3 = scmp.ne.s32.totalorder %s5070_s8, 0 }
  0x2f   : > { %v5019_v0 = vmov (!%p4011_p3), 0.0   ;;  %v5020_v1 = vmov (!%p4011_p3), -1e+30  }
  0x30   : > { %274 = sbr.rel (%p4011_p3) target bundleno = 96 (0x60), region = 36  ;;  %275 = vst [vmem:[#allocation2] sm:$0xff] (!%p4011_p3), %v5019_v0  ;;  %276 = vst [vmem:[#allocation2 + $0x8] sm:$0xff] (!%p4011_p3), %v5019_v0 }
  0x31   : > { %277 = vst [vmem:[#allocation2 + $0x10] sm:$0xff] (!%p4011_p3), %v5019_v0  ;;  %278 = vst [vmem:[#allocation2 + $0x18] sm:$0xff] (!%p4011_p3), %v5019_v0 }
  0x32   : > { %279 = vst [vmem:[#allocation2 + $0x20] sm:$0xff] (!%p4011_p3), %v5019_v0  ;;  %280 = vst [vmem:[#allocation2 + $0x28] sm:$0xff] (!%p4011_p3), %v5019_v0 }
  0x33   : > { %281 = vst [vmem:[#allocation2 + $0x30] sm:$0xff] (!%p4011_p3), %v5019_v0  ;;  %282 = vst [vmem:[#allocation2 + $0x38] sm:$0xff] (!%p4011_p3), %v5019_v0 }
  0x34   : > { %283 = vst [vmem:[#allocation2 + $0x40] sm:$0xff] (!%p4011_p3), %v5019_v0  ;;  %284 = vst [vmem:[#allocation2 + $0x48] sm:$0xff] (!%p4011_p3), %v5019_v0 }
  0x35   : > { %285 = vst [vmem:[#allocation2 + $0x50] sm:$0xff] (!%p4011_p3), %v5019_v0  ;;  %286 = vst [vmem:[#allocation2 + $0x58] sm:$0xff] (!%p4011_p3), %v5019_v0 }
  0x36   : > { %287 = vst [vmem:[#allocation2 + $0x60] sm:$0xff] (!%p4011_p3), %v5019_v0  ;;  %288 = vst [vmem:[#allocation2 + $0x68] sm:$0xff] (!%p4011_p3), %v5019_v0 }
  0x37   : > { %289 = vst [vmem:[#allocation2 + $0x70] sm:$0xff] %v5019_v0  ;;  %290 = vst [vmem:[#allocation2 + $0x78] sm:$0xff] %v5019_v0 }
  0x38   : > { %291 = vst [vmem:[#allocation2 + $0x80] sm:$0xff] %v5019_v0  ;;  %292 = vst [vmem:[#allocation2 + $0x88] sm:$0xff] %v5019_v0 }
  0x39   : > { %293 = vst [vmem:[#allocation2 + $0x90] sm:$0xff] %v5019_v0  ;;  %294 = vst [vmem:[#allocation2 + $0x98] sm:$0xff] %v5019_v0 }
  0x3a   : > { %295 = vst [vmem:[#allocation2 + $0xa0] sm:$0xff] %v5019_v0  ;;  %296 = vst [vmem:[#allocation2 + $0xa8] sm:$0xff] %v5019_v0 }
  0x3b   : > { %297 = vst [vmem:[#allocation2 + $0xb0] sm:$0xff] %v5019_v0  ;;  %298 = vst [vmem:[#allocation2 + $0xb8] sm:$0xff] %v5019_v0 }
  0x3c   : > { %299 = vst [vmem:[#allocation2 + $0xc0] sm:$0xff] %v5019_v0  ;;  %300 = vst [vmem:[#allocation2 + $0xc8] sm:$0xff] %v5019_v0 }
  0x3d   : > { %301 = vst [vmem:[#allocation2 + $0xd0] sm:$0xff] %v5019_v0  ;;  %302 = vst [vmem:[#allocation2 + $0xd8] sm:$0xff] %v5019_v0 }
  0x3e   : > { %303 = vst [vmem:[#allocation2 + $0xe0] sm:$0xff] %v5019_v0  ;;  %304 = vst [vmem:[#allocation2 + $0xe8] sm:$0xff] %v5019_v0 }
  0x3f   : > { %305 = vst [vmem:[#allocation2 + $0xf0] sm:$0xff] %v5019_v0  ;;  %306 = vst [vmem:[#allocation2 + $0xf8] sm:$0xff] %v5019_v0 }
  0x40   : > { %339 = vst [vmem:[#allocation4] sm:$0xff] %v5019_v0  ;;  %340 = vst [vmem:[#allocation4 + $0x8] sm:$0xff] %v5019_v0 }
  0x41   : > { %341 = vst [vmem:[#allocation4 + $0x10] sm:$0xff] %v5019_v0  ;;  %342 = vst [vmem:[#allocation4 + $0x18] sm:$0xff] %v5019_v0 }
  0x42   : > { %343 = vst [vmem:[#allocation4 + $0x20] sm:$0xff] %v5019_v0  ;;  %344 = vst [vmem:[#allocation4 + $0x28] sm:$0xff] %v5019_v0 }
  0x43   : > { %345 = vst [vmem:[#allocation4 + $0x30] sm:$0xff] %v5019_v0  ;;  %346 = vst [vmem:[#allocation4 + $0x38] sm:$0xff] %v5019_v0 }
  0x44   : > { %347 = vst [vmem:[#allocation4 + $0x40] sm:$0xff] %v5019_v0  ;;  %348 = vst [vmem:[#allocation4 + $0x48] sm:$0xff] %v5019_v0 }
  0x45   : > { %349 = vst [vmem:[#allocation4 + $0x50] sm:$0xff] %v5019_v0  ;;  %350 = vst [vmem:[#allocation4 + $0x58] sm:$0xff] %v5019_v0 }
  0x46   : > { %351 = vst [vmem:[#allocation4 + $0x60] sm:$0xff] %v5019_v0  ;;  %352 = vst [vmem:[#allocation4 + $0x68] sm:$0xff] %v5019_v0 }
  0x47   : > { %353 = vst [vmem:[#allocation4 + $0x70] sm:$0xff] %v5019_v0  ;;  %354 = vst [vmem:[#allocation4 + $0x78] sm:$0xff] %v5019_v0 }
  0x48   : > { %355 = vst [vmem:[#allocation4 + $0x80] sm:$0xff] %v5019_v0  ;;  %356 = vst [vmem:[#allocation4 + $0x88] sm:$0xff] %v5019_v0 }
  0x49   : > { %357 = vst [vmem:[#allocation4 + $0x90] sm:$0xff] %v5019_v0  ;;  %358 = vst [vmem:[#allocation4 + $0x98] sm:$0xff] %v5019_v0 }
  0x4a   : > { %359 = vst [vmem:[#allocation4 + $0xa0] sm:$0xff] %v5019_v0  ;;  %360 = vst [vmem:[#allocation4 + $0xa8] sm:$0xff] %v5019_v0 }
  0x4b   : > { %361 = vst [vmem:[#allocation4 + $0xb0] sm:$0xff] %v5019_v0  ;;  %362 = vst [vmem:[#allocation4 + $0xb8] sm:$0xff] %v5019_v0 }
  0x4c   : > { %363 = vst [vmem:[#allocation4 + $0xc0] sm:$0xff] %v5019_v0  ;;  %364 = vst [vmem:[#allocation4 + $0xc8] sm:$0xff] %v5019_v0 }
  0x4d   : > { %365 = vst [vmem:[#allocation4 + $0xd0] sm:$0xff] %v5019_v0  ;;  %366 = vst [vmem:[#allocation4 + $0xd8] sm:$0xff] %v5019_v0 }
  0x4e   : > { %367 = vst [vmem:[#allocation4 + $0xe0] sm:$0xff] %v5019_v0  ;;  %368 = vst [vmem:[#allocation4 + $0xe8] sm:$0xff] %v5019_v0 }
  0x4f   : > { %369 = vst [vmem:[#allocation4 + $0xf0] sm:$0xff] %v5019_v0  ;;  %370 = vst [vmem:[#allocation4 + $0xf8] sm:$0xff] %v5019_v0 }
  0x50   : > { %307 = vst [vmem:[#allocation3] sm:$0xff] %v5020_v1  ;;  %308 = vst [vmem:[#allocation3 + $0x8] sm:$0xff] %v5020_v1 }
  0x51   : > { %309 = vst [vmem:[#allocation3 + $0x10] sm:$0xff] %v5020_v1  ;;  %310 = vst [vmem:[#allocation3 + $0x18] sm:$0xff] %v5020_v1 }
  0x52   : > { %311 = vst [vmem:[#allocation3 + $0x20] sm:$0xff] %v5020_v1  ;;  %312 = vst [vmem:[#allocation3 + $0x28] sm:$0xff] %v5020_v1 }
  0x53   : > { %313 = vst [vmem:[#allocation3 + $0x30] sm:$0xff] %v5020_v1  ;;  %314 = vst [vmem:[#allocation3 + $0x38] sm:$0xff] %v5020_v1 }
  0x54   : > { %315 = vst [vmem:[#allocation3 + $0x40] sm:$0xff] %v5020_v1  ;;  %316 = vst [vmem:[#allocation3 + $0x48] sm:$0xff] %v5020_v1 }
  0x55   : > { %317 = vst [vmem:[#allocation3 + $0x50] sm:$0xff] %v5020_v1  ;;  %318 = vst [vmem:[#allocation3 + $0x58] sm:$0xff] %v5020_v1 }
  0x56   : > { %319 = vst [vmem:[#allocation3 + $0x60] sm:$0xff] %v5020_v1  ;;  %320 = vst [vmem:[#allocation3 + $0x68] sm:$0xff] %v5020_v1 }
  0x57   : > { %321 = vst [vmem:[#allocation3 + $0x70] sm:$0xff] %v5020_v1  ;;  %322 = vst [vmem:[#allocation3 + $0x78] sm:$0xff] %v5020_v1 }
  0x58   : > { %323 = vst [vmem:[#allocation3 + $0x80] sm:$0xff] %v5020_v1  ;;  %324 = vst [vmem:[#allocation3 + $0x88] sm:$0xff] %v5020_v1 }
  0x59   : > { %325 = vst [vmem:[#allocation3 + $0x90] sm:$0xff] %v5020_v1  ;;  %326 = vst [vmem:[#allocation3 + $0x98] sm:$0xff] %v5020_v1 }
  0x5a   : > { %327 = vst [vmem:[#allocation3 + $0xa0] sm:$0xff] %v5020_v1  ;;  %328 = vst [vmem:[#allocation3 + $0xa8] sm:$0xff] %v5020_v1 }
  0x5b   : > { %329 = vst [vmem:[#allocation3 + $0xb0] sm:$0xff] %v5020_v1  ;;  %330 = vst [vmem:[#allocation3 + $0xb8] sm:$0xff] %v5020_v1 }
  0x5c   : > { %331 = vst [vmem:[#allocation3 + $0xc0] sm:$0xff] %v5020_v1  ;;  %332 = vst [vmem:[#allocation3 + $0xc8] sm:$0xff] %v5020_v1 }
  0x5d   : > { %333 = vst [vmem:[#allocation3 + $0xd0] sm:$0xff] %v5020_v1  ;;  %334 = vst [vmem:[#allocation3 + $0xd8] sm:$0xff] %v5020_v1 }
  0x5e   : > { %335 = vst [vmem:[#allocation3 + $0xe0] sm:$0xff] %v5020_v1  ;;  %336 = vst [vmem:[#allocation3 + $0xe8] sm:$0xff] %v5020_v1 }
  0x5f   : > { %337 = vst [vmem:[#allocation3 + $0xf0] sm:$0xff] %v5020_v1  ;;  %338 = vst [vmem:[#allocation3 + $0xf8] sm:$0xff] %v5020_v1 }
  0x60 PF: > { %p4012_p4 = scmp.eq.s32.totalorder %s5070_s8, %s5068_s7 }
  0x62   : > { %374 = sbr.rel (%p4012_p4) target bundleno = 1495 (0x5d7), region = 40 }
  0x69   : > { %v4549_v2 = vld [vmem:[%s5080_s20] ss:$8 sps:$4 sm:$0xff]   ;;  %v4550_v3 = vld [vmem:[%s5080_s20 + $0x10] ss:$8 sps:$4 sm:$0xff]   ;;  %v5021_v27 = vmov 0  }
  0x6a   : > { %4276 = vmatprep.subr.bf16.mxu0 %v4549_v2  ;;  %v4551_v4 = vld [vmem:[%s5080_s20 + $0x20] ss:$8 sps:$4 sm:$0xff]   ;;  %v4552_v6 = vld [vmem:[%s5080_s20 + $0x30] ss:$8 sps:$4 sm:$0xff]   ;;  %4548 = vset.pattern.permute.xlu1 %v5021_v27 }
  0x6b   : > { %4277 = vmatpush3.bf16.xpose.msra.mxu0 %v4549_v2  ;;  %v4557_v5 = vld [vmem:[%s5075_s16] ss:$8 sps:$4 sm:$0xff]   ;;  %v4554_v8 = vld [vmem:[%s5080_s20 + $0x50] ss:$8 sps:$4 sm:$0xff]   ;;  %4547 = vset.pattern.permute.xlu0 %v5021_v27 }
  0x6c   : > { %4278 = vmatprep.subr.bf16.mxu0 %v4550_v3  ;;  %4292 = vmatprep.mubr.bf16.mxu0 %v4557_v5  ;;  %v4553_v7 = vld [vmem:[%s5080_s20 + $0x40] ss:$8 sps:$4 sm:$0xff]   ;;  %v4556_v10 = vld [vmem:[%s5080_s20 + $0x70] ss:$8 sps:$4 sm:$0xff]  }
  0x6d   : > { %v4555_v9 = vld [vmem:[%s5080_s20 + $0x60] ss:$8 sps:$4 sm:$0xff]   ;;  %v4558_v11 = vld [vmem:[%s5075_s16 + $0x10] ss:$8 sps:$4 sm:$0xff]  }
  0x6e   : > { %v4559_v12 = vld [vmem:[%s5075_s16 + $0x20] ss:$8 sps:$4 sm:$0xff]   ;;  %v4560_v13 = vld [vmem:[%s5075_s16 + $0x30] ss:$8 sps:$4 sm:$0xff]  }
  0x6f   : > { %v4561_v14 = vld [vmem:[%s5075_s16 + $0x40] ss:$8 sps:$4 sm:$0xff]   ;;  %v4562_v15 = vld [vmem:[%s5075_s16 + $0x50] ss:$8 sps:$4 sm:$0xff]  }
  0x70   : > { %v4563_v16 = vld [vmem:[%s5075_s16 + $0x60] ss:$8 sps:$4 sm:$0xff]   ;;  %v4564_v17 = vld [vmem:[%s5075_s16 + $0x70] ss:$8 sps:$4 sm:$0xff]  }
  0x71   : > { %v4565_v35 = vld [vmem:[%s5085_s24] ss:$8 sps:$4 sm:$0xff]   ;;  %v4566_v36 = vld [vmem:[%s5085_s24 + $0x10] ss:$8 sps:$4 sm:$0xff]  }
  0x72   : > { %4308 = vmatprep.subr.bf16.mxu1 %v4565_v35  ;;  %v4567_v37 = vld [vmem:[%s5085_s24 + $0x20] ss:$8 sps:$4 sm:$0xff]   ;;  %v4568_v43 = vld [vmem:[%s5085_s24 + $0x30] ss:$8 sps:$4 sm:$0xff]  }
  0x73   : > { %4279 = vmatpush3.bf16.xpose.msra.mxu0 %v4550_v3  ;;  %4309 = vmatpush3.bf16.msra.mxu1 %v4565_v35  ;;  %v5226_v38 = vld [vmem:[#allocation3 + $0x20] sm:$0xff]  ;;  %v5237_v45 = vld [vmem:[#allocation3 + $0x30] sm:$0xff] }
  0x74   : > { %4280 = vmatprep.subr.bf16.mxu0 %v4551_v4  ;;  %4310 = vmatprep.subr.bf16.mxu1 %v4566_v36  ;;  %v5228_v39 = vld [vmem:[#allocation3] sm:$0xff]  ;;  %v5243_v47 = vld [vmem:[#allocation3 + $0x10] sm:$0xff] }
  0x75   : > { %v4569_v52 = vld [vmem:[%s5085_s24 + $0x40] ss:$8 sps:$4 sm:$0xff]   ;;  %v5265_v57 = vld [vmem:[#allocation3 + $0x70] sm:$0xff] }
  0x76   : > { %v5259_v55 = vld [vmem:[#allocation3 + $0x60] sm:$0xff]  ;;  %v4570_v59 = vld [vmem:[%s5085_s24 + $0x50] ss:$8 sps:$4 sm:$0xff]  }
  0x77   : > { %4311 = vmatpush3.bf16.msra.mxu1 %v4566_v36  ;;  %v5274_v63 = vld [vmem:[#allocation3 + $0x40] sm:$0xff]  ;;  %v5280_v1 = vld [vmem:[#allocation3 + $0x50] sm:$0xff] }
  0x78   : > { %4312 = vmatprep.subr.bf16.mxu1 %v4567_v37  ;;  %v5313_v27 = vld [vmem:[#allocation3 + $0x90] sm:$0xff] }
  0x7b   : > { %4281 = vmatpush3.bf16.xpose.msra.mxu0 %v4551_v4  ;;  %4313 = vmatpush3.bf16.msra.mxu1 %v4567_v37  ;;  %v4571_v4 = vld [vmem:[%s5085_s24 + $0x60] ss:$8 sps:$4 sm:$0xff]  }
  0x7c   : > { %4282 = vmatprep.subr.bf16.mxu0 %v4552_v6  ;;  %4314 = vmatprep.subr.bf16.mxu1 %v4568_v43 }
  0x7f   : > { %4315 = vmatpush3.bf16.msra.mxu1 %v4568_v43 }
  0x80   : > { %4316 = vmatprep.subr.bf16.mxu1 %v4569_v52 }
  0x83   : > { %4283 = vmatpush3.bf16.xpose.msra.mxu0 %v4552_v6  ;;  %4317 = vmatpush3.bf16.msra.mxu1 %v4569_v52 }
  0x84   : > { %4284 = vmatprep.subr.bf16.mxu0 %v4553_v7  ;;  %4318 = vmatprep.subr.bf16.mxu1 %v4570_v59 }
  0x87   : > { %4319 = vmatpush3.bf16.msra.mxu1 %v4570_v59 }
  0x88   : > { %4320 = vmatprep.subr.bf16.mxu1 %v4571_v4 }
  0x8b   : > { %4285 = vmatpush3.bf16.xpose.msra.mxu0 %v4553_v7  ;;  %4321 = vmatpush3.bf16.msra.mxu1 %v4571_v4  ;;  %v5343_v4 = vld [vmem:[%s5080_s20 + $0x4] ss:$8 sps:$4 sm:$0xff]  }
  0x8c   : > { %4286 = vmatprep.subr.bf16.mxu0 %v4554_v8 }
  0x93   : > { %4287 = vmatpush3.bf16.xpose.msra.mxu0 %v4554_v8  ;;  %v5292_v8 = vld [vmem:[#allocation3 + $0xa0] sm:$0xff] }
  0x94   : > { %4288 = vmatprep.subr.bf16.mxu0 %v4555_v9 }
  0x9b   : > { %4289 = vmatpush3.bf16.xpose.msra.mxu0 %v4555_v9 }
  0x9c   : > { %4290 = vmatprep.subr.bf16.mxu0 %v4556_v10 }
  0xa3   : > { %4291 = vmatpush3.bf16.xpose.msra.mxu0 %v4556_v10  ;;  %v5298_v10 = vld [vmem:[#allocation3 + $0xb0] sm:$0xff] }
  0xaa   : > { %4293 = vmatmul.mubr.bf16.vlgmr.msra.gmra.mrb[0].mxu0 %v4558_v11 }
  0xab   : > { %4296 = vmatprep.mubr.bf16.mxu0 %v4559_v12 }
  0xb2   : > { %4297 = vmatmul.mubr.bf16.gmra.mrb[4].mxu0 %v4560_v13  ;;  %v4572_v13 = vld [vmem:[%s5085_s24 + $0x70] ss:$8 sps:$4 sm:$0xff]  }
  0xb3   : > { %4300 = vmatprep.mubr.bf16.mxu0 %v4561_v14  ;;  %4322 = vmatprep.subr.bf16.mxu1 %v4572_v13 }
  0xb4   : > { %4323 = vmatpush3.bf16.msra.mxu1 %v4572_v13  ;;  %v5351_v13 = vld [vmem:[#allocation3 + $0xd0] sm:$0xff] }
  0xb5   : > { %4340 = vmatprep.subr.bf16.mxu1 %v5343_v4 }
  0xba   : > { %4301 = vmatmul.mubr.bf16.gmra.mrb[8].mxu0 %v4562_v15 }
  0xbb   : > { %4304 = vmatprep.mubr.bf16.mxu0 %v4563_v16 }
  0xc2   : > { %4305 = vmatmul.mubr.bf16.gmra.mrb[12].mxu0 %v4564_v17  ;;  %v5310_v17 = vld [vmem:[#allocation3 + $0x80] sm:$0xff] }
 0x17d   : > { %v5175_v18 = vpop.f32.mrb[0].mxu0 }
 0x17e   : > { %620 = vmax.xlane.f32.xlu1 %v5175_v18  ;;  %v5178_v19 = vpop.f32.mrb[1].mxu0 }
 0x17f   : > { %616 = vmax.xlane.f32.xlu0 %v5178_v19  ;;  %v5181_v20 = vpop.f32.mrb[2].mxu0 }
 0x180   : > { %v5183_v21 = vpop.f32.mrb[3].mxu0 }
 0x182   : > { %622 = vmax.xlane.f32.xlu1 %v5181_v20 }
 0x183   : > { %618 = vmax.xlane.f32.xlu0 %v5183_v21 }
 0x185   : > { %v5187_v22 = vpop.f32.mrb[4].mxu0 }
 0x186   : > { %v5189_v23 = vpop.f32.mrb[5].mxu0 }
 0x187   : > { %v5191_v24 = vpop.f32.mrb[6].mxu0  ;;  %628 = vmax.xlane.f32.xlu0 %v5187_v22 }
 0x188   : > { %630 = vmax.xlane.f32.xlu1 %v5191_v24  ;;  %v5195_v25 = vpop.f32.mrb[7].mxu0 }
 0x18b   : > { %624 = vmax.xlane.f32.xlu0 %v5189_v23 }
 0x18c   : > { %626 = vmax.xlane.f32.xlu1 %v5195_v25 }
 0x18d   : > { %v5199_v26 = vpop.f32.mrb[8].mxu0 }
 0x18e   : > { %v5201_v28 = vpop.f32.mrb[9].mxu0 }
 0x18f   : > { %v5203_v29 = vpop.f32.mrb[10].mxu0  ;;  %636 = vmax.xlane.f32.xlu0 %v5199_v26 }
 0x190   : > { %638 = vmax.xlane.f32.xlu1 %v5203_v29  ;;  %v5207_v30 = vpop.f32.mrb[11].mxu0 }
 0x193   : > { %632 = vmax.xlane.f32.xlu0 %v5201_v28 }
 0x194   : > { %634 = vmax.xlane.f32.xlu1 %v5207_v30 }
 0x195   : > { %v5211_v31 = vpop.f32.mrb[12].mxu0 }
 0x196   : > { %v5213_v32 = vpop.f32.mrb[13].mxu0 }
 0x197   : > { %v5215_v33 = vpop.f32.mrb[14].mxu0  ;;  %644 = vmax.xlane.f32.xlu0 %v5211_v31 }
 0x198   : > { %646 = vmax.xlane.f32.xlu1 %v5215_v33  ;;  %v5219_v34 = vpop.f32.mrb[15].mxu0 }
 0x19b   : > { %640 = vmax.xlane.f32.xlu0 %v5213_v32 }
 0x19c   : > { %642 = vmax.xlane.f32.xlu1 %v5219_v34 }
 0x20b   : > { %v621_v40 = vpop.xlane.xlu1 %620 }
 0x20c   : > { %v5231_v41 = vmax.f32 %v5226_v38, %v621_v40  ;;  %v617_v42 = vpop.xlane.xlu0 %616 }
 0x20d   : > { %v5235_v44 = vmax.f32 %v5228_v39, %v617_v42 }
 0x20e   : > { %v666_v46 = vsub.f32 %v5226_v38, %v5231_v41  ;;  %1171 = vst [vmem:[#allocation3 + $0x20] sm:$0xff] %v5231_v41  ;;  %724 = vperm.xlu1 %4548, %v5231_v41   ;;  %v1107_v38 = vld [vmem:[#allocation2 + $0x20] sm:$0xff] }
 0x20f   : > { %1169 = vst [vmem:[#allocation3] sm:$0xff] %v5235_v44  ;;  %v623_v49 = vpop.xlane.xlu1 %622  ;;  %714 = vperm.xlu0 %4547, %v5235_v44  }
 0x210   : > { %v5250_v50 = vmax.f32 %v5237_v45, %v623_v49  ;;  %v619_v51 = vpop.xlane.xlu0 %618  ;;  %v5327_v49 = vld [vmem:[#allocation3 + $0xe0] sm:$0xff] }
 0x211   : > { %v5254_v53 = vmax.f32 %v5243_v47, %v619_v51  ;;  %v5330_v51 = vld [vmem:[#allocation3 + $0xf0] sm:$0xff] }
 0x212   : > { %1172 = vst [vmem:[#allocation3 + $0x30] sm:$0xff] %v5250_v50 }
 0x213   : > { %1170 = vst [vmem:[#allocation3 + $0x10] sm:$0xff] %v5254_v53  ;;  %719 = vperm.xlu1 %4548, %v5254_v53  }
 0x214   : > { %v629_v58 = vpop.xlane.xlu0 %628 }
 0x215   : > { %v631_v60 = vpop.xlane.xlu1 %630  ;;  %v5269_v61 = vmax.f32 %v5259_v55, %v629_v58 }
 0x216   : > { %v5272_v62 = vmax.f32 %v5265_v57, %v631_v60 }
 0x217   : > { %729 = vperm.xlu1 %4548, %v5250_v50   ;;  %1175 = vst [vmem:[#allocation3 + $0x60] sm:$0xff] %v5269_v61 }
 0x218   : > { %1176 = vst [vmem:[#allocation3 + $0x70] sm:$0xff] %v5272_v62  ;;  %v625_v3 = vpop.xlane.xlu0 %624 }
 0x219   : > { %v627_v5 = vpop.xlane.xlu1 %626  ;;  %v5287_v6 = vmax.f32 %v5274_v63, %v625_v3 }
 0x21a   : > { %v5290_v7 = vmax.f32 %v5280_v1, %v627_v5 }
 0x21b   : > { %744 = vperm.xlu1 %4548, %v5269_v61   ;;  %1173 = vst [vmem:[#allocation3 + $0x40] sm:$0xff] %v5287_v6 }
 0x21c   : > { %1174 = vst [vmem:[#allocation3 + $0x50] sm:$0xff] %v5290_v7  ;;  %v637_v12 = vpop.xlane.xlu0 %636 }
 0x21d   : > { %v639_v14 = vpop.xlane.xlu1 %638  ;;  %v5305_v15 = vmax.f32 %v5292_v8, %v637_v12  ;;  %v5348_v12 = vld [vmem:[#allocation3 + $0xc0] sm:$0xff] }
 0x21e   : > { %v5308_v16 = vmax.f32 %v5298_v10, %v639_v14 }
 0x21f   : > { %734 = vperm.xlu1 %4548, %v5287_v6   ;;  %1179 = vst [vmem:[#allocation3 + $0xa0] sm:$0xff] %v5305_v15 }
 0x220   : > { %1180 = vst [vmem:[#allocation3 + $0xb0] sm:$0xff] %v5308_v16  ;;  %v633_v37 = vpop.xlane.xlu0 %632 }
 0x221   : > { %v635_v40 = vpop.xlane.xlu1 %634  ;;  %v5322_v42 = vmax.f32 %v5310_v17, %v633_v37 }
 0x222   : > { %v5325_v43 = vmax.f32 %v5313_v27, %v635_v40 }
 0x223   : > { %739 = vperm.xlu1 %4548, %v5290_v7   ;;  %1177 = vst [vmem:[#allocation3 + $0x80] sm:$0xff] %v5322_v42 }
 0x224   : > { %1178 = vst [vmem:[#allocation3 + $0x90] sm:$0xff] %v5325_v43  ;;  %759 = vperm.xlu0 %4547, %v5325_v43   ;;  %v645_v59 = vpop.xlane.xlu0 %644 }
 0x225   : > { %v647_v60 = vpop.xlane.xlu1 %646  ;;  %v5340_v3 = vmax.f32 %v5327_v49, %v645_v59 }
 0x226   : > { %v5346_v5 = vmax.f32 %v5330_v51, %v647_v60 }
 0x227   : > { %749 = vperm.xlu1 %4548, %v5272_v62   ;;  %1183 = vst [vmem:[#allocation3 + $0xe0] sm:$0xff] %v5340_v3 }
 0x228   : > { %1184 = vst [vmem:[#allocation3 + $0xf0] sm:$0xff] %v5346_v5  ;;  %769 = vperm.xlu0 %4547, %v5308_v16   ;;  %v641_v40 = vpop.xlane.xlu0 %640 }
 0x229   : > { %v643_v59 = vpop.xlane.xlu1 %642  ;;  %v5362_v60 = vmax.f32 %v5348_v12, %v641_v40 }
 0x22a   : > { %v5365_v58 = vmax.f32 %v5351_v13, %v643_v59 }
 0x22b   : > { %754 = vperm.xlu1 %4548, %v5322_v42   ;;  %1181 = vst [vmem:[#allocation3 + $0xc0] sm:$0xff] %v5362_v60 }
 0x22c   : > { %1182 = vst [vmem:[#allocation3 + $0xd0] sm:$0xff] %v5365_v58  ;;  %779 = vperm.xlu0 %4547, %v5365_v58  }
 0x22f   : > { %764 = vperm.xlu1 %4548, %v5305_v15  }
 0x230   : > { %789 = vperm.xlu0 %4547, %v5346_v5  }
 0x233   : > { %774 = vperm.xlu1 %4548, %v5362_v60  }
 0x237   : > { %784 = vperm.xlu1 %4548, %v5340_v3  }
 0x28d   : > { %v725_v40 = vpop.permute.xlu1 %724 }
 0x28e   : > { %v715_v59 = vpop.permute.xlu0 %714  ;;  %v794_v36 = vsub.f32 %v5175_v18, %v725_v40 }
 0x28f   : > { %v792_v14 = vsub.f32 %v5178_v19, %v715_v59 }
 0x290   : > { %v812_v2 = vmul.f32 1.442695, %v794_v36 }
 0x291   : > { %v808_v52 = vmul.f32 1.442695, %v792_v14 }
 0x292   : > { %v720_v37 = vpop.permute.xlu1 %719 }
 0x293   : > { %v793_v35 = vsub.f32 %v5183_v21, %v720_v37  ;;  %4597 = vpow2.f32 %v808_v52 }
 0x295   : > { %v810_v11 = vmul.f32 1.442695, %v793_v35 }
 0x296   : > { %v730_v9 = vpop.permute.xlu1 %729 }
 0x297   : > { %4599 = vpow2.f32 %v810_v11  ;;  %v795_v0 = vsub.f32 %v5181_v20, %v730_v9 }
 0x298   : > { %4601 = vpow2.f32 %v812_v2 }
 0x299   : > { %v814_v56 = vmul.f32 1.442695, %v795_v0 }
 0x29a   : > { %v745_v54 = vpop.permute.xlu1 %744 }
 0x29b   : > { %4603 = vpow2.f32 %v814_v56  ;;  %v798_v21 = vsub.f32 %v5187_v22, %v745_v54  ;;  %v4574_v54 = vld [vmem:[%s5080_s20 + $0x14] ss:$8 sps:$4 sm:$0xff]  }
 0x29d   : > { %v5384_v59 = vpop.eup %4597 }
 0x29e   : > { %v735_v48 = vpop.permute.xlu1 %734 }
 0x29f   : > { %v796_v19 = vsub.f32 %v5189_v23, %v735_v48  ;;  %v820_v48 = vmul.f32 1.442695, %v798_v21 }
 0x2a1   : > { %v5386_v18 = vpop.eup %4599  ;;  %v816_v35 = vmul.f32 1.442695, %v796_v19 }
 0x2a2   : > { %v740_v36 = vpop.permute.xlu1 %739  ;;  %v936_v11 = vpack.c.bf16 %v5386_v18, %v5384_v59  ;;  %v5392_v2 = vpop.eup %4601 }
 0x2a3   : > { %v797_v20 = vsub.f32 %v5195_v25, %v740_v36  ;;  %v760_v0 = vpop.permute.xlu0 %759  ;;  %4605 = vpow2.f32 %v816_v35 }
 0x2a4   : > { %4324 = vmatprep.mubr.bf16.mxu1 %v936_v11  ;;  %v801_v9 = vsub.f32 %v5207_v30, %v760_v0  ;;  %v4575_v0 = vld [vmem:[%s5080_s20 + $0x24] ss:$8 sps:$4 sm:$0xff]  }
 0x2a5   : > { %v5394_v56 = vpop.eup %4603  ;;  %v818_v23 = vmul.f32 1.442695, %v797_v20 }
 0x2a6   : > { %v750_v52 = vpop.permute.xlu1 %749  ;;  %v937_v22 = vpack.c.bf16 %v5394_v56, %v5392_v2  ;;  %v826_v40 = vmul.f32 1.442695, %v801_v9 }
 0x2a7   : > { %4607 = vpow2.f32 %v818_v23  ;;  %v799_v14 = vsub.f32 %v5191_v24, %v750_v52  ;;  %v770_v25 = vpop.permute.xlu0 %769 }
 0x2a8   : > { %4325 = vmatmul.mubr.bf16.vlgmr.msra.gmra.mrb[0].mxu1 %v937_v22  ;;  %4609 = vpow2.f32 %v820_v48  ;;  %v803_v19 = vsub.f32 %v5203_v29, %v770_v25 }
 0x2a9   : > { %v822_v37 = vmul.f32 1.442695, %v799_v14  ;;  %4341 = vmatpush3.bf16.xpose.msra.mxu1 %v5343_v4 }
 0x2aa   : > { %v755_v21 = vpop.permute.xlu1 %754  ;;  %4342 = vmatprep.subr.bf16.mxu1 %v4574_v54  ;;  %v830_v11 = vmul.f32 1.442695, %v803_v19  ;;  %v4576_v19 = vld [vmem:[%s5080_s20 + $0x34] ss:$8 sps:$4 sm:$0xff]  }
 0x2ab   : > { %4611 = vpow2.f32 %v822_v37  ;;  %v800_v30 = vsub.f32 %v5201_v28, %v755_v21  ;;  %v780_v35 = vpop.permute.xlu0 %779 }
 0x2ac   : > { %4613 = vpow2.f32 %v826_v40  ;;  %v805_v24 = vsub.f32 %v5219_v34, %v780_v35 }
 0x2ad   : > { %v824_v36 = vmul.f32 1.442695, %v800_v30  ;;  %v5407_v48 = vpop.eup %4605 }
 0x2ae   : > { %v765_v20 = vpop.permute.xlu1 %764  ;;  %v834_v28 = vmul.f32 1.442695, %v805_v24 }
 0x2af   : > { %4615 = vpow2.f32 %v824_v36  ;;  %v802_v4 = vsub.f32 %v5199_v26, %v765_v20  ;;  %v790_v23 = vpop.permute.xlu0 %789  ;;  %v4577_v20 = vld [vmem:[%s5080_s20 + $0x44] ss:$8 sps:$4 sm:$0xff]  }
 0x2b0   : > { %4617 = vpow2.f32 %v830_v11  ;;  %v807_v52 = vsub.f32 %v5215_v33, %v790_v23 }
 0x2b1   : > { %v5409_v29 = vpop.eup %4607  ;;  %v828_v9 = vmul.f32 1.442695, %v802_v4  ;;  %4343 = vmatpush3.bf16.xpose.msra.mxu1 %v4574_v54 }
 0x2b2   : > { %v775_v22 = vpop.permute.xlu1 %774  ;;  %v938_v34 = vpack.c.bf16 %v5409_v29, %v5407_v48  ;;  %4344 = vmatprep.subr.bf16.mxu1 %v4575_v0  ;;  %v5415_v14 = vpop.eup %4609  ;;  %v838_v54 = vmul.f32 1.442695, %v807_v52  ;;  %v4581_v52 = vld [vmem:[%s5075_s16 + $0x4] ss:$8 sps:$4 sm:$0xff]  }
 0x2b3   : > { %4619 = vpow2.f32 %v828_v9  ;;  %v804_v26 = vsub.f32 %v5213_v32, %v775_v22 }
 0x2b4   : > { %4328 = vmatprep.mubr.bf16.mxu1 %v938_v34  ;;  %4621 = vpow2.f32 %v834_v28  ;;  %v4578_v34 = vld [vmem:[%s5080_s20 + $0x54] ss:$8 sps:$4 sm:$0xff]  }
 0x2b5   : > { %v5417_v25 = vpop.eup %4611  ;;  %v832_v37 = vmul.f32 1.442695, %v804_v26  ;;  %v4579_v26 = vld [vmem:[%s5080_s20 + $0x64] ss:$8 sps:$4 sm:$0xff]  }
 0x2b6   : > { %v785_v40 = vpop.permute.xlu1 %784  ;;  %v939_v33 = vpack.c.bf16 %v5417_v25, %v5415_v14  ;;  %v5423_v30 = vpop.eup %4613 }
 0x2b7   : > { %4623 = vpow2.f32 %v832_v37  ;;  %v806_v21 = vsub.f32 %v5211_v31, %v785_v40  ;;  %v4580_v37 = vld [vmem:[%s5080_s20 + $0x74] ss:$8 sps:$4 sm:$0xff]   ;;  %v4583_v40 = vld [vmem:[%s5075_s16 + $0x24] ss:$8 sps:$4 sm:$0xff]  }
 0x2b8   : > { %4329 = vmatmul.mubr.bf16.gmra.mrb[4].mxu1 %v939_v33  ;;  %4625 = vpow2.f32 %v838_v54  ;;  %v4582_v54 = vld [vmem:[%s5075_s16 + $0x14] ss:$8 sps:$4 sm:$0xff]  }
 0x2b9   : > { %v5425_v32 = vpop.eup %4615  ;;  %v836_v35 = vmul.f32 1.442695, %v806_v21  ;;  %4345 = vmatpush3.bf16.xpose.msra.mxu1 %v4575_v0  ;;  %v4584_v33 = vld [vmem:[%s5075_s16 + $0x34] ss:$8 sps:$4 sm:$0xff]  }
 0x2ba   : > { %v940_v36 = vpack.c.bf16 %v5423_v30, %v5425_v32  ;;  %4346 = vmatprep.subr.bf16.mxu1 %v4576_v19  ;;  %v5429_v11 = vpop.eup %4617  ;;  %v4586_v21 = vld [vmem:[%s5075_s16 + $0x54] ss:$8 sps:$4 sm:$0xff]  }
 0x2bb   : > { %4627 = vpow2.f32 %v836_v35  ;;  %v4587_v35 = vld [vmem:[%s5075_s16 + $0x64] ss:$8 sps:$4 sm:$0xff]  }
 0x2bc   : > { %4332 = vmatprep.mubr.bf16.mxu1 %v940_v36  ;;  %v4588_v36 = vld [vmem:[%s5075_s16 + $0x74] ss:$8 sps:$4 sm:$0xff]  }
 0x2bd   : > { %v5431_v24 = vpop.eup %4619 }
 0x2be   : > { %v941_v31 = vpack.c.bf16 %v5429_v11, %v5431_v24  ;;  %v5436_v4 = vpop.eup %4621 }
 0x2c0   : > { %4333 = vmatmul.mubr.bf16.gmra.mrb[8].mxu1 %v941_v31  ;;  %v684_v31 = vmul.f32 1.442695, %v666_v46  ;;  %v1105_v46 = vld [vmem:[#allocation2] sm:$0xff] }
 0x2c1   : > { %v5438_v0 = vpop.eup %4623  ;;  %4347 = vmatpush3.bf16.xpose.msra.mxu1 %v4576_v19  ;;  %v4585_v19 = vld [vmem:[%s5075_s16 + $0x44] ss:$8 sps:$4 sm:$0xff]  }
 0x2c2   : > { %v942_v23 = vpack.c.bf16 %v5436_v4, %v5438_v0  ;;  %4348 = vmatprep.subr.bf16.mxu1 %v4577_v20  ;;  %v5442_v9 = vpop.eup %4625  ;;  %4629 = vpow2.f32 %v684_v31 }
 0x2c4   : > { %4336 = vmatprep.mubr.bf16.mxu1 %v942_v23 }
 0x2c5   : > { %v5444_v28 = vpop.eup %4627 }
 0x2c6   : > { %v943_v22 = vpack.c.bf16 %v5442_v9, %v5444_v28 }
 0x2c8   : > { %4337 = vmatmul.mubr.bf16.gmra.mrb[12].mxu1 %v943_v22 }
 0x2c9   : > { %4349 = vmatpush3.bf16.xpose.msra.mxu1 %v4577_v20  ;;  %4356 = vmatprep.mubr.bf16.mxu1 %v4581_v52  ;;  %v6997_v20 = vsub.f32 %v5228_v39, %v5235_v44  ;;  %v6998_v52 = vsub.f32 %v5237_v45, %v5250_v50  ;;  %v7000_v44 = vsub.f32 %v5259_v55, %v5269_v61  ;;  %v1108_v50 = vld [vmem:[#allocation2 + $0x30] sm:$0xff] }
 0x2ca   : > { %4350 = vmatprep.subr.bf16.mxu1 %v4578_v34  ;;  %v7003_v55 = vsub.f32 %v5280_v1, %v5290_v7  ;;  %v7004_v1 = vsub.f32 %v5292_v8, %v5305_v15  ;;  %v1111_v8 = vld [vmem:[#allocation2 + $0x60] sm:$0xff] }
 0x2cb   : > { %v680_v23 = vmul.f32 1.442695, %v6997_v20  ;;  %v686_v22 = vmul.f32 1.442695, %v6998_v52  ;;  %v692_v45 = vmul.f32 1.442695, %v7000_v44  ;;  %v7007_v44 = vsub.f32 %v5313_v27, %v5325_v43 }
 0x2cc   : > { %v690_v61 = vmul.f32 1.442695, %v7003_v55  ;;  %v700_v7 = vmul.f32 1.442695, %v7004_v1  ;;  %v7009_v27 = vsub.f32 %v5348_v12, %v5362_v60  ;;  %v1114_v1 = vld [vmem:[#allocation2 + $0x90] sm:$0xff] }
 0x2cd   : > { %4631 = vpow2.f32 %v680_v23 }
 0x2ce   : > { %4633 = vpow2.f32 %v686_v22  ;;  %v704_v43 = vmul.f32 1.442695, %v7009_v27  ;;  %v1119_v27 = vld [vmem:[#allocation2 + $0xe0] sm:$0xff] }
 0x2d1   : > { %4351 = vmatpush3.bf16.xpose.msra.mxu1 %v4578_v34  ;;  %v6999_v34 = vsub.f32 %v5243_v47, %v5254_v53  ;;  %v7001_v47 = vsub.f32 %v5274_v63, %v5287_v6 }
 0x2d2   : > { %4352 = vmatprep.subr.bf16.mxu1 %v4579_v26 }
 0x2d3   : > { %v688_v53 = vmul.f32 1.442695, %v7001_v47  ;;  %v1109_v47 = vld [vmem:[#allocation2 + $0x40] sm:$0xff] }
 0x2d9   : > { %4353 = vmatpush3.bf16.xpose.msra.mxu1 %v4579_v26  ;;  %v682_v26 = vmul.f32 1.442695, %v6999_v34  ;;  %v7005_v34 = vsub.f32 %v5310_v17, %v5322_v42  ;;  %v1112_v42 = vld [vmem:[#allocation2 + $0x70] sm:$0xff] }
 0x2da   : > { %4354 = vmatprep.subr.bf16.mxu1 %v4580_v37 }
 0x2db   : > { %4635 = vpow2.f32 %v682_v26  ;;  %v696_v26 = vmul.f32 1.442695, %v7005_v34 }
 0x2dc   : > { %4637 = vpow2.f32 %v692_v45  ;;  %v698_v45 = vmul.f32 1.442695, %v7007_v44 }
 0x2dd   : > { %4639 = vpow2.f32 %v688_v53 }
 0x2e1   : > { %4355 = vmatpush3.bf16.xpose.msra.mxu1 %v4580_v37  ;;  %v5471_v37 = vpop.eup %4629 }
 0x2e2   : > { %v5473_v41 = vpop.eup %4631 }
 0x2e3   : > { %v5475_v39 = vpop.eup %4633 }
 0x2e4   : > { %v1124_v23 = vmul.f32 %v5475_v39, %v1108_v50 }
 0x2e8   : > { %4357 = vmatmul.mubr.bf16.vlgmr.msra.gmra.mrb[16].mxu1 %v4582_v54  ;;  %v5480_v54 = vpop.eup %4635 }
 0x2e9   : > { %4360 = vmatprep.mubr.bf16.mxu1 %v4583_v40  ;;  %v1123_v40 = vmul.f32 %v5471_v37, %v1107_v38  ;;  %v7006_v38 = vsub.f32 %v5298_v10, %v5308_v16  ;;  %v5507_v50 = vpop.eup %4637  ;;  %v7008_v10 = vsub.f32 %v5327_v49, %v5340_v3  ;;  %v7011_v49 = vsub.f32 %v5351_v13, %v5365_v58  ;;  %v1115_v58 = vld [vmem:[#allocation2 + $0xa0] sm:$0xff] }
 0x2ea   : > { %v5509_v15 = vpop.eup %4639 }
 0x2eb   : > { %v708_v16 = vmul.f32 1.442695, %v7008_v10  ;;  %v706_v3 = vmul.f32 1.442695, %v7011_v49 }
 0x2f0   : > { %4361 = vmatmul.mubr.bf16.gmra.mrb[20].mxu1 %v4584_v33  ;;  %v1106_v33 = vld [vmem:[#allocation2 + $0x10] sm:$0xff] }
 0x2f1   : > { %4364 = vmatprep.mubr.bf16.mxu1 %v4585_v19  ;;  %v7002_v19 = vsub.f32 %v5265_v57, %v5272_v62  ;;  %v1122_v52 = vmul.f32 %v5480_v54, %v1106_v33  ;;  %v1110_v33 = vld [vmem:[#allocation2 + $0x50] sm:$0xff] }
 0x2f8   : > { %4365 = vmatmul.mubr.bf16.gmra.mrb[24].mxu1 %v4586_v21  ;;  %v694_v21 = vmul.f32 1.442695, %v7002_v19  ;;  %v7010_v19 = vsub.f32 %v5330_v51, %v5346_v5 }
 0x2f9   : > { %4368 = vmatprep.mubr.bf16.mxu1 %v4587_v35 }
 0x2fa   : > { %4641 = vpow2.f32 %v694_v21  ;;  %v710_v21 = vmul.f32 1.442695, %v7010_v19  ;;  %v1120_v19 = vld [vmem:[#allocation2 + $0xf0] sm:$0xff] }
 0x2fb   : > { %4643 = vpow2.f32 %v690_v61 }
 0x2fc   : > { %4645 = vpow2.f32 %v700_v7 }
 0x2fd   : > { %4647 = vpow2.f32 %v696_v26 }
 0x300   : > { %4369 = vmatmul.mubr.bf16.gmra.mrb[28].mxu1 %v4588_v36  ;;  %v1121_v36 = vmul.f32 %v5473_v41, %v1105_v46  ;;  %v702_v46 = vmul.f32 1.442695, %v7006_v38 }
 0x302   : > { %4649 = vpow2.f32 %v702_v46 }
 0x303   : > { %4651 = vpow2.f32 %v698_v45 }
 0x304   : > { %v5511_v17 = vpop.eup %4641  ;;  %4653 = vpow2.f32 %v708_v16 }
 0x305   : > { %v5516_v53 = vpop.eup %4643  ;;  %4655 = vpow2.f32 %v704_v43 }
 0x306   : > { %4657 = vpow2.f32 %v710_v21 }
 0x307   : > { %4659 = vpow2.f32 %v706_v3 }
 0x37b   : > { %v4326_v35 = vpop.f32.mrb[0].mxu1 }
 0x37c   : > { %v1139_v31 = vadd.f32 %v4326_v35, %v1123_v40  ;;  %v1042_v20 = vpop.f32.mrb[1].mxu1  ;;  %v1127_v40 = vmul.f32 %v5507_v50, %v1111_v8 }
 0x37d   : > { %v1137_v63 = vadd.f32 %v1121_v36, %v1042_v20  ;;  %v4327_v6 = vpop.f32.mrb[2].mxu1  ;;  %v1125_v36 = vmul.f32 %v5509_v15, %v1109_v47  ;;  %v1126_v20 = vmul.f32 %v5516_v53, %v1110_v33 }
 0x37e   : > { %1155 = vst [vmem:[#allocation2 + $0x20] sm:$0xff] %v1139_v31  ;;  %v1140_v57 = vadd.f32 %v4327_v6, %v1124_v23  ;;  %v1045_v62 = vpop.f32.mrb[3].mxu1  ;;  %v1128_v31 = vmul.f32 %v5511_v17, %v1112_v42  ;;  %v5531_v23 = vpop.eup %4645  ;;  %v1113_v6 = vld [vmem:[#allocation2 + $0x80] sm:$0xff] }
 0x37f   : > { %1153 = vst [vmem:[#allocation2] sm:$0xff] %v1137_v63  ;;  %v1138_v22 = vadd.f32 %v1122_v52, %v1045_v62  ;;  %v5533_v13 = vpop.eup %4647 }
 0x380   : > { %1156 = vst [vmem:[#allocation2 + $0x30] sm:$0xff] %v1140_v57  ;;  %v5535_v52 = vpop.eup %4649  ;;  %v1116_v57 = vld [vmem:[#allocation2 + $0xb0] sm:$0xff]  ;;  %v1129_v34 = vmul.f32 %v5533_v13, %v1113_v6 }
 0x381   : > { %1154 = vst [vmem:[#allocation2 + $0x10] sm:$0xff] %v1138_v22  ;;  %v5537_v62 = vpop.eup %4651  ;;  %v1131_v22 = vmul.f32 %v5531_v23, %v1115_v58  ;;  %v1132_v46 = vmul.f32 %v5535_v52, %v1116_v57 }
 0x382   : > { %v1130_v8 = vmul.f32 %v5537_v62, %v1114_v1  ;;  %v5543_v16 = vpop.eup %4653 }
 0x383   : > { %v5545_v43 = vpop.eup %4655 }
 0x384   : > { %v5547_v33 = vpop.eup %4657 }
 0x385   : > { %v5549_v21 = vpop.eup %4659 }
 0x38b   : > { %v4330_v35 = vpop.f32.mrb[4].mxu1 }
 0x38c   : > { %v1143_v55 = vadd.f32 %v4330_v35, %v1127_v40  ;;  %v1058_v61 = vpop.f32.mrb[5].mxu1  ;;  %v1117_v40 = vld [vmem:[#allocation2 + $0xc0] sm:$0xff]  ;;  %v1135_v35 = vmul.f32 %v5543_v16, %v1119_v27 }
 0x38d   : > { %v1141_v12 = vadd.f32 %v1125_v36, %v1058_v61  ;;  %v4331_v60 = vpop.f32.mrb[6].mxu1  ;;  %v1118_v36 = vld [vmem:[#allocation2 + $0xd0] sm:$0xff]  ;;  %v1133_v3 = vmul.f32 %v5545_v43, %v1117_v40  ;;  %v4589_v27 = vld [vmem:[%s5085_s24 + $0x4] ss:$8 sps:$4 sm:$0xff]  }
 0x38e   : > { %1159 = vst [vmem:[#allocation2 + $0x60] sm:$0xff] %v1143_v55  ;;  %v1144_v51 = vadd.f32 %v4331_v60, %v1128_v31  ;;  %v1061_v5 = vpop.f32.mrb[7].mxu1  ;;  %v1136_v31 = vmul.f32 %v5547_v33, %v1120_v19  ;;  %v4590_v40 = vld [vmem:[%s5085_s24 + $0x14] ss:$8 sps:$4 sm:$0xff]   ;;  %4372 = vmatprep.subr.bf16.mxu0 %v4589_v27  ;;  %v4591_v19 = vld [vmem:[%s5085_s24 + $0x24] ss:$8 sps:$4 sm:$0xff]  }
 0x38f   : > { %1157 = vst [vmem:[#allocation2 + $0x40] sm:$0xff] %v1141_v12  ;;  %v1142_v63 = vadd.f32 %v1126_v20, %v1061_v5  ;;  %v1134_v20 = vmul.f32 %v5549_v21, %v1118_v36  ;;  %4373 = vmatpush3.bf16.msra.mxu0 %v4589_v27 }
 0x390   : > { %1160 = vst [vmem:[#allocation2 + $0x70] sm:$0xff] %v1144_v51  ;;  %4374 = vmatprep.subr.bf16.mxu0 %v4590_v40 }
 0x391   : > { %1158 = vst [vmem:[#allocation2 + $0x50] sm:$0xff] %v1142_v63 }
 0x393   : > { %v4334_v7 = vpop.f32.mrb[8].mxu1  ;;  %4375 = vmatpush3.bf16.msra.mxu0 %v4590_v40 }
 0x394   : > { %v1147_v26 = vadd.f32 %v4334_v7, %v1131_v22  ;;  %v1074_v38 = vpop.f32.mrb[9].mxu1  ;;  %4376 = vmatprep.subr.bf16.mxu0 %v4591_v19 }
 0x395   : > { %v1145_v44 = vadd.f32 %v1129_v34, %v1074_v38  ;;  %v4335_v45 = vpop.f32.mrb[10].mxu1 }
 0x396   : > { %1163 = vst [vmem:[#allocation2 + $0xa0] sm:$0xff] %v1147_v26  ;;  %v1148_v47 = vadd.f32 %v4335_v45, %v1132_v46  ;;  %v1077_v10 = vpop.f32.mrb[11].mxu1 }
 0x397   : > { %1161 = vst [vmem:[#allocation2 + $0x80] sm:$0xff] %v1145_v44  ;;  %v1146_v42 = vadd.f32 %v1130_v8, %v1077_v10  ;;  %4377 = vmatpush3.bf16.msra.mxu0 %v4591_v19 }
 0x398   : > { %1164 = vst [vmem:[#allocation2 + $0xb0] sm:$0xff] %v1148_v47 }
 0x399   : > { %1162 = vst [vmem:[#allocation2 + $0x90] sm:$0xff] %v1146_v42 }
 0x39b   : > { %v4338_v49 = vpop.f32.mrb[12].mxu1 }
 0x39c   : > { %v1151_v55 = vadd.f32 %v4338_v49, %v1135_v35  ;;  %v1090_v61 = vpop.f32.mrb[13].mxu1  ;;  %v5606_v35 = vld [vmem:[#allocation3 + $0x8] sm:$0xff]  ;;  %v5608_v49 = vld [vmem:[#allocation3 + $0x18] sm:$0xff] }
 0x39d   : > { %v1149_v12 = vadd.f32 %v1133_v3, %v1090_v61  ;;  %v4339_v60 = vpop.f32.mrb[14].mxu1  ;;  %7012 = vst [vmem:[#allocation9_spill] sm:$0xff] %v5606_v35  ;;  %7013 = vst [vmem:[#allocation10_spill] sm:$0xff] %v5608_v49  ;;  %v5613_v61 = vld [vmem:[#allocation3 + $0x38] sm:$0xff] }
 0x39e   : > { %1167 = vst [vmem:[#allocation2 + $0xe0] sm:$0xff] %v1151_v55  ;;  %v1152_v51 = vadd.f32 %v4339_v60, %v1136_v31  ;;  %v1093_v5 = vpop.f32.mrb[15].mxu1  ;;  %v4593_v31 = vld [vmem:[%s5085_s24 + $0x44] ss:$8 sps:$4 sm:$0xff]  }
 0x39f   : > { %1165 = vst [vmem:[#allocation2 + $0xc0] sm:$0xff] %v1149_v12  ;;  %v1150_v63 = vadd.f32 %v1134_v20, %v1093_v5  ;;  %v5622_v20 = vld [vmem:[#allocation3 + $0x28] sm:$0xff] }
 0x3a0   : > { %1168 = vst [vmem:[#allocation2 + $0xf0] sm:$0xff] %v1152_v51 }
 0x3a1   : > { %1166 = vst [vmem:[#allocation2 + $0xd0] sm:$0xff] %v1150_v63  ;;  %v4592_v63 = vld [vmem:[%s5085_s24 + $0x34] ss:$8 sps:$4 sm:$0xff]  }
 0x3a2   : > { %4378 = vmatprep.subr.bf16.mxu0 %v4592_v63 }
 0x3a3   : > { %4379 = vmatpush3.bf16.msra.mxu0 %v4592_v63  ;;  %v5656_v63 = vld [vmem:[#allocation3 + $0x78] sm:$0xff] }
 0x3a4   : > { %4380 = vmatprep.subr.bf16.mxu0 %v4593_v31  ;;  %7022 = vst [vmem:[#allocation19_spill] sm:$0xff] %v5656_v63 }
 0x3a7   : > { %4381 = vmatpush3.bf16.msra.mxu0 %v4593_v31 }
 0x3bb   : > { %v5555_v58 = vpop.f32.mrb[16].mxu1 }
 0x3bc   : > { %v5557_v6 = vpop.f32.mrb[17].mxu1 }
 0x3bd   : > { %1426 = vmax.xlane.f32.xlu1 %v5557_v6  ;;  %v5560_v57 = vpop.f32.mrb[18].mxu1 }
 0x3be   : > { %v5562_v22 = vpop.f32.mrb[19].mxu1 }
 0x3bf   : > { %1428 = vmax.xlane.f32.xlu0 %v5562_v22 }
 0x3c1   : > { %1432 = vmax.xlane.f32.xlu1 %v5560_v57 }
 0x3c3   : > { %1430 = vmax.xlane.f32.xlu0 %v5555_v58  ;;  %v5567_v1 = vpop.f32.mrb[20].mxu1 }
 0x3c4   : > { %v5569_v7 = vpop.f32.mrb[21].mxu1 }
 0x3c5   : > { %v5571_v34 = vpop.f32.mrb[22].mxu1 }
 0x3c6   : > { %v5573_v26 = vpop.f32.mrb[23].mxu1 }
 0x3c7   : > { %1434 = vmax.xlane.f32.xlu0 %v5569_v7  ;;  %1436 = vmax.xlane.f32.xlu1 %v5573_v26 }
 0x3cb   : > { %1438 = vmax.xlane.f32.xlu0 %v5567_v1  ;;  %1440 = vmax.xlane.f32.xlu1 %v5571_v34  ;;  %v5579_v38 = vpop.f32.mrb[24].mxu1 }
 0x3cc   : > { %v5581_v46 = vpop.f32.mrb[25].mxu1 }
 0x3cd   : > { %v5583_v44 = vpop.f32.mrb[26].mxu1 }
 0x3ce   : > { %v5585_v45 = vpop.f32.mrb[27].mxu1 }
 0x3cf   : > { %1442 = vmax.xlane.f32.xlu0 %v5581_v46  ;;  %1444 = vmax.xlane.f32.xlu1 %v5585_v45 }
 0x3d3   : > { %1446 = vmax.xlane.f32.xlu0 %v5579_v38  ;;  %1448 = vmax.xlane.f32.xlu1 %v5583_v44  ;;  %v5591_v8 = vpop.f32.mrb[28].mxu1 }
 0x3d4   : > { %v5593_v47 = vpop.f32.mrb[29].mxu1 }
 0x3d5   : > { %v5595_v10 = vpop.f32.mrb[30].mxu1 }
 0x3d6   : > { %v5597_v42 = vpop.f32.mrb[31].mxu1 }
 0x3d7   : > { %1450 = vmax.xlane.f32.xlu0 %v5593_v47  ;;  %1452 = vmax.xlane.f32.xlu1 %v5597_v42 }
 0x3db   : > { %1454 = vmax.xlane.f32.xlu0 %v5591_v8  ;;  %1456 = vmax.xlane.f32.xlu1 %v5595_v10 }
 0x44a   : > { %v1427_v36 = vpop.xlane.xlu1 %1426 }
 0x44b   : > { %v5611_v3 = vmax.f32 %v5606_v35, %v1427_v36  ;;  %v5639_v36 = vld [vmem:[#allocation3 + $0x48] sm:$0xff] }
 0x44c   : > { %v1429_v55 = vpop.xlane.xlu0 %1428  ;;  %7017 = vst [vmem:[#allocation14_spill] sm:$0xff] %v5639_v36  ;;  %v5654_v35 = vld [vmem:[#allocation3 + $0x68] sm:$0xff] }
 0x44d   : > { %7014 = vst [vmem:[#allocation11_spill] sm:$0xff] %v5611_v3  ;;  %1979 = vst [vmem:[#allocation3 + $0x8] sm:$0xff] %v5611_v3  ;;  %v5619_v12 = vmax.f32 %v5608_v49, %v1429_v55  ;;  %1524 = vperm.xlu0 %4547, %v5611_v3   ;;  %v5641_v55 = vld [vmem:[#allocation3 + $0x58] sm:$0xff] }
 0x44e   : > { %v1433_v60 = vpop.xlane.xlu1 %1432  ;;  %7018 = vst [vmem:[#allocation15_spill] sm:$0xff] %v5641_v55  ;;  %7021 = vst [vmem:[#allocation18_spill] sm:$0xff] %v5654_v35 }
 0x44f   : > { %7015 = vst [vmem:[#allocation12_spill] sm:$0xff] %v5619_v12  ;;  %1980 = vst [vmem:[#allocation3 + $0x18] sm:$0xff] %v5619_v12  ;;  %v5628_v5 = vmax.f32 %v5613_v61, %v1433_v60  ;;  %1529 = vperm.xlu1 %4548, %v5619_v12   ;;  %v5675_v12 = vld [vmem:[#allocation3 + $0x98] sm:$0xff] }
 0x450   : > { %v1431_v27 = vpop.xlane.xlu0 %1430  ;;  %7026 = vst [vmem:[#allocation23_spill] sm:$0xff] %v5675_v12 }
 0x451   : > { %1982 = vst [vmem:[#allocation3 + $0x38] sm:$0xff] %v5628_v5  ;;  %v5636_v19 = vmax.f32 %v5622_v20, %v1431_v27  ;;  %1539 = vperm.xlu0 %4547, %v5628_v5  }
 0x453   : > { %7016 = vst [vmem:[#allocation13_spill] sm:$0xff] %v5636_v19  ;;  %1981 = vst [vmem:[#allocation3 + $0x28] sm:$0xff] %v5636_v19  ;;  %1534 = vperm.xlu1 %4548, %v5636_v19  }
 0x454   : > { %v1435_v51 = vpop.xlane.xlu0 %1434  ;;  %v1437_v27 = vpop.xlane.xlu1 %1436 }
 0x455   : > { %v5649_v40 = vmax.f32 %v5639_v36, %v1435_v51  ;;  %v5652_v3 = vmax.f32 %v5641_v55, %v1437_v27  ;;  %v4594_v51 = vld [vmem:[%s5085_s24 + $0x54] ss:$8 sps:$4 sm:$0xff]   ;;  %v5673_v36 = vld [vmem:[#allocation3 + $0x88] sm:$0xff] }
 0x456   : > { %4382 = vmatprep.subr.bf16.mxu0 %v4594_v51  ;;  %7025 = vst [vmem:[#allocation22_spill] sm:$0xff] %v5673_v36 }
 0x457   : > { %7019 = vst [vmem:[#allocation16_spill] sm:$0xff] %v5649_v40  ;;  %7020 = vst [vmem:[#allocation17_spill] sm:$0xff] %v5652_v3  ;;  %1549 = vperm.xlu0 %4547, %v5652_v3   ;;  %1544 = vperm.xlu1 %4548, %v5649_v40  }
 0x458   : > { %1983 = vst [vmem:[#allocation3 + $0x48] sm:$0xff] %v5649_v40  ;;  %1984 = vst [vmem:[#allocation3 + $0x58] sm:$0xff] %v5652_v3  ;;  %v1439_v27 = vpop.xlane.xlu0 %1438  ;;  %v1441_v49 = vpop.xlane.xlu1 %1440  ;;  %4383 = vmatpush3.bf16.msra.mxu0 %v4594_v51  ;;  %v5694_v40 = vld [vmem:[#allocation3 + $0xb8] sm:$0xff] }
 0x459   : > { %v5668_v31 = vmax.f32 %v5654_v35, %v1439_v27  ;;  %v5671_v60 = vmax.f32 %v5656_v63, %v1441_v49  ;;  %v4595_v49 = vld [vmem:[%s5085_s24 + $0x64] ss:$8 sps:$4 sm:$0xff]  }
 0x45a   : > { %4384 = vmatprep.subr.bf16.mxu0 %v4595_v49  ;;  %v5692_v35 = vld [vmem:[#allocation3 + $0xa8] sm:$0xff] }
 0x45b   : > { %7023 = vst [vmem:[#allocation20_spill] sm:$0xff] %v5668_v31  ;;  %7024 = vst [vmem:[#allocation21_spill] sm:$0xff] %v5671_v60  ;;  %1559 = vperm.xlu0 %4547, %v5671_v60   ;;  %1554 = vperm.xlu1 %4548, %v5668_v31  }
 0x45c   : > { %1985 = vst [vmem:[#allocation3 + $0x68] sm:$0xff] %v5668_v31  ;;  %1986 = vst [vmem:[#allocation3 + $0x78] sm:$0xff] %v5671_v60  ;;  %v1443_v27 = vpop.xlane.xlu0 %1442  ;;  %v1445_v55 = vpop.xlane.xlu1 %1444  ;;  %4385 = vmatpush3.bf16.msra.mxu0 %v4595_v49  ;;  %v5711_v60 = vld [vmem:[#allocation3 + $0xc8] sm:$0xff] }
 0x45d   : > { %v5687_v51 = vmax.f32 %v5673_v36, %v1443_v27  ;;  %v5690_v3 = vmax.f32 %v5675_v12, %v1445_v55  ;;  %7029 = vst [vmem:[#allocation26_spill] sm:$0xff] %v5692_v35  ;;  %v4596_v55 = vld [vmem:[%s5085_s24 + $0x74] ss:$8 sps:$4 sm:$0xff]   ;;  %v5729_v31 = vld [vmem:[#allocation3 + $0xe8] sm:$0xff] }
 0x45e   : > { %4386 = vmatprep.subr.bf16.mxu0 %v4596_v55  ;;  %v5713_v36 = vld [vmem:[#allocation3 + $0xd8] sm:$0xff] }
 0x45f   : > { %7027 = vst [vmem:[#allocation24_spill] sm:$0xff] %v5687_v51  ;;  %7028 = vst [vmem:[#allocation25_spill] sm:$0xff] %v5690_v3  ;;  %1569 = vperm.xlu0 %4547, %v5690_v3   ;;  %1564 = vperm.xlu1 %4548, %v5687_v51   ;;  %v5731_v12 = vld [vmem:[#allocation3 + $0xf8] sm:$0xff] }
 0x460   : > { %1987 = vst [vmem:[#allocation3 + $0x88] sm:$0xff] %v5687_v51  ;;  %1988 = vst [vmem:[#allocation3 + $0x98] sm:$0xff] %v5690_v3  ;;  %v1447_v27 = vpop.xlane.xlu0 %1446  ;;  %v1449_v63 = vpop.xlane.xlu1 %1448  ;;  %4387 = vmatpush3.bf16.msra.mxu0 %v4596_v55 }
 0x461   : > { %v5706_v19 = vmax.f32 %v5692_v35, %v1447_v27  ;;  %v5709_v49 = vmax.f32 %v5694_v40, %v1449_v63 }
 0x463   : > { %7030 = vst [vmem:[#allocation27_spill] sm:$0xff] %v5706_v19  ;;  %7031 = vst [vmem:[#allocation28_spill] sm:$0xff] %v5709_v49  ;;  %1579 = vperm.xlu0 %4547, %v5709_v49   ;;  %1574 = vperm.xlu1 %4548, %v5706_v19  }
 0x464   : > { %1989 = vst [vmem:[#allocation3 + $0xa8] sm:$0xff] %v5706_v19  ;;  %1990 = vst [vmem:[#allocation3 + $0xb8] sm:$0xff] %v5709_v49  ;;  %v1451_v63 = vpop.xlane.xlu0 %1450  ;;  %v1453_v27 = vpop.xlane.xlu1 %1452 }
 0x465   : > { %v5724_v3 = vmax.f32 %v5711_v60, %v1451_v63  ;;  %v5727_v55 = vmax.f32 %v5713_v36, %v1453_v27 }
 0x467   : > { %1991 = vst [vmem:[#allocation3 + $0xc8] sm:$0xff] %v5724_v3  ;;  %1992 = vst [vmem:[#allocation3 + $0xd8] sm:$0xff] %v5727_v55  ;;  %1584 = vperm.xlu1 %4548, %v5724_v3   ;;  %1589 = vperm.xlu0 %4547, %v5727_v55  }
 0x468   : > { %v1455_v63 = vpop.xlane.xlu0 %1454  ;;  %v1457_v27 = vpop.xlane.xlu1 %1456 }
 0x469   : > { %v5742_v35 = vmax.f32 %v5729_v31, %v1455_v63  ;;  %v5745_v49 = vmax.f32 %v5731_v12, %v1457_v27 }
 0x46b   : > { %v1488_v51 = vsub.f32 %v5729_v31, %v5742_v35  ;;  %1993 = vst [vmem:[#allocation3 + $0xe8] sm:$0xff] %v5742_v35  ;;  %v1489_v19 = vsub.f32 %v5731_v12, %v5745_v49  ;;  %1994 = vst [vmem:[#allocation3 + $0xf8] sm:$0xff] %v5745_v49  ;;  %1594 = vperm.xlu1 %4548, %v5742_v35   ;;  %1599 = vperm.xlu0 %4547, %v5745_v49   ;;  %v1660_v49 = vld [vmem:[#allocation4 + $0xa8] sm:$0xff] }
 0x48a   : > { %874 = vadd.xlane.f32.xlu0 %v5386_v18 }
 0x48e   : > { %876 = vadd.xlane.f32.xlu0 %v5392_v2 }
 0x48f   : > { %872 = vadd.xlane.f32.xlu1 %v5384_v59 }
 0x492   : > { %880 = vadd.xlane.f32.xlu0 %v5407_v48 }
 0x493   : > { %878 = vadd.xlane.f32.xlu1 %v5394_v56 }
 0x496   : > { %884 = vadd.xlane.f32.xlu0 %v5415_v14 }
 0x497   : > { %882 = vadd.xlane.f32.xlu1 %v5409_v29 }
 0x49a   : > { %888 = vadd.xlane.f32.xlu0 %v5425_v32 }
 0x49b   : > { %886 = vadd.xlane.f32.xlu1 %v5417_v25 }
 0x49e   : > { %892 = vadd.xlane.f32.xlu0 %v5431_v24 }
 0x49f   : > { %890 = vadd.xlane.f32.xlu1 %v5423_v30 }
 0x4a2   : > { %896 = vadd.xlane.f32.xlu0 %v5438_v0 }
 0x4a3   : > { %894 = vadd.xlane.f32.xlu1 %v5429_v11 }
 0x4a6   : > { %900 = vadd.xlane.f32.xlu0 %v5444_v28 }
 0x4a7   : > { %898 = vadd.xlane.f32.xlu1 %v5436_v4 }
 0x4ab   : > { %902 = vadd.xlane.f32.xlu1 %v5442_v9 }
 0x4cc   : > { %v1525_v59 = vpop.permute.xlu0 %1524 }
 0x4cd   : > { %v1602_v18 = vsub.f32 %v5557_v6, %v1525_v59 }
 0x4ce   : > { %v1530_v2 = vpop.permute.xlu1 %1529 }
 0x4cf   : > { %v1618_v56 = vmul.f32 1.442695, %v1602_v18  ;;  %v1603_v48 = vsub.f32 %v5562_v22, %v1530_v2 }
 0x4d0   : > { %v1540_v29 = vpop.permute.xlu0 %1539 }
 0x4d1   : > { %v1620_v14 = vmul.f32 1.442695, %v1603_v48  ;;  %v1605_v25 = vsub.f32 %v5560_v57, %v1540_v29  ;;  %4661 = vpow2.f32 %v1618_v56 }
 0x4d2   : > { %v1535_v30 = vpop.permute.xlu1 %1534 }
 0x4d3   : > { %4663 = vpow2.f32 %v1620_v14  ;;  %v1624_v32 = vmul.f32 1.442695, %v1605_v25  ;;  %v1604_v11 = vsub.f32 %v5555_v58, %v1535_v30 }
 0x4d5   : > { %4665 = vpow2.f32 %v1624_v32  ;;  %v1622_v24 = vmul.f32 1.442695, %v1604_v11 }
 0x4d6   : > { %v1550_v4 = vpop.permute.xlu0 %1549  ;;  %v1545_v0 = vpop.permute.xlu1 %1544 }
 0x4d7   : > { %4667 = vpow2.f32 %v1622_v24  ;;  %v1607_v9 = vsub.f32 %v5573_v26, %v1550_v4  ;;  %v1606_v28 = vsub.f32 %v5569_v7, %v1545_v0 }
 0x4d9   : > { %v1628_v6 = vmul.f32 1.442695, %v1607_v9  ;;  %v1626_v22 = vmul.f32 1.442695, %v1606_v28 }
 0x4da   : > { %v1560_v63 = vpop.permute.xlu0 %1559  ;;  %v1555_v27 = vpop.permute.xlu1 %1554 }
 0x4db   : > { %4669 = vpow2.f32 %v1628_v6  ;;  %v1609_v57 = vsub.f32 %v5571_v34, %v1560_v63  ;;  %v1608_v59 = vsub.f32 %v5567_v1, %v1555_v27  ;;  %v4662_v18 = vpop.eup %4661 }
 0x4dc   : > { %4671 = vpow2.f32 %v1626_v22 }
 0x4dd   : > { %v4664_v58 = vpop.eup %4663  ;;  %v1632_v2 = vmul.f32 1.442695, %v1609_v57  ;;  %v1630_v56 = vmul.f32 1.442695, %v1608_v59 }
 0x4de   : > { %v1570_v48 = vpop.permute.xlu0 %1569  ;;  %v1565_v29 = vpop.permute.xlu1 %1564  ;;  %v1746_v14 = vpack.c.bf16 %v4664_v58, %v4662_v18 }
 0x4df   : > { %v4666_v26 = vpop.eup %4665  ;;  %4673 = vpow2.f32 %v1632_v2  ;;  %v1611_v7 = vsub.f32 %v5585_v45, %v1570_v48  ;;  %v1610_v25 = vsub.f32 %v5581_v46, %v1565_v29 }
 0x4e0   : > { %4675 = vpow2.f32 %v1630_v56  ;;  %1688 = vadd.xlane.f32.xlu1 %v4666_v26  ;;  %4388 = vmatprep.mubr.bf16.mxu0 %v1746_v14 }
 0x4e1   : > { %v4668_v34 = vpop.eup %4667  ;;  %v1636_v30 = vmul.f32 1.442695, %v1611_v7  ;;  %v1634_v1 = vmul.f32 1.442695, %v1610_v25 }
 0x4e2   : > { %v1580_v32 = vpop.permute.xlu0 %1579  ;;  %1686 = vadd.xlane.f32.xlu0 %v4668_v34  ;;  %v1575_v11 = vpop.permute.xlu1 %1574  ;;  %v1747_v24 = vpack.c.bf16 %v4666_v26, %v4668_v34 }
 0x4e3   : > { %4677 = vpow2.f32 %v1636_v30  ;;  %v1613_v4 = vsub.f32 %v5583_v44, %v1580_v32  ;;  %v1612_v0 = vsub.f32 %v5579_v38, %v1575_v11 }
 0x4e4   : > { %4679 = vpow2.f32 %v1634_v1  ;;  %1684 = vadd.xlane.f32.xlu1 %v4664_v58  ;;  %4389 = vmatmul.mubr.bf16.vlgmr.msra.gmra.mrb[16].mxu0 %v1747_v24 }
 0x4e5   : > { %v4670_v45 = vpop.eup %4669  ;;  %v1640_v46 = vmul.f32 1.442695, %v1613_v4  ;;  %v1638_v9 = vmul.f32 1.442695, %v1612_v0  ;;  %v841_v4 = vld [vmem:[#allocation4 + $0x10] sm:$0xff] }
 0x4e6   : > { %v4672_v28 = vpop.eup %4671  ;;  %v1590_v6 = vpop.permute.xlu0 %1589  ;;  %1682 = vadd.xlane.f32.xlu0 %v4662_v18  ;;  %v857_v0 = vmul.f32 %v5480_v54, %v841_v4  ;;  %v852_v4 = vld [vmem:[#allocation4 + $0xc0] sm:$0xff] }
 0x4e7   : > { %v1585_v22 = vpop.permute.xlu1 %1584  ;;  %4681 = vpow2.f32 %v1640_v46  ;;  %v1615_v63 = vsub.f32 %v5597_v42, %v1590_v6  ;;  %v1748_v57 = vpack.c.bf16 %v4670_v45, %v4672_v28  ;;  %v842_v46 = vld [vmem:[#allocation4 + $0x20] sm:$0xff] }
 0x4e8   : > { %v1614_v27 = vsub.f32 %v5593_v47, %v1585_v22  ;;  %4683 = vpow2.f32 %v1638_v9  ;;  %v858_v6 = vmul.f32 %v5471_v37, %v842_v46 }
 0x4e9   : > { %v4674_v44 = vpop.eup %4673  ;;  %v1644_v59 = vmul.f32 1.442695, %v1615_v63  ;;  %4392 = vmatprep.mubr.bf16.mxu0 %v1748_v57 }
 0x4ea   : > { %v1642_v38 = vmul.f32 1.442695, %v1614_v27  ;;  %v4676_v58 = vpop.eup %4675  ;;  %v1600_v2 = vpop.permute.xlu0 %1599  ;;  %1696 = vadd.xlane.f32.xlu1 %v4674_v44  ;;  %v844_v27 = vld [vmem:[#allocation4 + $0x40] sm:$0xff] }
 0x4eb   : > { %v1595_v56 = vpop.permute.xlu1 %1594  ;;  %4685 = vpow2.f32 %v1644_v59  ;;  %v1617_v48 = vsub.f32 %v5595_v10, %v1600_v2  ;;  %1694 = vadd.xlane.f32.xlu0 %v4676_v58  ;;  %v1749_v29 = vpack.c.bf16 %v4674_v44, %v4676_v58  ;;  %v843_v59 = vld [vmem:[#allocation4 + $0x30] sm:$0xff]  ;;  %v860_v58 = vmul.f32 %v5509_v15, %v844_v27 }
 0x4ec   : > { %v1616_v18 = vsub.f32 %v5591_v8, %v1595_v56  ;;  %4687 = vpow2.f32 %v1642_v38  ;;  %v859_v2 = vmul.f32 %v5475_v39, %v843_v59  ;;  %v846_v56 = vld [vmem:[#allocation4 + $0x60] sm:$0xff]  ;;  %v847_v15 = vld [vmem:[#allocation4 + $0x70] sm:$0xff] }
 0x4ed   : > { %v4678_v42 = vpop.eup %4677  ;;  %v1648_v47 = vmul.f32 1.442695, %v1617_v48  ;;  %4393 = vmatmul.mubr.bf16.gmra.mrb[20].mxu0 %v1749_v29  ;;  %v845_v29 = vld [vmem:[#allocation4 + $0x50] sm:$0xff] }
 0x4ee   : > { %v1646_v14 = vmul.f32 1.442695, %v1616_v18  ;;  %v4680_v26 = vpop.eup %4679  ;;  %1692 = vadd.xlane.f32.xlu1 %v4670_v45 }
 0x4ef   : > { %4689 = vpow2.f32 %v1648_v47  ;;  %1690 = vadd.xlane.f32.xlu0 %v4672_v28  ;;  %v1750_v7 = vpack.c.bf16 %v4678_v42, %v4680_v26  ;;  %v840_v28 = vld [vmem:[#allocation4] sm:$0xff]  ;;  %v861_v47 = vmul.f32 %v5516_v53, %v845_v29 }
 0x4f0   : > { %4691 = vpow2.f32 %v1646_v14  ;;  %v856_v63 = vmul.f32 %v5473_v41, %v840_v28  ;;  %v862_v41 = vmul.f32 %v5507_v50, %v846_v56  ;;  %v848_v14 = vld [vmem:[#allocation4 + $0x80] sm:$0xff]  ;;  %v849_v50 = vld [vmem:[#allocation4 + $0x90] sm:$0xff]  ;;  %v7032_v56 = vsub.f32 %v5613_v61, %v5628_v5 }
 0x4f1   : > { %v4682_v25 = vpop.eup %4681  ;;  %4396 = vmatprep.mubr.bf16.mxu0 %v1750_v7  ;;  %v864_v39 = vmul.f32 %v5533_v13, %v848_v14  ;;  %v851_v13 = vld [vmem:[#allocation4 + $0xb0] sm:$0xff] }
 0x4f2   : > { %v4684_v34 = vpop.eup %4683  ;;  %1704 = vadd.xlane.f32.xlu1 %v4682_v25  ;;  %v867_v28 = vmul.f32 %v5535_v52, %v851_v13  ;;  %v7039_v14 = vld [vmem:[#allocation11_spill] sm:$0xff] }
 0x4f3   : > { %1702 = vadd.xlane.f32.xlu0 %v4684_v34  ;;  %v1751_v10 = vpack.c.bf16 %v4682_v25, %v4684_v34 }
 0x4f5   : > { %v4686_v30 = vpop.eup %4685  ;;  %4397 = vmatmul.mubr.bf16.gmra.mrb[24].mxu0 %v1751_v10  ;;  %v863_v10 = vmul.f32 %v5511_v17, %v847_v15  ;;  %v868_v17 = vmul.f32 %v5545_v43, %v852_v4  ;;  %v7042_v15 = vld [vmem:[#allocation21_spill] sm:$0xff] }
 0x4f6   : > { %v4688_v8 = vpop.eup %4687  ;;  %1700 = vadd.xlane.f32.xlu1 %v4678_v42 }
 0x4f7   : > { %1698 = vadd.xlane.f32.xlu0 %v4680_v26  ;;  %v1752_v1 = vpack.c.bf16 %v4686_v30, %v4688_v8 }
 0x4f9   : > { %v4690_v32 = vpop.eup %4689  ;;  %4400 = vmatprep.mubr.bf16.mxu0 %v1752_v1 }
 0x4fa   : > { %v4692_v11 = vpop.eup %4691  ;;  %1708 = vadd.xlane.f32.xlu1 %v4686_v30  ;;  %v850_v30 = vld [vmem:[#allocation4 + $0xa0] sm:$0xff] }
 0x4fb   : > { %1706 = vadd.xlane.f32.xlu0 %v4688_v8  ;;  %v1753_v24 = vpack.c.bf16 %v4690_v32, %v4692_v11  ;;  %v866_v53 = vmul.f32 %v5531_v23, %v850_v30  ;;  %v853_v23 = vld [vmem:[#allocation4 + $0xd0] sm:$0xff] }
 0x4fc   : > { %v7047_v30 = vld [vmem:[#allocation15_spill] sm:$0xff] }
 0x4fd   : > { %4401 = vmatmul.mubr.bf16.gmra.mrb[28].mxu0 %v1753_v24  ;;  %v865_v24 = vmul.f32 %v5537_v62, %v849_v50 }
 0x4fe   : > { %1712 = vadd.xlane.f32.xlu1 %v4690_v32 }
 0x4ff   : > { %1710 = vadd.xlane.f32.xlu0 %v4692_v11 }
 0x517   : > { %v875_v45 = vpop.xlane.xlu0 %874 }
 0x518   : > { %v905_v9 = vadd.f32 %v875_v45, %v857_v0 }
 0x51a   : > { %921 = vst [vmem:[#allocation4 + $0x10] sm:$0xff] %v905_v9 }
 0x51b   : > { %v877_v22 = vpop.xlane.xlu0 %876 }
 0x51c   : > { %v906_v57 = vadd.f32 %v877_v22, %v858_v6  ;;  %v873_v44 = vpop.xlane.xlu1 %872  ;;  %v854_v6 = vld [vmem:[#allocation4 + $0xe0] sm:$0xff] }
 0x51d   : > { %v904_v38 = vadd.f32 %v873_v44, %v856_v63  ;;  %v870_v62 = vmul.f32 %v5543_v16, %v854_v6  ;;  %v869_v44 = vmul.f32 %v5549_v21, %v853_v23  ;;  %v7033_v16 = vld [vmem:[#allocation13_spill] sm:$0xff]  ;;  %v7035_v21 = vld [vmem:[#allocation10_spill] sm:$0xff]  ;;  %v7056_v23 = vld [vmem:[#allocation27_spill] sm:$0xff] }
 0x51e   : > { %922 = vst [vmem:[#allocation4 + $0x20] sm:$0xff] %v906_v57 }
 0x51f   : > { %920 = vst [vmem:[#allocation4] sm:$0xff] %v904_v38  ;;  %v881_v54 = vpop.xlane.xlu0 %880 }
 0x520   : > { %v908_v48 = vadd.f32 %v881_v54, %v860_v58  ;;  %v879_v18 = vpop.xlane.xlu1 %878  ;;  %v855_v58 = vld [vmem:[#allocation4 + $0xf0] sm:$0xff] }
 0x521   : > { %v907_v37 = vadd.f32 %v879_v18, %v859_v2  ;;  %v871_v52 = vmul.f32 %v5547_v33, %v855_v58  ;;  %v7034_v18 = vsub.f32 %v5622_v20, %v7033_v16  ;;  %v1650_v58 = vld [vmem:[#allocation4 + $0x8] sm:$0xff] }
 0x522   : > { %924 = vst [vmem:[#allocation4 + $0x40] sm:$0xff] %v908_v48  ;;  %v1496_v48 = vmul.f32 1.442695, %v7032_v56  ;;  %v7061_v16 = vld [vmem:[#allocation22_spill] sm:$0xff] }
 0x523   : > { %923 = vst [vmem:[#allocation4 + $0x30] sm:$0xff] %v907_v37  ;;  %v885_v42 = vpop.xlane.xlu0 %884  ;;  %v1494_v29 = vmul.f32 1.442695, %v7034_v18  ;;  %v7036_v37 = vld [vmem:[#allocation12_spill] sm:$0xff] }
 0x524   : > { %v910_v26 = vadd.f32 %v885_v42, %v862_v41  ;;  %v883_v7 = vpop.xlane.xlu1 %882  ;;  %v7037_v41 = vsub.f32 %v7035_v21, %v7036_v37  ;;  %4693 = vpow2.f32 %v1496_v48  ;;  %v7062_v18 = vld [vmem:[#allocation24_spill] sm:$0xff] }
 0x525   : > { %v909_v25 = vadd.f32 %v883_v7, %v861_v47  ;;  %v7038_v47 = vld [vmem:[#allocation9_spill] sm:$0xff]  ;;  %4695 = vpow2.f32 %v1494_v29  ;;  %v7041_v7 = vld [vmem:[#allocation19_spill] sm:$0xff]  ;;  %v7063_v29 = vsub.f32 %v7061_v16, %v7062_v18 }
 0x526   : > { %926 = vst [vmem:[#allocation4 + $0x60] sm:$0xff] %v910_v26  ;;  %v1492_v42 = vmul.f32 1.442695, %v7037_v41  ;;  %v7040_v26 = vsub.f32 %v7038_v47, %v7039_v14  ;;  %v7043_v61 = vsub.f32 %v7041_v7, %v7042_v15  ;;  %v1657_v14 = vld [vmem:[#allocation4 + $0x78] sm:$0xff]  ;;  %v1656_v7 = vld [vmem:[#allocation4 + $0x68] sm:$0xff]  ;;  %v7064_v15 = vsub.f32 %v5713_v36, %v5727_v55 }
 0x527   : > { %925 = vst [vmem:[#allocation4 + $0x50] sm:$0xff] %v909_v25  ;;  %v889_v34 = vpop.xlane.xlu0 %888  ;;  %v7044_v25 = vld [vmem:[#allocation18_spill] sm:$0xff]  ;;  %v1506_v21 = vmul.f32 1.442695, %v7063_v29  ;;  %v1518_v55 = vmul.f32 1.442695, %v1488_v51 }
 0x528   : > { %v912_v8 = vadd.f32 %v889_v34, %v864_v39  ;;  %v887_v1 = vpop.xlane.xlu1 %886  ;;  %v1490_v33 = vmul.f32 1.442695, %v7040_v26  ;;  %4697 = vpow2.f32 %v1492_v42  ;;  %v1504_v5 = vmul.f32 1.442695, %v7043_v61  ;;  %v7045_v39 = vld [vmem:[#allocation20_spill] sm:$0xff]  ;;  %v1654_v36 = vld [vmem:[#allocation4 + $0x48] sm:$0xff] }
 0x529   : > { %v911_v32 = vadd.f32 %v887_v1, %v863_v10  ;;  %v7046_v20 = vsub.f32 %v7044_v25, %v7045_v39  ;;  %v1516_v61 = vmul.f32 1.442695, %v7064_v15  ;;  %v1665_v29 = vld [vmem:[#allocation4 + $0xf8] sm:$0xff] }
 0x52a   : > { %928 = vst [vmem:[#allocation4 + $0x80] sm:$0xff] %v912_v8  ;;  %4699 = vpow2.f32 %v1490_v33  ;;  %v7048_v8 = vld [vmem:[#allocation17_spill] sm:$0xff] }
 0x52b   : > { %927 = vst [vmem:[#allocation4 + $0x70] sm:$0xff] %v911_v32  ;;  %v893_v11 = vpop.xlane.xlu0 %892  ;;  %v1502_v34 = vmul.f32 1.442695, %v7046_v20  ;;  %v7049_v1 = vsub.f32 %v7047_v30, %v7048_v8  ;;  %4701 = vpow2.f32 %v1504_v5  ;;  %v1653_v32 = vld [vmem:[#allocation4 + $0x38] sm:$0xff]  ;;  %v7065_v5 = vsub.f32 %v5711_v60, %v5724_v3 }
 0x52c   : > { %v914_v0 = vadd.f32 %v893_v11, %v866_v53  ;;  %v891_v45 = vpop.xlane.xlu1 %890  ;;  %v7050_v53 = vld [vmem:[#allocation14_spill] sm:$0xff]  ;;  %v7051_v11 = vld [vmem:[#allocation16_spill] sm:$0xff]  ;;  %v1520_v3 = vmul.f32 1.442695, %v1489_v19 }
 0x52d   : > { %v913_v46 = vadd.f32 %v891_v45, %v865_v24  ;;  %v1500_v50 = vmul.f32 1.442695, %v7049_v1  ;;  %v7052_v24 = vsub.f32 %v7050_v53, %v7051_v11  ;;  %4703 = vpow2.f32 %v1502_v34  ;;  %v1652_v45 = vld [vmem:[#allocation4 + $0x28] sm:$0xff]  ;;  %v1655_v8 = vld [vmem:[#allocation4 + $0x58] sm:$0xff] }
 0x52e   : > { %930 = vst [vmem:[#allocation4 + $0xa0] sm:$0xff] %v914_v0  ;;  %v5821_v10 = vpop.eup %4693  ;;  %v1514_v25 = vmul.f32 1.442695, %v7065_v5 }
 0x52f   : > { %929 = vst [vmem:[#allocation4 + $0x90] sm:$0xff] %v913_v46  ;;  %v897_v9 = vpop.xlane.xlu0 %896  ;;  %v1498_v4 = vmul.f32 1.442695, %v7052_v24  ;;  %v5829_v0 = vpop.eup %4695  ;;  %v1669_v13 = vmul.f32 %v5821_v10, %v1653_v32  ;;  %4705 = vpow2.f32 %v1500_v50 }
 0x530   : > { %v916_v22 = vadd.f32 %v897_v9, %v868_v17  ;;  %v895_v63 = vpop.xlane.xlu1 %894  ;;  %v7053_v17 = vld [vmem:[#allocation28_spill] sm:$0xff] }
 0x531   : > { %v915_v27 = vadd.f32 %v895_v63, %v867_v28  ;;  %v7054_v9 = vsub.f32 %v5694_v40, %v7053_v17  ;;  %4707 = vpow2.f32 %v1498_v4  ;;  %v7055_v63 = vld [vmem:[#allocation26_spill] sm:$0xff]  ;;  %v7058_v40 = vld [vmem:[#allocation23_spill] sm:$0xff] }
 0x532   : > { %932 = vst [vmem:[#allocation4 + $0xc0] sm:$0xff] %v916_v22  ;;  %v5832_v46 = vpop.eup %4697  ;;  %v1651_v22 = vld [vmem:[#allocation4 + $0x18] sm:$0xff] }
 0x533   : > { %931 = vst [vmem:[#allocation4 + $0xb0] sm:$0xff] %v915_v27  ;;  %v901_v57 = vpop.xlane.xlu0 %900  ;;  %v1512_v28 = vmul.f32 1.442695, %v7054_v9  ;;  %v7057_v27 = vsub.f32 %v7055_v63, %v7056_v23  ;;  %v1658_v23 = vld [vmem:[#allocation4 + $0x88] sm:$0xff] }
 0x534   : > { %v918_v59 = vadd.f32 %v901_v57, %v870_v62  ;;  %v899_v38 = vpop.xlane.xlu1 %898 }
 0x535   : > { %v917_v43 = vadd.f32 %v899_v38, %v869_v44  ;;  %v1510_v62 = vmul.f32 1.442695, %v7057_v27  ;;  %v1668_v44 = vmul.f32 %v5829_v0, %v1652_v45  ;;  %4709 = vpow2.f32 %v1512_v28  ;;  %v1661_v45 = vld [vmem:[#allocation4 + $0xb8] sm:$0xff] }
 0x536   : > { %934 = vst [vmem:[#allocation4 + $0xe0] sm:$0xff] %v918_v59  ;;  %v5841_v59 = vpop.eup %4699  ;;  %v1659_v28 = vld [vmem:[#allocation4 + $0x98] sm:$0xff] }
 0x537   : > { %933 = vst [vmem:[#allocation4 + $0xd0] sm:$0xff] %v917_v43  ;;  %4711 = vpow2.f32 %v1510_v62  ;;  %v1666_v41 = vmul.f32 %v5841_v59, %v1650_v58  ;;  %v5851_v42 = vpop.eup %4701  ;;  %v1663_v58 = vld [vmem:[#allocation4 + $0xd8] sm:$0xff] }
 0x538   : > { %v903_v54 = vpop.xlane.xlu1 %902  ;;  %v5853_v26 = vpop.eup %4703  ;;  %v1673_v39 = vmul.f32 %v5851_v42, %v1657_v14 }
 0x539   : > { %v919_v2 = vadd.f32 %v903_v54, %v871_v52  ;;  %v1667_v52 = vmul.f32 %v5832_v46, %v1651_v22  ;;  %v7059_v54 = vld [vmem:[#allocation25_spill] sm:$0xff]  ;;  %v5862_v20 = vpop.eup %4705  ;;  %v1672_v34 = vmul.f32 %v5853_v26, %v1656_v7 }
 0x53a   : > { %v1671_v53 = vmul.f32 %v5862_v20, %v1655_v8 }
 0x53b   : > { %935 = vst [vmem:[#allocation4 + $0xf0] sm:$0xff] %v919_v2  ;;  %v7060_v2 = vsub.f32 %v7058_v40, %v7059_v54  ;;  %v5865_v1 = vpop.eup %4707  ;;  %v1662_v54 = vld [vmem:[#allocation4 + $0xc8] sm:$0xff] }
 0x53c   : > { %v1670_v24 = vmul.f32 %v5865_v1, %v1654_v36 }
 0x53d   : > { %v1508_v56 = vmul.f32 1.442695, %v7060_v2 }
 0x53f   : > { %4713 = vpow2.f32 %v1508_v56  ;;  %v5874_v11 = vpop.eup %4709 }
 0x540   : > { %4715 = vpow2.f32 %v1506_v21  ;;  %v1677_v35 = vmul.f32 %v5874_v11, %v1661_v45 }
 0x541   : > { %4717 = vpow2.f32 %v1516_v61 }
 0x542   : > { %4719 = vpow2.f32 %v1514_v25 }
 0x543   : > { %4721 = vpow2.f32 %v1520_v3 }
 0x544   : > { %4723 = vpow2.f32 %v1518_v55 }
 0x56d   : > { %v1689_v6 = vpop.xlane.xlu1 %1688 }
 0x56e   : > { %v1717_v57 = vadd.f32 %v1689_v6, %v1669_v13  ;;  %v5877_v13 = vpop.eup %4711 }
 0x56f   : > { %v1687_v38 = vpop.xlane.xlu0 %1686  ;;  %v5880_v31 = vpop.eup %4713  ;;  %v1676_v51 = vmul.f32 %v5877_v13, %v1660_v49  ;;  %v1921_v49 = vld [vmem:[#allocation2 + $0x68] sm:$0xff] }
 0x570   : > { %1733 = vst [vmem:[#allocation4 + $0x38] sm:$0xff] %v1717_v57  ;;  %v1716_v43 = vadd.f32 %v1687_v38, %v1668_v44  ;;  %v5883_v6 = vpop.eup %4715  ;;  %v1675_v62 = vmul.f32 %v5880_v31, %v1659_v28 }
 0x571   : > { %v1685_v48 = vpop.xlane.xlu1 %1684  ;;  %v5886_v57 = vpop.eup %4717  ;;  %v1674_v44 = vmul.f32 %v5883_v6, %v1658_v23 }
 0x572   : > { %1732 = vst [vmem:[#allocation4 + $0x28] sm:$0xff] %v1716_v43  ;;  %v1715_v37 = vadd.f32 %v1685_v48, %v1667_v52  ;;  %v5889_v43 = vpop.eup %4719  ;;  %v1679_v56 = vmul.f32 %v5886_v57, %v1663_v58  ;;  %v1926_v58 = vld [vmem:[#allocation2 + $0xb8] sm:$0xff] }
 0x573   : > { %v1683_v47 = vpop.xlane.xlu0 %1682  ;;  %v5892_v48 = vpop.eup %4721  ;;  %v1678_v16 = vmul.f32 %v5889_v43, %v1662_v54 }
 0x574   : > { %1731 = vst [vmem:[#allocation4 + $0x18] sm:$0xff] %v1715_v37  ;;  %v1714_v33 = vadd.f32 %v1683_v47, %v1666_v41  ;;  %v5895_v21 = vpop.eup %4723  ;;  %v1664_v47 = vld [vmem:[#allocation4 + $0xe8] sm:$0xff] }
 0x575   : > { %v1680_v7 = vmul.f32 %v5895_v21, %v1664_v47  ;;  %v1929_v47 = vld [vmem:[#allocation2 + $0xe8] sm:$0xff] }
 0x576   : > { %1730 = vst [vmem:[#allocation4 + $0x8] sm:$0xff] %v1714_v33  ;;  %v1681_v33 = vmul.f32 %v5892_v48, %v1665_v29 }
 0x577   : > { %v1697_v30 = vpop.xlane.xlu1 %1696 }
 0x578   : > { %v1695_v50 = vpop.xlane.xlu0 %1694  ;;  %v1721_v32 = vadd.f32 %v1697_v30, %v1673_v39  ;;  %v1917_v39 = vld [vmem:[#allocation2 + $0x28] sm:$0xff]  ;;  %v1918_v30 = vld [vmem:[#allocation2 + $0x38] sm:$0xff] }
 0x579   : > { %v1720_v60 = vadd.f32 %v1695_v50, %v1672_v34  ;;  %v1915_v34 = vld [vmem:[#allocation2 + $0x8] sm:$0xff]  ;;  %v1933_v8 = vmul.f32 %v5829_v0, %v1917_v39  ;;  %v1916_v50 = vld [vmem:[#allocation2 + $0x18] sm:$0xff]  ;;  %v1934_v55 = vmul.f32 %v5821_v10, %v1918_v30 }
 0x57a   : > { %1737 = vst [vmem:[#allocation4 + $0x78] sm:$0xff] %v1721_v32  ;;  %v1931_v36 = vmul.f32 %v5841_v59, %v1915_v34  ;;  %v1919_v0 = vld [vmem:[#allocation2 + $0x48] sm:$0xff]  ;;  %v1937_v59 = vmul.f32 %v5853_v26, %v1921_v49 }
 0x57b   : > { %1736 = vst [vmem:[#allocation4 + $0x68] sm:$0xff] %v1720_v60  ;;  %v1693_v4 = vpop.xlane.xlu1 %1692  ;;  %v1935_v10 = vmul.f32 %v5865_v1, %v1919_v0  ;;  %v1923_v26 = vld [vmem:[#allocation2 + $0x88] sm:$0xff] }
 0x57c   : > { %v1691_v12 = vpop.xlane.xlu0 %1690  ;;  %v1719_v19 = vadd.f32 %v1693_v4, %v1671_v53  ;;  %v1932_v4 = vmul.f32 %v5832_v46, %v1916_v50 }
 0x57d   : > { %v1718_v17 = vadd.f32 %v1691_v12, %v1670_v24 }
 0x57e   : > { %1735 = vst [vmem:[#allocation4 + $0x58] sm:$0xff] %v1719_v19 }
 0x57f   : > { %1734 = vst [vmem:[#allocation4 + $0x48] sm:$0xff] %v1718_v17  ;;  %v1705_v9 = vpop.xlane.xlu1 %1704  ;;  %v1922_v17 = vld [vmem:[#allocation2 + $0x78] sm:$0xff] }
 0x580   : > { %v1703_v22 = vpop.xlane.xlu0 %1702  ;;  %v1725_v63 = vadd.f32 %v1705_v9, %v1677_v35  ;;  %v1920_v35 = vld [vmem:[#allocation2 + $0x58] sm:$0xff]  ;;  %v1938_v46 = vmul.f32 %v5851_v42, %v1922_v17  ;;  %v1939_v42 = vmul.f32 %v5883_v6, %v1923_v26  ;;  %v1945_v6 = vmul.f32 %v5895_v21, %v1929_v47 }
 0x581   : > { %v1724_v27 = vadd.f32 %v1703_v22, %v1676_v51  ;;  %v1936_v23 = vmul.f32 %v5862_v20, %v1920_v35  ;;  %v1942_v20 = vmul.f32 %v5874_v11, %v1926_v58 }
 0x582   : > { %1741 = vst [vmem:[#allocation4 + $0xb8] sm:$0xff] %v1725_v63 }
 0x583   : > { %1740 = vst [vmem:[#allocation4 + $0xa8] sm:$0xff] %v1724_v27  ;;  %v1701_v38 = vpop.xlane.xlu1 %1700 }
 0x584   : > { %v1699_v52 = vpop.xlane.xlu0 %1698  ;;  %v1723_v40 = vadd.f32 %v1701_v38, %v1675_v62  ;;  %v1925_v38 = vld [vmem:[#allocation2 + $0xa8] sm:$0xff] }
 0x585   : > { %v1722_v2 = vadd.f32 %v1699_v52, %v1674_v44  ;;  %v1941_v1 = vmul.f32 %v5877_v13, %v1925_v38  ;;  %v1924_v52 = vld [vmem:[#allocation2 + $0x98] sm:$0xff]  ;;  %v1927_v13 = vld [vmem:[#allocation2 + $0xc8] sm:$0xff] }
 0x586   : > { %1739 = vst [vmem:[#allocation4 + $0x98] sm:$0xff] %v1723_v40  ;;  %v1943_v11 = vmul.f32 %v5889_v43, %v1927_v13 }
 0x587   : > { %1738 = vst [vmem:[#allocation4 + $0x88] sm:$0xff] %v1722_v2  ;;  %v1709_v18 = vpop.xlane.xlu1 %1708 }
 0x588   : > { %v1707_v37 = vpop.xlane.xlu0 %1706  ;;  %v1727_v41 = vadd.f32 %v1709_v18, %v1679_v56  ;;  %v1940_v18 = vmul.f32 %v5880_v31, %v1924_v52 }
 0x589   : > { %v1726_v14 = vadd.f32 %v1707_v37, %v1678_v16 }
 0x58a   : > { %1743 = vst [vmem:[#allocation4 + $0xd8] sm:$0xff] %v1727_v41 }
 0x58b   : > { %1742 = vst [vmem:[#allocation4 + $0xc8] sm:$0xff] %v1726_v14  ;;  %v1713_v15 = vpop.xlane.xlu1 %1712  ;;  %v1930_v14 = vld [vmem:[#allocation2 + $0xf8] sm:$0xff] }
 0x58c   : > { %v1711_v61 = vpop.xlane.xlu0 %1710  ;;  %v1729_v5 = vadd.f32 %v1713_v15, %v1681_v33  ;;  %v1928_v33 = vld [vmem:[#allocation2 + $0xd8] sm:$0xff]  ;;  %v1946_v31 = vmul.f32 %v5892_v48, %v1930_v14 }
 0x58d   : > { %v1728_v25 = vadd.f32 %v1711_v61, %v1680_v7  ;;  %v1944_v39 = vmul.f32 %v5886_v57, %v1928_v33 }
 0x58e   : > { %1745 = vst [vmem:[#allocation4 + $0xf8] sm:$0xff] %v1729_v5 }
 0x58f   : > { %1744 = vst [vmem:[#allocation4 + $0xe8] sm:$0xff] %v1728_v25 }
 0x5b7   : > { %v4390_v32 = vpop.f32.mrb[16].mxu0 }
 0x5b8   : > { %v1949_v3 = vadd.f32 %v4390_v32, %v1933_v8  ;;  %v1852_v60 = vpop.f32.mrb[17].mxu0 }
 0x5b9   : > { %v1947_v53 = vadd.f32 %v1931_v36, %v1852_v60  ;;  %v4391_v24 = vpop.f32.mrb[18].mxu0 }
 0x5ba   : > { %1965 = vst [vmem:[#allocation2 + $0x28] sm:$0xff] %v1949_v3  ;;  %v1950_v45 = vadd.f32 %v4391_v24, %v1934_v55  ;;  %v1855_v12 = vpop.f32.mrb[19].mxu0 }
 0x5bb   : > { %1963 = vst [vmem:[#allocation2 + $0x8] sm:$0xff] %v1947_v53  ;;  %v1948_v19 = vadd.f32 %v1932_v4, %v1855_v12 }
 0x5bc   : > { %1966 = vst [vmem:[#allocation2 + $0x38] sm:$0xff] %v1950_v45 }
 0x5bd   : > { %1964 = vst [vmem:[#allocation2 + $0x18] sm:$0xff] %v1948_v19 }
 0x5c0   : > { %v4394_v51 = vpop.f32.mrb[20].mxu0 }
 0x5c1   : > { %v1953_v9 = vadd.f32 %v4394_v51, %v1937_v59  ;;  %v1868_v28 = vpop.f32.mrb[21].mxu0 }
 0x5c2   : > { %v1951_v22 = vadd.f32 %v1935_v10, %v1868_v28  ;;  %v4395_v63 = vpop.f32.mrb[22].mxu0 }
 0x5c3   : > { %1969 = vst [vmem:[#allocation2 + $0x68] sm:$0xff] %v1953_v9  ;;  %v1954_v27 = vadd.f32 %v4395_v63, %v1938_v46  ;;  %v1871_v62 = vpop.f32.mrb[23].mxu0 }
 0x5c4   : > { %1967 = vst [vmem:[#allocation2 + $0x48] sm:$0xff] %v1951_v22  ;;  %v1952_v44 = vadd.f32 %v1936_v23, %v1871_v62 }
 0x5c5   : > { %1970 = vst [vmem:[#allocation2 + $0x78] sm:$0xff] %v1954_v27 }
 0x5c6   : > { %1968 = vst [vmem:[#allocation2 + $0x58] sm:$0xff] %v1952_v44 }
 0x5c8   : > { %v4398_v40 = vpop.f32.mrb[24].mxu0 }
 0x5c9   : > { %v1957_v54 = vadd.f32 %v4398_v40, %v1941_v1  ;;  %v1884_v2 = vpop.f32.mrb[25].mxu0 }
 0x5ca   : > { %v1955_v56 = vadd.f32 %v1939_v42, %v1884_v2  ;;  %v4399_v16 = vpop.f32.mrb[26].mxu0 }
 0x5cb   : > { %1973 = vst [vmem:[#allocation2 + $0xa8] sm:$0xff] %v1957_v54  ;;  %v1958_v29 = vadd.f32 %v4399_v16, %v1942_v20  ;;  %v1887_v37 = vpop.f32.mrb[27].mxu0 }
 0x5cc   : > { %1971 = vst [vmem:[#allocation2 + $0x88] sm:$0xff] %v1955_v56  ;;  %v1956_v41 = vadd.f32 %v1940_v18, %v1887_v37 }
 0x5cd   : > { %1974 = vst [vmem:[#allocation2 + $0xb8] sm:$0xff] %v1958_v29 }
 0x5ce   : > { %1972 = vst [vmem:[#allocation2 + $0x98] sm:$0xff] %v1956_v41 }
 0x5d0   : > { %v4402_v7 = vpop.f32.mrb[28].mxu0 }
 0x5d1   : > { %v1961_v15 = vadd.f32 %v4402_v7, %v1945_v6  ;;  %v1900_v61 = vpop.f32.mrb[29].mxu0 }
 0x5d2   : > { %v1959_v5 = vadd.f32 %v1943_v11, %v1900_v61  ;;  %v4403_v25 = vpop.f32.mrb[30].mxu0 }
 0x5d3   : > { %1977 = vst [vmem:[#allocation2 + $0xe8] sm:$0xff] %v1961_v15  ;;  %v1962_v34 = vadd.f32 %v4403_v25, %v1946_v31  ;;  %v1903_v30 = vpop.f32.mrb[31].mxu0 }
 0x5d4   : > { %1975 = vst [vmem:[#allocation2 + $0xc8] sm:$0xff] %v1959_v5  ;;  %v1960_v8 = vadd.f32 %v1944_v39, %v1903_v30 }
 0x5d5   : > { %1978 = vst [vmem:[#allocation2 + $0xf8] sm:$0xff] %v1962_v34 }
 0x5d6   : > { %1976 = vst [vmem:[#allocation2 + $0xd8] sm:$0xff] %v1960_v8 }
 0x5d7 PF: > { %p4061_p5 = scmp.ne.s32.totalorder %s5070_s8, %s5068_s7 }
 0x5d9   : > { %1997 = sbr.rel (%p4061_p5) target bundleno = 2902 (0xb56), region = 44 }
 0x5e0   : > { %v4727_v43 = vld [vmem:[%s5080_s20] ss:$8 sps:$4 sm:$0xff]   ;;  %v4728_v57 = vld [vmem:[%s5080_s20 + $0x10] ss:$8 sps:$4 sm:$0xff]   ;;  %v1998_v49 = vlaneseq  ;;  %v5022_v10 = vmov -1e+30  }
 0x5e1   : > { %4404 = vmatprep.subr.bf16.mxu0 %v4727_v43  ;;  %v4729_v48 = vld [vmem:[%s5080_s20 + $0x20] ss:$8 sps:$4 sm:$0xff]   ;;  %v4730_v50 = vld [vmem:[%s5080_s20 + $0x30] ss:$8 sps:$4 sm:$0xff]  }
 0x5e2   : > { %4405 = vmatpush3.bf16.xpose.msra.mxu0 %v4727_v43  ;;  %v4735_v21 = vld [vmem:[%s5075_s16] ss:$8 sps:$4 sm:$0xff]   ;;  %v4732_v36 = vld [vmem:[%s5080_s20 + $0x50] ss:$8 sps:$4 sm:$0xff]   ;;  %v5933_v0 = vshrl.u32 %v1998_v49, 7  ;;  %v5936_v59 = vand.u32 127, %v1998_v49 }
 0x5e3   : > { %4406 = vmatprep.subr.bf16.mxu0 %v4728_v57  ;;  %4420 = vmatprep.mubr.bf16.mxu0 %v4735_v21  ;;  %v4731_v32 = vld [vmem:[%s5080_s20 + $0x40] ss:$8 sps:$4 sm:$0xff]   ;;  %v4734_v60 = vld [vmem:[%s5080_s20 + $0x70] ss:$8 sps:$4 sm:$0xff]  }
 0x5e4   : > { %v4733_v3 = vld [vmem:[%s5080_s20 + $0x60] ss:$8 sps:$4 sm:$0xff]   ;;  %v4736_v55 = vld [vmem:[%s5075_s16 + $0x10] ss:$8 sps:$4 sm:$0xff]   ;;  %v2001_v17 = vadd.s32 16, %v5933_v0  ;;  %v2002_v35 = vadd.s32 24, %v5933_v0  ;;  %vm2017_vm1 = vcmp.ge.s32.totalorder %v5933_v0, %v5936_v59 }
 0x5e5   : > { %v4737_v53 = vld [vmem:[%s5075_s16 + $0x20] ss:$8 sps:$4 sm:$0xff]   ;;  %v4738_v24 = vld [vmem:[%s5075_s16 + $0x30] ss:$8 sps:$4 sm:$0xff]   ;;  %v2000_v51 = vadd.s32 8, %v5933_v0  ;;  %v5947_v28 = vsel %vm2017_vm1, 0.0, %v5022_v10 }
 0x5e6   : > { %v4739_v4 = vld [vmem:[%s5075_s16 + $0x40] ss:$8 sps:$4 sm:$0xff]   ;;  %v4740_v45 = vld [vmem:[%s5075_s16 + $0x50] ss:$8 sps:$4 sm:$0xff]   ;;  %vm2019_vm0 = vcmp.ge.s32.totalorder %v2001_v17, %v5936_v59  ;;  %vm2020_vm2 = vcmp.ge.s32.totalorder %v2002_v35, %v5936_v59  ;;  %v2005_v46 = vadd.s32 48, %v5933_v0  ;;  %v2006_v27 = vadd.s32 56, %v5933_v0 }
 0x5e7   : > { %v4741_v12 = vld [vmem:[%s5075_s16 + $0x60] ss:$8 sps:$4 sm:$0xff]   ;;  %v4742_v19 = vld [vmem:[%s5075_s16 + $0x70] ss:$8 sps:$4 sm:$0xff]   ;;  %v5944_v9 = vsel %vm2019_vm0, 0.0, %v5022_v10  ;;  %vm2018_vm3 = vcmp.ge.s32.totalorder %v2000_v51, %v5936_v59  ;;  %v5960_v44 = vsel %vm2020_vm2, 0.0, %v5022_v10 }
 0x5e8   : > { %7066 = vst [vmem:[#allocation29_spill] sm:$0xff] %v5944_v9  ;;  %7067 = vst [vmem:[#allocation30_spill] sm:$0xff] %v5960_v44  ;;  %v2003_v26 = vadd.s32 32, %v5933_v0  ;;  %v5964_v58 = vsel %vm2018_vm3, 0.0, %v5022_v10  ;;  %vm2023_vm4 = vcmp.ge.s32.totalorder %v2005_v46, %v5936_v59  ;;  %v2004_v52 = vadd.s32 40, %v5933_v0  ;;  %v6084_v46 = vld [vmem:[#allocation3 + $0x20] sm:$0xff] }
 0x5e9   : > { %7068 = vst [vmem:[#allocation31_spill] sm:$0xff] %v5964_v58  ;;  %vm2024_vm5 = vcmp.ge.s32.totalorder %v2006_v27, %v5936_v59  ;;  %v5978_v54 = vsel %vm2023_vm4, 0.0, %v5022_v10  ;;  %v2009_v2 = vadd.s32 80, %v5933_v0  ;;  %v2010_v37 = vadd.s32 88, %v5933_v0  ;;  %v4743_v35 = vld [vmem:[%s5085_s24] ss:$8 sps:$4 sm:$0xff]  }
 0x5ea   : > { %4407 = vmatpush3.bf16.xpose.msra.mxu0 %v4728_v57  ;;  %7069 = vst [vmem:[#allocation32_spill] sm:$0xff] %v5978_v54  ;;  %vm2021_vm6 = vcmp.ge.s32.totalorder %v2003_v26, %v5936_v59  ;;  %vm2022_vm7 = vcmp.ge.s32.totalorder %v2004_v52, %v5936_v59  ;;  %v5986_v56 = vsel %vm2024_vm5, 0.0, %v5022_v10  ;;  %v2007_v13 = vadd.s32 64, %v5933_v0  ;;  %v4744_v51 = vld [vmem:[%s5085_s24 + $0x10] ss:$8 sps:$4 sm:$0xff]   ;;  %4436 = vmatprep.subr.bf16.mxu1 %v4743_v35 }
 0x5eb   : > { %4408 = vmatprep.subr.bf16.mxu0 %v4729_v48  ;;  %7070 = vst [vmem:[#allocation33_spill] sm:$0xff] %v5986_v56  ;;  %v5992_v18 = vsel %vm2021_vm6, 0.0, %v5022_v10  ;;  %v5996_v47 = vsel %vm2022_vm7, 0.0, %v5022_v10  ;;  %vm2027_vm8 = vcmp.ge.s32.totalorder %v2009_v2, %v5936_v59  ;;  %v2008_v33 = vadd.s32 72, %v5933_v0  ;;  %4437 = vmatpush3.bf16.msra.mxu1 %v4743_v35  ;;  %v4746_v26 = vld [vmem:[%s5085_s24 + $0x30] ss:$8 sps:$4 sm:$0xff]  }
 0x5ec   : > { %7071 = vst [vmem:[#allocation34_spill] sm:$0xff] %v5992_v18  ;;  %7072 = vst [vmem:[#allocation35_spill] sm:$0xff] %v5996_v47  ;;  %vm2028_vm9 = vcmp.ge.s32.totalorder %v2010_v37, %v5936_v59  ;;  %v6014_v15 = vsel %vm2027_vm8, 0.0, %v5022_v10  ;;  %vm2025_vm10 = vcmp.ge.s32.totalorder %v2007_v13, %v5936_v59  ;;  %v2013_v61 = vadd.s32 112, %v5933_v0  ;;  %4438 = vmatprep.subr.bf16.mxu1 %v4744_v51  ;;  %v6095_v52 = vld [vmem:[#allocation3 + $0x30] sm:$0xff] }
 0x5ed   : > { %7073 = vst [vmem:[#allocation36_spill] sm:$0xff] %v6014_v15  ;;  %vm2026_vm11 = vcmp.ge.s32.totalorder %v2008_v33, %v5936_v59  ;;  %v6020_v5 = vsel %vm2028_vm9, 0.0, %v5022_v10  ;;  %v6027_v39 = vsel %vm2025_vm10, 0.0, %v5022_v10  ;;  %v2014_v30 = vadd.s32 120, %v5933_v0  ;;  %v6201_v2 = vld [vmem:[%s5080_s20 + $0x4] ss:$8 sps:$4 sm:$0xff]  }
 0x5ee   : > { %7074 = vst [vmem:[#allocation37_spill] sm:$0xff] %v6020_v5  ;;  %7075 = vst [vmem:[#allocation38_spill] sm:$0xff] %v6027_v39  ;;  %v6032_v43 = vsel %vm2026_vm11, 0.0, %v5022_v10  ;;  %v2011_v57 = vadd.s32 96, %v5933_v0  ;;  %vm2031_vm12 = vcmp.ge.s32.totalorder %v2013_v61, %v5936_v59  ;;  %v6185_v61 = vld [vmem:[#allocation3 + $0xe0] sm:$0xff] }
 0x5ef   : > { %7076 = vst [vmem:[#allocation39_spill] sm:$0xff] %v6032_v43  ;;  %vm2032_vm13 = vcmp.ge.s32.totalorder %v2014_v30, %v5936_v59  ;;  %4439 = vmatpush3.bf16.msra.mxu1 %v4744_v51  ;;  %v6123_v30 = vld [vmem:[#allocation3 + $0x70] sm:$0xff]  ;;  %v4749_v51 = vld [vmem:[%s5085_s24 + $0x60] ss:$8 sps:$4 sm:$0xff]  }
 0x5f0   : > { %vm2029_vm14 = vcmp.ge.s32.totalorder %v2011_v57, %v5936_v59  ;;  %v4748_v57 = vld [vmem:[%s5085_s24 + $0x50] ss:$8 sps:$4 sm:$0xff]  }
 0x5f2   : > { %4409 = vmatpush3.bf16.xpose.msra.mxu0 %v4729_v48  ;;  %v5023_v48 = vmov 0  }
 0x5f3   : > { %4410 = vmatprep.subr.bf16.mxu0 %v4730_v50  ;;  %4726 = vset.pattern.permute.xlu1 %v5023_v48 }
 0x5f4   : > { %4725 = vset.pattern.permute.xlu0 %v5023_v48 }
 0x5fa   : > { %4411 = vmatpush3.bf16.xpose.msra.mxu0 %v4730_v50 }
 0x5fb   : > { %4412 = vmatprep.subr.bf16.mxu0 %v4731_v32 }
 0x602   : > { %4413 = vmatpush3.bf16.xpose.msra.mxu0 %v4731_v32  ;;  %v2012_v32 = vadd.s32 104, %v5933_v0 }
 0x603   : > { %4414 = vmatprep.subr.bf16.mxu0 %v4732_v36 }
 0x604   : > { %vm2030_vm15 = vcmp.ge.s32.totalorder %v2012_v32, %v5936_v59 }
 0x60a   : > { %4415 = vmatpush3.bf16.xpose.msra.mxu0 %v4732_v36 }
 0x60b   : > { %4416 = vmatprep.subr.bf16.mxu0 %v4733_v3 }
 0x612   : > { %4417 = vmatpush3.bf16.xpose.msra.mxu0 %v4733_v3 }
 0x613   : > { %4418 = vmatprep.subr.bf16.mxu0 %v4734_v60 }
 0x61a   : > { %4419 = vmatpush3.bf16.xpose.msra.mxu0 %v4734_v60  ;;  %v6050_v60 = vsel %vm2031_vm12, 0.0, %v5022_v10 }
 0x61b   : > { %7077 = vst [vmem:[#allocation40_spill] sm:$0xff] %v6050_v60 }
 0x621   : > { %4421 = vmatmul.mubr.bf16.vlgmr.msra.gmra.mrb[0].mxu0 %v4736_v55 }
 0x622   : > { %4424 = vmatprep.mubr.bf16.mxu0 %v4737_v53  ;;  %v6055_v53 = vsel %vm2032_vm13, 0.0, %v5022_v10 }
 0x623   : > { %7078 = vst [vmem:[#allocation41_spill] sm:$0xff] %v6055_v53 }
 0x629   : > { %4425 = vmatmul.mubr.bf16.gmra.mrb[4].mxu0 %v4738_v24 }
 0x62a   : > { %4428 = vmatprep.mubr.bf16.mxu0 %v4739_v4  ;;  %v6062_v4 = vsel %vm2029_vm14, 0.0, %v5022_v10 }
 0x62b   : > { %7079 = vst [vmem:[#allocation42_spill] sm:$0xff] %v6062_v4 }
 0x631   : > { %4429 = vmatmul.mubr.bf16.gmra.mrb[8].mxu0 %v4740_v45 }
 0x632   : > { %4432 = vmatprep.mubr.bf16.mxu0 %v4741_v12 }
 0x639   : > { %4433 = vmatmul.mubr.bf16.gmra.mrb[12].mxu0 %v4742_v19  ;;  %v6066_v19 = vsel %vm2030_vm15, 0.0, %v5022_v10  ;;  %v4745_v10 = vld [vmem:[%s5085_s24 + $0x20] ss:$8 sps:$4 sm:$0xff]  }
 0x63a   : > { %7080 = vst [vmem:[#allocation43_spill] sm:$0xff] %v6066_v19  ;;  %4440 = vmatprep.subr.bf16.mxu1 %v4745_v10 }
 0x63b   : > { %4441 = vmatpush3.bf16.msra.mxu1 %v4745_v10 }
 0x63c   : > { %4442 = vmatprep.subr.bf16.mxu1 %v4746_v26 }
 0x63f   : > { %4443 = vmatpush3.bf16.msra.mxu1 %v4746_v26  ;;  %v6150_v26 = vld [vmem:[#allocation3 + $0xa0] sm:$0xff] }
 0x6f4   : > { %v4422_v22 = vpop.f32.mrb[0].mxu0 }
 0x6f5   : > { %v5953_v63 = vadd.f32 %v4422_v22, %v5944_v9  ;;  %v2211_v23 = vpop.f32.mrb[1].mxu0  ;;  %v6086_v22 = vld [vmem:[#allocation3] sm:$0xff] }
 0x6f6   : > { %v5957_v62 = vadd.f32 %v2211_v23, %v5947_v28  ;;  %v4423_v38 = vpop.f32.mrb[2].mxu0 }
 0x6f7   : > { %v2214_v1 = vpop.f32.mrb[3].mxu0  ;;  %2294 = vmax.xlane.f32.xlu1 %v5953_v63  ;;  %v5971_v40 = vadd.f32 %v4423_v38, %v5960_v44 }
 0x6f8   : > { %2290 = vmax.xlane.f32.xlu0 %v5957_v62  ;;  %v5975_v42 = vadd.f32 %v2214_v1, %v5964_v58 }
 0x6fb   : > { %2296 = vmax.xlane.f32.xlu1 %v5971_v40 }
 0x6fc   : > { %v4426_v20 = vpop.f32.mrb[4].mxu0  ;;  %2292 = vmax.xlane.f32.xlu0 %v5975_v42 }
 0x6fd   : > { %v5989_v16 = vadd.f32 %v4426_v20, %v5978_v54  ;;  %v2227_v29 = vpop.f32.mrb[5].mxu0  ;;  %v6101_v20 = vld [vmem:[#allocation3 + $0x10] sm:$0xff] }
 0x6fe   : > { %v4427_v41 = vpop.f32.mrb[6].mxu0  ;;  %v6005_v7 = vadd.f32 %v2227_v29, %v5992_v18 }
 0x6ff   : > { %v6000_v14 = vadd.f32 %v4427_v41, %v5986_v56  ;;  %v2230_v6 = vpop.f32.mrb[7].mxu0 }
 0x700   : > { %2302 = vmax.xlane.f32.xlu0 %v5989_v16  ;;  %v6010_v11 = vadd.f32 %v2230_v6, %v5996_v47  ;;  %v4747_v6 = vld [vmem:[%s5085_s24 + $0x40] ss:$8 sps:$4 sm:$0xff]  }
 0x701   : > { %2304 = vmax.xlane.f32.xlu1 %v6000_v14  ;;  %4444 = vmatprep.subr.bf16.mxu1 %v4747_v6 }
 0x702   : > { %4445 = vmatpush3.bf16.msra.mxu1 %v4747_v6  ;;  %v6188_v6 = vld [vmem:[#allocation3 + $0xf0] sm:$0xff] }
 0x703   : > { %4446 = vmatprep.subr.bf16.mxu1 %v4748_v57 }
 0x704   : > { %v4430_v31 = vpop.f32.mrb[8].mxu0  ;;  %2298 = vmax.xlane.f32.xlu0 %v6005_v7 }
 0x705   : > { %v6024_v25 = vadd.f32 %v4430_v31, %v6014_v15  ;;  %v2243_v34 = vpop.f32.mrb[9].mxu0  ;;  %2300 = vmax.xlane.f32.xlu1 %v6010_v11  ;;  %v6117_v31 = vld [vmem:[#allocation3 + $0x60] sm:$0xff] }
 0x706   : > { %v4431_v8 = vpop.f32.mrb[10].mxu0  ;;  %v6041_v36 = vadd.f32 %v2243_v34, %v6027_v39  ;;  %4447 = vmatpush3.bf16.msra.mxu1 %v4748_v57  ;;  %v4750_v57 = vld [vmem:[%s5085_s24 + $0x70] ss:$8 sps:$4 sm:$0xff]  }
 0x707   : > { %v6036_v21 = vadd.f32 %v4431_v8, %v6020_v5  ;;  %v2246_v50 = vpop.f32.mrb[11].mxu0  ;;  %4448 = vmatprep.subr.bf16.mxu1 %v4749_v51 }
 0x708   : > { %2310 = vmax.xlane.f32.xlu0 %v6024_v25  ;;  %v6046_v3 = vadd.f32 %v2246_v50, %v6032_v43 }
 0x709   : > { %2312 = vmax.xlane.f32.xlu1 %v6036_v21 }
 0x70a   : > { %4449 = vmatpush3.bf16.msra.mxu1 %v4749_v51  ;;  %v6171_v51 = vld [vmem:[#allocation3 + $0x90] sm:$0xff] }
 0x70b   : > { %4450 = vmatprep.subr.bf16.mxu1 %v4750_v57 }
 0x70c   : > { %v4434_v55 = vpop.f32.mrb[12].mxu0  ;;  %2306 = vmax.xlane.f32.xlu0 %v6041_v36 }
 0x70d   : > { %v6059_v24 = vadd.f32 %v4434_v55, %v6050_v60  ;;  %v2259_v45 = vpop.f32.mrb[13].mxu0  ;;  %2308 = vmax.xlane.f32.xlu1 %v6046_v3  ;;  %v6132_v55 = vld [vmem:[#allocation3 + $0x40] sm:$0xff]  ;;  %v6209_v60 = vld [vmem:[#allocation3 + $0xd0] sm:$0xff] }
 0x70e   : > { %v4435_v12 = vpop.f32.mrb[14].mxu0  ;;  %v6072_v17 = vadd.f32 %v2259_v45, %v6062_v4  ;;  %4451 = vmatpush3.bf16.msra.mxu1 %v4750_v57  ;;  %v6206_v57 = vld [vmem:[#allocation3 + $0xc0] sm:$0xff] }
 0x70f   : > { %v6069_v49 = vadd.f32 %v4435_v12, %v6055_v53  ;;  %v2262_v0 = vpop.f32.mrb[15].mxu0  ;;  %v6138_v12 = vld [vmem:[#allocation3 + $0x50] sm:$0xff]  ;;  %4468 = vmatprep.subr.bf16.mxu1 %v6201_v2 }
 0x710   : > { %2318 = vmax.xlane.f32.xlu0 %v6059_v24  ;;  %v6077_v59 = vadd.f32 %v2262_v0, %v6066_v19  ;;  %v6168_v0 = vld [vmem:[#allocation3 + $0x80] sm:$0xff] }
 0x711   : > { %2320 = vmax.xlane.f32.xlu1 %v6069_v49 }
 0x714   : > { %2314 = vmax.xlane.f32.xlu0 %v6072_v17 }
 0x715   : > { %2316 = vmax.xlane.f32.xlu1 %v6077_v59 }
 0x784   : > { %v2295_v23 = vpop.xlane.xlu1 %2294 }
 0x785   : > { %v6089_v27 = vmax.f32 %v6084_v46, %v2295_v23  ;;  %v2291_v38 = vpop.xlane.xlu0 %2290 }
 0x786   : > { %v6093_v1 = vmax.f32 %v6086_v22, %v2291_v38 }
 0x787   : > { %2845 = vst [vmem:[#allocation3 + $0x20] sm:$0xff] %v6089_v27  ;;  %2398 = vperm.xlu1 %4726, %v6089_v27  }
 0x788   : > { %2843 = vst [vmem:[#allocation3] sm:$0xff] %v6093_v1  ;;  %v2297_v37 = vpop.xlane.xlu1 %2296  ;;  %2388 = vperm.xlu0 %4725, %v6093_v1  }
 0x789   : > { %v6108_v41 = vmax.f32 %v6095_v52, %v2297_v37  ;;  %v2293_v13 = vpop.xlane.xlu0 %2292 }
 0x78a   : > { %v6112_v33 = vmax.f32 %v6101_v20, %v2293_v13  ;;  %v6156_v13 = vld [vmem:[#allocation3 + $0xb0] sm:$0xff] }
 0x78b   : > { %2846 = vst [vmem:[#allocation3 + $0x30] sm:$0xff] %v6108_v41 }
 0x78c   : > { %2844 = vst [vmem:[#allocation3 + $0x10] sm:$0xff] %v6112_v33  ;;  %2393 = vperm.xlu1 %4726, %v6112_v33  }
 0x78d   : > { %v2303_v8 = vpop.xlane.xlu0 %2302 }
 0x78e   : > { %v2305_v48 = vpop.xlane.xlu1 %2304  ;;  %v6127_v50 = vmax.f32 %v6117_v31, %v2303_v8 }
 0x78f   : > { %v6130_v32 = vmax.f32 %v6123_v30, %v2305_v48 }
 0x790   : > { %2403 = vperm.xlu1 %4726, %v6108_v41   ;;  %2849 = vst [vmem:[#allocation3 + $0x60] sm:$0xff] %v6127_v50 }
 0x791   : > { %2850 = vst [vmem:[#allocation3 + $0x70] sm:$0xff] %v6130_v32  ;;  %v2299_v35 = vpop.xlane.xlu0 %2298 }
 0x792   : > { %v2301_v10 = vpop.xlane.xlu1 %2300  ;;  %v6145_v23 = vmax.f32 %v6132_v55, %v2299_v35 }
 0x793   : > { %v6148_v38 = vmax.f32 %v6138_v12, %v2301_v10 }
 0x794   : > { %2418 = vperm.xlu1 %4726, %v6127_v50   ;;  %2847 = vst [vmem:[#allocation3 + $0x40] sm:$0xff] %v6145_v23 }
 0x795   : > { %2848 = vst [vmem:[#allocation3 + $0x50] sm:$0xff] %v6148_v38  ;;  %v2311_v8 = vpop.xlane.xlu0 %2310 }
 0x796   : > { %v2313_v48 = vpop.xlane.xlu1 %2312  ;;  %v6163_v35 = vmax.f32 %v6150_v26, %v2311_v8 }
 0x797   : > { %v6166_v10 = vmax.f32 %v6156_v13, %v2313_v48 }
 0x798   : > { %2408 = vperm.xlu1 %4726, %v6145_v23   ;;  %2853 = vst [vmem:[#allocation3 + $0xa0] sm:$0xff] %v6163_v35 }
 0x799   : > { %2854 = vst [vmem:[#allocation3 + $0xb0] sm:$0xff] %v6166_v10  ;;  %v2307_v48 = vpop.xlane.xlu0 %2306 }
 0x79a   : > { %v2309_v37 = vpop.xlane.xlu1 %2308  ;;  %v6180_v45 = vmax.f32 %v6168_v0, %v2307_v48 }
 0x79b   : > { %v6183_v34 = vmax.f32 %v6171_v51, %v2309_v37 }
 0x79c   : > { %2413 = vperm.xlu1 %4726, %v6148_v38   ;;  %2851 = vst [vmem:[#allocation3 + $0x80] sm:$0xff] %v6180_v45 }
 0x79d   : > { %2852 = vst [vmem:[#allocation3 + $0x90] sm:$0xff] %v6183_v34  ;;  %2433 = vperm.xlu0 %4725, %v6183_v34   ;;  %v2319_v37 = vpop.xlane.xlu0 %2318 }
 0x79e   : > { %v2321_v48 = vpop.xlane.xlu1 %2320  ;;  %v6198_v29 = vmax.f32 %v6185_v61, %v2319_v37 }
 0x79f   : > { %v6204_v53 = vmax.f32 %v6188_v6, %v2321_v48 }
 0x7a0   : > { %2423 = vperm.xlu1 %4726, %v6130_v32   ;;  %2857 = vst [vmem:[#allocation3 + $0xe0] sm:$0xff] %v6198_v29 }
 0x7a1   : > { %2858 = vst [vmem:[#allocation3 + $0xf0] sm:$0xff] %v6204_v53  ;;  %2443 = vperm.xlu0 %4725, %v6166_v10   ;;  %v2315_v48 = vpop.xlane.xlu0 %2314 }
 0x7a2   : > { %v2317_v19 = vpop.xlane.xlu1 %2316  ;;  %v6220_v4 = vmax.f32 %v6206_v57, %v2315_v48 }
 0x7a3   : > { %v6223_v5 = vmax.f32 %v6209_v60, %v2317_v19 }
 0x7a4   : > { %2428 = vperm.xlu1 %4726, %v6180_v45   ;;  %2855 = vst [vmem:[#allocation3 + $0xc0] sm:$0xff] %v6220_v4 }
 0x7a5   : > { %2856 = vst [vmem:[#allocation3 + $0xd0] sm:$0xff] %v6223_v5  ;;  %2453 = vperm.xlu0 %4725, %v6223_v5  }
 0x7a8   : > { %2438 = vperm.xlu1 %4726, %v6163_v35  }
 0x7a9   : > { %2463 = vperm.xlu0 %4725, %v6204_v53  }
 0x7ac   : > { %2448 = vperm.xlu1 %4726, %v6220_v4  }
 0x7b0   : > { %2458 = vperm.xlu1 %4726, %v6198_v29  }
 0x806   : > { %v2399_v19 = vpop.permute.xlu1 %2398 }
 0x807   : > { %v2389_v48 = vpop.permute.xlu0 %2388  ;;  %v2468_v15 = vsub.f32 %v5953_v63, %v2399_v19 }
 0x808   : > { %v2466_v8 = vsub.f32 %v5957_v62, %v2389_v48 }
 0x809   : > { %v2486_v54 = vmul.f32 1.442695, %v2468_v15 }
 0x80a   : > { %v2482_v43 = vmul.f32 1.442695, %v2466_v8 }
 0x80b   : > { %v2394_v37 = vpop.permute.xlu1 %2393 }
 0x80c   : > { %v2467_v39 = vsub.f32 %v5975_v42, %v2394_v37  ;;  %4775 = vpow2.f32 %v2482_v43 }
 0x80e   : > { %v2484_v56 = vmul.f32 1.442695, %v2467_v39 }
 0x80f   : > { %v2404_v47 = vpop.permute.xlu1 %2403 }
 0x810   : > { %4777 = vpow2.f32 %v2484_v56  ;;  %v2469_v18 = vsub.f32 %v5971_v40, %v2404_v47 }
 0x811   : > { %4779 = vpow2.f32 %v2486_v54 }
 0x812   : > { %v2488_v9 = vmul.f32 1.442695, %v2469_v18 }
 0x813   : > { %v2419_v44 = vpop.permute.xlu1 %2418 }
 0x814   : > { %4781 = vpow2.f32 %v2488_v9  ;;  %v2472_v42 = vsub.f32 %v5989_v16, %v2419_v44  ;;  %v4752_v16 = vld [vmem:[%s5080_s20 + $0x14] ss:$8 sps:$4 sm:$0xff]  }
 0x816   : > { %v6242_v48 = vpop.eup %4775  ;;  %v2494_v47 = vmul.f32 1.442695, %v2472_v42 }
 0x817   : > { %v2409_v58 = vpop.permute.xlu1 %2408 }
 0x818   : > { %v2470_v62 = vsub.f32 %v6005_v7, %v2409_v58 }
 0x81a   : > { %v6244_v63 = vpop.eup %4777  ;;  %v2490_v15 = vmul.f32 1.442695, %v2470_v62 }
 0x81b   : > { %v2414_v39 = vpop.permute.xlu1 %2413  ;;  %v2610_v56 = vpack.c.bf16 %v6244_v63, %v6242_v48  ;;  %v6250_v18 = vpop.eup %4779 }
 0x81c   : > { %v2471_v40 = vsub.f32 %v6010_v11, %v2414_v39  ;;  %v2434_v54 = vpop.permute.xlu0 %2433  ;;  %4783 = vpow2.f32 %v2490_v15 }
 0x81d   : > { %4452 = vmatprep.mubr.bf16.mxu1 %v2610_v56  ;;  %v2475_v7 = vsub.f32 %v6046_v3, %v2434_v54  ;;  %v4753_v54 = vld [vmem:[%s5080_s20 + $0x24] ss:$8 sps:$4 sm:$0xff]  }
 0x81e   : > { %v6252_v9 = vpop.eup %4781  ;;  %v2492_v58 = vmul.f32 1.442695, %v2471_v40 }
 0x81f   : > { %v2424_v43 = vpop.permute.xlu1 %2423  ;;  %v2611_v44 = vpack.c.bf16 %v6252_v9, %v6250_v18  ;;  %v2500_v19 = vmul.f32 1.442695, %v2475_v7 }
 0x820   : > { %4785 = vpow2.f32 %v2492_v58  ;;  %v2473_v8 = vsub.f32 %v6000_v14, %v2424_v43  ;;  %v2444_v11 = vpop.permute.xlu0 %2443 }
 0x821   : > { %4453 = vmatmul.mubr.bf16.vlgmr.msra.gmra.mrb[0].mxu1 %v2611_v44  ;;  %4787 = vpow2.f32 %v2494_v47  ;;  %v2477_v62 = vsub.f32 %v6036_v21, %v2444_v11 }
 0x822   : > { %v2496_v37 = vmul.f32 1.442695, %v2473_v8  ;;  %4469 = vmatpush3.bf16.xpose.msra.mxu1 %v6201_v2 }
 0x823   : > { %v2429_v42 = vpop.permute.xlu1 %2428  ;;  %4470 = vmatprep.subr.bf16.mxu1 %v4752_v16  ;;  %v2504_v56 = vmul.f32 1.442695, %v2477_v62  ;;  %v4754_v62 = vld [vmem:[%s5080_s20 + $0x34] ss:$8 sps:$4 sm:$0xff]  }
 0x824   : > { %4789 = vpow2.f32 %v2496_v37  ;;  %v2474_v3 = vsub.f32 %v6041_v36, %v2429_v42  ;;  %v2454_v15 = vpop.permute.xlu0 %2453 }
 0x825   : > { %4791 = vpow2.f32 %v2500_v19  ;;  %v2479_v14 = vsub.f32 %v6077_v59, %v2454_v15 }
 0x826   : > { %v2498_v39 = vmul.f32 1.442695, %v2474_v3  ;;  %v6265_v47 = vpop.eup %4783 }
 0x827   : > { %v2439_v40 = vpop.permute.xlu1 %2438  ;;  %v2508_v36 = vmul.f32 1.442695, %v2479_v14 }
 0x828   : > { %4793 = vpow2.f32 %v2498_v39  ;;  %v2476_v2 = vsub.f32 %v6024_v25, %v2439_v40  ;;  %v2464_v58 = vpop.permute.xlu0 %2463  ;;  %v4755_v40 = vld [vmem:[%s5080_s20 + $0x44] ss:$8 sps:$4 sm:$0xff]  }
 0x829   : > { %4795 = vpow2.f32 %v2504_v56  ;;  %v2481_v43 = vsub.f32 %v6069_v49, %v2464_v58 }
 0x82a   : > { %v6267_v21 = vpop.eup %4785  ;;  %v2502_v7 = vmul.f32 1.442695, %v2476_v2  ;;  %4471 = vmatpush3.bf16.xpose.msra.mxu1 %v4752_v16 }
 0x82b   : > { %v2449_v44 = vpop.permute.xlu1 %2448  ;;  %v2612_v59 = vpack.c.bf16 %v6267_v21, %v6265_v47  ;;  %4472 = vmatprep.subr.bf16.mxu1 %v4753_v54  ;;  %v6273_v8 = vpop.eup %4787  ;;  %v2512_v16 = vmul.f32 1.442695, %v2481_v43  ;;  %v4759_v43 = vld [vmem:[%s5075_s16 + $0x4] ss:$8 sps:$4 sm:$0xff]  }
 0x82c   : > { %4797 = vpow2.f32 %v2502_v7  ;;  %v2478_v25 = vsub.f32 %v6072_v17, %v2449_v44 }
 0x82d   : > { %4456 = vmatprep.mubr.bf16.mxu1 %v2612_v59  ;;  %4799 = vpow2.f32 %v2508_v36  ;;  %v4756_v59 = vld [vmem:[%s5080_s20 + $0x54] ss:$8 sps:$4 sm:$0xff]  }
 0x82e   : > { %v6275_v11 = vpop.eup %4789  ;;  %v2506_v37 = vmul.f32 1.442695, %v2478_v25  ;;  %v4757_v25 = vld [vmem:[%s5080_s20 + $0x64] ss:$8 sps:$4 sm:$0xff]  }
 0x82f   : > { %v2459_v19 = vpop.permute.xlu1 %2458  ;;  %v2613_v49 = vpack.c.bf16 %v6275_v11, %v6273_v8  ;;  %v6281_v3 = vpop.eup %4791 }
 0x830   : > { %4801 = vpow2.f32 %v2506_v37  ;;  %v2480_v42 = vsub.f32 %v6059_v24, %v2459_v19  ;;  %v4758_v37 = vld [vmem:[%s5080_s20 + $0x74] ss:$8 sps:$4 sm:$0xff]   ;;  %v4761_v19 = vld [vmem:[%s5075_s16 + $0x24] ss:$8 sps:$4 sm:$0xff]  }
 0x831   : > { %4457 = vmatmul.mubr.bf16.gmra.mrb[4].mxu1 %v2613_v49  ;;  %4803 = vpow2.f32 %v2512_v16  ;;  %v4760_v16 = vld [vmem:[%s5075_s16 + $0x14] ss:$8 sps:$4 sm:$0xff]  }
 0x832   : > { %v6283_v17 = vpop.eup %4793  ;;  %v2510_v15 = vmul.f32 1.442695, %v2480_v42  ;;  %4473 = vmatpush3.bf16.xpose.msra.mxu1 %v4753_v54  ;;  %v4762_v49 = vld [vmem:[%s5075_s16 + $0x34] ss:$8 sps:$4 sm:$0xff]  }
 0x833   : > { %v2614_v39 = vpack.c.bf16 %v6281_v3, %v6283_v17  ;;  %4474 = vmatprep.subr.bf16.mxu1 %v4754_v62  ;;  %v6287_v56 = vpop.eup %4795  ;;  %v4764_v42 = vld [vmem:[%s5075_s16 + $0x54] ss:$8 sps:$4 sm:$0xff]  }
 0x834   : > { %4805 = vpow2.f32 %v2510_v15  ;;  %v4765_v15 = vld [vmem:[%s5075_s16 + $0x64] ss:$8 sps:$4 sm:$0xff]  }
 0x835   : > { %4460 = vmatprep.mubr.bf16.mxu1 %v2614_v39  ;;  %v4766_v39 = vld [vmem:[%s5075_s16 + $0x74] ss:$8 sps:$4 sm:$0xff]  }
 0x836   : > { %v6289_v14 = vpop.eup %4797 }
 0x837   : > { %v2615_v24 = vpack.c.bf16 %v6287_v56, %v6289_v14  ;;  %v6294_v2 = vpop.eup %4799 }
 0x839   : > { %4461 = vmatmul.mubr.bf16.gmra.mrb[8].mxu1 %v2615_v24  ;;  %v7081_v24 = vsub.f32 %v6084_v46, %v6089_v27  ;;  %v2781_v46 = vld [vmem:[#allocation2 + $0x20] sm:$0xff] }
 0x83a   : > { %v6296_v54 = vpop.eup %4801  ;;  %4475 = vmatpush3.bf16.xpose.msra.mxu1 %v4754_v62  ;;  %v4763_v62 = vld [vmem:[%s5075_s16 + $0x44] ss:$8 sps:$4 sm:$0xff]  }
 0x83b   : > { %v2616_v58 = vpack.c.bf16 %v6294_v2, %v6296_v54  ;;  %4476 = vmatprep.subr.bf16.mxu1 %v4755_v40  ;;  %v6300_v7 = vpop.eup %4803 }
 0x83d   : > { %4464 = vmatprep.mubr.bf16.mxu1 %v2616_v58  ;;  %v7082_v58 = vsub.f32 %v6086_v22, %v6093_v1  ;;  %v7085_v1 = vsub.f32 %v6117_v31, %v6127_v50  ;;  %v7088_v31 = vsub.f32 %v6138_v12, %v6148_v38  ;;  %v7089_v12 = vsub.f32 %v6150_v26, %v6163_v35  ;;  %v2785_v26 = vld [vmem:[#allocation2 + $0x60] sm:$0xff] }
 0x83e   : > { %v6302_v36 = vpop.eup %4805 }
 0x83f   : > { %v2617_v44 = vpack.c.bf16 %v6300_v7, %v6302_v36  ;;  %v2364_v50 = vmul.f32 1.442695, %v7088_v31  ;;  %v2374_v38 = vmul.f32 1.442695, %v7089_v12 }
 0x841   : > { %4465 = vmatmul.mubr.bf16.gmra.mrb[12].mxu1 %v2617_v44  ;;  %v7083_v44 = vsub.f32 %v6095_v52, %v6108_v41  ;;  %v2366_v52 = vmul.f32 1.442695, %v7085_v1  ;;  %v2782_v41 = vld [vmem:[#allocation2 + $0x30] sm:$0xff] }
 0x842   : > { %4477 = vmatpush3.bf16.xpose.msra.mxu1 %v4755_v40  ;;  %4484 = vmatprep.mubr.bf16.mxu1 %v4759_v43  ;;  %v2358_v40 = vmul.f32 1.442695, %v7081_v24  ;;  %v2354_v43 = vmul.f32 1.442695, %v7082_v58 }
 0x843   : > { %4478 = vmatprep.subr.bf16.mxu1 %v4756_v59 }
 0x844   : > { %4807 = vpow2.f32 %v2358_v40 }
 0x845   : > { %4809 = vpow2.f32 %v2354_v43 }
 0x84a   : > { %4479 = vmatpush3.bf16.xpose.msra.mxu1 %v4756_v59  ;;  %v2360_v59 = vmul.f32 1.442695, %v7083_v44 }
 0x84b   : > { %4480 = vmatprep.subr.bf16.mxu1 %v4757_v25 }
 0x84c   : > { %4811 = vpow2.f32 %v2360_v59 }
 0x852   : > { %4481 = vmatpush3.bf16.xpose.msra.mxu1 %v4757_v25  ;;  %v7084_v25 = vsub.f32 %v6101_v20, %v6112_v33  ;;  %v7086_v20 = vsub.f32 %v6132_v55, %v6145_v23 }
 0x853   : > { %4482 = vmatprep.subr.bf16.mxu1 %v4758_v37 }
 0x854   : > { %v2362_v33 = vmul.f32 1.442695, %v7086_v20 }
 0x85a   : > { %4483 = vmatpush3.bf16.xpose.msra.mxu1 %v4758_v37  ;;  %v2356_v37 = vmul.f32 1.442695, %v7084_v25 }
 0x85c   : > { %4813 = vpow2.f32 %v2356_v37  ;;  %v7090_v37 = vsub.f32 %v6168_v0, %v6180_v45  ;;  %v7093_v0 = vsub.f32 %v6185_v61, %v6198_v29  ;;  %v7096_v29 = vsub.f32 %v6209_v60, %v6223_v5  ;;  %v2789_v5 = vld [vmem:[#allocation2 + $0xa0] sm:$0xff] }
 0x85d   : > { %4815 = vpow2.f32 %v2366_v52  ;;  %v7092_v52 = vsub.f32 %v6171_v51, %v6183_v34  ;;  %v7094_v34 = vsub.f32 %v6206_v57, %v6220_v4 }
 0x85e   : > { %4817 = vpow2.f32 %v2362_v33  ;;  %v2783_v33 = vld [vmem:[#allocation2 + $0x40] sm:$0xff]  ;;  %v2380_v61 = vmul.f32 1.442695, %v7096_v29  ;;  %v2792_v29 = vld [vmem:[#allocation2 + $0xd0] sm:$0xff] }
 0x85f   : > { %v2378_v51 = vmul.f32 1.442695, %v7094_v34 }
 0x861   : > { %4485 = vmatmul.mubr.bf16.vlgmr.msra.gmra.mrb[16].mxu1 %v4760_v16  ;;  %v6329_v16 = vpop.eup %4807 }
 0x862   : > { %4488 = vmatprep.mubr.bf16.mxu1 %v4761_v19  ;;  %v6331_v27 = vpop.eup %4809  ;;  %v2779_v19 = vld [vmem:[#allocation2] sm:$0xff] }
 0x863   : > { %v6333_v22 = vpop.eup %4811  ;;  %v2795_v40 = vmul.f32 %v6331_v27, %v2779_v19  ;;  %v7091_v19 = vsub.f32 %v6156_v13, %v6166_v10  ;;  %v2382_v13 = vmul.f32 1.442695, %v7093_v0  ;;  %v2786_v10 = vld [vmem:[#allocation2 + $0x70] sm:$0xff] }
 0x864   : > { %v2798_v44 = vmul.f32 %v6333_v22, %v2782_v41  ;;  %v2372_v41 = vmul.f32 1.442695, %v7092_v52 }
 0x865   : > { %v2376_v1 = vmul.f32 1.442695, %v7091_v19 }
 0x869   : > { %4489 = vmatmul.mubr.bf16.gmra.mrb[20].mxu1 %v4762_v49  ;;  %v6338_v49 = vpop.eup %4813 }
 0x86a   : > { %4492 = vmatprep.mubr.bf16.mxu1 %v4763_v62  ;;  %v2797_v62 = vmul.f32 %v6329_v16, %v2781_v46  ;;  %v2370_v46 = vmul.f32 1.442695, %v7090_v37  ;;  %v6365_v20 = vpop.eup %4815 }
 0x86b   : > { %v6367_v35 = vpop.eup %4817 }
 0x86c   : > { %v2799_v31 = vmul.f32 %v6367_v35, %v2783_v33 }
 0x871   : > { %4493 = vmatmul.mubr.bf16.gmra.mrb[24].mxu1 %v4764_v42  ;;  %v2780_v42 = vld [vmem:[#allocation2 + $0x10] sm:$0xff] }
 0x872   : > { %4496 = vmatprep.mubr.bf16.mxu1 %v4765_v15  ;;  %v7087_v15 = vsub.f32 %v6123_v30, %v6130_v32  ;;  %v2796_v59 = vmul.f32 %v6338_v49, %v2780_v42  ;;  %v2801_v42 = vmul.f32 %v6365_v20, %v2785_v26 }
 0x879   : > { %4497 = vmatmul.mubr.bf16.gmra.mrb[28].mxu1 %v4766_v39  ;;  %v2368_v39 = vmul.f32 1.442695, %v7087_v15  ;;  %v2784_v15 = vld [vmem:[#allocation2 + $0x50] sm:$0xff] }
 0x87b   : > { %4819 = vpow2.f32 %v2368_v39  ;;  %v7095_v39 = vsub.f32 %v6188_v6, %v6204_v53 }
 0x87c   : > { %4821 = vpow2.f32 %v2364_v50 }
 0x87d   : > { %4823 = vpow2.f32 %v2374_v38  ;;  %v2788_v38 = vld [vmem:[#allocation2 + $0x90] sm:$0xff] }
 0x87e   : > { %4825 = vpow2.f32 %v2370_v46 }
 0x87f   : > { %4827 = vpow2.f32 %v2376_v1 }
 0x880   : > { %4829 = vpow2.f32 %v2372_v41 }
 0x881   : > { %4831 = vpow2.f32 %v2382_v13 }
 0x882   : > { %4833 = vpow2.f32 %v2378_v51  ;;  %v2793_v51 = vld [vmem:[#allocation2 + $0xe0] sm:$0xff] }
 0x885   : > { %v6369_v45 = vpop.eup %4819 }
 0x8f4   : > { %v4454_v24 = vpop.f32.mrb[0].mxu1 }
 0x8f5   : > { %v2813_v58 = vadd.f32 %v4454_v24, %v2797_v62  ;;  %v2716_v43 = vpop.f32.mrb[1].mxu1  ;;  %v6374_v62 = vpop.eup %4821  ;;  %v2384_v24 = vmul.f32 1.442695, %v7095_v39 }
 0x8f6   : > { %v2811_v55 = vadd.f32 %v2795_v40, %v2716_v43  ;;  %v4455_v23 = vpop.f32.mrb[2].mxu1  ;;  %v2802_v43 = vmul.f32 %v6369_v45, %v2786_v10 }
 0x8f7   : > { %2829 = vst [vmem:[#allocation2 + $0x20] sm:$0xff] %v2813_v58  ;;  %v2814_v30 = vadd.f32 %v4455_v23, %v2798_v44  ;;  %v2719_v32 = vpop.f32.mrb[3].mxu1  ;;  %v2800_v44 = vmul.f32 %v6374_v62, %v2784_v15  ;;  %4835 = vpow2.f32 %v2384_v24  ;;  %v2791_v15 = vld [vmem:[#allocation2 + $0xc0] sm:$0xff]  ;;  %v2794_v24 = vld [vmem:[#allocation2 + $0xf0] sm:$0xff] }
 0x8f8   : > { %2827 = vst [vmem:[#allocation2] sm:$0xff] %v2811_v55  ;;  %v2812_v25 = vadd.f32 %v2796_v59, %v2719_v32  ;;  %v6389_v55 = vpop.eup %4823  ;;  %4837 = vpow2.f32 %v2380_v61  ;;  %v2787_v59 = vld [vmem:[#allocation2 + $0x80] sm:$0xff]  ;;  %v2790_v32 = vld [vmem:[#allocation2 + $0xb0] sm:$0xff] }
 0x8f9   : > { %2830 = vst [vmem:[#allocation2 + $0x30] sm:$0xff] %v2814_v30  ;;  %v6391_v60 = vpop.eup %4825  ;;  %v2805_v12 = vmul.f32 %v6389_v55, %v2789_v5 }
 0x8fa   : > { %2828 = vst [vmem:[#allocation2 + $0x10] sm:$0xff] %v2812_v25  ;;  %v6393_v30 = vpop.eup %4827  ;;  %v2803_v46 = vmul.f32 %v6391_v60, %v2787_v59 }
 0x8fb   : > { %v6395_v25 = vpop.eup %4829  ;;  %v2806_v52 = vmul.f32 %v6393_v30, %v2790_v32 }
 0x8fc   : > { %v2804_v33 = vmul.f32 %v6395_v25, %v2788_v38  ;;  %v6401_v10 = vpop.eup %4831 }
 0x904   : > { %v4458_v40 = vpop.f32.mrb[4].mxu1 }
 0x905   : > { %v2817_v50 = vadd.f32 %v4458_v40, %v2801_v42  ;;  %v2732_v58 = vpop.f32.mrb[5].mxu1  ;;  %v6403_v42 = vpop.eup %4833 }
 0x906   : > { %v2815_v4 = vadd.f32 %v2799_v31, %v2732_v58  ;;  %v4459_v57 = vpop.f32.mrb[6].mxu1  ;;  %v6405_v39 = vpop.eup %4835  ;;  %v2809_v31 = vmul.f32 %v6401_v10, %v2793_v51 }
 0x907   : > { %2833 = vst [vmem:[#allocation2 + $0x60] sm:$0xff] %v2817_v50  ;;  %v2818_v53 = vadd.f32 %v4459_v57, %v2802_v43  ;;  %v2735_v6 = vpop.f32.mrb[7].mxu1  ;;  %v6407_v40 = vpop.eup %4837  ;;  %v2807_v50 = vmul.f32 %v6403_v42, %v2791_v15  ;;  %v7101_v15 = vld [vmem:[#allocation35_spill] sm:$0xff] }
 0x908   : > { %2831 = vst [vmem:[#allocation2 + $0x40] sm:$0xff] %v2815_v4  ;;  %v2816_v23 = vadd.f32 %v2800_v44, %v2735_v6  ;;  %v2810_v4 = vmul.f32 %v6405_v39, %v2794_v24 }
 0x909   : > { %2834 = vst [vmem:[#allocation2 + $0x70] sm:$0xff] %v2818_v53  ;;  %v2808_v53 = vmul.f32 %v6407_v40, %v2792_v29 }
 0x90a   : > { %2832 = vst [vmem:[#allocation2 + $0x50] sm:$0xff] %v2816_v23 }
 0x90c   : > { %v4462_v37 = vpop.f32.mrb[8].mxu1 }
 0x90d   : > { %v2821_v19 = vadd.f32 %v4462_v37, %v2805_v12  ;;  %v2748_v1 = vpop.f32.mrb[9].mxu1 }
 0x90e   : > { %v2819_v41 = vadd.f32 %v2803_v46, %v2748_v1  ;;  %v4463_v26 = vpop.f32.mrb[10].mxu1  ;;  %v7097_v46 = vld [vmem:[#allocation31_spill] sm:$0xff]  ;;  %v7098_v1 = vld [vmem:[#allocation30_spill] sm:$0xff] }
 0x90f   : > { %2837 = vst [vmem:[#allocation2 + $0xa0] sm:$0xff] %v2821_v19  ;;  %v2822_v0 = vadd.f32 %v4463_v26, %v2806_v52  ;;  %v2751_v13 = vpop.f32.mrb[11].mxu1 }
 0x910   : > { %2835 = vst [vmem:[#allocation2 + $0x80] sm:$0xff] %v2819_v41  ;;  %v2820_v34 = vadd.f32 %v2804_v33, %v2751_v13  ;;  %v7099_v41 = vld [vmem:[#allocation29_spill] sm:$0xff] }
 0x911   : > { %2838 = vst [vmem:[#allocation2 + $0xb0] sm:$0xff] %v2822_v0 }
 0x912   : > { %2836 = vst [vmem:[#allocation2 + $0x90] sm:$0xff] %v2820_v34  ;;  %v7100_v34 = vld [vmem:[#allocation34_spill] sm:$0xff] }
 0x914   : > { %v4466_v61 = vpop.f32.mrb[12].mxu1 }
 0x915   : > { %v2825_v58 = vadd.f32 %v4466_v61, %v2809_v31  ;;  %v2764_v43 = vpop.f32.mrb[13].mxu1  ;;  %v7102_v31 = vld [vmem:[#allocation32_spill] sm:$0xff]  ;;  %v7103_v61 = vld [vmem:[#allocation33_spill] sm:$0xff] }
 0x916   : > { %v2823_v57 = vadd.f32 %v2807_v50, %v2764_v43  ;;  %v4467_v44 = vpop.f32.mrb[14].mxu1 }
 0x917   : > { %2841 = vst [vmem:[#allocation2 + $0xe0] sm:$0xff] %v2825_v58  ;;  %v2826_v6 = vadd.f32 %v4467_v44, %v2810_v4  ;;  %v2767_v23 = vpop.f32.mrb[15].mxu1  ;;  %v7104_v44 = vld [vmem:[#allocation38_spill] sm:$0xff] }
 0x918   : > { %2839 = vst [vmem:[#allocation2 + $0xc0] sm:$0xff] %v2823_v57  ;;  %v2824_v5 = vadd.f32 %v2808_v53, %v2767_v23 }
 0x919   : > { %2842 = vst [vmem:[#allocation2 + $0xf0] sm:$0xff] %v2826_v6  ;;  %v7105_v6 = vld [vmem:[#allocation39_spill] sm:$0xff] }
 0x91a   : > { %2840 = vst [vmem:[#allocation2 + $0xd0] sm:$0xff] %v2824_v5  ;;  %v7106_v5 = vld [vmem:[#allocation36_spill] sm:$0xff] }
 0x934   : > { %v4486_v59 = vpop.f32.mrb[16].mxu1 }
 0x935   : > { %v3021_v32 = vpop.f32.mrb[17].mxu1  ;;  %v6425_v26 = vadd.f32 %v4486_v59, %v7099_v41 }
 0x936   : > { %v6414_v12 = vadd.f32 %v3021_v32, %v5947_v28  ;;  %v4487_v38 = vpop.f32.mrb[18].mxu1  ;;  %v7107_v32 = vld [vmem:[#allocation37_spill] sm:$0xff] }
 0x937   : > { %v3024_v37 = vpop.f32.mrb[19].mxu1  ;;  %v6421_v52 = vadd.f32 %v4487_v38, %v7098_v1 }
 0x938   : > { %v6417_v19 = vadd.f32 %v3024_v37, %v7097_v46  ;;  %3100 = vmax.xlane.f32.xlu1 %v6414_v12 }
 0x93a   : > { %3102 = vmax.xlane.f32.xlu0 %v6417_v19 }
 0x93c   : > { %v4490_v33 = vpop.f32.mrb[20].mxu1  ;;  %3106 = vmax.xlane.f32.xlu1 %v6421_v52 }
 0x93d   : > { %v3037_v28 = vpop.f32.mrb[21].mxu1  ;;  %v6438_v29 = vadd.f32 %v4490_v33, %v7102_v31  ;;  %v7108_v33 = vld [vmem:[#allocation42_spill] sm:$0xff]  ;;  %v7111_v31 = vld [vmem:[#allocation41_spill] sm:$0xff] }
 0x93e   : > { %v4491_v0 = vpop.f32.mrb[22].mxu1  ;;  %3104 = vmax.xlane.f32.xlu0 %v6425_v26  ;;  %v6430_v51 = vadd.f32 %v3037_v28, %v7100_v34  ;;  %v7110_v34 = vld [vmem:[#allocation40_spill] sm:$0xff] }
 0x93f   : > { %v3040_v13 = vpop.f32.mrb[23].mxu1  ;;  %v6441_v50 = vadd.f32 %v4491_v0, %v7103_v61  ;;  %v7109_v0 = vld [vmem:[#allocation43_spill] sm:$0xff] }
 0x940   : > { %v6433_v24 = vadd.f32 %v3040_v13, %v7101_v15 }
 0x942   : > { %3108 = vmax.xlane.f32.xlu0 %v6430_v51  ;;  %3110 = vmax.xlane.f32.xlu1 %v6433_v24 }
 0x944   : > { %v4494_v58 = vpop.f32.mrb[24].mxu1 }
 0x945   : > { %v3053_v43 = vpop.f32.mrb[25].mxu1  ;;  %v6454_v59 = vadd.f32 %v4494_v58, %v7106_v5  ;;  %v4767_v58 = vld [vmem:[%s5085_s24 + $0x4] ss:$8 sps:$4 sm:$0xff]  }
 0x946   : > { %v4495_v4 = vpop.f32.mrb[26].mxu1  ;;  %3112 = vmax.xlane.f32.xlu0 %v6438_v29  ;;  %3114 = vmax.xlane.f32.xlu1 %v6441_v50  ;;  %v6446_v53 = vadd.f32 %v3053_v43, %v7104_v44  ;;  %v4768_v43 = vld [vmem:[%s5085_s24 + $0x14] ss:$8 sps:$4 sm:$0xff]  }
 0x947   : > { %v3056_v57 = vpop.f32.mrb[27].mxu1  ;;  %v6457_v38 = vadd.f32 %v4495_v4, %v7107_v32  ;;  %4500 = vmatprep.subr.bf16.mxu0 %v4767_v58  ;;  %v4769_v4 = vld [vmem:[%s5085_s24 + $0x24] ss:$8 sps:$4 sm:$0xff]  }
 0x948   : > { %v6449_v23 = vadd.f32 %v3056_v57, %v7105_v6  ;;  %4501 = vmatpush3.bf16.msra.mxu0 %v4767_v58  ;;  %v6480_v57 = vld [vmem:[#allocation3 + $0x8] sm:$0xff]  ;;  %v6482_v6 = vld [vmem:[#allocation3 + $0x18] sm:$0xff] }
 0x949   : > { %4502 = vmatprep.subr.bf16.mxu0 %v4768_v43  ;;  %7112 = vst [vmem:[#allocation31_spill] sm:$0xff] %v6480_v57  ;;  %7113 = vst [vmem:[#allocation30_spill] sm:$0xff] %v6482_v6 }
 0x94a   : > { %3116 = vmax.xlane.f32.xlu0 %v6446_v53  ;;  %3118 = vmax.xlane.f32.xlu1 %v6449_v23 }
 0x94c   : > { %v4498_v37 = vpop.f32.mrb[28].mxu1  ;;  %4503 = vmatpush3.bf16.msra.mxu0 %v4768_v43 }
 0x94d   : > { %v3069_v46 = vpop.f32.mrb[29].mxu1  ;;  %v6470_v15 = vadd.f32 %v4498_v37, %v7110_v34  ;;  %4504 = vmatprep.subr.bf16.mxu0 %v4769_v4  ;;  %v6487_v37 = vld [vmem:[#allocation3 + $0x38] sm:$0xff] }
 0x94e   : > { %v4499_v1 = vpop.f32.mrb[30].mxu1  ;;  %3120 = vmax.xlane.f32.xlu0 %v6454_v59  ;;  %3122 = vmax.xlane.f32.xlu1 %v6457_v38  ;;  %v6462_v28 = vadd.f32 %v3069_v46, %v7108_v33  ;;  %v6496_v33 = vld [vmem:[#allocation3 + $0x28] sm:$0xff] }
 0x94f   : > { %v3072_v41 = vpop.f32.mrb[31].mxu1  ;;  %v6473_v61 = vadd.f32 %v4499_v1, %v7111_v31  ;;  %v4770_v31 = vld [vmem:[%s5085_s24 + $0x34] ss:$8 sps:$4 sm:$0xff]   ;;  %v4771_v46 = vld [vmem:[%s5085_s24 + $0x44] ss:$8 sps:$4 sm:$0xff]  }
 0x950   : > { %v6465_v13 = vadd.f32 %v3072_v41, %v7109_v0  ;;  %4505 = vmatpush3.bf16.msra.mxu0 %v4769_v4 }
 0x951   : > { %4506 = vmatprep.subr.bf16.mxu0 %v4770_v31 }
 0x952   : > { %3124 = vmax.xlane.f32.xlu0 %v6462_v28  ;;  %3126 = vmax.xlane.f32.xlu1 %v6465_v13 }
 0x954   : > { %4507 = vmatpush3.bf16.msra.mxu0 %v4770_v31  ;;  %v6530_v31 = vld [vmem:[#allocation3 + $0x78] sm:$0xff] }
 0x955   : > { %4508 = vmatprep.subr.bf16.mxu0 %v4771_v46  ;;  %7122 = vst [vmem:[#allocation37_spill] sm:$0xff] %v6530_v31 }
 0x956   : > { %3128 = vmax.xlane.f32.xlu0 %v6470_v15  ;;  %3130 = vmax.xlane.f32.xlu1 %v6473_v61 }
 0x958   : > { %4509 = vmatpush3.bf16.msra.mxu0 %v4771_v46 }
 0x9c5   : > { %v3101_v44 = vpop.xlane.xlu1 %3100 }
 0x9c6   : > { %v6485_v5 = vmax.f32 %v6480_v57, %v3101_v44  ;;  %v6513_v44 = vld [vmem:[#allocation3 + $0x48] sm:$0xff] }
 0x9c7   : > { %v3103_v32 = vpop.xlane.xlu0 %3102  ;;  %7117 = vst [vmem:[#allocation32_spill] sm:$0xff] %v6513_v44  ;;  %v6528_v57 = vld [vmem:[#allocation3 + $0x68] sm:$0xff] }
 0x9c8   : > { %7114 = vst [vmem:[#allocation29_spill] sm:$0xff] %v6485_v5  ;;  %3653 = vst [vmem:[#allocation3 + $0x8] sm:$0xff] %v6485_v5  ;;  %v6493_v1 = vmax.f32 %v6482_v6, %v3103_v32  ;;  %3198 = vperm.xlu0 %4725, %v6485_v5   ;;  %v6515_v32 = vld [vmem:[#allocation3 + $0x58] sm:$0xff] }
 0x9c9   : > { %v3107_v41 = vpop.xlane.xlu1 %3106  ;;  %7118 = vst [vmem:[#allocation33_spill] sm:$0xff] %v6515_v32  ;;  %7121 = vst [vmem:[#allocation36_spill] sm:$0xff] %v6528_v57 }
 0x9ca   : > { %7115 = vst [vmem:[#allocation34_spill] sm:$0xff] %v6493_v1  ;;  %3654 = vst [vmem:[#allocation3 + $0x18] sm:$0xff] %v6493_v1  ;;  %v6502_v34 = vmax.f32 %v6487_v37, %v3107_v41  ;;  %3203 = vperm.xlu1 %4726, %v6493_v1   ;;  %v6549_v1 = vld [vmem:[#allocation3 + $0x98] sm:$0xff] }
 0x9cb   : > { %v3105_v58 = vpop.xlane.xlu0 %3104  ;;  %7126 = vst [vmem:[#allocation41_spill] sm:$0xff] %v6549_v1 }
 0x9cc   : > { %3656 = vst [vmem:[#allocation3 + $0x38] sm:$0xff] %v6502_v34  ;;  %v6510_v4 = vmax.f32 %v6496_v33, %v3105_v58  ;;  %3213 = vperm.xlu0 %4725, %v6502_v34  }
 0x9ce   : > { %7116 = vst [vmem:[#allocation35_spill] sm:$0xff] %v6510_v4  ;;  %3655 = vst [vmem:[#allocation3 + $0x28] sm:$0xff] %v6510_v4  ;;  %3208 = vperm.xlu1 %4726, %v6510_v4  }
 0x9cf   : > { %v3109_v0 = vpop.xlane.xlu0 %3108  ;;  %v3111_v58 = vpop.xlane.xlu1 %3110 }
 0x9d0   : > { %v6523_v43 = vmax.f32 %v6513_v44, %v3109_v0  ;;  %v6526_v5 = vmax.f32 %v6515_v32, %v3111_v58  ;;  %v4772_v0 = vld [vmem:[%s5085_s24 + $0x54] ss:$8 sps:$4 sm:$0xff]   ;;  %v6547_v44 = vld [vmem:[#allocation3 + $0x88] sm:$0xff] }
 0x9d1   : > { %4510 = vmatprep.subr.bf16.mxu0 %v4772_v0  ;;  %7125 = vst [vmem:[#allocation40_spill] sm:$0xff] %v6547_v44 }
 0x9d2   : > { %7119 = vst [vmem:[#allocation38_spill] sm:$0xff] %v6523_v43  ;;  %7120 = vst [vmem:[#allocation39_spill] sm:$0xff] %v6526_v5  ;;  %3218 = vperm.xlu1 %4726, %v6523_v43   ;;  %3223 = vperm.xlu0 %4725, %v6526_v5  }
 0x9d3   : > { %3657 = vst [vmem:[#allocation3 + $0x48] sm:$0xff] %v6523_v43  ;;  %3658 = vst [vmem:[#allocation3 + $0x58] sm:$0xff] %v6526_v5  ;;  %v3113_v58 = vpop.xlane.xlu0 %3112  ;;  %v3115_v6 = vpop.xlane.xlu1 %3114  ;;  %4511 = vmatpush3.bf16.msra.mxu0 %v4772_v0  ;;  %v6568_v5 = vld [vmem:[#allocation3 + $0xb8] sm:$0xff] }
 0x9d4   : > { %v6542_v46 = vmax.f32 %v6528_v57, %v3113_v58  ;;  %v6545_v41 = vmax.f32 %v6530_v31, %v3115_v6  ;;  %v4773_v6 = vld [vmem:[%s5085_s24 + $0x64] ss:$8 sps:$4 sm:$0xff]  }
 0x9d5   : > { %4512 = vmatprep.subr.bf16.mxu0 %v4773_v6  ;;  %v6566_v57 = vld [vmem:[#allocation3 + $0xa8] sm:$0xff] }
 0x9d6   : > { %7123 = vst [vmem:[#allocation42_spill] sm:$0xff] %v6542_v46  ;;  %7124 = vst [vmem:[#allocation43_spill] sm:$0xff] %v6545_v41  ;;  %3228 = vperm.xlu1 %4726, %v6542_v46   ;;  %3233 = vperm.xlu0 %4725, %v6545_v41  }
 0x9d7   : > { %3659 = vst [vmem:[#allocation3 + $0x68] sm:$0xff] %v6542_v46  ;;  %3660 = vst [vmem:[#allocation3 + $0x78] sm:$0xff] %v6545_v41  ;;  %v3117_v58 = vpop.xlane.xlu0 %3116  ;;  %v3119_v32 = vpop.xlane.xlu1 %3118  ;;  %4513 = vmatpush3.bf16.msra.mxu0 %v4773_v6  ;;  %v6585_v46 = vld [vmem:[#allocation3 + $0xc8] sm:$0xff] }
 0x9d8   : > { %v6561_v0 = vmax.f32 %v6547_v44, %v3117_v58  ;;  %v6564_v43 = vmax.f32 %v6549_v1, %v3119_v32  ;;  %7129 = vst [vmem:[#allocation46_spill] sm:$0xff] %v6566_v57  ;;  %v4774_v32 = vld [vmem:[%s5085_s24 + $0x74] ss:$8 sps:$4 sm:$0xff]   ;;  %v6603_v41 = vld [vmem:[#allocation3 + $0xe8] sm:$0xff] }
 0x9d9   : > { %4514 = vmatprep.subr.bf16.mxu0 %v4774_v32  ;;  %v6587_v44 = vld [vmem:[#allocation3 + $0xd8] sm:$0xff] }
 0x9da   : > { %7127 = vst [vmem:[#allocation44_spill] sm:$0xff] %v6561_v0  ;;  %7128 = vst [vmem:[#allocation45_spill] sm:$0xff] %v6564_v43  ;;  %3238 = vperm.xlu1 %4726, %v6561_v0   ;;  %3243 = vperm.xlu0 %4725, %v6564_v43   ;;  %v6605_v1 = vld [vmem:[#allocation3 + $0xf8] sm:$0xff] }
 0x9db   : > { %3661 = vst [vmem:[#allocation3 + $0x88] sm:$0xff] %v6561_v0  ;;  %3662 = vst [vmem:[#allocation3 + $0x98] sm:$0xff] %v6564_v43  ;;  %v3121_v58 = vpop.xlane.xlu0 %3120  ;;  %v3123_v31 = vpop.xlane.xlu1 %3122  ;;  %4515 = vmatpush3.bf16.msra.mxu0 %v4774_v32 }
 0x9dc   : > { %v6580_v4 = vmax.f32 %v6566_v57, %v3121_v58  ;;  %v6583_v6 = vmax.f32 %v6568_v5, %v3123_v31 }
 0x9de   : > { %7130 = vst [vmem:[#allocation47_spill] sm:$0xff] %v6580_v4  ;;  %7131 = vst [vmem:[#allocation48_spill] sm:$0xff] %v6583_v6  ;;  %3248 = vperm.xlu1 %4726, %v6580_v4   ;;  %3253 = vperm.xlu0 %4725, %v6583_v6  }
 0x9df   : > { %3663 = vst [vmem:[#allocation3 + $0xa8] sm:$0xff] %v6580_v4  ;;  %3664 = vst [vmem:[#allocation3 + $0xb8] sm:$0xff] %v6583_v6  ;;  %v3125_v31 = vpop.xlane.xlu0 %3124  ;;  %v3127_v58 = vpop.xlane.xlu1 %3126 }
 0x9e0   : > { %v6598_v43 = vmax.f32 %v6585_v46, %v3125_v31  ;;  %v6601_v32 = vmax.f32 %v6587_v44, %v3127_v58 }
 0x9e2   : > { %3665 = vst [vmem:[#allocation3 + $0xc8] sm:$0xff] %v6598_v43  ;;  %3666 = vst [vmem:[#allocation3 + $0xd8] sm:$0xff] %v6601_v32  ;;  %3258 = vperm.xlu1 %4726, %v6598_v43   ;;  %3263 = vperm.xlu0 %4725, %v6601_v32  }
 0x9e3   : > { %v3129_v31 = vpop.xlane.xlu0 %3128  ;;  %v3131_v58 = vpop.xlane.xlu1 %3130 }
 0x9e4   : > { %v6616_v57 = vmax.f32 %v6603_v41, %v3129_v31  ;;  %v6619_v6 = vmax.f32 %v6605_v1, %v3131_v58 }
 0x9e6   : > { %v3162_v0 = vsub.f32 %v6603_v41, %v6616_v57  ;;  %3667 = vst [vmem:[#allocation3 + $0xe8] sm:$0xff] %v6616_v57  ;;  %v3163_v4 = vsub.f32 %v6605_v1, %v6619_v6  ;;  %3668 = vst [vmem:[#allocation3 + $0xf8] sm:$0xff] %v6619_v6  ;;  %3268 = vperm.xlu1 %4726, %v6616_v57   ;;  %3273 = vperm.xlu0 %4725, %v6619_v6   ;;  %v3335_v1 = vld [vmem:[#allocation4 + $0xb8] sm:$0xff] }
 0xa05   : > { %2548 = vadd.xlane.f32.xlu0 %v6244_v63 }
 0xa09   : > { %2550 = vadd.xlane.f32.xlu0 %v6250_v18 }
 0xa0a   : > { %2546 = vadd.xlane.f32.xlu1 %v6242_v48 }
 0xa0d   : > { %2554 = vadd.xlane.f32.xlu0 %v6265_v47 }
 0xa0e   : > { %2552 = vadd.xlane.f32.xlu1 %v6252_v9 }
 0xa11   : > { %2558 = vadd.xlane.f32.xlu0 %v6273_v8 }
 0xa12   : > { %2556 = vadd.xlane.f32.xlu1 %v6267_v21 }
 0xa15   : > { %2562 = vadd.xlane.f32.xlu0 %v6283_v17 }
 0xa16   : > { %2560 = vadd.xlane.f32.xlu1 %v6275_v11 }
 0xa19   : > { %2566 = vadd.xlane.f32.xlu0 %v6289_v14 }
 0xa1a   : > { %2564 = vadd.xlane.f32.xlu1 %v6281_v3 }
 0xa1d   : > { %2570 = vadd.xlane.f32.xlu0 %v6296_v54 }
 0xa1e   : > { %2568 = vadd.xlane.f32.xlu1 %v6287_v56 }
 0xa21   : > { %2574 = vadd.xlane.f32.xlu0 %v6302_v36 }
 0xa22   : > { %2572 = vadd.xlane.f32.xlu1 %v6294_v2 }
 0xa26   : > { %2576 = vadd.xlane.f32.xlu1 %v6300_v7 }
 0xa47   : > { %v3199_v48 = vpop.permute.xlu0 %3198 }
 0xa48   : > { %v3276_v63 = vsub.f32 %v6414_v12, %v3199_v48 }
 0xa49   : > { %v3204_v18 = vpop.permute.xlu1 %3203 }
 0xa4a   : > { %v3292_v9 = vmul.f32 1.442695, %v3276_v63  ;;  %v3277_v47 = vsub.f32 %v6417_v19, %v3204_v18 }
 0xa4b   : > { %v3214_v21 = vpop.permute.xlu0 %3213 }
 0xa4c   : > { %v3294_v8 = vmul.f32 1.442695, %v3277_v47  ;;  %v3279_v11 = vsub.f32 %v6421_v52, %v3214_v21  ;;  %4839 = vpow2.f32 %v3292_v9 }
 0xa4d   : > { %v3209_v3 = vpop.permute.xlu1 %3208 }
 0xa4e   : > { %4841 = vpow2.f32 %v3294_v8  ;;  %v3298_v17 = vmul.f32 1.442695, %v3279_v11  ;;  %v3278_v56 = vsub.f32 %v6425_v26, %v3209_v3 }
 0xa50   : > { %4843 = vpow2.f32 %v3298_v17  ;;  %v3296_v14 = vmul.f32 1.442695, %v3278_v56 }
 0xa51   : > { %v3224_v2 = vpop.permute.xlu0 %3223  ;;  %v3219_v54 = vpop.permute.xlu1 %3218 }
 0xa52   : > { %4845 = vpow2.f32 %v3296_v14  ;;  %v3281_v7 = vsub.f32 %v6433_v24, %v3224_v2  ;;  %v3280_v36 = vsub.f32 %v6430_v51, %v3219_v54 }
 0xa54   : > { %v3302_v12 = vmul.f32 1.442695, %v3281_v7  ;;  %v3300_v19 = vmul.f32 1.442695, %v3280_v36 }
 0xa55   : > { %v3234_v31 = vpop.permute.xlu0 %3233  ;;  %v3229_v58 = vpop.permute.xlu1 %3228 }
 0xa56   : > { %4847 = vpow2.f32 %v3302_v12  ;;  %v3283_v52 = vsub.f32 %v6441_v50, %v3234_v31  ;;  %v3282_v48 = vsub.f32 %v6438_v29, %v3229_v58  ;;  %v4840_v63 = vpop.eup %4839 }
 0xa57   : > { %4849 = vpow2.f32 %v3300_v19 }
 0xa58   : > { %v4842_v26 = vpop.eup %4841  ;;  %v3306_v18 = vmul.f32 1.442695, %v3283_v52  ;;  %v3304_v9 = vmul.f32 1.442695, %v3282_v48 }
 0xa59   : > { %v3244_v47 = vpop.permute.xlu0 %3243  ;;  %v3239_v21 = vpop.permute.xlu1 %3238  ;;  %v3420_v8 = vpack.c.bf16 %v4842_v26, %v4840_v63 }
 0xa5a   : > { %v4844_v24 = vpop.eup %4843  ;;  %4851 = vpow2.f32 %v3306_v18  ;;  %v3285_v51 = vsub.f32 %v6449_v23, %v3244_v47  ;;  %v3284_v11 = vsub.f32 %v6446_v53, %v3239_v21 }
 0xa5b   : > { %4853 = vpow2.f32 %v3304_v9  ;;  %3362 = vadd.xlane.f32.xlu1 %v4844_v24  ;;  %4516 = vmatprep.mubr.bf16.mxu0 %v3420_v8 }
 0xa5c   : > { %v4846_v50 = vpop.eup %4845  ;;  %v3310_v3 = vmul.f32 1.442695, %v3285_v51  ;;  %v3308_v29 = vmul.f32 1.442695, %v3284_v11 }
 0xa5d   : > { %v3254_v17 = vpop.permute.xlu0 %3253  ;;  %3360 = vadd.xlane.f32.xlu0 %v4846_v50  ;;  %v3249_v56 = vpop.permute.xlu1 %3248  ;;  %v3421_v14 = vpack.c.bf16 %v4844_v24, %v4846_v50 }
 0xa5e   : > { %4855 = vpow2.f32 %v3310_v3  ;;  %v3287_v2 = vsub.f32 %v6457_v38, %v3254_v17  ;;  %v3286_v54 = vsub.f32 %v6454_v59, %v3249_v56 }
 0xa5f   : > { %4857 = vpow2.f32 %v3308_v29  ;;  %3358 = vadd.xlane.f32.xlu1 %v4842_v26  ;;  %4517 = vmatmul.mubr.bf16.vlgmr.msra.gmra.mrb[16].mxu0 %v3421_v14 }
 0xa60   : > { %v4848_v23 = vpop.eup %4847  ;;  %v3314_v53 = vmul.f32 1.442695, %v3287_v2  ;;  %v3312_v7 = vmul.f32 1.442695, %v3286_v54  ;;  %v2515_v2 = vld [vmem:[#allocation4 + $0x10] sm:$0xff] }
 0xa61   : > { %v4850_v36 = vpop.eup %4849  ;;  %v3264_v12 = vpop.permute.xlu0 %3263  ;;  %3356 = vadd.xlane.f32.xlu0 %v4840_v63  ;;  %v2531_v54 = vmul.f32 %v6338_v49, %v2515_v2 }
 0xa62   : > { %v3259_v19 = vpop.permute.xlu1 %3258  ;;  %4859 = vpow2.f32 %v3314_v53  ;;  %v3289_v31 = vsub.f32 %v6465_v13, %v3264_v12  ;;  %v3422_v52 = vpack.c.bf16 %v4848_v23, %v4850_v36  ;;  %v2516_v53 = vld [vmem:[#allocation4 + $0x20] sm:$0xff] }
 0xa63   : > { %v3288_v58 = vsub.f32 %v6462_v28, %v3259_v19  ;;  %4861 = vpow2.f32 %v3312_v7  ;;  %v2532_v12 = vmul.f32 %v6329_v16, %v2516_v53  ;;  %v2520_v16 = vld [vmem:[#allocation4 + $0x60] sm:$0xff] }
 0xa64   : > { %v4852_v38 = vpop.eup %4851  ;;  %v3318_v48 = vmul.f32 1.442695, %v3289_v31  ;;  %4520 = vmatprep.mubr.bf16.mxu0 %v3422_v52 }
 0xa65   : > { %v3316_v59 = vmul.f32 1.442695, %v3288_v58  ;;  %v4854_v26 = vpop.eup %4853  ;;  %v3274_v18 = vpop.permute.xlu0 %3273  ;;  %3370 = vadd.xlane.f32.xlu1 %v4852_v38  ;;  %v2518_v58 = vld [vmem:[#allocation4 + $0x40] sm:$0xff] }
 0xa66   : > { %v3269_v9 = vpop.permute.xlu1 %3268  ;;  %4863 = vpow2.f32 %v3318_v48  ;;  %v3291_v47 = vsub.f32 %v6473_v61, %v3274_v18  ;;  %3368 = vadd.xlane.f32.xlu0 %v4854_v26  ;;  %v3423_v21 = vpack.c.bf16 %v4852_v38, %v4854_v26  ;;  %v2517_v48 = vld [vmem:[#allocation4 + $0x30] sm:$0xff]  ;;  %v2534_v49 = vmul.f32 %v6367_v35, %v2518_v58 }
 0xa67   : > { %v3290_v63 = vsub.f32 %v6470_v15, %v3269_v9  ;;  %4865 = vpow2.f32 %v3316_v59  ;;  %v2533_v18 = vmul.f32 %v6333_v22, %v2517_v48 }
 0xa68   : > { %v4856_v13 = vpop.eup %4855  ;;  %v3322_v28 = vmul.f32 1.442695, %v3291_v47  ;;  %4521 = vmatmul.mubr.bf16.gmra.mrb[20].mxu0 %v3423_v21  ;;  %v2519_v47 = vld [vmem:[#allocation4 + $0x50] sm:$0xff]  ;;  %v2536_v21 = vmul.f32 %v6365_v20, %v2520_v16 }
 0xa69   : > { %v3320_v8 = vmul.f32 1.442695, %v3290_v63  ;;  %v4858_v24 = vpop.eup %4857  ;;  %3366 = vadd.xlane.f32.xlu1 %v4848_v23  ;;  %v2535_v35 = vmul.f32 %v6374_v62, %v2519_v47 }
 0xa6a   : > { %4867 = vpow2.f32 %v3322_v28  ;;  %3364 = vadd.xlane.f32.xlu0 %v4850_v36  ;;  %v3424_v51 = vpack.c.bf16 %v4856_v13, %v4858_v24  ;;  %v2514_v36 = vld [vmem:[#allocation4] sm:$0xff] }
 0xa6b   : > { %4869 = vpow2.f32 %v3320_v8  ;;  %v2530_v31 = vmul.f32 %v6331_v27, %v2514_v36  ;;  %v2522_v28 = vld [vmem:[#allocation4 + $0x80] sm:$0xff] }
 0xa6c   : > { %v4860_v11 = vpop.eup %4859  ;;  %4524 = vmatprep.mubr.bf16.mxu0 %v3424_v51 }
 0xa6d   : > { %v4862_v50 = vpop.eup %4861  ;;  %3378 = vadd.xlane.f32.xlu1 %v4860_v11 }
 0xa6e   : > { %3376 = vadd.xlane.f32.xlu0 %v4862_v50  ;;  %v3425_v61 = vpack.c.bf16 %v4860_v11, %v4862_v50  ;;  %v2538_v11 = vmul.f32 %v6391_v60, %v2522_v28  ;;  %v7135_v28 = vld [vmem:[#allocation30_spill] sm:$0xff] }
 0xa70   : > { %v4864_v3 = vpop.eup %4863  ;;  %4525 = vmatmul.mubr.bf16.gmra.mrb[24].mxu0 %v3425_v61  ;;  %v2524_v61 = vld [vmem:[#allocation4 + $0xa0] sm:$0xff] }
 0xa71   : > { %v4866_v15 = vpop.eup %4865  ;;  %3374 = vadd.xlane.f32.xlu1 %v4856_v13 }
 0xa72   : > { %3372 = vadd.xlane.f32.xlu0 %v4858_v24  ;;  %v3426_v29 = vpack.c.bf16 %v4864_v3, %v4866_v15  ;;  %v2521_v24 = vld [vmem:[#allocation4 + $0x70] sm:$0xff] }
 0xa73   : > { %v2537_v20 = vmul.f32 %v6369_v45, %v2521_v24 }
 0xa74   : > { %v4868_v17 = vpop.eup %4867  ;;  %4528 = vmatprep.mubr.bf16.mxu0 %v3426_v29 }
 0xa75   : > { %v4870_v56 = vpop.eup %4869  ;;  %3382 = vadd.xlane.f32.xlu1 %v4864_v3 }
 0xa76   : > { %3380 = vadd.xlane.f32.xlu0 %v4866_v15  ;;  %v3427_v14 = vpack.c.bf16 %v4868_v17, %v4870_v56  ;;  %v2523_v15 = vld [vmem:[#allocation4 + $0x90] sm:$0xff] }
 0xa77   : > { %v2539_v60 = vmul.f32 %v6395_v25, %v2523_v15  ;;  %v7142_v15 = vld [vmem:[#allocation43_spill] sm:$0xff] }
 0xa78   : > { %4529 = vmatmul.mubr.bf16.gmra.mrb[28].mxu0 %v3427_v14  ;;  %v2526_v14 = vld [vmem:[#allocation4 + $0xc0] sm:$0xff] }
 0xa79   : > { %3386 = vadd.xlane.f32.xlu1 %v4868_v17  ;;  %v2540_v17 = vmul.f32 %v6389_v55, %v2524_v61  ;;  %v2542_v53 = vmul.f32 %v6403_v42, %v2526_v14 }
 0xa7a   : > { %3384 = vadd.xlane.f32.xlu0 %v4870_v56 }
 0xa92   : > { %v2549_v23 = vpop.xlane.xlu0 %2548 }
 0xa93   : > { %v6662_v7 = vadd.f32 %v2549_v23, %v2531_v54  ;;  %v2525_v54 = vld [vmem:[#allocation4 + $0xb0] sm:$0xff] }
 0xa94   : > { %v2541_v55 = vmul.f32 %v6393_v30, %v2525_v54  ;;  %v2529_v30 = vld [vmem:[#allocation4 + $0xf0] sm:$0xff] }
 0xa95   : > { %2595 = vst [vmem:[#allocation4 + $0x10] sm:$0xff] %v6662_v7  ;;  %v2545_v16 = vmul.f32 %v6405_v39, %v2529_v30  ;;  %v7139_v39 = vld [vmem:[#allocation29_spill] sm:$0xff]  ;;  %v7148_v54 = vld [vmem:[#allocation39_spill] sm:$0xff] }
 0xa96   : > { %v2551_v19 = vpop.xlane.xlu0 %2550 }
 0xa97   : > { %v6667_v52 = vadd.f32 %v2551_v19, %v2532_v12  ;;  %v2547_v38 = vpop.xlane.xlu1 %2546  ;;  %v2528_v12 = vld [vmem:[#allocation4 + $0xe0] sm:$0xff] }
 0xa98   : > { %v6669_v59 = vadd.f32 %v2547_v38, %v2530_v31  ;;  %v2527_v31 = vld [vmem:[#allocation4 + $0xd0] sm:$0xff]  ;;  %v2544_v38 = vmul.f32 %v6401_v10, %v2528_v12  ;;  %v7132_v10 = vsub.f32 %v6487_v37, %v6502_v34  ;;  %v7150_v12 = vld [vmem:[#allocation32_spill] sm:$0xff] }
 0xa99   : > { %2596 = vst [vmem:[#allocation4 + $0x20] sm:$0xff] %v6667_v52  ;;  %v2543_v42 = vmul.f32 %v6407_v40, %v2527_v31 }
 0xa9a   : > { %2594 = vst [vmem:[#allocation4] sm:$0xff] %v6669_v59  ;;  %v2555_v26 = vpop.xlane.xlu0 %2554  ;;  %v3170_v40 = vmul.f32 1.442695, %v7132_v10 }
 0xa9b   : > { %v6675_v9 = vadd.f32 %v2555_v26, %v2534_v49  ;;  %v2553_v27 = vpop.xlane.xlu1 %2552 }
 0xa9c   : > { %v6677_v63 = vadd.f32 %v2553_v27, %v2533_v18  ;;  %4871 = vpow2.f32 %v3170_v40 }
 0xa9d   : > { %2598 = vst [vmem:[#allocation4 + $0x40] sm:$0xff] %v6675_v9 }
 0xa9e   : > { %2597 = vst [vmem:[#allocation4 + $0x30] sm:$0xff] %v6677_v63  ;;  %v2559_v13 = vpop.xlane.xlu0 %2558 }
 0xa9f   : > { %v6683_v8 = vadd.f32 %v2559_v13, %v2536_v21  ;;  %v2557_v22 = vpop.xlane.xlu1 %2556  ;;  %v7133_v21 = vld [vmem:[#allocation35_spill] sm:$0xff] }
 0xaa0   : > { %v6685_v51 = vadd.f32 %v2557_v22, %v2535_v35  ;;  %v7134_v13 = vsub.f32 %v6496_v33, %v7133_v21  ;;  %v7136_v22 = vld [vmem:[#allocation34_spill] sm:$0xff]  ;;  %v3325_v21 = vld [vmem:[#allocation4 + $0x18] sm:$0xff] }
 0xaa1   : > { %2600 = vst [vmem:[#allocation4 + $0x60] sm:$0xff] %v6683_v8  ;;  %v7137_v24 = vsub.f32 %v7135_v28, %v7136_v22 }
 0xaa2   : > { %2599 = vst [vmem:[#allocation4 + $0x50] sm:$0xff] %v6685_v51  ;;  %v2563_v50 = vpop.xlane.xlu0 %2562  ;;  %v3168_v35 = vmul.f32 1.442695, %v7134_v13  ;;  %v7155_v13 = vld [vmem:[#allocation46_spill] sm:$0xff] }
 0xaa3   : > { %v6691_v3 = vadd.f32 %v2563_v50, %v2538_v11  ;;  %v2561_v62 = vpop.xlane.xlu1 %2560  ;;  %v3166_v11 = vmul.f32 1.442695, %v7137_v24  ;;  %v7138_v50 = vld [vmem:[#allocation31_spill] sm:$0xff] }
 0xaa4   : > { %v6693_v29 = vadd.f32 %v2561_v62, %v2537_v20  ;;  %v7140_v20 = vsub.f32 %v7138_v50, %v7139_v39  ;;  %4873 = vpow2.f32 %v3168_v35  ;;  %v7141_v62 = vld [vmem:[#allocation37_spill] sm:$0xff]  ;;  %v7156_v35 = vld [vmem:[#allocation47_spill] sm:$0xff] }
 0xaa5   : > { %2602 = vst [vmem:[#allocation4 + $0x80] sm:$0xff] %v6691_v3  ;;  %4875 = vpow2.f32 %v3166_v11  ;;  %v7143_v37 = vsub.f32 %v7141_v62, %v7142_v15  ;;  %v7157_v28 = vsub.f32 %v7155_v13, %v7156_v35  ;;  %v7158_v62 = vld [vmem:[#allocation41_spill] sm:$0xff]  ;;  %v3329_v35 = vld [vmem:[#allocation4 + $0x58] sm:$0xff] }
 0xaa6   : > { %2601 = vst [vmem:[#allocation4 + $0x70] sm:$0xff] %v6693_v29  ;;  %v2567_v56 = vpop.xlane.xlu0 %2566  ;;  %v3164_v61 = vmul.f32 1.442695, %v7140_v20  ;;  %v6743_v14 = vpop.eup %4871  ;;  %v3324_v20 = vld [vmem:[#allocation4 + $0x8] sm:$0xff]  ;;  %v7159_v15 = vld [vmem:[#allocation45_spill] sm:$0xff] }
 0xaa7   : > { %v6699_v2 = vadd.f32 %v2567_v56, %v2540_v17  ;;  %v2565_v45 = vpop.xlane.xlu1 %2564  ;;  %v3178_v34 = vmul.f32 1.442695, %v7143_v37  ;;  %v7144_v17 = vld [vmem:[#allocation36_spill] sm:$0xff]  ;;  %v7145_v56 = vld [vmem:[#allocation42_spill] sm:$0xff]  ;;  %v3184_v22 = vmul.f32 1.442695, %v7157_v28  ;;  %v7160_v37 = vsub.f32 %v7158_v62, %v7159_v15 }
 0xaa8   : > { %v6701_v23 = vadd.f32 %v2565_v45, %v2539_v60  ;;  %4877 = vpow2.f32 %v3164_v61  ;;  %v7146_v33 = vsub.f32 %v7144_v17, %v7145_v56  ;;  %v7147_v45 = vld [vmem:[#allocation33_spill] sm:$0xff]  ;;  %v7161_v56 = vld [vmem:[#allocation40_spill] sm:$0xff] }
 0xaa9   : > { %2604 = vst [vmem:[#allocation4 + $0xa0] sm:$0xff] %v6699_v2  ;;  %4879 = vpow2.f32 %v3178_v34  ;;  %v3182_v34 = vmul.f32 1.442695, %v7160_v37  ;;  %v3334_v37 = vld [vmem:[#allocation4 + $0xa8] sm:$0xff] }
 0xaaa   : > { %2603 = vst [vmem:[#allocation4 + $0x90] sm:$0xff] %v6701_v23  ;;  %v2571_v36 = vpop.xlane.xlu0 %2570  ;;  %v3176_v60 = vmul.f32 1.442695, %v7146_v33  ;;  %v7162_v33 = vld [vmem:[#allocation44_spill] sm:$0xff] }
 0xaab   : > { %v6707_v19 = vadd.f32 %v2571_v36, %v2542_v53  ;;  %v2569_v25 = vpop.xlane.xlu1 %2568  ;;  %v7149_v53 = vsub.f32 %v7147_v45, %v7148_v54 }
 0xaac   : > { %v6709_v58 = vadd.f32 %v2569_v25, %v2541_v55  ;;  %v3327_v55 = vld [vmem:[#allocation4 + $0x38] sm:$0xff]  ;;  %v7151_v25 = vld [vmem:[#allocation38_spill] sm:$0xff]  ;;  %4881 = vpow2.f32 %v3176_v60  ;;  %v7163_v60 = vsub.f32 %v7161_v56, %v7162_v33 }
 0xaad   : > { %2606 = vst [vmem:[#allocation4 + $0xc0] sm:$0xff] %v6707_v19  ;;  %v3174_v36 = vmul.f32 1.442695, %v7149_v53  ;;  %v7152_v31 = vsub.f32 %v7150_v12, %v7151_v25  ;;  %v3331_v12 = vld [vmem:[#allocation4 + $0x78] sm:$0xff] }
 0xaae   : > { %2605 = vst [vmem:[#allocation4 + $0xb0] sm:$0xff] %v6709_v58  ;;  %v2575_v48 = vpop.xlane.xlu0 %2574  ;;  %v3180_v45 = vmul.f32 1.442695, %v7163_v60  ;;  %v3333_v56 = vld [vmem:[#allocation4 + $0x98] sm:$0xff] }
 0xaaf   : > { %v6715_v49 = vadd.f32 %v2575_v48, %v2544_v38  ;;  %v2573_v26 = vpop.xlane.xlu1 %2572  ;;  %v3172_v38 = vmul.f32 1.442695, %v7152_v31  ;;  %v6751_v48 = vpop.eup %4873  ;;  %4883 = vpow2.f32 %v3174_v36 }
 0xab0   : > { %v6717_v18 = vadd.f32 %v2573_v26, %v2543_v42  ;;  %v3326_v42 = vld [vmem:[#allocation4 + $0x28] sm:$0xff]  ;;  %v3343_v26 = vmul.f32 %v6743_v14, %v3327_v55  ;;  %v6754_v30 = vpop.eup %4875 }
 0xab1   : > { %2608 = vst [vmem:[#allocation4 + $0xe0] sm:$0xff] %v6715_v49  ;;  %4885 = vpow2.f32 %v3172_v38  ;;  %v3342_v11 = vmul.f32 %v6751_v48, %v3326_v42  ;;  %v3330_v38 = vld [vmem:[#allocation4 + $0x68] sm:$0xff]  ;;  %v7164_v42 = vsub.f32 %v6587_v44, %v6601_v32 }
 0xab2   : > { %2607 = vst [vmem:[#allocation4 + $0xd0] sm:$0xff] %v6717_v18  ;;  %v6765_v50 = vpop.eup %4877  ;;  %v3328_v32 = vld [vmem:[#allocation4 + $0x48] sm:$0xff] }
 0xab3   : > { %v2577_v27 = vpop.xlane.xlu1 %2576  ;;  %v3340_v53 = vmul.f32 %v6765_v50, %v3324_v20  ;;  %v6781_v36 = vpop.eup %4879 }
 0xab4   : > { %v6722_v47 = vadd.f32 %v2577_v27, %v2545_v16  ;;  %v7153_v16 = vld [vmem:[#allocation48_spill] sm:$0xff] }
 0xab5   : > { %v7154_v27 = vsub.f32 %v6568_v5, %v7153_v16  ;;  %v3341_v5 = vmul.f32 %v6754_v30, %v3325_v21  ;;  %v7165_v16 = vsub.f32 %v6585_v46, %v6598_v43  ;;  %v3194_v43 = vmul.f32 1.442695, %v3163_v4 }
 0xab6   : > { %2609 = vst [vmem:[#allocation4 + $0xf0] sm:$0xff] %v6722_v47  ;;  %v6783_v25 = vpop.eup %4881 }
 0xab7   : > { %v3186_v10 = vmul.f32 1.442695, %v7154_v27  ;;  %v3188_v27 = vmul.f32 1.442695, %v7165_v16  ;;  %v3346_v21 = vmul.f32 %v6783_v25, %v3330_v38  ;;  %v3337_v16 = vld [vmem:[#allocation4 + $0xd8] sm:$0xff] }
 0xab9   : > { %4887 = vpow2.f32 %v3186_v10  ;;  %v3347_v10 = vmul.f32 %v6781_v36, %v3331_v12 }
 0xaba   : > { %4889 = vpow2.f32 %v3184_v22 }
 0xabb   : > { %4891 = vpow2.f32 %v3182_v34 }
 0xabc   : > { %4893 = vpow2.f32 %v3180_v45 }
 0xae8   : > { %v3363_v40 = vpop.xlane.xlu1 %3362 }
 0xae9   : > { %v6762_v24 = vadd.f32 %v3363_v40, %v3343_v26  ;;  %v3190_v26 = vmul.f32 1.442695, %v7164_v42  ;;  %v6796_v40 = vpop.eup %4883 }
 0xaea   : > { %v3361_v39 = vpop.xlane.xlu0 %3360  ;;  %v6799_v28 = vpop.eup %4885 }
 0xaeb   : > { %3407 = vst [vmem:[#allocation4 + $0x38] sm:$0xff] %v6762_v24  ;;  %v6768_v61 = vadd.f32 %v3361_v39, %v3342_v11  ;;  %4895 = vpow2.f32 %v3190_v26  ;;  %v3192_v11 = vmul.f32 1.442695, %v3162_v0  ;;  %v3345_v39 = vmul.f32 %v6796_v40, %v3329_v35  ;;  %v6813_v20 = vpop.eup %4887 }
 0xaec   : > { %v3359_v17 = vpop.xlane.xlu1 %3358  ;;  %4897 = vpow2.f32 %v3188_v27  ;;  %v6817_v4 = vpop.eup %4889  ;;  %v3351_v41 = vmul.f32 %v6813_v20, %v3335_v1 }
 0xaed   : > { %3406 = vst [vmem:[#allocation4 + $0x28] sm:$0xff] %v6768_v61  ;;  %v6778_v54 = vadd.f32 %v3359_v17, %v3341_v5  ;;  %v3344_v5 = vmul.f32 %v6799_v28, %v3328_v32  ;;  %4899 = vpow2.f32 %v3194_v43  ;;  %v6825_v0 = vpop.eup %4891  ;;  %v3350_v34 = vmul.f32 %v6817_v4, %v3334_v37 }
 0xaee   : > { %v3357_v55 = vpop.xlane.xlu0 %3356  ;;  %4901 = vpow2.f32 %v3192_v11  ;;  %v6829_v33 = vpop.eup %4893  ;;  %v3349_v12 = vmul.f32 %v6825_v0, %v3333_v56 }
 0xaef   : > { %3405 = vst [vmem:[#allocation4 + $0x18] sm:$0xff] %v6778_v54  ;;  %v6786_v31 = vadd.f32 %v3357_v55, %v3340_v53  ;;  %v3332_v53 = vld [vmem:[#allocation4 + $0x88] sm:$0xff]  ;;  %4903 = vrcp.f32 %v6662_v7  ;;  %v3592_v7 = vld [vmem:[#allocation2 + $0x38] sm:$0xff] }
 0xaf0   : > { %v3348_v42 = vmul.f32 %v6829_v33, %v3332_v53  ;;  %4905 = vrcp.f32 %v6667_v52 }
 0xaf1   : > { %3404 = vst [vmem:[#allocation4 + $0x8] sm:$0xff] %v6786_v31  ;;  %4907 = vrcp.f32 %v6669_v59 }
 0xaf2   : > { %v3371_v13 = vpop.xlane.xlu1 %3370  ;;  %4909 = vrcp.f32 %v6677_v63  ;;  %v3590_v63 = vld [vmem:[#allocation2 + $0x18] sm:$0xff] }
 0xaf3   : > { %v3369_v22 = vpop.xlane.xlu0 %3368  ;;  %v6801_v44 = vadd.f32 %v3371_v13, %v3347_v10  ;;  %v3336_v13 = vld [vmem:[#allocation4 + $0xc8] sm:$0xff]  ;;  %4911 = vrcp.f32 %v6768_v61 }
 0xaf4   : > { %v6806_v46 = vadd.f32 %v3369_v22, %v3346_v21  ;;  %4913 = vrcp.f32 %v6786_v31 }
 0xaf5   : > { %3411 = vst [vmem:[#allocation4 + $0x78] sm:$0xff] %v6801_v44  ;;  %v6837_v38 = vpop.eup %4895  ;;  %4915 = vrcp.f32 %v6762_v24 }
 0xaf6   : > { %3410 = vst [vmem:[#allocation4 + $0x68] sm:$0xff] %v6806_v46  ;;  %v3367_v62 = vpop.xlane.xlu1 %3366  ;;  %v6841_v27 = vpop.eup %4897  ;;  %v3353_v22 = vmul.f32 %v6837_v38, %v3337_v16  ;;  %4917 = vrcp.f32 %v6778_v54 }
 0xaf7   : > { %v3365_v6 = vpop.xlane.xlu0 %3364  ;;  %v6819_v15 = vadd.f32 %v3367_v62, %v3345_v39  ;;  %v6849_v32 = vpop.eup %4899  ;;  %v3352_v43 = vmul.f32 %v6841_v27, %v3336_v13  ;;  %v3339_v39 = vld [vmem:[#allocation4 + $0xf8] sm:$0xff]  ;;  %4919 = vrcp.f32 %v6675_v9 }
 0xaf8   : > { %v6821_v57 = vadd.f32 %v3365_v6, %v3344_v5  ;;  %v6853_v5 = vpop.eup %4901  ;;  %v3338_v6 = vld [vmem:[#allocation4 + $0xe8] sm:$0xff]  ;;  %4921 = vrcp.f32 %v6683_v8  ;;  %v3608_v8 = vmul.f32 %v6743_v14, %v3592_v7  ;;  %v4968_v14 = vld [vmem:[#allocation2] sm:$0xff] }
 0xaf9   : > { %3409 = vst [vmem:[#allocation4 + $0x58] sm:$0xff] %v6819_v15  ;;  %4923 = vrcp.f32 %v6685_v51 }
 0xafa   : > { %3408 = vst [vmem:[#allocation4 + $0x48] sm:$0xff] %v6821_v57  ;;  %v3379_v17 = vpop.xlane.xlu1 %3378  ;;  %4925 = vrcp.f32 %v6693_v29  ;;  %v4967_v29 = vld [vmem:[#allocation2 + $0x20] sm:$0xff] }
 0xafb   : > { %v3377_v60 = vpop.xlane.xlu0 %3376  ;;  %v6831_v45 = vadd.f32 %v3379_v17, %v3351_v41  ;;  %v3355_v41 = vmul.f32 %v6849_v32, %v3339_v39  ;;  %4927 = vrcp.f32 %v6806_v46 }
 0xafc   : > { %v6833_v55 = vadd.f32 %v3377_v60, %v3350_v34  ;;  %v3354_v34 = vmul.f32 %v6853_v5, %v3338_v6  ;;  %4929 = vrcp.f32 %v6821_v57 }
 0xafd   : > { %3415 = vst [vmem:[#allocation4 + $0xb8] sm:$0xff] %v6831_v45  ;;  %4931 = vrcp.f32 %v6801_v44  ;;  %v4969_v44 = vld [vmem:[#allocation2 + $0x30] sm:$0xff] }
 0xafe   : > { %3414 = vst [vmem:[#allocation4 + $0xa8] sm:$0xff] %v6833_v55  ;;  %v3375_v26 = vpop.xlane.xlu1 %3374  ;;  %4933 = vrcp.f32 %v6819_v15  ;;  %v4970_v15 = vld [vmem:[#allocation2 + $0x10] sm:$0xff] }
 0xaff   : > { %v3373_v10 = vpop.xlane.xlu0 %3372  ;;  %v6843_v21 = vadd.f32 %v3375_v26, %v3349_v12  ;;  %v3591_v12 = vld [vmem:[#allocation2 + $0x28] sm:$0xff]  ;;  %v4904_v26 = vpop.eup %4903  ;;  %4935 = vrcp.f32 %v6691_v3 }
 0xb00   : > { %v6845_v35 = vadd.f32 %v3373_v10, %v3348_v42  ;;  %v3589_v42 = vld [vmem:[#allocation2 + $0x8] sm:$0xff]  ;;  %v4906_v52 = vpop.eup %4905  ;;  %v3607_v59 = vmul.f32 %v6751_v48, %v3591_v12  ;;  %v3606_v48 = vmul.f32 %v6754_v30, %v3590_v63  ;;  %4937 = vrcp.f32 %v6699_v2  ;;  %v3596_v63 = vld [vmem:[#allocation2 + $0x78] sm:$0xff] }
 0xb01   : > { %3413 = vst [vmem:[#allocation4 + $0x98] sm:$0xff] %v6843_v21  ;;  %v4908_v61 = vpop.eup %4907  ;;  %v3605_v54 = vmul.f32 %v6765_v50, %v3589_v42  ;;  %v3769_v50 = vmul.f32 %v4967_v29, %v4906_v52  ;;  %v3767_v42 = vmul.f32 %v4970_v15, %v4904_v26  ;;  %v3593_v52 = vld [vmem:[#allocation2 + $0x48] sm:$0xff]  ;;  %4939 = vrcp.f32 %v6701_v23 }
 0xb02   : > { %3412 = vst [vmem:[#allocation4 + $0x88] sm:$0xff] %v6845_v35  ;;  %v3383_v11 = vpop.xlane.xlu1 %3382  ;;  %v4910_v31 = vpop.eup %4909  ;;  %4941 = vrcp.f32 %v6709_v58  ;;  %v3612_v58 = vmul.f32 %v6781_v36, %v3596_v63  ;;  %v4972_v36 = vld [vmem:[#allocation2 + $0x40] sm:$0xff] }
 0xb03   : > { %v3381_v62 = vpop.xlane.xlu0 %3380  ;;  %v6855_v1 = vadd.f32 %v3383_v11, %v3353_v22  ;;  %v4912_v10 = vpop.eup %4911  ;;  %4943 = vrcp.f32 %v6833_v55 }
 0xb04   : > { %v6857_v37 = vadd.f32 %v3381_v62, %v3352_v43  ;;  %v4914_v22 = vpop.eup %4913  ;;  %v3765_v62 = vmul.f32 %v4968_v14, %v4908_v61  ;;  %4945 = vrcp.f32 %v6845_v35 }
 0xb05   : > { %3417 = vst [vmem:[#allocation4 + $0xd8] sm:$0xff] %v6855_v1  ;;  %v4916_v39 = vpop.eup %4915  ;;  %4947 = vrcp.f32 %v6831_v45 }
 0xb06   : > { %3416 = vst [vmem:[#allocation4 + $0xc8] sm:$0xff] %v6857_v37  ;;  %v3387_v17 = vpop.xlane.xlu1 %3386 }
 0xb07   : > { %v3385_v56 = vpop.xlane.xlu0 %3384  ;;  %v6863_v60 = vadd.f32 %v3387_v17, %v3355_v41  ;;  %v4918_v41 = vpop.eup %4917  ;;  %4949 = vrcp.f32 %v6843_v21  ;;  %v4973_v21 = vld [vmem:[#allocation2 + $0x70] sm:$0xff] }
 0xb08   : > { %v6865_v53 = vadd.f32 %v3385_v56, %v3354_v34  ;;  %v3771_v34 = vmul.f32 %v4969_v44, %v4910_v31  ;;  %v3595_v56 = vld [vmem:[#allocation2 + $0x68] sm:$0xff] }
 0xb09   : > { %3419 = vst [vmem:[#allocation4 + $0xf8] sm:$0xff] %v6863_v60  ;;  %v3611_v2 = vmul.f32 %v6783_v25, %v3595_v56 }
 0xb0a   : > { %3418 = vst [vmem:[#allocation4 + $0xe8] sm:$0xff] %v6865_v53 }
 0xb32   : > { %v4518_v24 = vpop.f32.mrb[16].mxu0 }
 0xb33   : > { %v3623_v9 = vadd.f32 %v4518_v24, %v3607_v59  ;;  %v3526_v16 = vpop.f32.mrb[17].mxu0  ;;  %v4920_v59 = vpop.eup %4919  ;;  %4951 = vrcp.f32 %v6707_v19 }
 0xb34   : > { %v3621_v51 = vadd.f32 %v3605_v54, %v3526_v16  ;;  %v4519_v13 = vpop.f32.mrb[18].mxu0  ;;  %v4922_v61 = vpop.eup %4921  ;;  %v3594_v54 = vld [vmem:[#allocation2 + $0x58] sm:$0xff]  ;;  %4953 = vrcp.f32 %v6715_v49 }
 0xb35   : > { %3639 = vst [vmem:[#allocation2 + $0x28] sm:$0xff] %v3623_v9  ;;  %v3770_v43 = vmul.f32 %v4912_v10, %v3623_v9  ;;  %v3624_v11 = vadd.f32 %v4519_v13, %v3608_v8  ;;  %v3529_v46 = vpop.f32.mrb[19].mxu0  ;;  %v4924_v31 = vpop.eup %4923  ;;  %v3609_v9 = vmul.f32 %v6799_v28, %v3593_v52  ;;  %v3610_v13 = vmul.f32 %v6796_v40, %v3594_v54  ;;  %v4971_v28 = vld [vmem:[#allocation2 + $0x60] sm:$0xff] }
 0xb36   : > { %3637 = vst [vmem:[#allocation2 + $0x8] sm:$0xff] %v3621_v51  ;;  %v3766_v57 = vmul.f32 %v4914_v22, %v3621_v51  ;;  %v3622_v6 = vadd.f32 %v3606_v48, %v3529_v46  ;;  %v4926_v23 = vpop.eup %4925  ;;  %v3777_v48 = vmul.f32 %v4971_v28, %v4922_v61  ;;  %v3599_v46 = vld [vmem:[#allocation2 + $0xa8] sm:$0xff]  ;;  %4955 = vrcp.f32 %v6717_v18 }
 0xb37   : > { %v4134_v30 = vpack.c.bf16 %v3770_v43, %v3769_v50  ;;  %3640 = vst [vmem:[#allocation2 + $0x38] sm:$0xff] %v3624_v11  ;;  %v3772_v17 = vmul.f32 %v4916_v39, %v3624_v11  ;;  %v4928_v10 = vpop.eup %4927  ;;  %v3773_v43 = vmul.f32 %v4972_v36, %v4920_v59  ;;  %v3779_v14 = vmul.f32 %v4973_v21, %v4926_v23  ;;  %v3602_v36 = vld [vmem:[#allocation2 + $0xd8] sm:$0xff] }
 0xb38   : > { %v4132_v12 = vpack.c.bf16 %v3766_v57, %v3765_v62  ;;  %3638 = vst [vmem:[#allocation2 + $0x18] sm:$0xff] %v3622_v6  ;;  %v3768_v7 = vmul.f32 %v4918_v41, %v3622_v6  ;;  %v4930_v55 = vpop.eup %4929  ;;  %v3597_v57 = vld [vmem:[#allocation2 + $0x88] sm:$0xff]  ;;  %v4974_v41 = vld [vmem:[#allocation2 + $0x50] sm:$0xff]  ;;  %4957 = vrcp.f32 %v6722_v47  ;;  %v3615_v56 = vmul.f32 %v6817_v4, %v3599_v46 }
 0xb39   : > { %3895 = vst [vmem:[%s5090_s27 + $0x10] sm:$0xff] %v4134_v30  ;;  %v4135_v3 = vpack.c.bf16 %v3772_v17, %v3771_v34  ;;  %v4932_v50 = vpop.eup %4931  ;;  %v3775_v30 = vmul.f32 %v4974_v41, %v4924_v31  ;;  %v3600_v34 = vld [vmem:[#allocation2 + $0xb8] sm:$0xff]  ;;  %4959 = vrcp.f32 %v6865_v53  ;;  %v4979_v41 = vld [vmem:[#allocation2 + $0xe0] sm:$0xff] }
 0xb3a   : > { %3893 = vst [vmem:[%s5090_s27] sm:$0xff] %v4132_v12  ;;  %v4133_v24 = vpack.c.bf16 %v3768_v7, %v3767_v42  ;;  %v4934_v39 = vpop.eup %4933  ;;  %v3598_v12 = vld [vmem:[#allocation2 + $0x98] sm:$0xff]  ;;  %v3613_v7 = vmul.f32 %v6829_v33, %v3597_v57  ;;  %4961 = vrcp.f32 %v6857_v37  ;;  %v4975_v33 = vld [vmem:[#allocation2 + $0xa0] sm:$0xff] }
 0xb3b   : > { %3896 = vst [vmem:[%s5090_s27 + $0x18] sm:$0xff] %v4135_v3  ;;  %v4522_v26 = vpop.f32.mrb[20].mxu0  ;;  %v4936_v6 = vpop.eup %4935  ;;  %v3616_v3 = vmul.f32 %v6813_v20, %v3600_v34  ;;  %4963 = vrcp.f32 %v6863_v60  ;;  %v3614_v53 = vmul.f32 %v6825_v0, %v3598_v12  ;;  %v4976_v20 = vld [vmem:[#allocation2 + $0x80] sm:$0xff]  ;;  %v4977_v0 = vld [vmem:[#allocation2 + $0xb0] sm:$0xff] }
 0xb3c   : > { %3894 = vst [vmem:[%s5090_s27 + $0x8] sm:$0xff] %v4133_v24  ;;  %v3627_v16 = vadd.f32 %v4522_v26, %v3611_v2  ;;  %v3542_v8 = vpop.f32.mrb[21].mxu0  ;;  %v4938_v17 = vpop.eup %4937  ;;  %4965 = vrcp.f32 %v6855_v1 }
 0xb3d   : > { %v3625_v25 = vadd.f32 %v3609_v9, %v3542_v8  ;;  %v4523_v51 = vpop.f32.mrb[22].mxu0  ;;  %v4940_v15 = vpop.eup %4939  ;;  %v3785_v2 = vmul.f32 %v4975_v33, %v4938_v17  ;;  %v3781_v9 = vmul.f32 %v4976_v20, %v4936_v6 }
 0xb3e   : > { %3643 = vst [vmem:[#allocation2 + $0x68] sm:$0xff] %v3627_v16  ;;  %v3778_v22 = vmul.f32 %v4928_v10, %v3627_v16  ;;  %v3628_v35 = vadd.f32 %v4523_v51, %v3612_v58  ;;  %v3545_v29 = vpop.f32.mrb[23].mxu0  ;;  %v4942_v52 = vpop.eup %4941  ;;  %v3603_v16 = vld [vmem:[#allocation2 + $0xe8] sm:$0xff] }
 0xb3f   : > { %3641 = vst [vmem:[#allocation2 + $0x48] sm:$0xff] %v3625_v25  ;;  %v3774_v45 = vmul.f32 %v4930_v55, %v3625_v25  ;;  %v3626_v11 = vadd.f32 %v3610_v13, %v3545_v29  ;;  %v4944_v63 = vpop.eup %4943  ;;  %v3787_v10 = vmul.f32 %v4977_v0, %v4942_v52  ;;  %v3601_v25 = vld [vmem:[#allocation2 + $0xc8] sm:$0xff]  ;;  %v4978_v55 = vld [vmem:[#allocation2 + $0x90] sm:$0xff] }
 0xb40   : > { %v4138_v40 = vpack.c.bf16 %v3778_v22, %v3777_v48  ;;  %3644 = vst [vmem:[#allocation2 + $0x78] sm:$0xff] %v3628_v35  ;;  %v3780_v62 = vmul.f32 %v4932_v50, %v3628_v35  ;;  %v4946_v24 = vpop.eup %4945  ;;  %v3783_v28 = vmul.f32 %v4978_v55, %v4940_v15  ;;  %v3604_v22 = vld [vmem:[#allocation2 + $0xf8] sm:$0xff]  ;;  %v3619_v50 = vmul.f32 %v6853_v5, %v3603_v16 }
 0xb41   : > { %v4136_v19 = vpack.c.bf16 %v3774_v45, %v3773_v43  ;;  %3642 = vst [vmem:[#allocation2 + $0x58] sm:$0xff] %v3626_v11  ;;  %v3776_v44 = vmul.f32 %v4934_v39, %v3626_v11  ;;  %v4948_v26 = vpop.eup %4947  ;;  %v3617_v46 = vmul.f32 %v6841_v27, %v3601_v25 }
 0xb42   : > { %3899 = vst [vmem:[%s5090_s27 + $0x30] sm:$0xff] %v4138_v40  ;;  %v4139_v49 = vpack.c.bf16 %v3780_v62, %v3779_v14  ;;  %v4950_v8 = vpop.eup %4949  ;;  %v3620_v14 = vmul.f32 %v6849_v32, %v3604_v22 }
 0xb43   : > { %3897 = vst [vmem:[%s5090_s27 + $0x20] sm:$0xff] %v4136_v19  ;;  %v4137_v18 = vpack.c.bf16 %v3776_v44, %v3775_v30  ;;  %v4526_v42 = vpop.f32.mrb[24].mxu0  ;;  %v4952_v51 = vpop.eup %4951  ;;  %v3618_v19 = vmul.f32 %v6837_v38, %v3602_v36  ;;  %v4981_v38 = vld [vmem:[#allocation2 + $0xf0] sm:$0xff] }
 0xb44   : > { %3900 = vst [vmem:[%s5090_s27 + $0x38] sm:$0xff] %v4139_v49  ;;  %v3631_v59 = vadd.f32 %v4526_v42, %v3615_v56  ;;  %v3558_v47 = vpop.f32.mrb[25].mxu0  ;;  %v4954_v35 = vpop.eup %4953  ;;  %v4980_v49 = vld [vmem:[#allocation2 + $0xc0] sm:$0xff] }
 0xb45   : > { %3898 = vst [vmem:[%s5090_s27 + $0x28] sm:$0xff] %v4137_v18  ;;  %v3629_v4 = vadd.f32 %v3613_v7, %v3558_v47  ;;  %v4527_v61 = vpop.f32.mrb[26].mxu0  ;;  %v4956_v43 = vpop.eup %4955  ;;  %v3793_v30 = vmul.f32 %v4979_v41, %v4954_v35  ;;  %v3789_v56 = vmul.f32 %v4980_v49, %v4952_v51 }
 0xb46   : > { %3647 = vst [vmem:[#allocation2 + $0xa8] sm:$0xff] %v3631_v59  ;;  %v3786_v37 = vmul.f32 %v4944_v63, %v3631_v59  ;;  %v3632_v54 = vadd.f32 %v4527_v61, %v3616_v3  ;;  %v3561_v31 = vpop.f32.mrb[27].mxu0  ;;  %v4958_v39 = vpop.eup %4957  ;;  %v4982_v59 = vld [vmem:[#allocation2 + $0xd0] sm:$0xff] }
 0xb47   : > { %3645 = vst [vmem:[#allocation2 + $0x88] sm:$0xff] %v3629_v4  ;;  %v3782_v23 = vmul.f32 %v4946_v24, %v3629_v4  ;;  %v3630_v60 = vadd.f32 %v3614_v53, %v3561_v31  ;;  %v4960_v62 = vpop.eup %4959  ;;  %v3795_v42 = vmul.f32 %v4981_v38, %v4958_v39  ;;  %v3791_v47 = vmul.f32 %v4982_v59, %v4956_v43 }
 0xb48   : > { %v4142_v58 = vpack.c.bf16 %v3786_v37, %v3785_v2  ;;  %3648 = vst [vmem:[#allocation2 + $0xb8] sm:$0xff] %v3632_v54  ;;  %v3788_v1 = vmul.f32 %v4948_v26, %v3632_v54  ;;  %v4962_v5 = vpop.eup %4961 }
 0xb49   : > { %v4140_v13 = vpack.c.bf16 %v3782_v23, %v3781_v9  ;;  %3646 = vst [vmem:[#allocation2 + $0x98] sm:$0xff] %v3630_v60  ;;  %v3784_v48 = vmul.f32 %v4950_v8, %v3630_v60  ;;  %v4964_v27 = vpop.eup %4963 }
 0xb4a   : > { %3903 = vst [vmem:[%s5090_s27 + $0x50] sm:$0xff] %v4142_v58  ;;  %v4143_v29 = vpack.c.bf16 %v3788_v1, %v3787_v10  ;;  %v4966_v15 = vpop.eup %4965 }
 0xb4b   : > { %3901 = vst [vmem:[%s5090_s27 + $0x40] sm:$0xff] %v4140_v13  ;;  %v4141_v45 = vpack.c.bf16 %v3784_v48, %v3783_v28  ;;  %v4530_v11 = vpop.f32.mrb[28].mxu0 }
 0xb4c   : > { %3904 = vst [vmem:[%s5090_s27 + $0x58] sm:$0xff] %v4143_v29  ;;  %v3635_v40 = vadd.f32 %v4530_v11, %v3619_v50  ;;  %v3574_v21 = vpop.f32.mrb[29].mxu0 }
 0xb4d   : > { %3902 = vst [vmem:[%s5090_s27 + $0x48] sm:$0xff] %v4141_v45  ;;  %v3633_v57 = vadd.f32 %v3617_v46, %v3574_v21  ;;  %v4531_v6 = vpop.f32.mrb[30].mxu0 }
 0xb4e   : > { %3651 = vst [vmem:[#allocation2 + $0xe8] sm:$0xff] %v3635_v40  ;;  %v3794_v44 = vmul.f32 %v4960_v62, %v3635_v40  ;;  %v3636_v34 = vadd.f32 %v4531_v6, %v3620_v14  ;;  %v3577_v17 = vpop.f32.mrb[31].mxu0 }
 0xb4f   : > { %3649 = vst [vmem:[#allocation2 + $0xc8] sm:$0xff] %v3633_v57  ;;  %v3790_v32 = vmul.f32 %v4962_v5, %v3633_v57  ;;  %v3634_v12 = vadd.f32 %v3618_v19, %v3577_v17 }
 0xb50   : > { %v4146_v18 = vpack.c.bf16 %v3794_v44, %v3793_v30  ;;  %3652 = vst [vmem:[#allocation2 + $0xf8] sm:$0xff] %v3636_v34  ;;  %v3796_v7 = vmul.f32 %v4964_v27, %v3636_v34 }
 0xb51   : > { %v4144_v52 = vpack.c.bf16 %v3790_v32, %v3789_v56  ;;  %3650 = vst [vmem:[#allocation2 + $0xd8] sm:$0xff] %v3634_v12  ;;  %v3792_v3 = vmul.f32 %v4966_v15, %v3634_v12 }
 0xb52   : > { %3907 = vst [vmem:[%s5090_s27 + $0x70] sm:$0xff] %v4146_v18  ;;  %v4147_v63 = vpack.c.bf16 %v3796_v7, %v3795_v42 }
 0xb53   : > { %3905 = vst [vmem:[%s5090_s27 + $0x60] sm:$0xff] %v4144_v52  ;;  %v4145_v4 = vpack.c.bf16 %v3792_v3, %v3791_v47 }
 0xb54   : > { %3908 = vst [vmem:[%s5090_s27 + $0x78] sm:$0xff] %v4147_v63 }
 0xb55   : > { %3906 = vst [vmem:[%s5090_s27 + $0x68] sm:$0xff] %v4145_v4 }
 0xb56 PF: > { %s25_s1 = sadd.s32 1, %s5015_s1  }
 0xb57   : > { %p22_p6 = scmp.ge.s32.totalorder %s25_s1, 5  }
 0xb59   :  { %24 = sbr.rel (!%p22_p6) target bundleno = 26 (0x1a), region = 80 }

</bundles_post_ra>
